<compile_context>
chip_gen: v5e
topology: v5e:2x2
jax: 0.10.0
libtpu: 0.0.40
codegen_flags: <defaults>
</compile_context>

<pallas_src>
import math
from fractions import Fraction

import numpy as np
import jax
import jax.numpy as jnp
from jax import lax
from jax.experimental import pallas as pl
from jax.experimental.pallas import tpu as pltpu

_RESNET_MEAN = np.array([0.485, 0.456, 0.406], dtype=np.float32)
_RESNET_STD = np.array([0.229, 0.224, 0.225], dtype=np.float32)

_LANE = 128


# ----------------------------------------------------------------------------
# host-side constant construction
# ----------------------------------------------------------------------------
def _bilinear_matrix(in_size, out_size):
    # PyTorch F.interpolate(mode='bilinear', align_corners=False) weights.
    ratio = in_size / out_size
    A = np.zeros((out_size, in_size), dtype=np.float32)
    for d in range(out_size):
        src = max((d + 0.5) * ratio - 0.5, 0.0)
        i0 = min(int(np.floor(src)), in_size - 1)
        i1 = min(i0 + 1, in_size - 1)
        lam = src - i0
        A[d, i0] += 1.0 - lam
        A[d, i1] += lam
    return A


def _round_up(x, m):
    return ((x + m - 1) // m) * m


def init_params(key, in_chans=3, patch_size=4, embed_dim=256):
    k1, k2 = jax.random.split(key)
    K = in_chans * patch_size * patch_size
    # PyTorch Conv2d weight layout (D, C, P, P) -> (K, D), K ordered (c, ph, pw)
    w = jax.random.normal(k1, (embed_dim, in_chans, patch_size, patch_size),
                          jnp.float32) * 0.02
    w_patch = w.reshape(embed_dim, K).T
    b_patch = jax.random.normal(k2, (embed_dim,), jnp.float32) * 0.02
    gamma = jnp.ones((embed_dim,), jnp.float32)    # _net.norm.weight
    beta = jnp.zeros((embed_dim,), jnp.float32)    # _net.norm.bias
    return dict(w_patch=w_patch, b_patch=b_patch, gamma=gamma, beta=beta)


def build_plan(params, image_size, scale_factors, patch_size):
    """Precompute every per-scale constant needed by the fused kernel."""
    if len(scale_factors) <= 0:
        raise ValueError(f"Wrong format of scale_factors: {scale_factors}")
    C, H, W = image_size
    P = patch_size
    K, D = params["w_patch"].shape
    assert C == 3, "resnet normalization stats are 3-channel"
    assert K == C * P * P
    CW = C * W
    CW_pad = _round_up(CW, _LANE)

    # ---- fold (x - mean)/std into the (bf16-quantized) patch-embed weight ----
    pp = P * P
    inv_std = np.repeat(1.0 / _RESNET_STD, pp).astype(np.float32)          # (K,)
    shift = np.repeat(_RESNET_MEAN / _RESNET_STD, pp).astype(np.float32)   # (K,)
    w_patch = np.asarray(params["w_patch"], np.float32)                    # (K, D)
    w_eff_f32 = (w_patch * inv_std[:, None]).astype(jnp.bfloat16).astype(np.float32)
    b_patch = np.asarray(params["b_patch"], np.float32)                    # (D,)
    # fold against the quantized weight so the identity holds in bf16 (review fix)
    b_eff = (b_patch - shift @ w_eff_f32).reshape(1, D)

    scales = []
    for sf in scale_factors:
        frac = sf if isinstance(sf, Fraction) else Fraction(sf).limit_denominator(1 << 20)
        Ho = int(math.floor(H * frac))
        Wo = int(math.floor(W * frac))
        assert Ho % P == 0 and Wo % P == 0, (
            f"scale {sf}: resized size ({Ho},{Wo}) not divisible by patch_size {P}")
        Hp, Wp = Ho // P, Wo // P
        A_h = _bilinear_matrix(H, Ho)          # (Ho, H) f32, rows sum to 1
        A_w = _bilinear_matrix(W, Wo)          # (Wo, W)
        identity = (frac == 1)

        # H-resize fused with the stride-P patch-row selection: AH[ph] = A_h[ph::P]
        AH = np.stack([A_h[ph::P] for ph in range(P)], axis=0)            # (P, Hp, H)

        # W-resize for all channels in one matmul: kron(I_C, A_w^T), zero-padded
        # to a full 128-lane square (skipped entirely for scale 1).
        WC = None
        if not identity:
            WC = np.zeros((CW_pad, CW_pad), np.float32)
            for c in range(C):
                WC[c * W:(c + 1) * W, c * Wo:(c + 1) * Wo] = A_w.T

        # patch-embed weight pre-scattered into per-ph block matrices:
        #   M[ph, c*Wo + wo, wp*D + d] = w_eff[(c, ph, wo % P), d] iff wo // P == wp
        M = np.zeros((P, CW_pad, Wp * D), np.float32)
        for ph in range(P):
            for c in range(C):
                for wo in range(Wo):
                    wp, pw = divmod(wo, P)
                    k = (c * P + ph) * P + pw
                    M[ph, c * Wo + wo, wp * D:(wp + 1) * D] = w_eff_f32[k]

        scales.append(dict(
            Hp=Hp, Wp=Wp, has_wc=not identity, inv_np=float(1.0 / (Hp * Wp)),
            A_h=A_h, A_w=A_w,                                  # for the pure-JAX reference
            wc=None if identity else jnp.asarray(WC, jnp.float32),
            ah=jnp.asarray(AH, jnp.float32),
            m=jnp.asarray(M, jnp.bfloat16),                    # values already bf16-exact
        ))

    return dict(
        C=C, H=H, W=W, P=P, D=D, cw_pad=CW_pad, n_scales=len(scale_factors),
        b_eff=jnp.asarray(b_eff, jnp.float32),
        gamma=jnp.asarray(np.asarray(params["gamma"], np.float32).reshape(1, D)),
        beta=jnp.asarray(np.asarray(params["beta"], np.float32).reshape(1, D)),
        w_eff_f32=jnp.asarray(w_eff_f32),                      # reference check only
        scales=scales,
    )


# ----------------------------------------------------------------------------
# the single fused kernel
# ----------------------------------------------------------------------------
def _make_fused_kernel(scale_meta, P, D):
    inv_ns = np.float32(1.0 / len(scale_meta))

    def kernel(*refs):
        x_ref = refs[0]
        idx = 1
        per_scale = []
        for meta in scale_meta:
            wc_ref = None
            if meta["has_wc"]:
                wc_ref = refs[idx]
                idx += 1
            per_scale.append((wc_ref, refs[idx], refs[idx + 1]))   # (wc, ah, m)
            idx += 2
        b_ref, g_ref, bt_ref, out_ref = refs[idx], refs[idx + 1], refs[idx + 2], refs[idx + 3]

        x = x_ref[0]                                              # (H, CW_pad) f32
        acc = jnp.zeros((1, D), jnp.float32)
        for meta, (wc_ref, ah_ref, m_ref) in zip(scale_meta, per_scale):
            Hp, Wp = meta["Hp"], meta["Wp"]
            # W-axis bilinear resize, all channels in one f32 matmul (skip at scale 1)
            xw = x if wc_ref is None else jnp.dot(
                x, wc_ref[...], preferred_element_type=jnp.float32)          # (H, CW_pad)
            # per patch-row offset ph: fused H-resize + stride-P row select, then
            # patch-embed via the pre-scattered weight (bf16 MXU, f32 accumulation)
            tok = None
            for ph in range(P):
                yph = jnp.dot(ah_ref[ph], xw,
                              preferred_element_type=jnp.float32)            # (Hp, CW_pad)
                term = jnp.dot(yph.astype(jnp.bfloat16), m_ref[ph],
                               preferred_element_type=jnp.float32)           # (Hp, Wp*D)
                tok = term if tok is None else tok + term
            # token mean-pool: sublane sum + 256-aligned static lane segment sums
            rowsum = jnp.sum(tok, axis=0, keepdims=True)                     # (1, Wp*D)
            pooled = rowsum[:, 0:D]
            for wp in range(1, Wp):
                pooled = pooled + rowsum[:, wp * D:(wp + 1) * D]
            pooled = pooled * np.float32(meta["inv_np"]) + b_ref[...]        # bias after pool
            # per-scale LayerNorm (eps 1e-6) + affine, f32
            mu = jnp.mean(pooled, axis=-1, keepdims=True)
            var = jnp.mean(jnp.square(pooled - mu), axis=-1, keepdims=True)
            feat = (pooled - mu) * lax.rsqrt(var + np.float32(1e-6))
            acc = acc + feat * g_ref[...] + bt_ref[...]
        out_ref[0] = acc * inv_ns

    return kernel


def multiscale_forward(image_rgb, plan):
    B, C, H, W = image_rgb.shape
    assert (C, H, W) == (plan["C"], plan["H"], plan["W"])
    P, D, CW_pad = plan["P"], plan["D"], plan["cw_pad"]
    CW = C * W

    # single host-side layout change: NCHW -> (B, H, C*W), zero-padded to 128 lanes
    # so every image load inside the kernel is an unmasked full-lane vld.
    x = jnp.transpose(image_rgb, (0, 2, 1, 3)).reshape(B, H, CW)
    x = jnp.pad(x, ((0, 0), (0, 0), (0, CW_pad - CW)))

    def _const_spec(a):
        return pl.BlockSpec(a.shape, lambda b: (0,) * a.ndim)

    operands = [x]
    in_specs = [pl.BlockSpec((1, H, CW_pad), lambda b: (b, 0, 0))]
    for meta in plan["scales"]:
        if meta["has_wc"]:
            operands.append(meta["wc"])
            in_specs.append(_const_spec(meta["wc"]))
        operands.append(meta["ah"])
        in_specs.append(_const_spec(meta["ah"]))
        operands.append(meta["m"])
        in_specs.append(_const_spec(meta["m"]))
    for name in ("b_eff", "gamma", "beta"):
        operands.append(plan[name])
        in_specs.append(_const_spec(plan[name]))

    out = pl.pallas_call(
        _make_fused_kernel(plan["scales"], P, D),
        out_shape=jax.ShapeDtypeStruct((B, 1, D), jnp.float32),
        grid=(B,),   # v7x: keep >= 2 batch elements so both TensorCores get work
        in_specs=in_specs,
        out_specs=pl.BlockSpec((1, 1, D), lambda b: (b, 0, 0)),
        compiler_params=pltpu.CompilerParams(
            dimension_semantics=("parallel",),
            vmem_limit_bytes=32 * 1024 * 1024,
        ),
    )(*operands)
    return out.reshape(B, D)


# ----------------------------------------------------------------------------
# straightforward jnp mirror (resize -> im2col -> patch-embed -> pool -> LN),
# used only as a numerical cross-check of the fused kernel's algebra.
# ----------------------------------------------------------------------------
def _reference_forward(image_rgb, plan):
    B, C, H, W = image_rgb.shape
    P, D = plan["P"], plan["D"]
    w_eff_bf16 = plan["w_eff_f32"].astype(jnp.bfloat16)
    acc = jnp.zeros((B, D), jnp.float32)
    for meta in plan["scales"]:
        Ah = jnp.asarray(meta["A_h"])
        Aw = jnp.asarray(meta["A_w"])
        Yw = jnp.einsum("bchw,vw->bchv", image_rgb, Aw, precision=lax.Precision.HIGHEST)
        Y = jnp.einsum("oh,bchv->bcov", Ah, Yw, precision=lax.Precision.HIGHEST)
        Hp, Wp = meta["Hp"], meta["Wp"]
        pat = Y.reshape(B, C, Hp, P, Wp, P).transpose(0, 2, 4, 1, 3, 5)
        pat = pat.reshape(B, Hp * Wp, C * P * P)
        tok = jnp.einsum("bnk,kd->bnd", pat.astype(jnp.bfloat16), w_eff_bf16,
                         preferred_element_type=jnp.float32)
        pooled = jnp.mean(tok, axis=1) + plan["b_eff"]
        mu = jnp.mean(pooled, axis=-1, keepdims=True)
        var = jnp.mean(jnp.square(pooled - mu), axis=-1, keepdims=True)
        feat = (pooled - mu) * lax.rsqrt(var + 1e-6)
        acc = acc + feat * plan["gamma"] + plan["beta"]
    return acc / plan["n_scales"]


if __name__ == "__main__":
    key = jax.random.PRNGKey(0)
    k_img, k_param = jax.random.split(key)

    B, C, H, W = 2, 3, 24, 24        # small NCHW image, divisible for all scales
    patch_size = 4
    embed_dim = 256                  # 256-multiple: fills v6e/v7x MXU, still 128-aligned for v5e
    scale_factors = (Fraction(1), Fraction(1, 2), Fraction(1, 3))

    image_rgb = jax.random.uniform(k_img, (B, C, H, W), jnp.float32)
    params = init_params(k_param, in_chans=C, patch_size=patch_size, embed_dim=embed_dim)
    plan = build_plan(params, (C, H, W), scale_factors, patch_size)

    features = multiscale_forward(image_rgb, plan)
    jax.block_until_ready(features)
    assert features.shape == (B, embed_dim)
    assert features.dtype == jnp.float32

    ref = _reference_forward(image_rgb, plan)
    np.testing.assert_allclose(np.asarray(features), np.asarray(ref),
                               rtol=5e-3, atol=5e-3)
    print("KERNEL_OK")
</pallas_src>

<mosaic_0001>
module attributes {stable_mosaic.version = 11 : i64} {
  func.func @kernel(%arg0: i32, %arg1: memref<1x24x128xf32, #tpu.memory_space<vmem>>, %arg2: memref<4x6x24xf32, #tpu.memory_space<vmem>>, %arg3: memref<4x128x1536xbf16, #tpu.memory_space<vmem>>, %arg4: memref<128x128xf32, #tpu.memory_space<vmem>>, %arg5: memref<4x3x24xf32, #tpu.memory_space<vmem>>, %arg6: memref<4x128x768xbf16, #tpu.memory_space<vmem>>, %arg7: memref<128x128xf32, #tpu.memory_space<vmem>>, %arg8: memref<4x2x24xf32, #tpu.memory_space<vmem>>, %arg9: memref<4x128x512xbf16, #tpu.memory_space<vmem>>, %arg10: memref<1x256xf32, #tpu.memory_space<vmem>>, %arg11: memref<1x256xf32, #tpu.memory_space<vmem>>, %arg12: memref<1x256xf32, #tpu.memory_space<vmem>>, %arg13: memref<1x1x256xf32, #tpu.memory_space<vmem>>) attributes {dimension_semantics = [#tpu.dimension_semantics<parallel>], iteration_bounds = array<i64: 2>, scalar_prefetch = 0 : i64, scratch_operands = 0 : i64, tpu.core_type = #tpu.core_type<tc>, window_params = [{transform_indices = @transform_0, window_bounds = array<i64: 1, 24, 128>}, {pipeline_mode = #tpu.pipeline_mode<synchronous>, transform_indices = @transform_1, window_bounds = array<i64: 4, 6, 24>}, {pipeline_mode = #tpu.pipeline_mode<synchronous>, transform_indices = @transform_2, window_bounds = array<i64: 4, 128, 1536>}, {pipeline_mode = #tpu.pipeline_mode<synchronous>, transform_indices = @transform_3, window_bounds = array<i64: 128, 128>}, {pipeline_mode = #tpu.pipeline_mode<synchronous>, transform_indices = @transform_4, window_bounds = array<i64: 4, 3, 24>}, {pipeline_mode = #tpu.pipeline_mode<synchronous>, transform_indices = @transform_5, window_bounds = array<i64: 4, 128, 768>}, {pipeline_mode = #tpu.pipeline_mode<synchronous>, transform_indices = @transform_6, window_bounds = array<i64: 128, 128>}, {pipeline_mode = #tpu.pipeline_mode<synchronous>, transform_indices = @transform_7, window_bounds = array<i64: 4, 2, 24>}, {pipeline_mode = #tpu.pipeline_mode<synchronous>, transform_indices = @transform_8, window_bounds = array<i64: 4, 128, 512>}, {pipeline_mode = #tpu.pipeline_mode<synchronous>, transform_indices = @transform_9, window_bounds = array<i64: 1, 256>}, {pipeline_mode = #tpu.pipeline_mode<synchronous>, transform_indices = @transform_10, window_bounds = array<i64: 1, 256>}, {pipeline_mode = #tpu.pipeline_mode<synchronous>, transform_indices = @transform_11, window_bounds = array<i64: 1, 256>}, {transform_indices = @transform_12, window_bounds = array<i64: 1, 1, 256>}]} {
    %c0 = arith.constant 0 : index
    %c0_0 = arith.constant 0 : index
    %c0_1 = arith.constant 0 : index
    %0 = vector.load %arg1[%c0, %c0_0, %c0_1] : memref<1x24x128xf32, #tpu.memory_space<vmem>>, vector<1x24x128xf32>
    %1 = vector.shape_cast %0 : vector<1x24x128xf32> to vector<24x128xf32>
    %cst = arith.constant 0.000000e+00 : f32
    %2 = vector.broadcast %cst : f32 to vector<1x256xf32>
    %c0_2 = arith.constant 0 : index
    %c0_3 = arith.constant 0 : index
    %c0_4 = arith.constant 0 : index
    %3 = vector.load %arg2[%c0_2, %c0_3, %c0_4] : memref<4x6x24xf32, #tpu.memory_space<vmem>>, vector<1x6x24xf32>
    %4 = vector.shape_cast %3 : vector<1x6x24xf32> to vector<6x24xf32>
    %cst_5 = arith.constant dense<0.000000e+00> : vector<6x128xf32>
    %5 = tpu.matmul %4, %1, %cst_5 {dimension_numbers = #tpu.dot_dimension_numbers<[1], [0], [0], [1], [0, 0, 1, 1], [], []>} : vector<6x24xf32>, vector<24x128xf32>, vector<6x128xf32> -> vector<6x128xf32>
    %6 = arith.truncf %5 : vector<6x128xf32> to vector<6x128xbf16>
    %c0_6 = arith.constant 0 : index
    %c0_7 = arith.constant 0 : index
    %c0_8 = arith.constant 0 : index
    %7 = vector.load %arg3[%c0_6, %c0_7, %c0_8] : memref<4x128x1536xbf16, #tpu.memory_space<vmem>>, vector<1x128x1536xbf16>
    %8 = vector.shape_cast %7 : vector<1x128x1536xbf16> to vector<128x1536xbf16>
    %cst_9 = arith.constant dense<0.000000e+00> : vector<6x1536xf32>
    %9 = tpu.matmul %6, %8, %cst_9 {dimension_numbers = #tpu.dot_dimension_numbers<[1], [0], [0], [1], [0, 0, 1, 1], [], []>} : vector<6x128xbf16>, vector<128x1536xbf16>, vector<6x1536xf32> -> vector<6x1536xf32>
    %c1 = arith.constant 1 : index
    %c0_10 = arith.constant 0 : index
    %c0_11 = arith.constant 0 : index
    %10 = vector.load %arg2[%c1, %c0_10, %c0_11] : memref<4x6x24xf32, #tpu.memory_space<vmem>>, vector<1x6x24xf32>
    %11 = vector.shape_cast %10 : vector<1x6x24xf32> to vector<6x24xf32>
    %cst_12 = arith.constant dense<0.000000e+00> : vector<6x128xf32>
    %12 = tpu.matmul %11, %1, %cst_12 {dimension_numbers = #tpu.dot_dimension_numbers<[1], [0], [0], [1], [0, 0, 1, 1], [], []>} : vector<6x24xf32>, vector<24x128xf32>, vector<6x128xf32> -> vector<6x128xf32>
    %13 = arith.truncf %12 : vector<6x128xf32> to vector<6x128xbf16>
    %c1_13 = arith.constant 1 : index
    %c0_14 = arith.constant 0 : index
    %c0_15 = arith.constant 0 : index
    %14 = vector.load %arg3[%c1_13, %c0_14, %c0_15] : memref<4x128x1536xbf16, #tpu.memory_space<vmem>>, vector<1x128x1536xbf16>
    %15 = vector.shape_cast %14 : vector<1x128x1536xbf16> to vector<128x1536xbf16>
    %cst_16 = arith.constant dense<0.000000e+00> : vector<6x1536xf32>
    %16 = tpu.matmul %13, %15, %cst_16 {dimension_numbers = #tpu.dot_dimension_numbers<[1], [0], [0], [1], [0, 0, 1, 1], [], []>} : vector<6x128xbf16>, vector<128x1536xbf16>, vector<6x1536xf32> -> vector<6x1536xf32>
    %17 = arith.addf %9, %16 : vector<6x1536xf32>
    %c2 = arith.constant 2 : index
    %c0_17 = arith.constant 0 : index
    %c0_18 = arith.constant 0 : index
    %18 = vector.load %arg2[%c2, %c0_17, %c0_18] : memref<4x6x24xf32, #tpu.memory_space<vmem>>, vector<1x6x24xf32>
    %19 = vector.shape_cast %18 : vector<1x6x24xf32> to vector<6x24xf32>
    %cst_19 = arith.constant dense<0.000000e+00> : vector<6x128xf32>
    %20 = tpu.matmul %19, %1, %cst_19 {dimension_numbers = #tpu.dot_dimension_numbers<[1], [0], [0], [1], [0, 0, 1, 1], [], []>} : vector<6x24xf32>, vector<24x128xf32>, vector<6x128xf32> -> vector<6x128xf32>
    %21 = arith.truncf %20 : vector<6x128xf32> to vector<6x128xbf16>
    %c2_20 = arith.constant 2 : index
    %c0_21 = arith.constant 0 : index
    %c0_22 = arith.constant 0 : index
    %22 = vector.load %arg3[%c2_20, %c0_21, %c0_22] : memref<4x128x1536xbf16, #tpu.memory_space<vmem>>, vector<1x128x1536xbf16>
    %23 = vector.shape_cast %22 : vector<1x128x1536xbf16> to vector<128x1536xbf16>
    %cst_23 = arith.constant dense<0.000000e+00> : vector<6x1536xf32>
    %24 = tpu.matmul %21, %23, %cst_23 {dimension_numbers = #tpu.dot_dimension_numbers<[1], [0], [0], [1], [0, 0, 1, 1], [], []>} : vector<6x128xbf16>, vector<128x1536xbf16>, vector<6x1536xf32> -> vector<6x1536xf32>
    %25 = arith.addf %17, %24 : vector<6x1536xf32>
    %c3 = arith.constant 3 : index
    %c0_24 = arith.constant 0 : index
    %c0_25 = arith.constant 0 : index
    %26 = vector.load %arg2[%c3, %c0_24, %c0_25] : memref<4x6x24xf32, #tpu.memory_space<vmem>>, vector<1x6x24xf32>
    %27 = vector.shape_cast %26 : vector<1x6x24xf32> to vector<6x24xf32>
    %cst_26 = arith.constant dense<0.000000e+00> : vector<6x128xf32>
    %28 = tpu.matmul %27, %1, %cst_26 {dimension_numbers = #tpu.dot_dimension_numbers<[1], [0], [0], [1], [0, 0, 1, 1], [], []>} : vector<6x24xf32>, vector<24x128xf32>, vector<6x128xf32> -> vector<6x128xf32>
    %29 = arith.truncf %28 : vector<6x128xf32> to vector<6x128xbf16>
    %c3_27 = arith.constant 3 : index
    %c0_28 = arith.constant 0 : index
    %c0_29 = arith.constant 0 : index
    %30 = vector.load %arg3[%c3_27, %c0_28, %c0_29] : memref<4x128x1536xbf16, #tpu.memory_space<vmem>>, vector<1x128x1536xbf16>
    %31 = vector.shape_cast %30 : vector<1x128x1536xbf16> to vector<128x1536xbf16>
    %cst_30 = arith.constant dense<0.000000e+00> : vector<6x1536xf32>
    %32 = tpu.matmul %29, %31, %cst_30 {dimension_numbers = #tpu.dot_dimension_numbers<[1], [0], [0], [1], [0, 0, 1, 1], [], []>} : vector<6x128xbf16>, vector<128x1536xbf16>, vector<6x1536xf32> -> vector<6x1536xf32>
    %33 = arith.addf %25, %32 : vector<6x1536xf32>
    %cst_31 = arith.constant dense<0.000000e+00> : vector<1536xf32>
    %34 = vector.multi_reduction <add>, %33, %cst_31 [0] : vector<6x1536xf32> to vector<1536xf32>
    %35 = vector.shape_cast %34 : vector<1536xf32> to vector<1x1536xf32>
    %36 = vector.extract_strided_slice %35 {offsets = [0, 0], sizes = [1, 256], strides = [1, 1]} : vector<1x1536xf32> to vector<1x256xf32>
    %37 = vector.extract_strided_slice %35 {offsets = [0, 256], sizes = [1, 256], strides = [1, 1]} : vector<1x1536xf32> to vector<1x256xf32>
    %38 = arith.addf %36, %37 : vector<1x256xf32>
    %39 = vector.extract_strided_slice %35 {offsets = [0, 512], sizes = [1, 256], strides = [1, 1]} : vector<1x1536xf32> to vector<1x256xf32>
    %40 = arith.addf %38, %39 : vector<1x256xf32>
    %41 = vector.extract_strided_slice %35 {offsets = [0, 768], sizes = [1, 256], strides = [1, 1]} : vector<1x1536xf32> to vector<1x256xf32>
    %42 = arith.addf %40, %41 : vector<1x256xf32>
    %43 = vector.extract_strided_slice %35 {offsets = [0, 1024], sizes = [1, 256], strides = [1, 1]} : vector<1x1536xf32> to vector<1x256xf32>
    %44 = arith.addf %42, %43 : vector<1x256xf32>
    %45 = vector.extract_strided_slice %35 {offsets = [0, 1280], sizes = [1, 256], strides = [1, 1]} : vector<1x1536xf32> to vector<1x256xf32>
    %46 = arith.addf %44, %45 : vector<1x256xf32>
    %cst_32 = arith.constant 0.027777778 : f32
    %47 = vector.broadcast %cst_32 : f32 to vector<1x256xf32>
    %48 = arith.mulf %46, %47 : vector<1x256xf32>
    %c0_33 = arith.constant 0 : index
    %c0_34 = arith.constant 0 : index
    %49 = vector.load %arg10[%c0_33, %c0_34] : memref<1x256xf32, #tpu.memory_space<vmem>>, vector<1x256xf32>
    %50 = arith.addf %48, %49 : vector<1x256xf32>
    %cst_35 = arith.constant dense<0.000000e+00> : vector<1xf32>
    %51 = vector.multi_reduction <add>, %50, %cst_35 [1] : vector<1x256xf32> to vector<1xf32>
    %52 = vector.shape_cast %51 : vector<1xf32> to vector<1x1xf32>
    %cst_36 = arith.constant 2.560000e+02 : f32
    %53 = vector.broadcast %cst_36 : f32 to vector<1x1xf32>
    %54 = arith.divf %52, %53 : vector<1x1xf32>
    %55 = vector.broadcast %54 : vector<1x1xf32> to vector<1x256xf32>
    %56 = arith.subf %50, %55 : vector<1x256xf32>
    %57 = arith.mulf %56, %56 : vector<1x256xf32>
    %cst_37 = arith.constant dense<0.000000e+00> : vector<1xf32>
    %58 = vector.multi_reduction <add>, %57, %cst_37 [1] : vector<1x256xf32> to vector<1xf32>
    %59 = vector.shape_cast %58 : vector<1xf32> to vector<1x1xf32>
    %cst_38 = arith.constant 2.560000e+02 : f32
    %60 = vector.broadcast %cst_38 : f32 to vector<1x1xf32>
    %61 = arith.divf %59, %60 : vector<1x1xf32>
    %62 = vector.broadcast %54 : vector<1x1xf32> to vector<1x256xf32>
    %63 = arith.subf %50, %62 : vector<1x256xf32>
    %cst_39 = arith.constant 9.99999997E-7 : f32
    %64 = vector.broadcast %cst_39 : f32 to vector<1x1xf32>
    %65 = arith.addf %61, %64 : vector<1x1xf32>
    %66 = math.rsqrt %65 : vector<1x1xf32>
    %67 = vector.broadcast %66 : vector<1x1xf32> to vector<1x256xf32>
    %68 = arith.mulf %63, %67 : vector<1x256xf32>
    %c0_40 = arith.constant 0 : index
    %c0_41 = arith.constant 0 : index
    %69 = vector.load %arg11[%c0_40, %c0_41] : memref<1x256xf32, #tpu.memory_space<vmem>>, vector<1x256xf32>
    %70 = arith.mulf %68, %69 : vector<1x256xf32>
    %71 = arith.addf %2, %70 : vector<1x256xf32>
    %c0_42 = arith.constant 0 : index
    %c0_43 = arith.constant 0 : index
    %72 = vector.load %arg12[%c0_42, %c0_43] : memref<1x256xf32, #tpu.memory_space<vmem>>, vector<1x256xf32>
    %73 = arith.addf %71, %72 : vector<1x256xf32>
    %c0_44 = arith.constant 0 : index
    %c0_45 = arith.constant 0 : index
    %74 = vector.load %arg4[%c0_44, %c0_45] : memref<128x128xf32, #tpu.memory_space<vmem>>, vector<128x128xf32>
    %cst_46 = arith.constant dense<0.000000e+00> : vector<24x128xf32>
    %75 = tpu.matmul %1, %74, %cst_46 {dimension_numbers = #tpu.dot_dimension_numbers<[1], [0], [0], [1], [0, 0, 1, 1], [], []>} : vector<24x128xf32>, vector<128x128xf32>, vector<24x128xf32> -> vector<24x128xf32>
    %c0_47 = arith.constant 0 : index
    %c0_48 = arith.constant 0 : index
    %c0_49 = arith.constant 0 : index
    %76 = vector.load %arg5[%c0_47, %c0_48, %c0_49] : memref<4x3x24xf32, #tpu.memory_space<vmem>>, vector<1x3x24xf32>
    %77 = vector.shape_cast %76 : vector<1x3x24xf32> to vector<3x24xf32>
    %cst_50 = arith.constant dense<0.000000e+00> : vector<3x128xf32>
    %78 = tpu.matmul %77, %75, %cst_50 {dimension_numbers = #tpu.dot_dimension_numbers<[1], [0], [0], [1], [0, 0, 1, 1], [], []>} : vector<3x24xf32>, vector<24x128xf32>, vector<3x128xf32> -> vector<3x128xf32>
    %79 = arith.truncf %78 : vector<3x128xf32> to vector<3x128xbf16>
    %c0_51 = arith.constant 0 : index
    %c0_52 = arith.constant 0 : index
    %c0_53 = arith.constant 0 : index
    %80 = vector.load %arg6[%c0_51, %c0_52, %c0_53] : memref<4x128x768xbf16, #tpu.memory_space<vmem>>, vector<1x128x768xbf16>
    %81 = vector.shape_cast %80 : vector<1x128x768xbf16> to vector<128x768xbf16>
    %cst_54 = arith.constant dense<0.000000e+00> : vector<3x768xf32>
    %82 = tpu.matmul %79, %81, %cst_54 {dimension_numbers = #tpu.dot_dimension_numbers<[1], [0], [0], [1], [0, 0, 1, 1], [], []>} : vector<3x128xbf16>, vector<128x768xbf16>, vector<3x768xf32> -> vector<3x768xf32>
    %c1_55 = arith.constant 1 : index
    %c0_56 = arith.constant 0 : index
    %c0_57 = arith.constant 0 : index
    %83 = vector.load %arg5[%c1_55, %c0_56, %c0_57] : memref<4x3x24xf32, #tpu.memory_space<vmem>>, vector<1x3x24xf32>
    %84 = vector.shape_cast %83 : vector<1x3x24xf32> to vector<3x24xf32>
    %cst_58 = arith.constant dense<0.000000e+00> : vector<3x128xf32>
    %85 = tpu.matmul %84, %75, %cst_58 {dimension_numbers = #tpu.dot_dimension_numbers<[1], [0], [0], [1], [0, 0, 1, 1], [], []>} : vector<3x24xf32>, vector<24x128xf32>, vector<3x128xf32> -> vector<3x128xf32>
    %86 = arith.truncf %85 : vector<3x128xf32> to vector<3x128xbf16>
    %c1_59 = arith.constant 1 : index
    %c0_60 = arith.constant 0 : index
    %c0_61 = arith.constant 0 : index
    %87 = vector.load %arg6[%c1_59, %c0_60, %c0_61] : memref<4x128x768xbf16, #tpu.memory_space<vmem>>, vector<1x128x768xbf16>
    %88 = vector.shape_cast %87 : vector<1x128x768xbf16> to vector<128x768xbf16>
    %cst_62 = arith.constant dense<0.000000e+00> : vector<3x768xf32>
    %89 = tpu.matmul %86, %88, %cst_62 {dimension_numbers = #tpu.dot_dimension_numbers<[1], [0], [0], [1], [0, 0, 1, 1], [], []>} : vector<3x128xbf16>, vector<128x768xbf16>, vector<3x768xf32> -> vector<3x768xf32>
    %90 = arith.addf %82, %89 : vector<3x768xf32>
    %c2_63 = arith.constant 2 : index
    %c0_64 = arith.constant 0 : index
    %c0_65 = arith.constant 0 : index
    %91 = vector.load %arg5[%c2_63, %c0_64, %c0_65] : memref<4x3x24xf32, #tpu.memory_space<vmem>>, vector<1x3x24xf32>
    %92 = vector.shape_cast %91 : vector<1x3x24xf32> to vector<3x24xf32>
    %cst_66 = arith.constant dense<0.000000e+00> : vector<3x128xf32>
    %93 = tpu.matmul %92, %75, %cst_66 {dimension_numbers = #tpu.dot_dimension_numbers<[1], [0], [0], [1], [0, 0, 1, 1], [], []>} : vector<3x24xf32>, vector<24x128xf32>, vector<3x128xf32> -> vector<3x128xf32>
    %94 = arith.truncf %93 : vector<3x128xf32> to vector<3x128xbf16>
    %c2_67 = arith.constant 2 : index
    %c0_68 = arith.constant 0 : index
    %c0_69 = arith.constant 0 : index
    %95 = vector.load %arg6[%c2_67, %c0_68, %c0_69] : memref<4x128x768xbf16, #tpu.memory_space<vmem>>, vector<1x128x768xbf16>
    %96 = vector.shape_cast %95 : vector<1x128x768xbf16> to vector<128x768xbf16>
    %cst_70 = arith.constant dense<0.000000e+00> : vector<3x768xf32>
    %97 = tpu.matmul %94, %96, %cst_70 {dimension_numbers = #tpu.dot_dimension_numbers<[1], [0], [0], [1], [0, 0, 1, 1], [], []>} : vector<3x128xbf16>, vector<128x768xbf16>, vector<3x768xf32> -> vector<3x768xf32>
    %98 = arith.addf %90, %97 : vector<3x768xf32>
    %c3_71 = arith.constant 3 : index
    %c0_72 = arith.constant 0 : index
    %c0_73 = arith.constant 0 : index
    %99 = vector.load %arg5[%c3_71, %c0_72, %c0_73] : memref<4x3x24xf32, #tpu.memory_space<vmem>>, vector<1x3x24xf32>
    %100 = vector.shape_cast %99 : vector<1x3x24xf32> to vector<3x24xf32>
    %cst_74 = arith.constant dense<0.000000e+00> : vector<3x128xf32>
    %101 = tpu.matmul %100, %75, %cst_74 {dimension_numbers = #tpu.dot_dimension_numbers<[1], [0], [0], [1], [0, 0, 1, 1], [], []>} : vector<3x24xf32>, vector<24x128xf32>, vector<3x128xf32> -> vector<3x128xf32>
    %102 = arith.truncf %101 : vector<3x128xf32> to vector<3x128xbf16>
    %c3_75 = arith.constant 3 : index
    %c0_76 = arith.constant 0 : index
    %c0_77 = arith.constant 0 : index
    %103 = vector.load %arg6[%c3_75, %c0_76, %c0_77] : memref<4x128x768xbf16, #tpu.memory_space<vmem>>, vector<1x128x768xbf16>
    %104 = vector.shape_cast %103 : vector<1x128x768xbf16> to vector<128x768xbf16>
    %cst_78 = arith.constant dense<0.000000e+00> : vector<3x768xf32>
    %105 = tpu.matmul %102, %104, %cst_78 {dimension_numbers = #tpu.dot_dimension_numbers<[1], [0], [0], [1], [0, 0, 1, 1], [], []>} : vector<3x128xbf16>, vector<128x768xbf16>, vector<3x768xf32> -> vector<3x768xf32>
    %106 = arith.addf %98, %105 : vector<3x768xf32>
    %cst_79 = arith.constant dense<0.000000e+00> : vector<768xf32>
    %107 = vector.multi_reduction <add>, %106, %cst_79 [0] : vector<3x768xf32> to vector<768xf32>
    %108 = vector.shape_cast %107 : vector<768xf32> to vector<1x768xf32>
    %109 = vector.extract_strided_slice %108 {offsets = [0, 0], sizes = [1, 256], strides = [1, 1]} : vector<1x768xf32> to vector<1x256xf32>
    %110 = vector.extract_strided_slice %108 {offsets = [0, 256], sizes = [1, 256], strides = [1, 1]} : vector<1x768xf32> to vector<1x256xf32>
    %111 = arith.addf %109, %110 : vector<1x256xf32>
    %112 = vector.extract_strided_slice %108 {offsets = [0, 512], sizes = [1, 256], strides = [1, 1]} : vector<1x768xf32> to vector<1x256xf32>
    %113 = arith.addf %111, %112 : vector<1x256xf32>
    %cst_80 = arith.constant 0.111111112 : f32
    %114 = vector.broadcast %cst_80 : f32 to vector<1x256xf32>
    %115 = arith.mulf %113, %114 : vector<1x256xf32>
    %c0_81 = arith.constant 0 : index
    %c0_82 = arith.constant 0 : index
    %116 = vector.load %arg10[%c0_81, %c0_82] : memref<1x256xf32, #tpu.memory_space<vmem>>, vector<1x256xf32>
    %117 = arith.addf %115, %116 : vector<1x256xf32>
    %cst_83 = arith.constant dense<0.000000e+00> : vector<1xf32>
    %118 = vector.multi_reduction <add>, %117, %cst_83 [1] : vector<1x256xf32> to vector<1xf32>
    %119 = vector.shape_cast %118 : vector<1xf32> to vector<1x1xf32>
    %cst_84 = arith.constant 2.560000e+02 : f32
    %120 = vector.broadcast %cst_84 : f32 to vector<1x1xf32>
    %121 = arith.divf %119, %120 : vector<1x1xf32>
    %122 = vector.broadcast %121 : vector<1x1xf32> to vector<1x256xf32>
    %123 = arith.subf %117, %122 : vector<1x256xf32>
    %124 = arith.mulf %123, %123 : vector<1x256xf32>
    %cst_85 = arith.constant dense<0.000000e+00> : vector<1xf32>
    %125 = vector.multi_reduction <add>, %124, %cst_85 [1] : vector<1x256xf32> to vector<1xf32>
    %126 = vector.shape_cast %125 : vector<1xf32> to vector<1x1xf32>
    %cst_86 = arith.constant 2.560000e+02 : f32
    %127 = vector.broadcast %cst_86 : f32 to vector<1x1xf32>
    %128 = arith.divf %126, %127 : vector<1x1xf32>
    %129 = vector.broadcast %121 : vector<1x1xf32> to vector<1x256xf32>
    %130 = arith.subf %117, %129 : vector<1x256xf32>
    %cst_87 = arith.constant 9.99999997E-7 : f32
    %131 = vector.broadcast %cst_87 : f32 to vector<1x1xf32>
    %132 = arith.addf %128, %131 : vector<1x1xf32>
    %133 = math.rsqrt %132 : vector<1x1xf32>
    %134 = vector.broadcast %133 : vector<1x1xf32> to vector<1x256xf32>
    %135 = arith.mulf %130, %134 : vector<1x256xf32>
    %c0_88 = arith.constant 0 : index
    %c0_89 = arith.constant 0 : index
    %136 = vector.load %arg11[%c0_88, %c0_89] : memref<1x256xf32, #tpu.memory_space<vmem>>, vector<1x256xf32>
    %137 = arith.mulf %135, %136 : vector<1x256xf32>
    %138 = arith.addf %73, %137 : vector<1x256xf32>
    %c0_90 = arith.constant 0 : index
    %c0_91 = arith.constant 0 : index
    %139 = vector.load %arg12[%c0_90, %c0_91] : memref<1x256xf32, #tpu.memory_space<vmem>>, vector<1x256xf32>
    %140 = arith.addf %138, %139 : vector<1x256xf32>
    %c0_92 = arith.constant 0 : index
    %c0_93 = arith.constant 0 : index
    %141 = vector.load %arg7[%c0_92, %c0_93] : memref<128x128xf32, #tpu.memory_space<vmem>>, vector<128x128xf32>
    %cst_94 = arith.constant dense<0.000000e+00> : vector<24x128xf32>
    %142 = tpu.matmul %1, %141, %cst_94 {dimension_numbers = #tpu.dot_dimension_numbers<[1], [0], [0], [1], [0, 0, 1, 1], [], []>} : vector<24x128xf32>, vector<128x128xf32>, vector<24x128xf32> -> vector<24x128xf32>
    %c0_95 = arith.constant 0 : index
    %c0_96 = arith.constant 0 : index
    %c0_97 = arith.constant 0 : index
    %143 = vector.load %arg8[%c0_95, %c0_96, %c0_97] : memref<4x2x24xf32, #tpu.memory_space<vmem>>, vector<1x2x24xf32>
    %144 = vector.shape_cast %143 : vector<1x2x24xf32> to vector<2x24xf32>
    %cst_98 = arith.constant dense<0.000000e+00> : vector<2x128xf32>
    %145 = tpu.matmul %144, %142, %cst_98 {dimension_numbers = #tpu.dot_dimension_numbers<[1], [0], [0], [1], [0, 0, 1, 1], [], []>} : vector<2x24xf32>, vector<24x128xf32>, vector<2x128xf32> -> vector<2x128xf32>
    %146 = arith.truncf %145 : vector<2x128xf32> to vector<2x128xbf16>
    %c0_99 = arith.constant 0 : index
    %c0_100 = arith.constant 0 : index
    %c0_101 = arith.constant 0 : index
    %147 = vector.load %arg9[%c0_99, %c0_100, %c0_101] : memref<4x128x512xbf16, #tpu.memory_space<vmem>>, vector<1x128x512xbf16>
    %148 = vector.shape_cast %147 : vector<1x128x512xbf16> to vector<128x512xbf16>
    %cst_102 = arith.constant dense<0.000000e+00> : vector<2x512xf32>
    %149 = tpu.matmul %146, %148, %cst_102 {dimension_numbers = #tpu.dot_dimension_numbers<[1], [0], [0], [1], [0, 0, 1, 1], [], []>} : vector<2x128xbf16>, vector<128x512xbf16>, vector<2x512xf32> -> vector<2x512xf32>
    %c1_103 = arith.constant 1 : index
    %c0_104 = arith.constant 0 : index
    %c0_105 = arith.constant 0 : index
    %150 = vector.load %arg8[%c1_103, %c0_104, %c0_105] : memref<4x2x24xf32, #tpu.memory_space<vmem>>, vector<1x2x24xf32>
    %151 = vector.shape_cast %150 : vector<1x2x24xf32> to vector<2x24xf32>
    %cst_106 = arith.constant dense<0.000000e+00> : vector<2x128xf32>
    %152 = tpu.matmul %151, %142, %cst_106 {dimension_numbers = #tpu.dot_dimension_numbers<[1], [0], [0], [1], [0, 0, 1, 1], [], []>} : vector<2x24xf32>, vector<24x128xf32>, vector<2x128xf32> -> vector<2x128xf32>
    %153 = arith.truncf %152 : vector<2x128xf32> to vector<2x128xbf16>
    %c1_107 = arith.constant 1 : index
    %c0_108 = arith.constant 0 : index
    %c0_109 = arith.constant 0 : index
    %154 = vector.load %arg9[%c1_107, %c0_108, %c0_109] : memref<4x128x512xbf16, #tpu.memory_space<vmem>>, vector<1x128x512xbf16>
    %155 = vector.shape_cast %154 : vector<1x128x512xbf16> to vector<128x512xbf16>
    %cst_110 = arith.constant dense<0.000000e+00> : vector<2x512xf32>
    %156 = tpu.matmul %153, %155, %cst_110 {dimension_numbers = #tpu.dot_dimension_numbers<[1], [0], [0], [1], [0, 0, 1, 1], [], []>} : vector<2x128xbf16>, vector<128x512xbf16>, vector<2x512xf32> -> vector<2x512xf32>
    %157 = arith.addf %149, %156 : vector<2x512xf32>
    %c2_111 = arith.constant 2 : index
    %c0_112 = arith.constant 0 : index
    %c0_113 = arith.constant 0 : index
    %158 = vector.load %arg8[%c2_111, %c0_112, %c0_113] : memref<4x2x24xf32, #tpu.memory_space<vmem>>, vector<1x2x24xf32>
    %159 = vector.shape_cast %158 : vector<1x2x24xf32> to vector<2x24xf32>
    %cst_114 = arith.constant dense<0.000000e+00> : vector<2x128xf32>
    %160 = tpu.matmul %159, %142, %cst_114 {dimension_numbers = #tpu.dot_dimension_numbers<[1], [0], [0], [1], [0, 0, 1, 1], [], []>} : vector<2x24xf32>, vector<24x128xf32>, vector<2x128xf32> -> vector<2x128xf32>
    %161 = arith.truncf %160 : vector<2x128xf32> to vector<2x128xbf16>
    %c2_115 = arith.constant 2 : index
    %c0_116 = arith.constant 0 : index
    %c0_117 = arith.constant 0 : index
    %162 = vector.load %arg9[%c2_115, %c0_116, %c0_117] : memref<4x128x512xbf16, #tpu.memory_space<vmem>>, vector<1x128x512xbf16>
    %163 = vector.shape_cast %162 : vector<1x128x512xbf16> to vector<128x512xbf16>
    %cst_118 = arith.constant dense<0.000000e+00> : vector<2x512xf32>
    %164 = tpu.matmul %161, %163, %cst_118 {dimension_numbers = #tpu.dot_dimension_numbers<[1], [0], [0], [1], [0, 0, 1, 1], [], []>} : vector<2x128xbf16>, vector<128x512xbf16>, vector<2x512xf32> -> vector<2x512xf32>
    %165 = arith.addf %157, %164 : vector<2x512xf32>
    %c3_119 = arith.constant 3 : index
    %c0_120 = arith.constant 0 : index
    %c0_121 = arith.constant 0 : index
    %166 = vector.load %arg8[%c3_119, %c0_120, %c0_121] : memref<4x2x24xf32, #tpu.memory_space<vmem>>, vector<1x2x24xf32>
    %167 = vector.shape_cast %166 : vector<1x2x24xf32> to vector<2x24xf32>
    %cst_122 = arith.constant dense<0.000000e+00> : vector<2x128xf32>
    %168 = tpu.matmul %167, %142, %cst_122 {dimension_numbers = #tpu.dot_dimension_numbers<[1], [0], [0], [1], [0, 0, 1, 1], [], []>} : vector<2x24xf32>, vector<24x128xf32>, vector<2x128xf32> -> vector<2x128xf32>
    %169 = arith.truncf %168 : vector<2x128xf32> to vector<2x128xbf16>
    %c3_123 = arith.constant 3 : index
    %c0_124 = arith.constant 0 : index
    %c0_125 = arith.constant 0 : index
    %170 = vector.load %arg9[%c3_123, %c0_124, %c0_125] : memref<4x128x512xbf16, #tpu.memory_space<vmem>>, vector<1x128x512xbf16>
    %171 = vector.shape_cast %170 : vector<1x128x512xbf16> to vector<128x512xbf16>
    %cst_126 = arith.constant dense<0.000000e+00> : vector<2x512xf32>
    %172 = tpu.matmul %169, %171, %cst_126 {dimension_numbers = #tpu.dot_dimension_numbers<[1], [0], [0], [1], [0, 0, 1, 1], [], []>} : vector<2x128xbf16>, vector<128x512xbf16>, vector<2x512xf32> -> vector<2x512xf32>
    %173 = arith.addf %165, %172 : vector<2x512xf32>
    %cst_127 = arith.constant dense<0.000000e+00> : vector<512xf32>
    %174 = vector.multi_reduction <add>, %173, %cst_127 [0] : vector<2x512xf32> to vector<512xf32>
    %175 = vector.shape_cast %174 : vector<512xf32> to vector<1x512xf32>
    %176 = vector.extract_strided_slice %175 {offsets = [0, 0], sizes = [1, 256], strides = [1, 1]} : vector<1x512xf32> to vector<1x256xf32>
    %177 = vector.extract_strided_slice %175 {offsets = [0, 256], sizes = [1, 256], strides = [1, 1]} : vector<1x512xf32> to vector<1x256xf32>
    %178 = arith.addf %176, %177 : vector<1x256xf32>
    %cst_128 = arith.constant 2.500000e-01 : f32
    %179 = vector.broadcast %cst_128 : f32 to vector<1x256xf32>
    %180 = arith.mulf %178, %179 : vector<1x256xf32>
    %c0_129 = arith.constant 0 : index
    %c0_130 = arith.constant 0 : index
    %181 = vector.load %arg10[%c0_129, %c0_130] : memref<1x256xf32, #tpu.memory_space<vmem>>, vector<1x256xf32>
    %182 = arith.addf %180, %181 : vector<1x256xf32>
    %cst_131 = arith.constant dense<0.000000e+00> : vector<1xf32>
    %183 = vector.multi_reduction <add>, %182, %cst_131 [1] : vector<1x256xf32> to vector<1xf32>
    %184 = vector.shape_cast %183 : vector<1xf32> to vector<1x1xf32>
    %cst_132 = arith.constant 2.560000e+02 : f32
    %185 = vector.broadcast %cst_132 : f32 to vector<1x1xf32>
    %186 = arith.divf %184, %185 : vector<1x1xf32>
    %187 = vector.broadcast %186 : vector<1x1xf32> to vector<1x256xf32>
    %188 = arith.subf %182, %187 : vector<1x256xf32>
    %189 = arith.mulf %188, %188 : vector<1x256xf32>
    %cst_133 = arith.constant dense<0.000000e+00> : vector<1xf32>
    %190 = vector.multi_reduction <add>, %189, %cst_133 [1] : vector<1x256xf32> to vector<1xf32>
    %191 = vector.shape_cast %190 : vector<1xf32> to vector<1x1xf32>
    %cst_134 = arith.constant 2.560000e+02 : f32
    %192 = vector.broadcast %cst_134 : f32 to vector<1x1xf32>
    %193 = arith.divf %191, %192 : vector<1x1xf32>
    %194 = vector.broadcast %186 : vector<1x1xf32> to vector<1x256xf32>
    %195 = arith.subf %182, %194 : vector<1x256xf32>
    %cst_135 = arith.constant 9.99999997E-7 : f32
    %196 = vector.broadcast %cst_135 : f32 to vector<1x1xf32>
    %197 = arith.addf %193, %196 : vector<1x1xf32>
    %198 = math.rsqrt %197 : vector<1x1xf32>
    %199 = vector.broadcast %198 : vector<1x1xf32> to vector<1x256xf32>
    %200 = arith.mulf %195, %199 : vector<1x256xf32>
    %c0_136 = arith.constant 0 : index
    %c0_137 = arith.constant 0 : index
    %201 = vector.load %arg11[%c0_136, %c0_137] : memref<1x256xf32, #tpu.memory_space<vmem>>, vector<1x256xf32>
    %202 = arith.mulf %200, %201 : vector<1x256xf32>
    %203 = arith.addf %140, %202 : vector<1x256xf32>
    %c0_138 = arith.constant 0 : index
    %c0_139 = arith.constant 0 : index
    %204 = vector.load %arg12[%c0_138, %c0_139] : memref<1x256xf32, #tpu.memory_space<vmem>>, vector<1x256xf32>
    %205 = arith.addf %203, %204 : vector<1x256xf32>
    %cst_140 = arith.constant 0.333333343 : f32
    %206 = vector.broadcast %cst_140 : f32 to vector<1x256xf32>
    %207 = arith.mulf %205, %206 : vector<1x256xf32>
    %c0_141 = arith.constant 0 : index
    %c0_142 = arith.constant 0 : index
    %c0_143 = arith.constant 0 : index
    %208 = vector.load %arg13[%c0_141, %c0_142, %c0_143] : memref<1x1x256xf32, #tpu.memory_space<vmem>>, vector<1x1x256xf32>
    %209 = vector.shape_cast %208 : vector<1x1x256xf32> to vector<1x256xf32>
    %210 = vector.shape_cast %207 : vector<1x256xf32> to vector<1x1x256xf32>
    tpu.vector_store %arg13[%c0_141, %c0_142, %c0_143], %210 {strides = array<i32>} : memref<1x1x256xf32, #tpu.memory_space<vmem>>, vector<1x1x256xf32>,
    return
  }
  func.func @transform_0(%arg0: i32) -> (i32, i32, i32) {
    %c0_i32 = arith.constant 0 : i32
    %c0_i32_0 = arith.constant 0 : i32
    %c0_i32_1 = arith.constant 0 : i32
    return %arg0, %c0_i32, %c0_i32_0 : i32, i32, i32
  }
  func.func @transform_1(%arg0: i32) -> (i32, i32, i32) {
    %c0_i32 = arith.constant 0 : i32
    %c0_i32_0 = arith.constant 0 : i32
    %c0_i32_1 = arith.constant 0 : i32
    %c0_i32_2 = arith.constant 0 : i32
    return %c0_i32, %c0_i32_0, %c0_i32_1 : i32, i32, i32
  }
  func.func @transform_2(%arg0: i32) -> (i32, i32, i32) {
    %c0_i32 = arith.constant 0 : i32
    %c0_i32_0 = arith.constant 0 : i32
    %c0_i32_1 = arith.constant 0 : i32
    %c0_i32_2 = arith.constant 0 : i32
    return %c0_i32, %c0_i32_0, %c0_i32_1 : i32, i32, i32
  }
  func.func @transform_3(%arg0: i32) -> (i32, i32) {
    %c0_i32 = arith.constant 0 : i32
    %c0_i32_0 = arith.constant 0 : i32
    %c0_i32_1 = arith.constant 0 : i32
    return %c0_i32, %c0_i32_0 : i32, i32
  }
  func.func @transform_4(%arg0: i32) -> (i32, i32, i32) {
    %c0_i32 = arith.constant 0 : i32
    %c0_i32_0 = arith.constant 0 : i32
    %c0_i32_1 = arith.constant 0 : i32
    %c0_i32_2 = arith.constant 0 : i32
    return %c0_i32, %c0_i32_0, %c0_i32_1 : i32, i32, i32
  }
  func.func @transform_5(%arg0: i32) -> (i32, i32, i32) {
    %c0_i32 = arith.constant 0 : i32
    %c0_i32_0 = arith.constant 0 : i32
    %c0_i32_1 = arith.constant 0 : i32
    %c0_i32_2 = arith.constant 0 : i32
    return %c0_i32, %c0_i32_0, %c0_i32_1 : i32, i32, i32
  }
  func.func @transform_6(%arg0: i32) -> (i32, i32) {
    %c0_i32 = arith.constant 0 : i32
    %c0_i32_0 = arith.constant 0 : i32
    %c0_i32_1 = arith.constant 0 : i32
    return %c0_i32, %c0_i32_0 : i32, i32
  }
  func.func @transform_7(%arg0: i32) -> (i32, i32, i32) {
    %c0_i32 = arith.constant 0 : i32
    %c0_i32_0 = arith.constant 0 : i32
    %c0_i32_1 = arith.constant 0 : i32
    %c0_i32_2 = arith.constant 0 : i32
    return %c0_i32, %c0_i32_0, %c0_i32_1 : i32, i32, i32
  }
  func.func @transform_8(%arg0: i32) -> (i32, i32, i32) {
    %c0_i32 = arith.constant 0 : i32
    %c0_i32_0 = arith.constant 0 : i32
    %c0_i32_1 = arith.constant 0 : i32
    %c0_i32_2 = arith.constant 0 : i32
    return %c0_i32, %c0_i32_0, %c0_i32_1 : i32, i32, i32
  }
  func.func @transform_9(%arg0: i32) -> (i32, i32) {
    %c0_i32 = arith.constant 0 : i32
    %c0_i32_0 = arith.constant 0 : i32
    %c0_i32_1 = arith.constant 0 : i32
    return %c0_i32, %c0_i32_0 : i32, i32
  }
  func.func @transform_10(%arg0: i32) -> (i32, i32) {
    %c0_i32 = arith.constant 0 : i32
    %c0_i32_0 = arith.constant 0 : i32
    %c0_i32_1 = arith.constant 0 : i32
    return %c0_i32, %c0_i32_0 : i32, i32
  }
  func.func @transform_11(%arg0: i32) -> (i32, i32) {
    %c0_i32 = arith.constant 0 : i32
    %c0_i32_0 = arith.constant 0 : i32
    %c0_i32_1 = arith.constant 0 : i32
    return %c0_i32, %c0_i32_0 : i32, i32
  }
  func.func @transform_12(%arg0: i32) -> (i32, i32, i32) {
    %c0_i32 = arith.constant 0 : i32
    %c0_i32_0 = arith.constant 0 : i32
    %c0_i32_1 = arith.constant 0 : i32
    return %arg0, %c0_i32, %c0_i32_0 : i32, i32, i32
  }
}

</mosaic_0001>

<bundles_post_ra>
// kernel: tpu_custom_call.1
= control target key start
LH: loop header
LB: loop body
LE: loop exit
PB: predicated region body
PF: predicated region fallthrough
CT: control target
= control target key end

     0   :  { %s11726_s0 = inlined_call_operand.hbm [shape: f32[2,24,128], index: 0, kind: input, shape index: {}]   ;;  %s11727_s1 = inlined_call_operand.vmem [shape: f32[4,6,24], index: 1, kind: input, shape index: {}]   ;;  %s11728_s2 = inlined_call_operand.hbm [shape: bf16[4,128,1536], index: 2, kind: input, shape index: {}]   ;;  %s11729_s3 = inlined_call_operand.hbm [shape: f32[128,128], index: 3, kind: input, shape index: {}]   ;;  %s11730_s4 = inlined_call_operand.vmem [shape: f32[4,3,24], index: 4, kind: input, shape index: {}]   ;;  %s11731_s5 = inlined_call_operand.hbm [shape: bf16[4,128,768], index: 5, kind: input, shape index: {}]   ;;  %s11732_s6 = inlined_call_operand.hbm [shape: f32[128,128], index: 6, kind: input, shape index: {}]   ;;  %s11733_s7 = inlined_call_operand.hbm [shape: f32[4,2,24], index: 7, kind: input, shape index: {}]   ;;  %s11734_s8 = inlined_call_operand.hbm [shape: bf16[4,128,512], index: 8, kind: input, shape index: {}]   ;;  %s11735_s9 = inlined_call_operand.hbm [shape: f32[1,256], index: 9, kind: input, shape index: {}]   ;;  %s11736_s10 = inlined_call_operand.hbm [shape: f32[1,256], index: 10, kind: input, shape index: {}]   ;;  %s11737_s11 = inlined_call_operand.hbm [shape: f32[1,256], index: 11, kind: input, shape index: {}]   ;;  %s11738_s12 = inlined_call_operand.hbm [shape: f32[2,1,256], index: 12, kind: output, shape index: {}]  }
   0x1   :  { %11745 = sst [smem:[#allocation28_spill]] %s11727_s1 }
   0x2   :  { %11746 = sst [smem:[#allocation29_spill]] %s11728_s2 }
   0x3   :  { %11747 = sst [smem:[#allocation30_spill]] %s11729_s3 }
   0x4   :  { %11748 = sst [smem:[#allocation31_spill]] %s11730_s4 }
   0x5   :  { %11749 = sst [smem:[#allocation32_spill]] %s11731_s5 }
   0x6   :  { %11750 = sst [smem:[#allocation33_spill]] %s11732_s6 }
   0x7   :  { %11751 = sst [smem:[#allocation34_spill]] %s11733_s7 }
   0x8   :  { %11752 = sst [smem:[#allocation35_spill]] %s11738_s12 }
   0x9   :  { %17 = vsyncpa [#allocation3], 0 }
   0xa   :  { %19 = vsyncpa [#allocation3 + $0x1], 0 }
   0xb   :  { %20 = vsyncpa [#allocation6], 0 }
   0xc   :  { %21 = vsyncpa [#allocation9], 0 }
   0xd   :  { %22 = vsyncpa [#allocation12], 0 }
   0xe   :  { %23 = vsyncpa [#allocation15], 0 }
   0xf   :  { %24 = vsyncpa [#allocation18], 0 }
  0x10   :  { %25 = vsyncpa [#allocation4], 0 }
  0x11   :  { %27 = vsyncpa [#allocation4 + $0x1], 0  ;;  %s11102_s21 = smov 0   ;;  %s11104_s22 = smov 0  }
  0x12   :  { %s11106_s23 = smov 0   ;;  %s11108_s24 = smov 0  }
  0x13 LB: > { %s11753_s2 = sld [smem:[#allocation29_spill]]  ;;  %s11126_s28 = sadd.s32 4294967295, %s11015_s24   ;;  %s11015_s24 = sphi %s11108_s24, %s11775_s24   ;;  %s11011_s23 = sphi %s11106_s23, %s11774_s23   ;;  %s11007_s22 = sphi %s11104_s22, %s11773_s22   ;;  %s11003_s21 = sphi %s11102_s21, %s11772_s21  }
  0x14   : > { %p6896_p0 = scmp.ge.s32.totalorder %s11015_s24, 1  ;;  %p54_p1 = scmp.eq.s32.totalorder %s11126_s28, 0 }
  0x15   : > { %p321_p2 = scmp.lt.s32.totalorder %s11015_s24, 3  ;;  %s11017_s30 = smov [#allocation5]  }
  0x16   : > { %s337_s13 = sshll.u32 %s11017_s30, 4  ;;  %s11756_s5 = sld [smem:[#allocation32_spill]]  ;;  %s338_s13 = int_to_ptr.vmem [resolvable:$true] %s337_s13 }
  0x17   : > { %p11131_p3 = pnand %p6896_p0, %p321_p2  ;;  %s11018_s18 = smov [#allocation8]  }
  0x18   : > { %s368_s19 = sshll.u32 %s11018_s18, 4  ;;  %s11019_s20 = smov 768   ;;  %s369_s19 = int_to_ptr.vmem [resolvable:$true] %s368_s19 }
  0x19   : > { %s335_s27 = sshll.u32 %s11753_s2, 4  ;;  %p10504_p4 = pneg %p11131_p3  ;;  %s336_s27 = int_to_ptr.hbm [resolvable:$true] %s335_s27 }
  0x1a   : > { %s11754_s29 = scalar_select %p11131_p3, 1, 0 }
  0x1b   : > { %p11143_p6 = pnand %p10504_p4, %p54_p1  ;;  %s11020_s25 = smov 48  }
  0x1c   : > { %11755 = sst [smem:[#allocation27_spill]] %s11754_s29  ;;  %s366_s16 = sshll.u32 %s11756_s5, 4  ;;  %s367_s16 = int_to_ptr.hbm [resolvable:$true] %s366_s16 }
  0x1d   : > { %10507 = dma.hbm_to_vmem [thread:$0]  (!%p11143_p6), %s336_s27, 49152, %s338_s13, [#allocation6], %s11019_s20, %s11019_s20, %s11020_s25  }
  0x1e   : > { %s11021_s26 = smov 384   ;;  %s11022_s30 = smov 24  }
  0x1f   : > { %10513 = dma.hbm_to_vmem [thread:$0]  (!%p11143_p6), %s367_s16, 24576, %s369_s19, [#allocation9], %s11021_s26, %s11021_s26, %s11022_s30  }
  0x20   : > { %s11758_s7 = sld [smem:[#allocation34_spill]]  ;;  %s11023_s5 = smov [#allocation11]  }
  0x21   : > { %s396_s12 = sshll.u32 %s11023_s5, 4  ;;  %s423_s1 = sshll.u32 %s11735_s9, 4  ;;  %s397_s12 = int_to_ptr.vmem [resolvable:$true] %s396_s12  ;;  %s424_s1 = int_to_ptr.hbm [resolvable:$true] %s423_s1 }
  0x22   : > { %s11024_s29 = smov 32   ;;  %s11025_s27 = smov 2  }
  0x23   : > { %s11026_s13 = smov [#allocation14]   ;;  %s11759_s3 = sld [smem:[#allocation30_spill]] }
  0x24   : > { %s425_s16 = sshll.u32 %s11026_s13, 4  ;;  %s11027_s5 = smov [#allocation7]   ;;  %s426_s16 = int_to_ptr.vmem [resolvable:$true] %s425_s16 }
  0x25   : > { %10525 = dma.hbm_to_vmem [thread:$0]  (!%p11143_p6), %s424_s1, 32, %s426_s16, [#allocation15]  }
  0x26   : > { %s394_s2 = sshll.u32 %s11758_s7, 4  ;;  %s351_s4 = sshll.u32 %s11027_s5, 4  ;;  %s395_s2 = int_to_ptr.hbm [resolvable:$true] %s394_s2  ;;  %s352_s4 = int_to_ptr.vmem [resolvable:$true] %s351_s4 }
  0x27   : > { %10519 = dma.hbm_to_vmem [thread:$0]  (!%p11143_p6), %s395_s2, 128, %s397_s12, [#allocation12], %s11024_s29, %s11024_s29, %s11025_s27  }
  0x28   : > { %s11760_s6 = sld [smem:[#allocation33_spill]]  ;;  %s11743_s2 = smov 128  }
  0x29   : > { %s349_s25 = sshll.u32 %s11759_s3, 4  ;;  %s11744_s12 = smov 8   ;;  %s350_s25 = int_to_ptr.hbm [resolvable:$true] %s349_s25 }
  0x2a   : > { %10510 = dma.hbm_to_vmem [thread:$0]  (!%p11143_p6), %s350_s25, 2048, %s352_s4, [#allocation6], %s11743_s2, %s11743_s2, %s11744_s12  }
  0x2b   : > { %s11030_s29 = smov [#allocation10]   ;;  %s408_s27 = sshll.u32 %s11734_s8, 4  ;;  %s409_s27 = int_to_ptr.hbm [resolvable:$true] %s408_s27 }
  0x2c   : > { %s382_s15 = sshll.u32 %s11030_s29, 4  ;;  %s11031_s13 = smov [#allocation13]   ;;  %s383_s15 = int_to_ptr.vmem [resolvable:$true] %s382_s15 }
  0x2d   : > { %s410_s16 = sshll.u32 %s11031_s13, 4  ;;  %s435_s25 = sshll.u32 %s11736_s10, 4  ;;  %s411_s16 = int_to_ptr.vmem [resolvable:$true] %s410_s16  ;;  %s436_s25 = int_to_ptr.hbm [resolvable:$true] %s435_s25 }
  0x2e   : > { %s380_s14 = sshll.u32 %s11760_s6, 4  ;;  %s11032_s5 = smov 256   ;;  %s381_s14 = int_to_ptr.hbm [resolvable:$true] %s380_s14 }
  0x2f   : > { %10516 = dma.hbm_to_vmem [thread:$0]  (!%p11143_p6), %s381_s14, 2048, %s383_s15, [#allocation9], %s11743_s2, %s11743_s2, %s11744_s12  }
  0x30   : > { %s11033_s4 = smov 16   ;;  %s11034_s26 = smov [#allocation16]  }
  0x31   : > { %10522 = dma.hbm_to_vmem [thread:$0]  (!%p11143_p6), %s409_s27, 16384, %s411_s16, [#allocation12], %s11032_s5, %s11032_s5, %s11033_s4  }
  0x32   : > { %s437_s30 = sshll.u32 %s11034_s26, 4  ;;  %s447_s15 = sshll.u32 %s11737_s11, 4  ;;  %s438_s30 = int_to_ptr.vmem [resolvable:$true] %s437_s30  ;;  %s448_s15 = int_to_ptr.hbm [resolvable:$true] %s447_s15 }
  0x33   : > { %10528 = dma.hbm_to_vmem [thread:$0]  (!%p11143_p6), %s436_s25, 32, %s438_s30, [#allocation15]  }
  0x34   : > { %s11035_s18 = smov [#allocation17]   ;;  %s6895_s27 = sadd.s32 4294967294, %s11015_s24  }
  0x35   : > { %s449_s1 = sshll.u32 %s11035_s18, 4  ;;  %s11194_s13 = sadd.s32 1, %s11015_s24   ;;  %s450_s1 = int_to_ptr.vmem [resolvable:$true] %s449_s1 }
  0x36   : > { %10531 = dma.hbm_to_vmem [thread:$0]  (!%p11143_p6), %s448_s15, 32, %s450_s1, [#allocation18]  }
  0x37   : > { %s40_s16 = sadd.s32 1, %s11011_s23  ;;  %s37_s19 = ssub.s32 %s11015_s24, %s11194_s13 }
  0x38   : > { %p47_p7 = scmp.ne.s32.totalorder %s11011_s23, %s11007_s22  ;;  %p38_p8 = scmp.eq.s32.totalorder %s37_s19, 0 }
  0x39   : > { %p48_p9 = scmp.eq.s32.totalorder %s11015_s24, 0  ;;  %p53_p10 = scmp.ne.s32.totalorder %s11007_s22, %s11003_s21 }
  0x3a   : > { %p308_p11 = scmp.eq.s32.totalorder %s11126_s28, 1  ;;  %p314_p2 = scmp.eq.s32.totalorder %s6895_s27, 1 }
  0x3b   : > { %s11206_s20 = scalar_select %p38_p8, %s11011_s23, %s40_s16  }
  0x3c   : > { %p49_p12 = por %p48_p9, %p47_p7  ;;  %p11210_p13 = por %p54_p1, %p53_p10 }
  0x3d   : > { %p11214_p0 = por %p308_p11, %p47_p7  ;;  %p10549_p4 = scmp.lt.s32.totalorder %s11015_s24, 2 }
  0x3e   : > { %s460_s5 = sand.u32 1, %s11011_s23   ;;  %p11220_p6 = por %p314_p2, %p53_p10 }
  0x3f   : > { %s10461_s26 = smul.u32 24, %s460_s5  ;;  %p11224_p8 = pnand %p10549_p4, %p49_p12 }
  0x40   : > { %s10462_s14 = smul.u32 24, %s11015_s24  ;;  %s461_s19 = scalar_lea.sflag [#allocation3], %s460_s5 }
  0x41   : > { %s464_s1 = scalar_lea.vmem [#allocation2], %s10461_s26  ;;  %p10903_p9 = pneg %p11224_p8 }
  0x42   : > { %s469_s18 = scalar_lea.hbm %s11726_s0, %s10462_s14  ;;  %s472_s16 = sshll.u32 %s464_s1, 4  ;;  %s473_s16 = int_to_ptr.vmem [resolvable:$true] %s472_s16 }
  0x43   : > { %s470_s27 = sshll.u32 %s469_s18, 4  ;;  %s10906_s7 = scalar_lea.hbm %s11726_s0, 48  ;;  %s471_s27 = int_to_ptr.hbm [resolvable:$true] %s470_s27 }
  0x44   : > { %s10899_s2 = sshra.s32 %s471_s27, 4  ;;  %s10900_s2 = int_to_ptr.hbm [resolvable:$true] %s10899_s2 }
  0x45   : > { %s10901_s12 = scalar_lea.hbm %s10900_s2, 24  ;;  %p10907_p12 = scmp.lt.s32.totalorder %s10900_s2, %s11726_s0 }
  0x46   : > { %p10902_p7 = scmp.ne.s32.totalorder %s10900_s2, %s10901_s12  ;;  %p10908_p2 = scmp.lt.s32.totalorder %s10906_s7, %s10901_s12 }
  0x48   : > { %p10904_p10 = pnand %p10903_p9, %p10902_p7  ;;  %p10909_p4 = por %p10908_p2, %p10907_p12 }
  0x4a   : > { %p10905_p11 = pneg %p10904_p10 }
  0x4c   : > { %p10910_p5 = pnand %p10909_p4, %p10905_p11 }
  0x4e   : > { %10913 = shalt.err (!%p10910_p5)
}
  0x4f   : > { %s11765_s5 = smov 8   ;;  %s11766_s26 = smov 128  }
  0x50   : > { %10535 = dma.hbm_to_vmem [thread:$0]  (!%p11224_p8), %s471_s27, 384, %s473_s16, %s461_s19, %s11766_s26, %s11766_s26, %s11765_s5  }
  0x51   : > { %484 = sbr.rel (%p11131_p3) target bundleno = 2420 (0x974), region = 68  ;;  %s11248_s3 = sand.u32 (!%p11131_p3), 1, %s11007_s22  }
  0x52   : > { %s10463_s6 = smul.u32 (!%p11131_p3), 24, %s11248_s3  ;;  %s487_s7 = scalar_lea.sflag (!%p11131_p3), [#allocation3], %s11248_s3 }
  0x54   : > { %s11252_s2 = scalar_lea.vmem (!%p11131_p3), [#allocation2], %s10463_s6 }
  0x56   : > { %10974 = dma.done.wait (%p11210_p13), %s487_s7, 384  }
  0x57   : > { %10976 = vsyncadd (%p11210_p13), %s487_s7, 4294966912 }
  0x58   : > { %10978 = dma.done.wait (%p54_p1), [#allocation6], 51200  }
  0x59   : > { %10980 = vsyncadd (%p54_p1), [#allocation6], 4294916096 }
  0x5a   : > { %10982 = dma.done.wait (%p54_p1), [#allocation9], 26624  }
  0x5b   : > { %10984 = vsyncadd (%p54_p1), [#allocation9], 4294940672 }
  0x5c   : > { %10986 = dma.done.wait (%p54_p1), [#allocation12], 16512  }
  0x5d   : > { %10988 = vsyncadd (%p54_p1), [#allocation12], 4294950784 }
  0x5e   : > { %10990 = dma.done.wait (%p54_p1), [#allocation15], 64  }
  0x5f   : > { %10992 = vsyncadd (%p54_p1), [#allocation15], 4294967232 }
  0x60   : > { %10994 = dma.done.wait (%p54_p1), [#allocation18], 32  }
  0x61   : > { %10996 = vsyncadd (%p54_p1), [#allocation18], 4294967264  ;;  %v579_v0 = vld [vmem:[%s11252_s2 + $0x10] sm:$0xff]  ;;  %v578_v1 = vld [vmem:[%s11252_s2 + $0x8] sm:$0xff]  ;;  %vm581_vm0 = vcmask 195584   ;;  %s11768_s30 = sld [smem:[#allocation28_spill]] }
  0x62   : > { %v577_v2 = vld [vmem:[%s11252_s2] sm:$0xff]  ;;  %720 = vmatpush.msra.mxu1 %v579_v0  ;;  %598 = vmatpush.msra.mxu0 %v579_v0  ;;  %v7260_v5 = vld [vmem:[#allocation5 + $0x5a0] sm:$0xf]  ;;  %v9937_v7 = vld [vmem:[#allocation5 + $0x5a4] sm:$0xf]  ;;  %vm3639_vm1 = vcmask 1045504  }
  0x63   : > { %v9943_v6 = vld [vmem:[#allocation5 + $0x5cc] sm:$0xf0]  ;;  %v7262_v8 = vld [vmem:[#allocation5 + $0x5d0] sm:$0xf0]  ;;  %v7268_v11 = vld [vmem:[#allocation5 + $0x5a8] sm:$0xf] }
  0x64   : > { %721 = vmatpush.msra.mxu1 %v578_v1  ;;  %599 = vmatpush.msra.mxu0 %v578_v1  ;;  %v7261_v9 = vor.u32 %v9943_v6, %v7260_v5  ;;  %v7265_v10 = vor.u32 %v9937_v7, %v7262_v8  ;;  %v9944_v12 = vld [vmem:[#allocation5 + $0x5d4] sm:$0xf0]  ;;  %v9938_v13 = vld [vmem:[#allocation5 + $0x5ac] sm:$0xf]  ;;  %v7270_v15 = vld [vmem:[#allocation5 + $0x5d8] sm:$0xf0] }
  0x65   : > { %v7269_v14 = vor.u32 %v9944_v12, %v7268_v11  ;;  %v7212_v16 = vld [vmem:[#allocation5 + $0x540] sm:$0xf]  ;;  %v9931_v17 = vld [vmem:[#allocation5 + $0x56c] sm:$0xf0]  ;;  %v7273_v18 = vor.u32 %v9938_v13, %v7270_v15  ;;  %v9925_v19 = vld [vmem:[#allocation5 + $0x544] sm:$0xf] }
  0x66   : > { %722 = vmatpush.msra.mxu1 %v577_v2  ;;  %600 = vmatpush.msra.mxu0 %v577_v2  ;;  %v7214_v20 = vld [vmem:[#allocation5 + $0x570] sm:$0xf0]  ;;  %v7220_v21 = vld [vmem:[#allocation5 + $0x548] sm:$0xf]  ;;  %v9932_v22 = vld [vmem:[#allocation5 + $0x574] sm:$0xf0]  ;;  %v7213_v25 = vor.u32 %v9931_v17, %v7212_v16 }
  0x67   : > { %v6920_v3 = vld [vmem:[%s11768_s30 + $0x8] sm:$0x3f]  ;;  %v580_v4 = vld [vmem:[%s11768_s30] sm:$0x3f]  ;;  %v9926_v23 = vld [vmem:[#allocation5 + $0x54c] sm:$0xf]  ;;  %1305 = vmatpush.bf16.msra.mxu2 %v7261_v9  ;;  %1318 = vmatpush.bf16.msra.mxu3 %v7265_v10  ;;  %v7217_v26 = vor.u32 %v9925_v19, %v7214_v20  ;;  %v7221_v29 = vor.u32 %v9932_v22, %v7220_v21 }
  0x68   : > { %6921 = vmatmul.msk.f32.vlgmr.msra.gmra.mxu1 %vm581_vm0, %v6920_v3  ;;  %6919 = vmatmul.msk.f32.vlgmr.msra.gmra.mxu0 %vm581_vm0, %v580_v4  ;;  %v7222_v24 = vld [vmem:[#allocation5 + $0x578] sm:$0xf0]  ;;  %v7164_v27 = vld [vmem:[#allocation5 + $0x4e0] sm:$0xf]  ;;  %v9919_v28 = vld [vmem:[#allocation5 + $0x50c] sm:$0xf0] }
  0x69   : > { %1331 = vmatpush.bf16.msrb.mxu0 %v7269_v14  ;;  %1344 = vmatpush.bf16.msrb.mxu1 %v7273_v18  ;;  %v7225_v30 = vor.u32 %v9926_v23, %v7222_v24  ;;  %v9913_v31 = vld [vmem:[#allocation5 + $0x4e4] sm:$0xf]  ;;  %v7166_v32 = vld [vmem:[#allocation5 + $0x510] sm:$0xf0]  ;;  %v7172_v33 = vld [vmem:[#allocation5 + $0x4e8] sm:$0xf]  ;;  %v7165_v37 = vor.u32 %v9919_v28, %v7164_v27 }
  0x6a   : > { %v9920_v34 = vld [vmem:[#allocation5 + $0x514] sm:$0xf0]  ;;  %v9914_v35 = vld [vmem:[#allocation5 + $0x4ec] sm:$0xf]  ;;  %v7174_v36 = vld [vmem:[#allocation5 + $0x518] sm:$0xf0]  ;;  %v7169_v38 = vor.u32 %v9913_v31, %v7166_v32 }
  0x6b   : > { %1306 = vmatpush.bf16.msra.mxu2 %v7213_v25  ;;  %1319 = vmatpush.bf16.msra.mxu3 %v7217_v26  ;;  %v7116_v39 = vld [vmem:[#allocation5 + $0x480] sm:$0xf]  ;;  %v9907_v40 = vld [vmem:[#allocation5 + $0x4ac] sm:$0xf0]  ;;  %v7173_v41 = vor.u32 %v9920_v34, %v7172_v33  ;;  %v7177_v42 = vor.u32 %v9914_v35, %v7174_v36  ;;  %v9901_v43 = vld [vmem:[#allocation5 + $0x484] sm:$0xf] }
  0x6c   : > { %v7118_v44 = vld [vmem:[#allocation5 + $0x4b0] sm:$0xf0]  ;;  %v7124_v45 = vld [vmem:[#allocation5 + $0x488] sm:$0xf]  ;;  %v9908_v46 = vld [vmem:[#allocation5 + $0x4b4] sm:$0xf0]  ;;  %v7117_v49 = vor.u32 %v9907_v40, %v7116_v39 }
  0x6d   : > { %1332 = vmatpush.bf16.msrb.mxu0 %v7221_v29  ;;  %1345 = vmatpush.bf16.msrb.mxu1 %v7225_v30  ;;  %v9902_v47 = vld [vmem:[#allocation5 + $0x48c] sm:$0xf]  ;;  %v7126_v48 = vld [vmem:[#allocation5 + $0x4b8] sm:$0xf0]  ;;  %v7121_v50 = vor.u32 %v9901_v43, %v7118_v44  ;;  %v7068_v51 = vld [vmem:[#allocation5 + $0x420] sm:$0xf]  ;;  %v7125_v53 = vor.u32 %v9908_v46, %v7124_v45 }
  0x6e   : > { %v9895_v52 = vld [vmem:[#allocation5 + $0x44c] sm:$0xf0]  ;;  %v7129_v54 = vor.u32 %v9902_v47, %v7126_v48  ;;  %v9889_v55 = vld [vmem:[#allocation5 + $0x424] sm:$0xf]  ;;  %v7070_v56 = vld [vmem:[#allocation5 + $0x450] sm:$0xf0] }
  0x6f   : > { %1307 = vmatpush.bf16.msra.mxu2 %v7165_v37  ;;  %1320 = vmatpush.bf16.msra.mxu3 %v7169_v38  ;;  %v7076_v57 = vld [vmem:[#allocation5 + $0x428] sm:$0xf]  ;;  %v9896_v58 = vld [vmem:[#allocation5 + $0x454] sm:$0xf0]  ;;  %v9890_v59 = vld [vmem:[#allocation5 + $0x42c] sm:$0xf]  ;;  %v7069_v61 = vor.u32 %v9895_v52, %v7068_v51  ;;  %v7073_v62 = vor.u32 %v9889_v55, %v7070_v56 }
  0x70   : > { %v7078_v60 = vld [vmem:[#allocation5 + $0x458] sm:$0xf0]  ;;  %v7020_v63 = vld [vmem:[#allocation5 + $0x3c0] sm:$0xf]  ;;  %v9883_v0 = vld [vmem:[#allocation5 + $0x3ec] sm:$0xf0]  ;;  %v7077_v1 = vor.u32 %v9896_v58, %v7076_v57 }
  0x71   : > { %1333 = vmatpush.bf16.msrb.mxu0 %v7173_v41  ;;  %1346 = vmatpush.bf16.msrb.mxu1 %v7177_v42  ;;  %v7081_v2 = vor.u32 %v9890_v59, %v7078_v60  ;;  %v9877_v3 = vld [vmem:[#allocation5 + $0x3c4] sm:$0xf]  ;;  %v7022_v4 = vld [vmem:[#allocation5 + $0x3f0] sm:$0xf0]  ;;  %v7028_v5 = vld [vmem:[#allocation5 + $0x3c8] sm:$0xf]  ;;  %v7021_v9 = vor.u32 %v9883_v0, %v7020_v63 }
  0x72   : > { %v9884_v6 = vld [vmem:[#allocation5 + $0x3f4] sm:$0xf0]  ;;  %v9878_v7 = vld [vmem:[#allocation5 + $0x3cc] sm:$0xf]  ;;  %v7030_v8 = vld [vmem:[#allocation5 + $0x3f8] sm:$0xf0]  ;;  %v7025_v10 = vor.u32 %v9877_v3, %v7022_v4 }
  0x73   : > { %1308 = vmatpush.bf16.msra.mxu2 %v7117_v49  ;;  %1321 = vmatpush.bf16.msra.mxu3 %v7121_v50  ;;  %v6972_v11 = vld [vmem:[#allocation5 + $0x360] sm:$0xf]  ;;  %v9871_v12 = vld [vmem:[#allocation5 + $0x38c] sm:$0xf0]  ;;  %v7029_v13 = vor.u32 %v9884_v6, %v7028_v5  ;;  %v7033_v14 = vor.u32 %v9878_v7, %v7030_v8  ;;  %v9865_v15 = vld [vmem:[#allocation5 + $0x364] sm:$0xf] }
  0x74   : > { %v6974_v16 = vld [vmem:[#allocation5 + $0x390] sm:$0xf0]  ;;  %v6980_v17 = vld [vmem:[#allocation5 + $0x368] sm:$0xf]  ;;  %v9872_v18 = vld [vmem:[#allocation5 + $0x394] sm:$0xf0]  ;;  %v6973_v22 = vor.u32 %v9871_v12, %v6972_v11 }
  0x75   : > { %1334 = vmatpush.bf16.msrb.mxu0 %v7125_v53  ;;  %1347 = vmatpush.bf16.msrb.mxu1 %v7129_v54  ;;  %v9866_v19 = vld [vmem:[#allocation5 + $0x36c] sm:$0xf]  ;;  %v6982_v20 = vld [vmem:[#allocation5 + $0x398] sm:$0xf0]  ;;  %v6924_v21 = vld [vmem:[#allocation5 + $0x300] sm:$0xf]  ;;  %v6977_v23 = vor.u32 %v9865_v15, %v6974_v16  ;;  %v6981_v27 = vor.u32 %v9872_v18, %v6980_v17 }
  0x76   : > { %v9859_v24 = vld [vmem:[#allocation5 + $0x32c] sm:$0xf0]  ;;  %v9853_v25 = vld [vmem:[#allocation5 + $0x304] sm:$0xf]  ;;  %v6926_v26 = vld [vmem:[#allocation5 + $0x330] sm:$0xf0]  ;;  %v6985_v28 = vor.u32 %v9866_v19, %v6982_v20 }
  0x77   : > { %1309 = vmatpush.bf16.msra.mxu2 %v7069_v61  ;;  %1322 = vmatpush.bf16.msra.mxu3 %v7073_v62  ;;  %v6932_v29 = vld [vmem:[#allocation5 + $0x308] sm:$0xf]  ;;  %v9860_v30 = vld [vmem:[#allocation5 + $0x334] sm:$0xf0]  ;;  %v9854_v31 = vld [vmem:[#allocation5 + $0x30c] sm:$0xf]  ;;  %v6925_v38 = vor.u32 %v9859_v24, %v6924_v21  ;;  %v6929_v39 = vor.u32 %v9853_v25, %v6926_v26 }
  0x78   : > { %v6934_v32 = vld [vmem:[#allocation5 + $0x338] sm:$0xf0]  ;;  %v7276_v33 = vld [vmem:[#allocation5 + $0x5b0] sm:$0xf]  ;;  %v9945_v34 = vld [vmem:[#allocation5 + $0x5dc] sm:$0xf0]  ;;  %v6933_v43 = vor.u32 %v9860_v30, %v6932_v29 }
  0x79   : > { %1335 = vmatpush.bf16.msrb.mxu0 %v7077_v1  ;;  %1348 = vmatpush.bf16.msrb.mxu1 %v7081_v2  ;;  %v9939_v35 = vld [vmem:[#allocation5 + $0x5b4] sm:$0xf]  ;;  %v7278_v36 = vld [vmem:[#allocation5 + $0x5e0] sm:$0xf0]  ;;  %v7284_v37 = vld [vmem:[#allocation5 + $0x5b8] sm:$0xf]  ;;  %v6937_v44 = vor.u32 %v9854_v31, %v6934_v32  ;;  %v7277_v45 = vor.u32 %v9945_v34, %v7276_v33 }
  0x7a   : > { %v9946_v40 = vld [vmem:[#allocation5 + $0x5e4] sm:$0xf0]  ;;  %v9940_v41 = vld [vmem:[#allocation5 + $0x5bc] sm:$0xf]  ;;  %v7286_v42 = vld [vmem:[#allocation5 + $0x5e8] sm:$0xf0]  ;;  %v7281_v46 = vor.u32 %v9939_v35, %v7278_v36 }
  0x7b   : > { %1310 = vmatpush.bf16.msra.mxu2 %v7021_v9  ;;  %1323 = vmatpush.bf16.msra.mxu3 %v7025_v10  ;;  %v7228_v47 = vld [vmem:[#allocation5 + $0x550] sm:$0xf]  ;;  %v9933_v48 = vld [vmem:[#allocation5 + $0x57c] sm:$0xf0]  ;;  %v7285_v49 = vor.u32 %v9946_v40, %v7284_v37  ;;  %v7289_v50 = vor.u32 %v9940_v41, %v7286_v42  ;;  %v9927_v51 = vld [vmem:[#allocation5 + $0x554] sm:$0xf] }
  0x7c   : > { %v7230_v52 = vld [vmem:[#allocation5 + $0x580] sm:$0xf0]  ;;  %v7236_v53 = vld [vmem:[#allocation5 + $0x558] sm:$0xf]  ;;  %v9934_v54 = vld [vmem:[#allocation5 + $0x584] sm:$0xf0]  ;;  %v7229_v57 = vor.u32 %v9933_v48, %v7228_v47 }
  0x7d   : > { %1336 = vmatpush.bf16.msrb.mxu0 %v7029_v13  ;;  %1349 = vmatpush.bf16.msrb.mxu1 %v7033_v14  ;;  %v9928_v55 = vld [vmem:[#allocation5 + $0x55c] sm:$0xf]  ;;  %v7238_v56 = vld [vmem:[#allocation5 + $0x588] sm:$0xf0]  ;;  %v7233_v58 = vor.u32 %v9927_v51, %v7230_v52  ;;  %v7180_v59 = vld [vmem:[#allocation5 + $0x4f0] sm:$0xf]  ;;  %v7237_v61 = vor.u32 %v9934_v54, %v7236_v53 }
  0x7e   : > { %v9921_v60 = vld [vmem:[#allocation5 + $0x51c] sm:$0xf0]  ;;  %v7241_v62 = vor.u32 %v9928_v55, %v7238_v56  ;;  %v9915_v63 = vld [vmem:[#allocation5 + $0x4f4] sm:$0xf]  ;;  %v7182_v0 = vld [vmem:[#allocation5 + $0x520] sm:$0xf0] }
  0x7f   : > { %1311 = vmatpush.bf16.msra.mxu2 %v6973_v22  ;;  %1324 = vmatpush.bf16.msra.mxu3 %v6977_v23  ;;  %v7188_v1 = vld [vmem:[#allocation5 + $0x4f8] sm:$0xf]  ;;  %v9922_v2 = vld [vmem:[#allocation5 + $0x524] sm:$0xf0]  ;;  %v9916_v3 = vld [vmem:[#allocation5 + $0x4fc] sm:$0xf]  ;;  %v7181_v5 = vor.u32 %v9921_v60, %v7180_v59  ;;  %v7185_v6 = vor.u32 %v9915_v63, %v7182_v0 }
  0x80   : > { %v7190_v4 = vld [vmem:[#allocation5 + $0x528] sm:$0xf0]  ;;  %v7132_v7 = vld [vmem:[#allocation5 + $0x490] sm:$0xf]  ;;  %v9909_v8 = vld [vmem:[#allocation5 + $0x4bc] sm:$0xf0]  ;;  %v7189_v9 = vor.u32 %v9922_v2, %v7188_v1 }
  0x81   : > { %1337 = vmatpush.bf16.msrb.mxu0 %v6981_v27  ;;  %1350 = vmatpush.bf16.msrb.mxu1 %v6985_v28  ;;  %v7193_v10 = vor.u32 %v9916_v3, %v7190_v4  ;;  %v9903_v11 = vld [vmem:[#allocation5 + $0x494] sm:$0xf]  ;;  %v7134_v12 = vld [vmem:[#allocation5 + $0x4c0] sm:$0xf0]  ;;  %v7140_v13 = vld [vmem:[#allocation5 + $0x498] sm:$0xf]  ;;  %v7133_v17 = vor.u32 %v9909_v8, %v7132_v7 }
  0x82   : > { %v9910_v14 = vld [vmem:[#allocation5 + $0x4c4] sm:$0xf0]  ;;  %v9904_v15 = vld [vmem:[#allocation5 + $0x49c] sm:$0xf]  ;;  %v7142_v16 = vld [vmem:[#allocation5 + $0x4c8] sm:$0xf0]  ;;  %v7137_v18 = vor.u32 %v9903_v11, %v7134_v12 }
  0x83   : > { %1312 = vmatpush.bf16.msra.mxu2 %v6925_v38  ;;  %1325 = vmatpush.bf16.msra.mxu3 %v6929_v39  ;;  %v7084_v19 = vld [vmem:[#allocation5 + $0x430] sm:$0xf]  ;;  %v9897_v20 = vld [vmem:[#allocation5 + $0x45c] sm:$0xf0]  ;;  %v7141_v21 = vor.u32 %v9910_v14, %v7140_v13  ;;  %v7145_v22 = vor.u32 %v9904_v15, %v7142_v16  ;;  %v9891_v23 = vld [vmem:[#allocation5 + $0x434] sm:$0xf] }
  0x84   : > { %v7086_v24 = vld [vmem:[#allocation5 + $0x460] sm:$0xf0]  ;;  %v7092_v25 = vld [vmem:[#allocation5 + $0x438] sm:$0xf]  ;;  %v9898_v26 = vld [vmem:[#allocation5 + $0x464] sm:$0xf0]  ;;  %v7085_v29 = vor.u32 %v9897_v20, %v7084_v19 }
  0x85   : > { %1338 = vmatpush.bf16.msrb.mxu0 %v6933_v43  ;;  %1351 = vmatpush.bf16.msrb.mxu1 %v6937_v44  ;;  %v9892_v27 = vld [vmem:[#allocation5 + $0x43c] sm:$0xf]  ;;  %v7094_v28 = vld [vmem:[#allocation5 + $0x468] sm:$0xf0]  ;;  %v7089_v30 = vor.u32 %v9891_v23, %v7086_v24  ;;  %v7036_v31 = vld [vmem:[#allocation5 + $0x3d0] sm:$0xf]  ;;  %v7093_v33 = vor.u32 %v9898_v26, %v7092_v25 }
  0x86   : > { %v9885_v32 = vld [vmem:[#allocation5 + $0x3fc] sm:$0xf0]  ;;  %v7097_v34 = vor.u32 %v9892_v27, %v7094_v28  ;;  %v9879_v35 = vld [vmem:[#allocation5 + $0x3d4] sm:$0xf]  ;;  %v7038_v36 = vld [vmem:[#allocation5 + $0x400] sm:$0xf0] }
  0x87   : > { %1357 = vmatpush.bf16.msrb.mxu2 %v7277_v45  ;;  %1370 = vmatpush.bf16.msrb.mxu3 %v7281_v46  ;;  %v7044_v37 = vld [vmem:[#allocation5 + $0x3d8] sm:$0xf]  ;;  %v9886_v38 = vld [vmem:[#allocation5 + $0x404] sm:$0xf0]  ;;  %v9880_v39 = vld [vmem:[#allocation5 + $0x3dc] sm:$0xf]  ;;  %v7037_v41 = vor.u32 %v9885_v32, %v7036_v31  ;;  %v7041_v42 = vor.u32 %v9879_v35, %v7038_v36 }
  0x88   : > { %v7046_v40 = vld [vmem:[#allocation5 + $0x408] sm:$0xf0]  ;;  %v6988_v43 = vld [vmem:[#allocation5 + $0x370] sm:$0xf]  ;;  %v9873_v44 = vld [vmem:[#allocation5 + $0x39c] sm:$0xf0]  ;;  %v7045_v45 = vor.u32 %v9886_v38, %v7044_v37 }
  0x89   : > { %1383 = vmatpush.bf16.msra.mxu0 %v7285_v49  ;;  %1396 = vmatpush.bf16.msra.mxu1 %v7289_v50  ;;  %v7049_v46 = vor.u32 %v9880_v39, %v7046_v40  ;;  %v9867_v47 = vld [vmem:[#allocation5 + $0x374] sm:$0xf]  ;;  %v6990_v48 = vld [vmem:[#allocation5 + $0x3a0] sm:$0xf0]  ;;  %v6996_v49 = vld [vmem:[#allocation5 + $0x378] sm:$0xf]  ;;  %v6989_v53 = vor.u32 %v9873_v44, %v6988_v43 }
  0x8a   : > { %v9874_v50 = vld [vmem:[#allocation5 + $0x3a4] sm:$0xf0]  ;;  %v9868_v51 = vld [vmem:[#allocation5 + $0x37c] sm:$0xf]  ;;  %v6998_v52 = vld [vmem:[#allocation5 + $0x3a8] sm:$0xf0]  ;;  %v6993_v54 = vor.u32 %v9867_v47, %v6990_v48 }
  0x8b   : > { %1358 = vmatpush.bf16.msrb.mxu2 %v7229_v57  ;;  %1371 = vmatpush.bf16.msrb.mxu3 %v7233_v58  ;;  %v6997_v55 = vor.u32 %v9874_v50, %v6996_v49  ;;  %v7001_v56 = vor.u32 %v9868_v51, %v6998_v52  ;;  %v6940_v57 = vld [vmem:[#allocation5 + $0x310] sm:$0xf]  ;;  %v9861_v58 = vld [vmem:[#allocation5 + $0x33c] sm:$0xf0]  ;;  %v9855_v59 = vld [vmem:[#allocation5 + $0x314] sm:$0xf] }
  0x8c   : > { %v6941_v60 = vor.u32 %v9861_v58, %v6940_v57  ;;  %v9862_v63 = vld [vmem:[#allocation5 + $0x344] sm:$0xf0]  ;;  %v9856_v2 = vld [vmem:[#allocation5 + $0x31c] sm:$0xf]  ;;  %v6950_v3 = vld [vmem:[#allocation5 + $0x348] sm:$0xf0] }
  0x8d   : > { %1384 = vmatpush.bf16.msra.mxu0 %v7237_v61  ;;  %1397 = vmatpush.bf16.msra.mxu1 %v7241_v62  ;;  %v6942_v61 = vld [vmem:[#allocation5 + $0x340] sm:$0xf0]  ;;  %v6948_v62 = vld [vmem:[#allocation5 + $0x318] sm:$0xf]  ;;  %v6953_v4 = vor.u32 %v9856_v2, %v6950_v3  ;;  %v7294_v8 = vld [vmem:[#allocation5 + $0x5f0] sm:$0xf0] }
  0x8e   : > { %v6945_v0 = vor.u32 %v9855_v59, %v6942_v61  ;;  %v6949_v1 = vor.u32 %v9862_v63, %v6948_v62  ;;  %v9941_v7 = vld [vmem:[#allocation5 + $0x5c4] sm:$0xf]  ;;  %v9942_v11 = vld [vmem:[#allocation5 + $0x5cc] sm:$0xf]  ;;  %v7302_v12 = vld [vmem:[#allocation5 + $0x5f8] sm:$0xf0] }
  0x8f   : > { %1359 = vmatpush.bf16.msrb.mxu2 %v7181_v5  ;;  %1372 = vmatpush.bf16.msrb.mxu3 %v7185_v6  ;;  %v7292_v5 = vld [vmem:[#allocation5 + $0x5c0] sm:$0xf]  ;;  %v9947_v6 = vld [vmem:[#allocation5 + $0x5ec] sm:$0xf0]  ;;  %v7297_v16 = vor.u32 %v9941_v7, %v7294_v8  ;;  %v7305_v20 = vor.u32 %v9942_v11, %v7302_v12  ;;  %v7252_v23 = vld [vmem:[#allocation5 + $0x568] sm:$0xf] }
  0x90   : > { %v7293_v15 = vor.u32 %v9947_v6, %v7292_v5  ;;  %v9936_v24 = vld [vmem:[#allocation5 + $0x594] sm:$0xf0]  ;;  %v9930_v25 = vld [vmem:[#allocation5 + $0x56c] sm:$0xf]  ;;  %v7254_v26 = vld [vmem:[#allocation5 + $0x598] sm:$0xf0] }
  0x91   : > { %1385 = vmatpush.bf16.msra.mxu0 %v7189_v9  ;;  %1398 = vmatpush.bf16.msra.mxu1 %v7193_v10  ;;  %v7300_v9 = vld [vmem:[#allocation5 + $0x5c8] sm:$0xf]  ;;  %v9948_v10 = vld [vmem:[#allocation5 + $0x5f4] sm:$0xf0]  ;;  %v7253_v31 = vor.u32 %v9936_v24, %v7252_v23  ;;  %v7257_v32 = vor.u32 %v9930_v25, %v7254_v26  ;;  %v9918_v37 = vld [vmem:[#allocation5 + $0x50c] sm:$0xf] }
  0x92   : > { %v7301_v19 = vor.u32 %v9948_v10, %v7300_v9  ;;  %v7204_v35 = vld [vmem:[#allocation5 + $0x508] sm:$0xf]  ;;  %v9924_v36 = vld [vmem:[#allocation5 + $0x534] sm:$0xf0]  ;;  %v7206_v38 = vld [vmem:[#allocation5 + $0x538] sm:$0xf0] }
  0x93   : > { %1360 = vmatpush.bf16.msrb.mxu2 %v7133_v17  ;;  %1373 = vmatpush.bf16.msrb.mxu3 %v7137_v18  ;;  %v7244_v17 = vld [vmem:[#allocation5 + $0x560] sm:$0xf]  ;;  %v9935_v18 = vld [vmem:[#allocation5 + $0x58c] sm:$0xf0]  ;;  %v7205_v43 = vor.u32 %v9924_v36, %v7204_v35  ;;  %v7209_v44 = vor.u32 %v9918_v37, %v7206_v38  ;;  %v7156_v47 = vld [vmem:[#allocation5 + $0x4a8] sm:$0xf] }
  0x94   : > { %v7245_v27 = vor.u32 %v9935_v18, %v7244_v17  ;;  %v9912_v48 = vld [vmem:[#allocation5 + $0x4d4] sm:$0xf0]  ;;  %v9906_v49 = vld [vmem:[#allocation5 + $0x4ac] sm:$0xf]  ;;  %v7158_v50 = vld [vmem:[#allocation5 + $0x4d8] sm:$0xf0] }
  0x95   : > { %1386 = vmatpush.bf16.msra.mxu0 %v7141_v21  ;;  %1399 = vmatpush.bf16.msra.mxu1 %v7145_v22  ;;  %v9929_v21 = vld [vmem:[#allocation5 + $0x564] sm:$0xf]  ;;  %v7246_v22 = vld [vmem:[#allocation5 + $0x590] sm:$0xf0]  ;;  %v7108_v59 = vld [vmem:[#allocation5 + $0x448] sm:$0xf] }
  0x96   : > { %v7249_v28 = vor.u32 %v9929_v21, %v7246_v22  ;;  %v9893_v57 = vld [vmem:[#allocation5 + $0x444] sm:$0xf]  ;;  %v7102_v58 = vld [vmem:[#allocation5 + $0x470] sm:$0xf0]  ;;  %v9894_v61 = vld [vmem:[#allocation5 + $0x44c] sm:$0xf] }
  0x97   : > { %1361 = vmatpush.bf16.msrb.mxu2 %v7085_v29  ;;  %1374 = vmatpush.bf16.msrb.mxu3 %v7089_v30  ;;  %v7196_v29 = vld [vmem:[#allocation5 + $0x500] sm:$0xf]  ;;  %v9923_v30 = vld [vmem:[#allocation5 + $0x52c] sm:$0xf0]  ;;  %v7110_v62 = vld [vmem:[#allocation5 + $0x478] sm:$0xf0] }
  0x98   : > { %v7197_v39 = vor.u32 %v9923_v30, %v7196_v29  ;;  %v9887_v2 = vld [vmem:[#allocation5 + $0x40c] sm:$0xf0]  ;;  %v9881_v5 = vld [vmem:[#allocation5 + $0x3e4] sm:$0xf]  ;;  %v7054_v6 = vld [vmem:[#allocation5 + $0x410] sm:$0xf0] }
  0x99   : > { %1387 = vmatpush.bf16.msra.mxu0 %v7093_v33  ;;  %1400 = vmatpush.bf16.msra.mxu1 %v7097_v34  ;;  %v9917_v33 = vld [vmem:[#allocation5 + $0x504] sm:$0xf]  ;;  %v7198_v34 = vld [vmem:[#allocation5 + $0x530] sm:$0xf0]  ;;  %v7060_v7 = vld [vmem:[#allocation5 + $0x3e8] sm:$0xf]  ;;  %v7057_v12 = vor.u32 %v9881_v5, %v7054_v6 }
  0x9a   : > { %v7201_v40 = vor.u32 %v9917_v33, %v7198_v34  ;;  %v9888_v8 = vld [vmem:[#allocation5 + $0x414] sm:$0xf0]  ;;  %v9882_v9 = vld [vmem:[#allocation5 + $0x3ec] sm:$0xf]  ;;  %v7062_v10 = vld [vmem:[#allocation5 + $0x418] sm:$0xf0] }
  0x9b   : > { %1362 = vmatpush.bf16.msrb.mxu2 %v7037_v41  ;;  %1375 = vmatpush.bf16.msrb.mxu3 %v7041_v42  ;;  %v7148_v41 = vld [vmem:[#allocation5 + $0x4a0] sm:$0xf]  ;;  %v9911_v42 = vld [vmem:[#allocation5 + $0x4cc] sm:$0xf0]  ;;  %v7065_v17 = vor.u32 %v9882_v9, %v7062_v10  ;;  %v9869_v18 = vld [vmem:[#allocation5 + $0x384] sm:$0xf] }
  0x9c   : > { %v7149_v51 = vor.u32 %v9911_v42, %v7148_v41  ;;  %v9876_v21 = vld [vmem:[#allocation5 + $0x3b4] sm:$0xf0]  ;;  %v9870_v22 = vld [vmem:[#allocation5 + $0x38c] sm:$0xf]  ;;  %v7014_v23 = vld [vmem:[#allocation5 + $0x3b8] sm:$0xf0] }
  0x9d   : > { %1388 = vmatpush.bf16.msra.mxu0 %v7045_v45  ;;  %1401 = vmatpush.bf16.msra.mxu1 %v7049_v46  ;;  %v9905_v45 = vld [vmem:[#allocation5 + $0x4a4] sm:$0xf]  ;;  %v7150_v46 = vld [vmem:[#allocation5 + $0x4d0] sm:$0xf0]  ;;  %v6956_v24 = vld [vmem:[#allocation5 + $0x320] sm:$0xf] }
  0x9e   : > { %v7153_v52 = vor.u32 %v9905_v45, %v7150_v46  ;;  %v6958_v29 = vld [vmem:[#allocation5 + $0x350] sm:$0xf0]  ;;  %v9864_v33 = vld [vmem:[#allocation5 + $0x354] sm:$0xf0]  ;;  %v9858_v34 = vld [vmem:[#allocation5 + $0x32c] sm:$0xf] }
  0x9f   : > { %1363 = vmatpush.bf16.msrb.mxu2 %v6989_v53  ;;  %1376 = vmatpush.bf16.msrb.mxu3 %v6993_v54  ;;  %v7100_v53 = vld [vmem:[#allocation5 + $0x440] sm:$0xf]  ;;  %v9899_v54 = vld [vmem:[#allocation5 + $0x46c] sm:$0xf0]  ;;  %v6966_v35 = vld [vmem:[#allocation5 + $0x358] sm:$0xf0] }
  0xa0   : > { %v7101_v63 = vor.u32 %v9899_v54, %v7100_v53  ;;  %v7644_v36 = vld [vmem:[#allocation5 + $0x2a0] sm:$0xf]  ;;  %v9847_v37 = vld [vmem:[#allocation5 + $0x2cc] sm:$0xf0]  ;;  %v9841_v38 = vld [vmem:[#allocation5 + $0x2a4] sm:$0xf] }
  0xa1   : > { %1389 = vmatpush.bf16.msra.mxu0 %v6997_v55  ;;  %1402 = vmatpush.bf16.msra.mxu1 %v7001_v56  ;;  %v7157_v55 = vor.u32 %v9912_v48, %v7156_v47  ;;  %v7161_v56 = vor.u32 %v9906_v49, %v7158_v50  ;;  %v7654_v45 = vld [vmem:[#allocation5 + $0x2d8] sm:$0xf0]  ;;  %v6969_v47 = vor.u32 %v9858_v34, %v6966_v35  ;;  %v7596_v50 = vld [vmem:[#allocation5 + $0x240] sm:$0xf]  ;;  %v9829_v54 = vld [vmem:[#allocation5 + $0x244] sm:$0xf] }
  0xa2   : > { %v7645_v48 = vor.u32 %v9847_v37, %v7644_v36  ;;  %v9824_v5 = vld [vmem:[#allocation5 + $0x214] sm:$0xf0]  ;;  %v9818_v6 = vld [vmem:[#allocation5 + $0x1ec] sm:$0xf]  ;;  %v7500_v10 = vld [vmem:[#allocation5 + $0x180] sm:$0xf] }
  0xa3   : > { %1364 = vmatpush.bf16.msrb.mxu2 %v6941_v60  ;;  %1377 = vmatpush.bf16.msrb.mxu3 %v6945_v0  ;;  %v9900_v60 = vld [vmem:[#allocation5 + $0x474] sm:$0xf0]  ;;  %v7105_v0 = vor.u32 %v9893_v57, %v7102_v58  ;;  %v9830_v58 = vld [vmem:[#allocation5 + $0x24c] sm:$0xf]  ;;  %v7404_v34 = vld [vmem:[#allocation5 + $0xc0] sm:$0xf] }
  0xa4   : > { %v7109_v3 = vor.u32 %v9900_v60, %v7108_v59  ;;  %v9836_v57 = vld [vmem:[#allocation5 + $0x274] sm:$0xf0]  ;;  %v7606_v59 = vld [vmem:[#allocation5 + $0x278] sm:$0xf0]  ;;  %v9787_v35 = vld [vmem:[#allocation5 + $0xec] sm:$0xf0] }
  0xa5   : > { %1390 = vmatpush.bf16.msra.mxu0 %v6949_v1  ;;  %1403 = vmatpush.bf16.msra.mxu1 %v6953_v4  ;;  %v7052_v1 = vld [vmem:[#allocation5 + $0x3e0] sm:$0xf]  ;;  %v7113_v4 = vor.u32 %v9894_v61, %v7110_v62  ;;  %vm3744_vm2 = vcmask 1040384   ;;  %s11769_s26 = sld [smem:[#allocation31_spill]]  ;;  %vm5423_vm3 = vcmask 1042432   ;;  %vm6641_vm5 = vcmask 1041408  }
  0xa6   : > { %v7053_v11 = vor.u32 %v9887_v2, %v7052_v1  ;;  %v7548_v62 = vld [vmem:[#allocation5 + $0x1e0] sm:$0xf]  ;;  %v7609_v1 = vor.u32 %v9830_v58, %v7606_v59  ;;  %v9817_v2 = vld [vmem:[#allocation5 + $0x1e4] sm:$0xf]  ;;  %v9763_v59 = vld [vmem:[#allocation5 + $0x2c] sm:$0xf0] }
  0xa7   : > { %s9754_s1 = sshll.u32 %s11126_s28, 1  ;;  %s11770_s19 = sld [smem:[#allocation35_spill]] }
  0xa8   : > { %s6724_s28 = scalar_lea.sflag [#allocation4], %s11248_s3 }
  0xad   : > { %s6734_s29 = scalar_lea.hbm %s11770_s19, %s9754_s1  ;;  %s10949_s18 = scalar_lea.hbm %s11770_s19, 4 }
  0xae   : > { %s6738_s15 = sshll.u32 %s6734_s29, 4  ;;  %s6739_s15 = int_to_ptr.hbm [resolvable:$true] %s6738_s15 }
  0xaf   : > { %s10943_s6 = sshra.s32 %s6739_s15, 4  ;;  %s10944_s6 = int_to_ptr.hbm [resolvable:$true] %s10943_s6 }
  0xb0   : > { %s10945_s7 = scalar_lea.hbm %s10944_s6, 2  ;;  %p10950_p13 = scmp.lt.s32.totalorder %s10944_s6, %s11770_s19 }
  0xb1   : > { %p10946_p1 = scmp.ne.s32.totalorder %s10944_s6, %s10945_s7  ;;  %p10951_p8 = scmp.lt.s32.totalorder %s10949_s18, %s10945_s7 }
  0xb3   : > { %p10947_p3 = pnand %p10946_p1, %p11214_p0  ;;  %p10952_p7 = por %p10951_p8, %p10950_p13 }
  0xb5   : > { %p10948_p5 = pneg %p10947_p3 }
  0xb7   : > { %p10953_p9 = pnand %p10952_p7, %p10948_p5 }
  0xe5   : > { %v724_v13 = vpop.f32.mrf.mxu1 }
  0xe6   : > { %v11289_v14 = vpack.c.bf16 %v724_v13, %v724_v13  ;;  %v7004_v13 = vld [vmem:[#allocation5 + $0x380] sm:$0xf] }
  0xe8   : > { %1313 = vmatmul.bf16.vlgmr.msra.gmra.mxu2 %v11289_v14  ;;  %1326 = vmatmul.bf16.vlgmr.msra.gmra.mxu3 %v11289_v14 }
  0xe9   : > { %1339 = vmatmul.bf16.vlgmr.msrb.gmra.mxu0 %v11289_v14  ;;  %1352 = vmatmul.bf16.vlgmr.msrb.gmra.mxu1 %v11289_v14 }
  0xea   : > { %1409 = vmatpush.bf16.msra.mxu2 %v7293_v15  ;;  %1422 = vmatpush.bf16.msra.mxu3 %v7297_v16  ;;  %v9875_v15 = vld [vmem:[#allocation5 + $0x3ac] sm:$0xf0]  ;;  %v7061_v16 = vor.u32 %v9888_v8, %v7060_v7  ;;  %v7558_v7 = vld [vmem:[#allocation5 + $0x218] sm:$0xf0] }
  0xeb   : > { %1435 = vmatpush.bf16.msrb.mxu0 %v7301_v19  ;;  %1448 = vmatpush.bf16.msrb.mxu1 %v7305_v20  ;;  %v7006_v19 = vld [vmem:[#allocation5 + $0x3b0] sm:$0xf0]  ;;  %v7012_v20 = vld [vmem:[#allocation5 + $0x388] sm:$0xf]  ;;  %v7005_v25 = vor.u32 %v9875_v15, %v7004_v13  ;;  %v7561_v13 = vor.u32 %v9818_v6, %v7558_v7  ;;  %v9805_v15 = vld [vmem:[#allocation5 + $0x184] sm:$0xf] }
  0xec   : > { %v7009_v26 = vor.u32 %v9869_v18, %v7006_v19  ;;  %v7013_v30 = vor.u32 %v9876_v21, %v7012_v20  ;;  %v9812_v18 = vld [vmem:[#allocation5 + $0x1b4] sm:$0xf0]  ;;  %v9806_v19 = vld [vmem:[#allocation5 + $0x18c] sm:$0xf]  ;;  %v7510_v20 = vld [vmem:[#allocation5 + $0x1b8] sm:$0xf0] }
  0xed   : > { %v9843_v6 = vld [vmem:[#allocation5 + $0x2b4] sm:$0xf]  ;;  %v7662_v7 = vld [vmem:[#allocation5 + $0x2e0] sm:$0xf0] }
  0xee   : > { %1410 = vmatpush.bf16.msra.mxu2 %v7245_v27  ;;  %1423 = vmatpush.bf16.msra.mxu3 %v7249_v28  ;;  %v9863_v27 = vld [vmem:[#allocation5 + $0x34c] sm:$0xf0]  ;;  %v9857_v28 = vld [vmem:[#allocation5 + $0x324] sm:$0xf] }
  0xef   : > { %1436 = vmatpush.bf16.msrb.mxu0 %v7253_v31  ;;  %1449 = vmatpush.bf16.msrb.mxu1 %v7257_v32  ;;  %v7017_v31 = vor.u32 %v9870_v22, %v7014_v23  ;;  %v6964_v32 = vld [vmem:[#allocation5 + $0x328] sm:$0xf]  ;;  %v6957_v41 = vor.u32 %v9863_v27, %v6956_v24  ;;  %v6961_v42 = vor.u32 %v9857_v28, %v6958_v29  ;;  %v7452_v22 = vld [vmem:[#allocation5 + $0x120] sm:$0xf]  ;;  %v9799_v23 = vld [vmem:[#allocation5 + $0x14c] sm:$0xf0] }
  0xf0   : > { %v6965_v46 = vor.u32 %v9864_v33, %v6964_v32  ;;  %v7454_v27 = vld [vmem:[#allocation5 + $0x150] sm:$0xf0]  ;;  %v7460_v28 = vld [vmem:[#allocation5 + $0x128] sm:$0xf]  ;;  %v9800_v29 = vld [vmem:[#allocation5 + $0x154] sm:$0xf0]  ;;  %v7453_v32 = vor.u32 %v9799_v23, %v7452_v22 }
  0xf1   : > { %v7461_v36 = vor.u32 %v9800_v29, %v7460_v28  ;;  %v9831_v23 = vld [vmem:[#allocation5 + $0x254] sm:$0xf]  ;;  %v9832_v28 = vld [vmem:[#allocation5 + $0x25c] sm:$0xf]  ;;  %v7622_v29 = vld [vmem:[#allocation5 + $0x288] sm:$0xf0] }
  0xf2   : > { %1411 = vmatpush.bf16.msra.mxu2 %v7197_v39  ;;  %1424 = vmatpush.bf16.msra.mxu3 %v7201_v40  ;;  %v7646_v39 = vld [vmem:[#allocation5 + $0x2d0] sm:$0xf0]  ;;  %v7652_v40 = vld [vmem:[#allocation5 + $0x2a8] sm:$0xf] }
  0xf3   : > { %1437 = vmatpush.bf16.msrb.mxu0 %v7205_v43  ;;  %1450 = vmatpush.bf16.msrb.mxu1 %v7209_v44  ;;  %v9848_v43 = vld [vmem:[#allocation5 + $0x2d4] sm:$0xf0]  ;;  %v9842_v44 = vld [vmem:[#allocation5 + $0x2ac] sm:$0xf]  ;;  %v7649_v49 = vor.u32 %v9841_v38, %v7646_v39  ;;  %v9781_v38 = vld [vmem:[#allocation5 + $0xc4] sm:$0xf] }
  0xf4   : > { %v7657_v53 = vor.u32 %v9842_v44, %v7654_v45  ;;  %v7406_v39 = vld [vmem:[#allocation5 + $0xf0] sm:$0xf0]  ;;  %v7405_v44 = vor.u32 %v9787_v35, %v7404_v34  ;;  %v7625_v35 = vor.u32 %v9832_v28, %v7622_v29 }
  0xf5   : > { %v7409_v45 = vor.u32 %v9781_v38, %v7406_v39  ;;  %v7572_v38 = vld [vmem:[#allocation5 + $0x1f8] sm:$0xf]  ;;  %v9826_v39 = vld [vmem:[#allocation5 + $0x224] sm:$0xf0] }
  0xf6   : > { %1412 = vmatpush.bf16.msra.mxu2 %v7149_v51  ;;  %1425 = vmatpush.bf16.msra.mxu3 %v7153_v52  ;;  %v9835_v51 = vld [vmem:[#allocation5 + $0x26c] sm:$0xf0]  ;;  %v7653_v52 = vor.u32 %v9848_v43, %v7652_v40  ;;  %v7412_v40 = vld [vmem:[#allocation5 + $0xc8] sm:$0xf]  ;;  %v7414_v43 = vld [vmem:[#allocation5 + $0xf8] sm:$0xf0] }
  0xf7   : > { %1438 = vmatpush.bf16.msrb.mxu0 %v7157_v55  ;;  %1451 = vmatpush.bf16.msrb.mxu1 %v7161_v56  ;;  %v7598_v55 = vld [vmem:[#allocation5 + $0x270] sm:$0xf0]  ;;  %v7604_v56 = vld [vmem:[#allocation5 + $0x248] sm:$0xf]  ;;  %v7597_v60 = vor.u32 %v9835_v51, %v7596_v50  ;;  %v9769_v50 = vld [vmem:[#allocation5 + $0x64] sm:$0xf] }
  0xf8   : > { %1365 = vmatmul.bf16.vlgmr.msrb.gmra.mxu2 %v11289_v14  ;;  %1378 = vmatmul.bf16.vlgmr.msrb.gmra.mxu3 %v11289_v14  ;;  %v7601_v61 = vor.u32 %v9829_v54, %v7598_v55  ;;  %v7358_v51 = vld [vmem:[#allocation5 + $0x90] sm:$0xf0]  ;;  %v9770_v54 = vld [vmem:[#allocation5 + $0x6c] sm:$0xf]  ;;  %v7366_v55 = vld [vmem:[#allocation5 + $0x98] sm:$0xf0] }
  0xf9   : > { %1391 = vmatmul.bf16.vlgmr.msra.gmra.mxu0 %v11289_v14  ;;  %1404 = vmatmul.bf16.vlgmr.msra.gmra.mxu1 %v11289_v14  ;;  %v7361_v58 = vor.u32 %v9769_v50, %v7358_v51  ;;  %v7524_v50 = vld [vmem:[#allocation5 + $0x198] sm:$0xf]  ;;  %v9814_v51 = vld [vmem:[#allocation5 + $0x1c4] sm:$0xf0] }
  0xfa   : > { %1413 = vmatpush.bf16.msra.mxu2 %v7101_v63  ;;  %1426 = vmatpush.bf16.msra.mxu3 %v7105_v0  ;;  %v9823_v63 = vld [vmem:[#allocation5 + $0x20c] sm:$0xf0]  ;;  %v7605_v0 = vor.u32 %v9836_v57, %v7604_v56  ;;  %v7308_v56 = vld [vmem:[#allocation5] sm:$0xf] }
  0xfb   : > { %1439 = vmatpush.bf16.msrb.mxu0 %v7109_v3  ;;  %1452 = vmatpush.bf16.msrb.mxu1 %v7113_v4  ;;  %v7550_v3 = vld [vmem:[#allocation5 + $0x210] sm:$0xf0]  ;;  %v7556_v4 = vld [vmem:[#allocation5 + $0x1e8] sm:$0xf]  ;;  %v7549_v8 = vor.u32 %v9823_v63, %v7548_v62  ;;  %v7369_v63 = vor.u32 %v9770_v54, %v7366_v55 }
  0xfc   : > { %v7553_v9 = vor.u32 %v9817_v2, %v7550_v3  ;;  %v9758_v2 = vld [vmem:[#allocation5 + $0xc] sm:$0xf]  ;;  %v7318_v3 = vld [vmem:[#allocation5 + $0x38] sm:$0xf0] }
  0xfe   : > { %1414 = vmatpush.bf16.msra.mxu2 %v7053_v11  ;;  %1427 = vmatpush.bf16.msra.mxu3 %v7057_v12  ;;  %v9811_v11 = vld [vmem:[#allocation5 + $0x1ac] sm:$0xf0]  ;;  %v7557_v12 = vor.u32 %v9824_v5, %v7556_v4  ;;  %v9849_v5 = vld [vmem:[#allocation5 + $0x2dc] sm:$0xf0] }
  0xff   : > { %1440 = vmatpush.bf16.msrb.mxu0 %v7061_v16  ;;  %1453 = vmatpush.bf16.msrb.mxu1 %v7065_v17  ;;  %v7502_v16 = vld [vmem:[#allocation5 + $0x1b0] sm:$0xf0]  ;;  %v7508_v17 = vld [vmem:[#allocation5 + $0x188] sm:$0xf]  ;;  %v7501_v21 = vor.u32 %v9811_v11, %v7500_v10  ;;  %v7660_v4 = vld [vmem:[#allocation5 + $0x2b0] sm:$0xf] }
 0x100   : > { %v7509_v24 = vor.u32 %v9812_v18, %v7508_v17  ;;  %v9850_v11 = vld [vmem:[#allocation5 + $0x2e4] sm:$0xf0]  ;;  %v7321_v17 = vor.u32 %v9758_v2, %v7318_v3  ;;  %v7661_v18 = vor.u32 %v9849_v5, %v7660_v4  ;;  %v7420_v4 = vld [vmem:[#allocation5 + $0xd0] sm:$0xf]  ;;  %v9789_v5 = vld [vmem:[#allocation5 + $0xfc] sm:$0xf0] }
 0x102   : > { %1415 = vmatpush.bf16.msra.mxu2 %v7005_v25  ;;  %1428 = vmatpush.bf16.msra.mxu3 %v7009_v26  ;;  %v7513_v25 = vor.u32 %v9806_v19, %v7510_v20  ;;  %v9793_v26 = vld [vmem:[#allocation5 + $0x124] sm:$0xf]  ;;  %v7665_v19 = vor.u32 %v9843_v6, %v7662_v7  ;;  %v7612_v20 = vld [vmem:[#allocation5 + $0x250] sm:$0xf] }
 0x103   : > { %1441 = vmatpush.bf16.msrb.mxu0 %v7013_v30  ;;  %1454 = vmatpush.bf16.msrb.mxu1 %v7017_v31  ;;  %v9794_v30 = vld [vmem:[#allocation5 + $0x12c] sm:$0xf]  ;;  %v7462_v31 = vld [vmem:[#allocation5 + $0x158] sm:$0xf0]  ;;  %v7457_v33 = vor.u32 %v9793_v26, %v7454_v27  ;;  %v9838_v27 = vld [vmem:[#allocation5 + $0x284] sm:$0xf0] }
 0x104   : > { %v7465_v37 = vor.u32 %v9794_v30, %v7462_v31 }
 0x106   : > { %1416 = vmatpush.bf16.msra.mxu2 %v6957_v41  ;;  %1429 = vmatpush.bf16.msra.mxu3 %v6961_v42  ;;  %v9788_v41 = vld [vmem:[#allocation5 + $0xf4] sm:$0xf0]  ;;  %v9782_v42 = vld [vmem:[#allocation5 + $0xcc] sm:$0xf] }
 0x107   : > { %1442 = vmatpush.bf16.msrb.mxu0 %v6965_v46  ;;  %1455 = vmatpush.bf16.msrb.mxu1 %v6969_v47  ;;  %v7356_v46 = vld [vmem:[#allocation5 + $0x60] sm:$0xf]  ;;  %v9775_v47 = vld [vmem:[#allocation5 + $0x8c] sm:$0xf0] }
 0x108   : > { %v7357_v57 = vor.u32 %v9775_v47, %v7356_v46  ;;  %v7573_v46 = vor.u32 %v9826_v39, %v7572_v38  ;;  %v7334_v38 = vld [vmem:[#allocation5 + $0x48] sm:$0xf0]  ;;  %v7676_v39 = vld [vmem:[#allocation5 + $0x2c0] sm:$0xf] }
 0x109   : > { %1417 = vmatmul.bf16.vlgmr.msra.gmra.mxu2 %v11289_v14  ;;  %1430 = vmatmul.bf16.vlgmr.msra.gmra.mxu3 %v11289_v14 }
 0x10a   : > { %1941 = vmatpush.bf16.msrb.mxu2 %v7645_v48  ;;  %1954 = vmatpush.bf16.msrb.mxu3 %v7649_v49  ;;  %v7413_v48 = vor.u32 %v9788_v41, %v7412_v40  ;;  %v7417_v49 = vor.u32 %v9782_v42, %v7414_v43  ;;  %v9820_v40 = vld [vmem:[#allocation5 + $0x1fc] sm:$0xf]  ;;  %v7574_v41 = vld [vmem:[#allocation5 + $0x228] sm:$0xf0] }
 0x10b   : > { %1967 = vmatpush.bf16.msra.mxu0 %v7653_v52  ;;  %1980 = vmatpush.bf16.msra.mxu1 %v7657_v53  ;;  %v7364_v52 = vld [vmem:[#allocation5 + $0x68] sm:$0xf]  ;;  %v9776_v53 = vld [vmem:[#allocation5 + $0x94] sm:$0xf0]  ;;  %v7577_v47 = vor.u32 %v9820_v40, %v7574_v41  ;;  %v9851_v40 = vld [vmem:[#allocation5 + $0x2ec] sm:$0xf0] }
 0x10c   : > { %1443 = vmatmul.bf16.vlgmr.msrb.gmra.mxu0 %v11289_v14  ;;  %1456 = vmatmul.bf16.vlgmr.msrb.gmra.mxu1 %v11289_v14  ;;  %v7505_v14 = vor.u32 %v9805_v15, %v7502_v16  ;;  %v7365_v62 = vor.u32 %v9776_v53, %v7364_v52  ;;  %v602_v15 = vpop.f32.mrf.mxu0  ;;  %v9808_v52 = vld [vmem:[#allocation5 + $0x19c] sm:$0xf]  ;;  %v7526_v53 = vld [vmem:[#allocation5 + $0x1c8] sm:$0xf0]  ;;  %v9845_v41 = vld [vmem:[#allocation5 + $0x2c4] sm:$0xf] }
 0x10d   : > { %v11303_v26 = vpack.c.bf16 %v602_v15, %v602_v15  ;;  %v7421_v15 = vor.u32 %v9789_v5, %v7420_v4  ;;  %v9821_v5 = vld [vmem:[#allocation5 + $0x204] sm:$0xf] }
 0x10e   : > { %1942 = vmatpush.bf16.msrb.mxu2 %v7597_v60  ;;  %1955 = vmatpush.bf16.msrb.mxu3 %v7601_v61  ;;  %v9757_v60 = vld [vmem:[#allocation5 + $0x4] sm:$0xf]  ;;  %v7310_v61 = vld [vmem:[#allocation5 + $0x30] sm:$0xf0] }
 0x10f   : > { %1968 = vmatpush.bf16.msra.mxu0 %v7605_v0  ;;  %1981 = vmatpush.bf16.msra.mxu1 %v7609_v1  ;;  %v7316_v0 = vld [vmem:[#allocation5 + $0x8] sm:$0xf]  ;;  %v9764_v1 = vld [vmem:[#allocation5 + $0x34] sm:$0xf0]  ;;  %v7313_v10 = vor.u32 %v9757_v60, %v7310_v61  ;;  %v9795_v60 = vld [vmem:[#allocation5 + $0x134] sm:$0xf] }
 0x110   : > { %v7317_v16 = vor.u32 %v9764_v1, %v7316_v0  ;;  %v7470_v61 = vld [vmem:[#allocation5 + $0x160] sm:$0xf0]  ;;  %v9796_v0 = vld [vmem:[#allocation5 + $0x13c] sm:$0xf]  ;;  %v7478_v1 = vld [vmem:[#allocation5 + $0x168] sm:$0xf0] }
 0x111   : > { %v7473_v3 = vor.u32 %v9795_v60, %v7470_v61  ;;  %v7481_v7 = vor.u32 %v9796_v0, %v7478_v1  ;;  %v9840_v60 = vld [vmem:[#allocation5 + $0x294] sm:$0xf0]  ;;  %v9834_v61 = vld [vmem:[#allocation5 + $0x26c] sm:$0xf]  ;;  %v7580_v1 = vld [vmem:[#allocation5 + $0x200] sm:$0xf] }
 0x112   : > { %1943 = vmatpush.bf16.msrb.mxu2 %v7549_v8  ;;  %1956 = vmatpush.bf16.msrb.mxu3 %v7553_v9  ;;  %v7668_v8 = vld [vmem:[#allocation5 + $0x2b8] sm:$0xf]  ;;  %v7309_v9 = vor.u32 %v9763_v59, %v7308_v56  ;;  %v7468_v56 = vld [vmem:[#allocation5 + $0x130] sm:$0xf]  ;;  %v7529_v59 = vor.u32 %v9808_v52, %v7526_v53  ;;  %v7628_v53 = vld [vmem:[#allocation5 + $0x260] sm:$0xf] }
 0x113   : > { %1969 = vmatpush.bf16.msra.mxu0 %v7557_v12  ;;  %1982 = vmatpush.bf16.msra.mxu1 %v7561_v13  ;;  %v9844_v12 = vld [vmem:[#allocation5 + $0x2bc] sm:$0xf]  ;;  %v7670_v13 = vld [vmem:[#allocation5 + $0x2e8] sm:$0xf0] }
 0x114   : > { %v7673_v22 = vor.u32 %v9844_v12, %v7670_v13  ;;  %v9784_v12 = vld [vmem:[#allocation5 + $0xdc] sm:$0xf]  ;;  %v7430_v13 = vld [vmem:[#allocation5 + $0x108] sm:$0xf0] }
 0x116   : > { %1944 = vmatpush.bf16.msrb.mxu2 %v7501_v21  ;;  %1957 = vmatpush.bf16.msrb.mxu3 %v7505_v14  ;;  %v9837_v21 = vld [vmem:[#allocation5 + $0x27c] sm:$0xf0]  ;;  %v7669_v14 = vor.u32 %v9850_v11, %v7668_v8  ;;  %v9783_v8 = vld [vmem:[#allocation5 + $0xd4] sm:$0xf]  ;;  %v9790_v11 = vld [vmem:[#allocation5 + $0x104] sm:$0xf0] }
 0x117   : > { %1970 = vmatpush.bf16.msra.mxu0 %v7509_v24  ;;  %1983 = vmatpush.bf16.msra.mxu1 %v7513_v25  ;;  %v7614_v24 = vld [vmem:[#allocation5 + $0x280] sm:$0xf0]  ;;  %v7620_v25 = vld [vmem:[#allocation5 + $0x258] sm:$0xf]  ;;  %v7613_v30 = vor.u32 %v9837_v21, %v7612_v20  ;;  %v7433_v20 = vor.u32 %v9784_v12, %v7430_v13  ;;  %v9771_v21 = vld [vmem:[#allocation5 + $0x74] sm:$0xf] }
 0x118   : > { %v7617_v31 = vor.u32 %v9831_v23, %v7614_v24  ;;  %v7621_v34 = vor.u32 %v9838_v27, %v7620_v25  ;;  %v9778_v23 = vld [vmem:[#allocation5 + $0xa4] sm:$0xf0]  ;;  %v9772_v24 = vld [vmem:[#allocation5 + $0x7c] sm:$0xf]  ;;  %v7382_v25 = vld [vmem:[#allocation5 + $0xa8] sm:$0xf0] }
 0x119   : > { %v7324_v27 = vld [vmem:[#allocation5 + $0x10] sm:$0xf]  ;;  %v7532_v13 = vld [vmem:[#allocation5 + $0x1a0] sm:$0xf] }
 0x11a   : > { %1945 = vmatpush.bf16.msrb.mxu2 %v7453_v32  ;;  %1958 = vmatpush.bf16.msrb.mxu3 %v7457_v33  ;;  %v7564_v32 = vld [vmem:[#allocation5 + $0x1f0] sm:$0xf]  ;;  %v9825_v33 = vld [vmem:[#allocation5 + $0x21c] sm:$0xf0] }
 0x11b   : > { %1971 = vmatpush.bf16.msra.mxu0 %v7461_v36  ;;  %1984 = vmatpush.bf16.msra.mxu1 %v7465_v37  ;;  %v9819_v36 = vld [vmem:[#allocation5 + $0x1f4] sm:$0xf]  ;;  %v7566_v37 = vld [vmem:[#allocation5 + $0x220] sm:$0xf0]  ;;  %v7565_v42 = vor.u32 %v9825_v33, %v7564_v32 }
 0x11c   : > { %v7569_v43 = vor.u32 %v9819_v36, %v7566_v37  ;;  %v7326_v32 = vld [vmem:[#allocation5 + $0x40] sm:$0xf0]  ;;  %v9766_v36 = vld [vmem:[#allocation5 + $0x44] sm:$0xf0]  ;;  %v9760_v37 = vld [vmem:[#allocation5 + $0x1c] sm:$0xf] }
 0x11e   : > { %1946 = vmatpush.bf16.msrb.mxu2 %v7405_v44  ;;  %1959 = vmatpush.bf16.msrb.mxu3 %v7409_v45  ;;  %v7516_v44 = vld [vmem:[#allocation5 + $0x190] sm:$0xf]  ;;  %v9813_v45 = vld [vmem:[#allocation5 + $0x1bc] sm:$0xf0] }
 0x11f   : > { %1972 = vmatpush.bf16.msra.mxu0 %v7413_v48  ;;  %1985 = vmatpush.bf16.msra.mxu1 %v7417_v49  ;;  %v9807_v48 = vld [vmem:[#allocation5 + $0x194] sm:$0xf]  ;;  %v7518_v49 = vld [vmem:[#allocation5 + $0x1c0] sm:$0xf0]  ;;  %v7517_v54 = vor.u32 %v9813_v45, %v7516_v44 }
 0x120   : > { %v7521_v55 = vor.u32 %v9807_v48, %v7518_v49  ;;  %v7686_v48 = vld [vmem:[#allocation5 + $0x2f8] sm:$0xf0] }
 0x122   : > { %1947 = vmatpush.bf16.msrb.mxu2 %v7357_v57  ;;  %1960 = vmatpush.bf16.msrb.mxu3 %v7361_v58  ;;  %v9801_v57 = vld [vmem:[#allocation5 + $0x15c] sm:$0xf0]  ;;  %v7525_v58 = vor.u32 %v9814_v51, %v7524_v50  ;;  %v7337_v50 = vor.u32 %v9760_v37, %v7334_v38  ;;  %v7677_v51 = vor.u32 %v9851_v40, %v7676_v39  ;;  %v9791_v39 = vld [vmem:[#allocation5 + $0x10c] sm:$0xf0] }
 0x123   : > { %1973 = vmatpush.bf16.msra.mxu0 %v7365_v62  ;;  %1986 = vmatpush.bf16.msra.mxu1 %v7369_v63  ;;  %v7476_v62 = vld [vmem:[#allocation5 + $0x138] sm:$0xf]  ;;  %v9802_v63 = vld [vmem:[#allocation5 + $0x164] sm:$0xf0]  ;;  %v7469_v2 = vor.u32 %v9801_v57, %v7468_v56  ;;  %v9833_v57 = vld [vmem:[#allocation5 + $0x264] sm:$0xf] }
 0x124   : > { %v7477_v6 = vor.u32 %v9802_v63, %v7476_v62  ;;  %v7638_v62 = vld [vmem:[#allocation5 + $0x298] sm:$0xf0]  ;;  %v7436_v38 = vld [vmem:[#allocation5 + $0xe0] sm:$0xf] }
 0x125   : > { %v7641_v4 = vor.u32 %v9834_v61, %v7638_v62  ;;  %v7340_v62 = vld [vmem:[#allocation5 + $0x20] sm:$0xf] }
 0x126   : > { %1948 = vmatpush.bf16.msrb.mxu2 %v7309_v9  ;;  %1961 = vmatpush.bf16.msrb.mxu3 %v7313_v10  ;;  %v7422_v9 = vld [vmem:[#allocation5 + $0x100] sm:$0xf0]  ;;  %v7428_v10 = vld [vmem:[#allocation5 + $0xd8] sm:$0xf] }
 0x127   : > { %1974 = vmatpush.bf16.msra.mxu0 %v7317_v16  ;;  %1987 = vmatpush.bf16.msra.mxu1 %v7321_v17  ;;  %v7425_v16 = vor.u32 %v9783_v8, %v7422_v9  ;;  %v7372_v17 = vld [vmem:[#allocation5 + $0x70] sm:$0xf]  ;;  %v9828_v8 = vld [vmem:[#allocation5 + $0x234] sm:$0xf0]  ;;  %v9822_v9 = vld [vmem:[#allocation5 + $0x20c] sm:$0xf] }
 0x129   : > { %1949 = vmatmul.bf16.vlgmr.msrb.gmra.mxu2 %v11303_v26  ;;  %1962 = vmatmul.bf16.vlgmr.msrb.gmra.mxu3 %v11303_v26 }
 0x12a   : > { %1993 = vmatpush.bf16.msra.mxu2 %v7661_v18  ;;  %2006 = vmatpush.bf16.msra.mxu3 %v7665_v19  ;;  %v9777_v18 = vld [vmem:[#allocation5 + $0x9c] sm:$0xf0]  ;;  %v7429_v19 = vor.u32 %v9790_v11, %v7428_v10  ;;  %v7590_v10 = vld [vmem:[#allocation5 + $0x238] sm:$0xf0] }
 0x12b   : > { %2019 = vmatpush.bf16.msrb.mxu0 %v7669_v14  ;;  %2032 = vmatpush.bf16.msrb.mxu1 %v7673_v22  ;;  %v7374_v14 = vld [vmem:[#allocation5 + $0xa0] sm:$0xf0]  ;;  %v7380_v22 = vld [vmem:[#allocation5 + $0x78] sm:$0xf]  ;;  %v7373_v28 = vor.u32 %v9777_v18, %v7372_v17  ;;  %v7593_v17 = vor.u32 %v9822_v9, %v7590_v10 }
 0x12c   : > { %1975 = vmatmul.bf16.vlgmr.msra.gmra.mxu0 %v11303_v26  ;;  %1988 = vmatmul.bf16.vlgmr.msra.gmra.mxu1 %v11303_v26  ;;  %v7377_v29 = vor.u32 %v9771_v21, %v7374_v14  ;;  %v7381_v33 = vor.u32 %v9778_v23, %v7380_v22  ;;  %v9809_v18 = vld [vmem:[#allocation5 + $0x1a4] sm:$0xf]  ;;  %v9816_v21 = vld [vmem:[#allocation5 + $0x1d4] sm:$0xf0]  ;;  %v9810_v14 = vld [vmem:[#allocation5 + $0x1ac] sm:$0xf] }
 0x12d   : > { %v7542_v22 = vld [vmem:[#allocation5 + $0x1d8] sm:$0xf0] }
 0x12e   : > { %1994 = vmatpush.bf16.msra.mxu2 %v7613_v30  ;;  %2007 = vmatpush.bf16.msra.mxu3 %v7617_v31  ;;  %v9765_v30 = vld [vmem:[#allocation5 + $0x3c] sm:$0xf0]  ;;  %v9759_v31 = vld [vmem:[#allocation5 + $0x14] sm:$0xf] }
 0x12f   : > { %2020 = vmatpush.bf16.msrb.mxu0 %v7621_v34  ;;  %2033 = vmatpush.bf16.msrb.mxu1 %v7625_v35  ;;  %v7385_v34 = vor.u32 %v9772_v24, %v7382_v25  ;;  %v7332_v35 = vld [vmem:[#allocation5 + $0x18] sm:$0xf]  ;;  %v7325_v44 = vor.u32 %v9765_v30, %v7324_v27  ;;  %v7329_v45 = vor.u32 %v9759_v31, %v7326_v32  ;;  %v7484_v25 = vld [vmem:[#allocation5 + $0x140] sm:$0xf]  ;;  %v9803_v27 = vld [vmem:[#allocation5 + $0x16c] sm:$0xf0] }
 0x130   : > { %v7333_v49 = vor.u32 %v9766_v36, %v7332_v35  ;;  %v9797_v30 = vld [vmem:[#allocation5 + $0x144] sm:$0xf]  ;;  %v7486_v31 = vld [vmem:[#allocation5 + $0x170] sm:$0xf0]  ;;  %v7492_v32 = vld [vmem:[#allocation5 + $0x148] sm:$0xf]  ;;  %v7485_v36 = vor.u32 %v9803_v27, %v7484_v25 }
 0x131   : > { %v7494_v35 = vld [vmem:[#allocation5 + $0x178] sm:$0xf0]  ;;  %v7489_v37 = vor.u32 %v9797_v30, %v7486_v31 }
 0x132   : > { %1995 = vmatpush.bf16.msra.mxu2 %v7565_v42  ;;  %2008 = vmatpush.bf16.msra.mxu3 %v7569_v43  ;;  %v7678_v42 = vld [vmem:[#allocation5 + $0x2f0] sm:$0xf0]  ;;  %v7684_v43 = vld [vmem:[#allocation5 + $0x2c8] sm:$0xf] }
 0x133   : > { %2021 = vmatpush.bf16.msrb.mxu0 %v7573_v46  ;;  %2034 = vmatpush.bf16.msrb.mxu1 %v7577_v47  ;;  %v9852_v46 = vld [vmem:[#allocation5 + $0x2f4] sm:$0xf0]  ;;  %v9846_v47 = vld [vmem:[#allocation5 + $0x2cc] sm:$0xf]  ;;  %v7681_v52 = vor.u32 %v9845_v41, %v7678_v42  ;;  %v9785_v42 = vld [vmem:[#allocation5 + $0xe4] sm:$0xf] }
 0x134   : > { %v7689_v56 = vor.u32 %v9846_v47, %v7686_v48  ;;  %v7446_v47 = vld [vmem:[#allocation5 + $0x118] sm:$0xf0]  ;;  %v7437_v48 = vor.u32 %v9791_v39, %v7436_v38  ;;  %v10033_v38 = vld [vmem:[#allocation5 + $0x8a4] sm:$0xf] }
 0x136   : > { %1996 = vmatpush.bf16.msra.mxu2 %v7517_v54  ;;  %2009 = vmatpush.bf16.msra.mxu3 %v7521_v55  ;;  %v9839_v54 = vld [vmem:[#allocation5 + $0x28c] sm:$0xf0]  ;;  %v7685_v55 = vor.u32 %v9852_v46, %v7684_v43  ;;  %v7438_v43 = vld [vmem:[#allocation5 + $0x110] sm:$0xf0]  ;;  %v9786_v46 = vld [vmem:[#allocation5 + $0xec] sm:$0xf] }
 0x137   : > { %2022 = vmatpush.bf16.msrb.mxu0 %v7525_v58  ;;  %2035 = vmatpush.bf16.msrb.mxu1 %v7529_v59  ;;  %v7630_v58 = vld [vmem:[#allocation5 + $0x290] sm:$0xf0]  ;;  %v7636_v59 = vld [vmem:[#allocation5 + $0x268] sm:$0xf]  ;;  %v7629_v63 = vor.u32 %v9839_v54, %v7628_v53  ;;  %v7449_v53 = vor.u32 %v9786_v46, %v7446_v47  ;;  %v9773_v54 = vld [vmem:[#allocation5 + $0x84] sm:$0xf] }
 0x138   : > { %v7633_v0 = vor.u32 %v9833_v57, %v7630_v58  ;;  %v9780_v57 = vld [vmem:[#allocation5 + $0xb4] sm:$0xf0]  ;;  %v9774_v58 = vld [vmem:[#allocation5 + $0x8c] sm:$0xf] }
 0x139   : > { %v10034_v47 = vld [vmem:[#allocation5 + $0x8ac] sm:$0xf] }
 0x13a   : > { %1997 = vmatpush.bf16.msra.mxu2 %v7469_v2  ;;  %2010 = vmatpush.bf16.msra.mxu3 %v7473_v3  ;;  %v9827_v2 = vld [vmem:[#allocation5 + $0x22c] sm:$0xf0]  ;;  %v7637_v3 = vor.u32 %v9840_v60, %v7636_v59  ;;  %v7398_v59 = vld [vmem:[#allocation5 + $0xb8] sm:$0xf0] }
 0x13b   : > { %2023 = vmatpush.bf16.msrb.mxu0 %v7477_v6  ;;  %2036 = vmatpush.bf16.msrb.mxu1 %v7481_v7  ;;  %v7582_v6 = vld [vmem:[#allocation5 + $0x230] sm:$0xf0]  ;;  %v7588_v7 = vld [vmem:[#allocation5 + $0x208] sm:$0xf]  ;;  %v7581_v11 = vor.u32 %v9827_v2, %v7580_v1  ;;  %v7401_v1 = vor.u32 %v9774_v58, %v7398_v59  ;;  %v9761_v2 = vld [vmem:[#allocation5 + $0x24] sm:$0xf] }
 0x13c   : > { %v7585_v12 = vor.u32 %v9821_v5, %v7582_v6  ;;  %v9768_v5 = vld [vmem:[#allocation5 + $0x54] sm:$0xf0]  ;;  %v9762_v6 = vld [vmem:[#allocation5 + $0x2c] sm:$0xf] }
 0x13d   : > { %v10028_v58 = vld [vmem:[#allocation5 + $0x874] sm:$0xf0] }
 0x13e   : > { %1998 = vmatpush.bf16.msra.mxu2 %v7421_v15  ;;  %2011 = vmatpush.bf16.msra.mxu3 %v7425_v16  ;;  %v9815_v15 = vld [vmem:[#allocation5 + $0x1cc] sm:$0xf0]  ;;  %v7589_v16 = vor.u32 %v9828_v8, %v7588_v7  ;;  %v7350_v7 = vld [vmem:[#allocation5 + $0x58] sm:$0xf0] }
 0x13f   : > { %2024 = vmatpush.bf16.msrb.mxu0 %v7429_v19  ;;  %2037 = vmatpush.bf16.msrb.mxu1 %v7433_v20  ;;  %v7534_v19 = vld [vmem:[#allocation5 + $0x1d0] sm:$0xf0]  ;;  %v7540_v20 = vld [vmem:[#allocation5 + $0x1a8] sm:$0xf]  ;;  %v7533_v23 = vor.u32 %v9815_v15, %v7532_v13 }
 0x140   : > { %v7537_v24 = vor.u32 %v9809_v18, %v7534_v19  ;;  %v11322_v13 = vld [vmem:[%s11252_s2 + $0x8] sm:$0xff] }
 0x142   : > { %1999 = vmatpush.bf16.msra.mxu2 %v7373_v28  ;;  %2012 = vmatpush.bf16.msra.mxu3 %v7377_v29  ;;  %v7541_v28 = vor.u32 %v9816_v21, %v7540_v20  ;;  %v7545_v29 = vor.u32 %v9810_v14, %v7542_v22 }
 0x143   : > { %2025 = vmatpush.bf16.msrb.mxu0 %v7381_v33  ;;  %2038 = vmatpush.bf16.msrb.mxu1 %v7385_v34  ;;  %v9804_v33 = vld [vmem:[#allocation5 + $0x174] sm:$0xf0]  ;;  %v9798_v34 = vld [vmem:[#allocation5 + $0x14c] sm:$0xf] }
 0x144   : > { %v7493_v40 = vor.u32 %v9804_v33, %v7492_v32  ;;  %v7497_v41 = vor.u32 %v9798_v34, %v7494_v35 }
 0x146   : > { %2000 = vmatpush.bf16.msra.mxu2 %v7325_v44  ;;  %2013 = vmatpush.bf16.msra.mxu3 %v7329_v45  ;;  %v7444_v44 = vld [vmem:[#allocation5 + $0xe8] sm:$0xf]  ;;  %v9792_v45 = vld [vmem:[#allocation5 + $0x114] sm:$0xf0] }
 0x147   : > { %2026 = vmatpush.bf16.msrb.mxu0 %v7333_v49  ;;  %2039 = vmatpush.bf16.msrb.mxu1 %v7337_v50  ;;  %v7441_v49 = vor.u32 %v9785_v42, %v7438_v43  ;;  %v7388_v50 = vld [vmem:[#allocation5 + $0x80] sm:$0xf]  ;;  %v10040_v42 = vld [vmem:[#allocation5 + $0x8d4] sm:$0xf0] }
 0x149   : > { %2001 = vmatmul.bf16.vlgmr.msra.gmra.mxu2 %v11303_v26  ;;  %2014 = vmatmul.bf16.vlgmr.msra.gmra.mxu3 %v11303_v26 }
 0x14a   : > { %2045 = vmatpush.bf16.msrb.mxu2 %v7677_v51  ;;  %2058 = vmatpush.bf16.msrb.mxu3 %v7681_v52  ;;  %v9779_v51 = vld [vmem:[#allocation5 + $0xac] sm:$0xf0]  ;;  %v7445_v52 = vor.u32 %v9792_v45, %v7444_v44 }
 0x14b   : > { %2071 = vmatpush.bf16.msra.mxu0 %v7685_v55  ;;  %2084 = vmatpush.bf16.msra.mxu1 %v7689_v56  ;;  %v7390_v55 = vld [vmem:[#allocation5 + $0xb0] sm:$0xf0]  ;;  %v7396_v56 = vld [vmem:[#allocation5 + $0x88] sm:$0xf]  ;;  %v7389_v60 = vor.u32 %v9779_v51, %v7388_v50 }
 0x14c   : > { %2027 = vmatmul.bf16.vlgmr.msrb.gmra.mxu0 %v11303_v26  ;;  %2040 = vmatmul.bf16.vlgmr.msrb.gmra.mxu1 %v11303_v26  ;;  %v7393_v61 = vor.u32 %v9773_v54, %v7390_v55  ;;  %v10021_v54 = vld [vmem:[#allocation5 + $0x844] sm:$0xf] }
 0x14e   : > { %2046 = vmatpush.bf16.msrb.mxu2 %v7629_v63  ;;  %2059 = vmatpush.bf16.msrb.mxu3 %v7633_v0  ;;  %v9767_v63 = vld [vmem:[#allocation5 + $0x4c] sm:$0xf0]  ;;  %v7397_v0 = vor.u32 %v9780_v57, %v7396_v56  ;;  %v7984_v56 = vld [vmem:[#allocation5 + $0x870] sm:$0xf0]  ;;  %v7990_v57 = vld [vmem:[#allocation5 + $0x848] sm:$0xf] }
 0x14f   : > { %2072 = vmatpush.bf16.msra.mxu0 %v7637_v3  ;;  %2085 = vmatpush.bf16.msra.mxu1 %v7641_v4  ;;  %v7342_v3 = vld [vmem:[#allocation5 + $0x50] sm:$0xf0]  ;;  %v7348_v4 = vld [vmem:[#allocation5 + $0x28] sm:$0xf]  ;;  %v7341_v8 = vor.u32 %v9767_v63, %v7340_v62  ;;  %v7987_v59 = vor.u32 %v10021_v54, %v7984_v56  ;;  %v7992_v62 = vld [vmem:[#allocation5 + $0x878] sm:$0xf0] }
 0x150   : > { %v7345_v9 = vor.u32 %v9761_v2, %v7342_v3  ;;  %v7349_v10 = vor.u32 %v9768_v5, %v7348_v4  ;;  %v10009_v2 = vld [vmem:[#allocation5 + $0x7e4] sm:$0xf] }
 0x152   : > { %2047 = vmatpush.bf16.msrb.mxu2 %v7581_v11  ;;  %2060 = vmatpush.bf16.msrb.mxu3 %v7585_v12  ;;  %v7353_v11 = vor.u32 %v9762_v6, %v7350_v7  ;;  %v11314_v12 = vld [vmem:[%s11252_s2 + $0x10] sm:$0xff]  ;;  %v7936_v6 = vld [vmem:[#allocation5 + $0x810] sm:$0xf0]  ;;  %v7942_v7 = vld [vmem:[#allocation5 + $0x7e8] sm:$0xf] }
 0x153   : > { %2073 = vmatpush.bf16.msra.mxu0 %v7589_v16  ;;  %2086 = vmatpush.bf16.msra.mxu1 %v7593_v17  ;;  %v11330_v17 = vld [vmem:[%s11252_s2] sm:$0xff] }
 0x156   : > { %2048 = vmatpush.bf16.msrb.mxu2 %v7533_v23  ;;  %2061 = vmatpush.bf16.msrb.mxu3 %v7537_v24 }
 0x157   : > { %2074 = vmatpush.bf16.msra.mxu0 %v7541_v28  ;;  %2087 = vmatpush.bf16.msra.mxu1 %v7545_v29 }
 0x15a   : > { %2049 = vmatpush.bf16.msrb.mxu2 %v7485_v36  ;;  %2062 = vmatpush.bf16.msrb.mxu3 %v7489_v37  ;;  %v8030_v36 = vld [vmem:[#allocation5 + $0x8a0] sm:$0xf]  ;;  %v10039_v37 = vld [vmem:[#allocation5 + $0x8cc] sm:$0xf0] }
 0x15b   : > { %2075 = vmatpush.bf16.msra.mxu0 %v7493_v40  ;;  %2088 = vmatpush.bf16.msra.mxu1 %v7497_v41  ;;  %v8031_v39 = vor.u32 %v10039_v37, %v8030_v36  ;;  %v8032_v40 = vld [vmem:[#allocation5 + $0x8d0] sm:$0xf0]  ;;  %v8038_v41 = vld [vmem:[#allocation5 + $0x8a8] sm:$0xf]  ;;  %v10004_v37 = vld [vmem:[#allocation5 + $0x7b4] sm:$0xf0] }
 0x15c   : > { %v8035_v45 = vor.u32 %v10033_v38, %v8032_v40  ;;  %v8039_v46 = vor.u32 %v10040_v42, %v8038_v41  ;;  %v7894_v36 = vld [vmem:[#allocation5 + $0x788] sm:$0xf]  ;;  %v9998_v40 = vld [vmem:[#allocation5 + $0x78c] sm:$0xf]  ;;  %v7896_v41 = vld [vmem:[#allocation5 + $0x7b8] sm:$0xf0] }
 0x15d   : > { %v7838_v42 = vld [vmem:[#allocation5 + $0x720] sm:$0xf] }
 0x15e   : > { %2050 = vmatpush.bf16.msrb.mxu2 %v7437_v48  ;;  %2063 = vmatpush.bf16.msrb.mxu3 %v7441_v49  ;;  %v8040_v48 = vld [vmem:[#allocation5 + $0x8d8] sm:$0xf0] }
 0x15f   : > { %2076 = vmatpush.bf16.msra.mxu0 %v7445_v52  ;;  %2089 = vmatpush.bf16.msra.mxu1 %v7449_v53  ;;  %v8043_v49 = vor.u32 %v10034_v47, %v8040_v48  ;;  %v7982_v52 = vld [vmem:[#allocation5 + $0x840] sm:$0xf]  ;;  %v10027_v53 = vld [vmem:[#allocation5 + $0x86c] sm:$0xf0] }
 0x160   : > { %v7983_v55 = vor.u32 %v10027_v53, %v7982_v52  ;;  %v9992_v52 = vld [vmem:[#allocation5 + $0x754] sm:$0xf0]  ;;  %v9986_v53 = vld [vmem:[#allocation5 + $0x72c] sm:$0xf] }
 0x162   : > { %2051 = vmatpush.bf16.msrb.mxu2 %v7389_v60  ;;  %2064 = vmatpush.bf16.msrb.mxu3 %v7393_v61  ;;  %v7991_v60 = vor.u32 %v10028_v58, %v7990_v57  ;;  %v10022_v61 = vld [vmem:[#allocation5 + $0x84c] sm:$0xf]  ;;  %v7790_v57 = vld [vmem:[#allocation5 + $0x6c0] sm:$0xf]  ;;  %v9979_v58 = vld [vmem:[#allocation5 + $0x6ec] sm:$0xf0] }
 0x163   : > { %2077 = vmatpush.bf16.msra.mxu0 %v7397_v0  ;;  %2090 = vmatpush.bf16.msra.mxu1 %v7401_v1  ;;  %v7995_v63 = vor.u32 %v10022_v61, %v7992_v62  ;;  %v7934_v0 = vld [vmem:[#allocation5 + $0x7e0] sm:$0xf]  ;;  %v10015_v1 = vld [vmem:[#allocation5 + $0x80c] sm:$0xf0]  ;;  %v7792_v61 = vld [vmem:[#allocation5 + $0x6f0] sm:$0xf0] }
 0x164   : > { %v7935_v5 = vor.u32 %v10015_v1, %v7934_v0  ;;  %v7798_v62 = vld [vmem:[#allocation5 + $0x6c8] sm:$0xf] }
 0x166   : > { %2052 = vmatpush.bf16.msrb.mxu2 %v7341_v8  ;;  %2065 = vmatpush.bf16.msrb.mxu3 %v7345_v9  ;;  %v11325_v15 = vpop.f32.mrf.mxu0  ;;  %v11327_v16 = vpop.f32.mrf.mxu1  ;;  %v10016_v8 = vld [vmem:[#allocation5 + $0x814] sm:$0xf0]  ;;  %v7939_v9 = vor.u32 %v10009_v2, %v7936_v6  ;;  %v9974_v6 = vld [vmem:[#allocation5 + $0x6cc] sm:$0xf] }
 0x167   : > { %2078 = vmatpush.bf16.msra.mxu0 %v7349_v10  ;;  %2091 = vmatpush.bf16.msra.mxu1 %v7353_v11  ;;  %v7943_v10 = vor.u32 %v10016_v8, %v7942_v7  ;;  %v10010_v11 = vld [vmem:[#allocation5 + $0x7ec] sm:$0xf]  ;;  %v7800_v7 = vld [vmem:[#allocation5 + $0x6f8] sm:$0xf0]  ;;  %v7742_v8 = vld [vmem:[#allocation5 + $0x660] sm:$0xf] }
 0x169   : > { %2053 = vmatmul.bf16.vlgmr.msrb.gmra.mxu2 %v11303_v26  ;;  %2066 = vmatmul.bf16.vlgmr.msrb.gmra.mxu3 %v11303_v26 }
 0x16a   : > { %2115 = vmatpush.msra.mxu2 %v11314_v12  ;;  %2079 = vmatmul.bf16.vlgmr.msra.gmra.mxu0 %v11303_v26 }
 0x16b   : > { %2092 = vmatmul.bf16.vlgmr.msra.gmra.mxu1 %v11303_v26  ;;  %v11333_v18 = vpop.f32.mrf.mxu2  ;;  %v11335_v19 = vpop.f32.mrf.mxu3  ;;  %v7690_v26 = vld [vmem:[%s11768_s30 + $0x10] sm:$0x3f]  ;;  %2700 = vmatpush.bf16.msra.mxu3 %v8031_v39  ;;  %v7895_v39 = vor.u32 %v10004_v37, %v7894_v36  ;;  %v7752_v36 = vld [vmem:[#allocation5 + $0x698] sm:$0xf0] }
 0x16c   : > { %2116 = vmatpush.msra.mxu2 %v11322_v13  ;;  %2713 = vmatpush.bf16.msrb.mxu0 %v8035_v45  ;;  %v9985_v45 = vld [vmem:[#allocation5 + $0x724] sm:$0xf]  ;;  %v7694_v37 = vld [vmem:[#allocation5 + $0x600] sm:$0xf] }
 0x16d   : > { %2726 = vmatpush.bf16.msrb.mxu1 %v8039_v46  ;;  %v7840_v46 = vld [vmem:[#allocation5 + $0x750] sm:$0xf0] }
 0x16e   : > { %2117 = vmatpush.msra.mxu2 %v11330_v17  ;;  %v1342_v20 = vpop.f32.mrf.mxu0  ;;  %v1355_v21 = vpop.f32.mrf.mxu1 }
 0x16f   : > { %2701 = vmatpush.bf16.msra.mxu3 %v7983_v55  ;;  %v7944_v20 = vld [vmem:[#allocation5 + $0x818] sm:$0xf0] }
 0x170   : > { %2739 = vmatpush.bf16.msrb.mxu2 %v8043_v49  ;;  %2714 = vmatpush.bf16.msrb.mxu0 %v7987_v59  ;;  %v7947_v21 = vor.u32 %v10010_v11, %v7944_v20  ;;  %v7848_v55 = vld [vmem:[#allocation5 + $0x758] sm:$0xf0]  ;;  %v9973_v59 = vld [vmem:[#allocation5 + $0x6c4] sm:$0xf]  ;;  %v7744_v20 = vld [vmem:[#allocation5 + $0x690] sm:$0xf0] }
 0x171   : > { %2727 = vmatpush.bf16.msrb.mxu1 %v7991_v60  ;;  %v7851_v56 = vor.u32 %v9986_v53, %v7848_v55  ;;  %v7791_v60 = vor.u32 %v9979_v58, %v7790_v57  ;;  %v7795_v2 = vor.u32 %v9973_v59, %v7792_v61  ;;  %v9961_v11 = vld [vmem:[#allocation5 + $0x664] sm:$0xf]  ;;  %v8054_v53 = vld [vmem:[#allocation5 + $0x8b8] sm:$0xf]  ;;  %v10036_v57 = vld [vmem:[#allocation5 + $0x8bc] sm:$0xf] }
 0x172   : > { %v8056_v58 = vld [vmem:[#allocation5 + $0x8e8] sm:$0xf0] }
 0x173   : > { %v1316_v14 = vpop.f32.mrf.mxu2  ;;  %v1329_v22 = vpop.f32.mrf.mxu3  ;;  %2702 = vmatpush.bf16.msra.mxu3 %v7935_v5  ;;  %v8059_v61 = vor.u32 %v10036_v57, %v8056_v58  ;;  %v9993_v58 = vld [vmem:[#allocation5 + $0x75c] sm:$0xf0] }
 0x174   : > { %2740 = vmatpush.bf16.msrb.mxu2 %v7995_v63  ;;  %2715 = vmatpush.bf16.msrb.mxu0 %v7939_v9  ;;  %v10003_v14 = vld [vmem:[#allocation5 + $0x7ac] sm:$0xf0]  ;;  %v9997_v22 = vld [vmem:[#allocation5 + $0x784] sm:$0xf]  ;;  %v9980_v63 = vld [vmem:[#allocation5 + $0x6f4] sm:$0xf0]  ;;  %v7803_v9 = vor.u32 %v9974_v6, %v7800_v7 }
 0x175   : > { %2728 = vmatpush.bf16.msrb.mxu1 %v7943_v10  ;;  %v7799_v5 = vor.u32 %v9980_v63, %v7798_v62  ;;  %v9967_v10 = vld [vmem:[#allocation5 + $0x68c] sm:$0xf0]  ;;  %v10029_v63 = vld [vmem:[#allocation5 + $0x87c] sm:$0xf0]  ;;  %v10030_v6 = vld [vmem:[#allocation5 + $0x884] sm:$0xf0] }
 0x176   : > { %v11341_v23 = vpop.f32.mrf.mxu0  ;;  %v11343_v24 = vpop.f32.mrf.mxu1  ;;  %v7998_v62 = vld [vmem:[#allocation5 + $0x850] sm:$0xf] }
 0x178   : > { %2741 = vmatpush.bf16.msrb.mxu2 %v7947_v21  ;;  %v7743_v21 = vor.u32 %v9967_v10, %v7742_v8  ;;  %v8008_v10 = vld [vmem:[#allocation5 + $0x888] sm:$0xf0] }
 0x179   : > { %7691 = vmatmul.msk.f32.vlgmr.msra.gmra.mxu2 %vm581_vm0, %v7690_v26  ;;  %v7886_v26 = vld [vmem:[#allocation5 + $0x780] sm:$0xf]  ;;  %2729 = vmatpush.bf16.msrb.mxu1 %v7895_v39 }
 0x17b   : > { %v11345_v25 = vpop.f32.mrf.mxu2  ;;  %v11347_v27 = vpop.f32.mrf.mxu3 }
 0x17e   : > { %v1394_v28 = vpop.f32.mrf.mxu0  ;;  %v1407_v29 = vpop.f32.mrf.mxu1 }
 0x183   : > { %v1368_v30 = vpop.f32.mrf.mxu2  ;;  %v1381_v31 = vpop.f32.mrf.mxu3 }
 0x184   : > { %v7887_v30 = vor.u32 %v10003_v14, %v7886_v26  ;;  %v7888_v31 = vld [vmem:[#allocation5 + $0x7b0] sm:$0xf0]  ;;  %v7750_v26 = vld [vmem:[#allocation5 + $0x668] sm:$0xf]  ;;  %v9968_v14 = vld [vmem:[#allocation5 + $0x694] sm:$0xf0] }
 0x185   : > { %v7891_v38 = vor.u32 %v9997_v22, %v7888_v31  ;;  %v9962_v22 = vld [vmem:[#allocation5 + $0x66c] sm:$0xf]  ;;  %v7751_v31 = vor.u32 %v9968_v14, %v7750_v26  ;;  %v10011_v26 = vld [vmem:[#allocation5 + $0x7f4] sm:$0xf] }
 0x186   : > { %2703 = vmatpush.bf16.msra.mxu3 %v7887_v30  ;;  %v7747_v30 = vor.u32 %v9961_v11, %v7744_v20  ;;  %v7755_v39 = vor.u32 %v9962_v22, %v7752_v36  ;;  %v7950_v20 = vld [vmem:[#allocation5 + $0x7f0] sm:$0xf]  ;;  %v7952_v22 = vld [vmem:[#allocation5 + $0x820] sm:$0xf0] }
 0x187   : > { %2716 = vmatpush.bf16.msrb.mxu0 %v7891_v38  ;;  %v9955_v38 = vld [vmem:[#allocation5 + $0x62c] sm:$0xf0] }
 0x189   : > { %v11349_v32 = vpop.f32.mrf.mxu0  ;;  %v11351_v33 = vpop.f32.mrf.mxu1 }
 0x18c   : > { %v11353_v34 = vpop.f32.mrf.mxu2  ;;  %v11355_v35 = vpop.f32.mrf.mxu3 }
 0x191   : > { %v1446_v43 = vpop.f32.mrf.mxu0  ;;  %v1459_v44 = vpop.f32.mrf.mxu1 }
 0x192   : > { %v7899_v43 = vor.u32 %v9998_v40, %v7896_v41  ;;  %v9991_v44 = vld [vmem:[#allocation5 + $0x74c] sm:$0xf0]  ;;  %v9949_v40 = vld [vmem:[#allocation5 + $0x604] sm:$0xf]  ;;  %v7696_v41 = vld [vmem:[#allocation5 + $0x630] sm:$0xf0] }
 0x193   : > { %v7839_v49 = vor.u32 %v9991_v44, %v7838_v42  ;;  %v7702_v42 = vld [vmem:[#allocation5 + $0x608] sm:$0xf]  ;;  %v9950_v44 = vld [vmem:[#allocation5 + $0x60c] sm:$0xf] }
 0x194   : > { %v1420_v50 = vpop.f32.mrf.mxu2  ;;  %v1433_v51 = vpop.f32.mrf.mxu3  ;;  %2742 = vmatpush.bf16.msrb.mxu2 %v7899_v43  ;;  %v9956_v43 = vld [vmem:[#allocation5 + $0x634] sm:$0xf0] }
 0x195   : > { %v7843_v50 = vor.u32 %v9985_v45, %v7840_v46  ;;  %v7846_v51 = vld [vmem:[#allocation5 + $0x728] sm:$0xf]  ;;  %2704 = vmatpush.bf16.msra.mxu3 %v7839_v49  ;;  %v7704_v45 = vld [vmem:[#allocation5 + $0x638] sm:$0xf0]  ;;  %v7695_v46 = vor.u32 %v9955_v38, %v7694_v37  ;;  %v10035_v49 = vld [vmem:[#allocation5 + $0x8b4] sm:$0xf]  ;;  %v7955_v38 = vor.u32 %v10011_v26, %v7952_v22 }
 0x196   : > { %v7847_v54 = vor.u32 %v9992_v52, %v7846_v51  ;;  %v7703_v51 = vor.u32 %v9956_v43, %v7702_v42  ;;  %v8048_v52 = vld [vmem:[#allocation5 + $0x8e0] sm:$0xf0]  ;;  %v7707_v55 = vor.u32 %v9950_v44, %v7704_v45  ;;  %v7902_v43 = vld [vmem:[#allocation5 + $0x790] sm:$0xf]  ;;  %v10005_v44 = vld [vmem:[#allocation5 + $0x7bc] sm:$0xf0] }
 0x197   : > { %2717 = vmatpush.bf16.msrb.mxu0 %v7843_v50  ;;  %v7699_v50 = vor.u32 %v9949_v40, %v7696_v41  ;;  %v8051_v59 = vor.u32 %v10035_v49, %v8048_v52  ;;  %v10012_v40 = vld [vmem:[#allocation5 + $0x7fc] sm:$0xf]  ;;  %v7960_v41 = vld [vmem:[#allocation5 + $0x828] sm:$0xf0]  ;;  %v9999_v45 = vld [vmem:[#allocation5 + $0x794] sm:$0xf] }
 0x198   : > { %2730 = vmatpush.bf16.msrb.mxu1 %v7847_v54  ;;  %2743 = vmatpush.bf16.msrb.mxu2 %v7851_v56  ;;  %v10042_v54 = vld [vmem:[#allocation5 + $0x8e4] sm:$0xf0]  ;;  %v7963_v42 = vor.u32 %v10012_v40, %v7960_v41  ;;  %v7814_v26 = vld [vmem:[#allocation5 + $0x6d8] sm:$0xf] }
 0x199   : > { %2705 = vmatpush.bf16.msra.mxu3 %v7791_v60  ;;  %v8055_v60 = vor.u32 %v10042_v54, %v8054_v53  ;;  %v10006_v49 = vld [vmem:[#allocation5 + $0x7c4] sm:$0xf0]  ;;  %v10000_v54 = vld [vmem:[#allocation5 + $0x79c] sm:$0xf] }
 0x19b   : > { %2718 = vmatpush.bf16.msrb.mxu0 %v7795_v2  ;;  %v8000_v2 = vld [vmem:[#allocation5 + $0x880] sm:$0xf0] }
 0x19c   : > { %2731 = vmatpush.bf16.msrb.mxu1 %v7799_v5  ;;  %2744 = vmatpush.bf16.msrb.mxu2 %v7803_v9  ;;  %v8006_v5 = vld [vmem:[#allocation5 + $0x858] sm:$0xf]  ;;  %v10024_v9 = vld [vmem:[#allocation5 + $0x85c] sm:$0xf] }
 0x19d   : > { %2706 = vmatpush.bf16.msra.mxu3 %v7743_v21  ;;  %v8007_v8 = vor.u32 %v10030_v6, %v8006_v5  ;;  %v8011_v11 = vor.u32 %v10024_v9, %v8008_v10  ;;  %v10017_v21 = vld [vmem:[#allocation5 + $0x81c] sm:$0xf0]  ;;  %v7806_v9 = vld [vmem:[#allocation5 + $0x6d0] sm:$0xf] }
 0x19e   : > { %v7951_v14 = vor.u32 %v10017_v21, %v7950_v20  ;;  %v9981_v10 = vld [vmem:[#allocation5 + $0x6fc] sm:$0xf0]  ;;  %v7808_v21 = vld [vmem:[#allocation5 + $0x700] sm:$0xf0] }
 0x19f   : > { %2719 = vmatpush.bf16.msrb.mxu0 %v7747_v30  ;;  %v7958_v30 = vld [vmem:[#allocation5 + $0x7f8] sm:$0xf]  ;;  %v7807_v20 = vor.u32 %v9981_v10, %v7806_v9 }
 0x1a0   : > { %2732 = vmatpush.bf16.msrb.mxu1 %v7751_v31  ;;  %2745 = vmatpush.bf16.msrb.mxu2 %v7755_v39  ;;  %v10018_v31 = vld [vmem:[#allocation5 + $0x824] sm:$0xf0] }
 0x1a1   : > { %2707 = vmatpush.bf16.msra.mxu3 %v7695_v46  ;;  %v7959_v39 = vor.u32 %v10018_v31, %v7958_v30  ;;  %v7903_v46 = vor.u32 %v10005_v44, %v7902_v43  ;;  %v9976_v31 = vld [vmem:[#allocation5 + $0x6dc] sm:$0xf]  ;;  %v9969_v43 = vld [vmem:[#allocation5 + $0x69c] sm:$0xf0]  ;;  %v9963_v44 = vld [vmem:[#allocation5 + $0x674] sm:$0xf] }
 0x1a3   : > { %2720 = vmatpush.bf16.msrb.mxu0 %v7699_v50 }
 0x1a4   : > { %2733 = vmatpush.bf16.msrb.mxu1 %v7703_v51  ;;  %2746 = vmatpush.bf16.msrb.mxu2 %v7707_v55  ;;  %v7912_v55 = vld [vmem:[#allocation5 + $0x7c8] sm:$0xf0] }
 0x1a5   : > { %v7915_v57 = vor.u32 %v10000_v54, %v7912_v55 }
 0x1a7   : > { %2765 = vmatpush.bf16.msra.mxu0 %v8051_v59  ;;  %v9987_v59 = vld [vmem:[#allocation5 + $0x734] sm:$0xf] }
 0x1a8   : > { %2778 = vmatpush.bf16.msra.mxu1 %v8055_v60  ;;  %2791 = vmatpush.bf16.msra.mxu2 %v8059_v61  ;;  %v7856_v60 = vld [vmem:[#allocation5 + $0x760] sm:$0xf0] }
 0x1a9   : > { %v11357_v3 = vpop.f32.mrf.mxu0  ;;  %v11359_v4 = vpop.f32.mrf.mxu1  ;;  %v7859_v5 = vor.u32 %v9987_v59, %v7856_v60  ;;  %v7712_v60 = vld [vmem:[#allocation5 + $0x640] sm:$0xf0] }
 0x1ac   : > { %v11361_v28 = vpop.f32.mrf.mxu2  ;;  %v11363_v29 = vpop.f32.mrf.mxu3  ;;  %2779 = vmatpush.bf16.msra.mxu1 %v8007_v8  ;;  %2792 = vmatpush.bf16.msra.mxu2 %v8011_v11  ;;  %v9975_v11 = vld [vmem:[#allocation5 + $0x6d4] sm:$0xf] }
 0x1ad   : > { %v7811_v22 = vor.u32 %v9975_v11, %v7808_v21 }
 0x1b0   : > { %2780 = vmatpush.bf16.msra.mxu1 %v7959_v39  ;;  %2793 = vmatpush.bf16.msra.mxu2 %v7963_v42  ;;  %v7758_v39 = vld [vmem:[#allocation5 + $0x670] sm:$0xf] }
 0x1b1   : > { %v1978_v47 = vpop.f32.mrf.mxu0  ;;  %v1991_v48 = vpop.f32.mrf.mxu1 }
 0x1b2   : > { %v8046_v47 = vld [vmem:[#allocation5 + $0x8b0] sm:$0xf]  ;;  %v10041_v48 = vld [vmem:[#allocation5 + $0x8dc] sm:$0xf0] }
 0x1b3   : > { %v8047_v56 = vor.u32 %v10041_v48, %v8046_v47  ;;  %v7904_v47 = vld [vmem:[#allocation5 + $0x7c0] sm:$0xf0]  ;;  %v7910_v48 = vld [vmem:[#allocation5 + $0x798] sm:$0xf] }
 0x1b4   : > { %v1952_v0 = vpop.f32.mrf.mxu2  ;;  %v1965_v1 = vpop.f32.mrf.mxu3  ;;  %v7907_v52 = vor.u32 %v9999_v45, %v7904_v47  ;;  %v7911_v53 = vor.u32 %v10006_v49, %v7910_v48  ;;  %2794 = vmatpush.bf16.msra.mxu2 %v7915_v57  ;;  %v7760_v45 = vld [vmem:[#allocation5 + $0x6a0] sm:$0xf0]  ;;  %v9970_v47 = vld [vmem:[#allocation5 + $0x6a4] sm:$0xf0]  ;;  %v9964_v48 = vld [vmem:[#allocation5 + $0x67c] sm:$0xf]  ;;  %v7759_v49 = vor.u32 %v9969_v43, %v7758_v39 }
 0x1b5   : > { %2752 = vmatpush.bf16.msrb.mxu3 %v8047_v56  ;;  %v10023_v0 = vld [vmem:[#allocation5 + $0x854] sm:$0xf]  ;;  %v7999_v1 = vor.u32 %v10029_v63, %v7998_v62  ;;  %v7854_v56 = vld [vmem:[#allocation5 + $0x730] sm:$0xf]  ;;  %v7862_v62 = vld [vmem:[#allocation5 + $0x738] sm:$0xf] }
 0x1b6   : > { %v8003_v7 = vor.u32 %v10023_v0, %v8000_v2  ;;  %v7855_v61 = vor.u32 %v9993_v58, %v7854_v56  ;;  %v9994_v63 = vld [vmem:[#allocation5 + $0x764] sm:$0xf0]  ;;  %v9988_v0 = vld [vmem:[#allocation5 + $0x73c] sm:$0xf]  ;;  %2781 = vmatpush.bf16.msra.mxu1 %v7911_v53  ;;  %v7763_v53 = vor.u32 %v9963_v44, %v7760_v45  ;;  %v7710_v56 = vld [vmem:[#allocation5 + $0x610] sm:$0xf] }
 0x1b7   : > { %v7863_v6 = vor.u32 %v9994_v63, %v7862_v62  ;;  %v9957_v57 = vld [vmem:[#allocation5 + $0x63c] sm:$0xf0]  ;;  %v9951_v58 = vld [vmem:[#allocation5 + $0x614] sm:$0xf]  ;;  %v9958_v62 = vld [vmem:[#allocation5 + $0x644] sm:$0xf0] }
 0x1b8   : > { %2766 = vmatpush.bf16.msra.mxu0 %v8003_v7  ;;  %v7864_v7 = vld [vmem:[#allocation5 + $0x768] sm:$0xf0]  ;;  %v7711_v59 = vor.u32 %v9957_v57, %v7710_v56  ;;  %v7715_v63 = vor.u32 %v9951_v58, %v7712_v60  ;;  %v8014_v45 = vld [vmem:[#allocation5 + $0x860] sm:$0xf]  ;;  %v8024_v56 = vld [vmem:[#allocation5 + $0x898] sm:$0xf0] }
 0x1b9   : > { %2753 = vmatpush.bf16.msrb.mxu3 %v7999_v1  ;;  %v7867_v8 = vor.u32 %v9988_v0, %v7864_v7  ;;  %v10038_v39 = vld [vmem:[#allocation5 + $0x8cc] sm:$0xf]  ;;  %v10019_v60 = vld [vmem:[#allocation5 + $0x82c] sm:$0xf0] }
 0x1ba   : > { %2782 = vmatpush.bf16.msra.mxu1 %v7863_v6 }
 0x1bb   : > { %2795 = vmatpush.bf16.msra.mxu2 %v7867_v8 }
 0x1bc   : > { %2767 = vmatpush.bf16.msra.mxu0 %v7955_v38  ;;  %v7816_v38 = vld [vmem:[#allocation5 + $0x708] sm:$0xf0] }
 0x1bd   : > { %2754 = vmatpush.bf16.msrb.mxu3 %v7951_v14  ;;  %v9982_v14 = vld [vmem:[#allocation5 + $0x704] sm:$0xf0]  ;;  %v7819_v42 = vor.u32 %v9976_v31, %v7816_v38  ;;  %v10044_v38 = vld [vmem:[#allocation5 + $0x8f4] sm:$0xf0] }
 0x1be   : > { %v7815_v30 = vor.u32 %v9982_v14, %v7814_v26  ;;  %v8062_v26 = vld [vmem:[#allocation5 + $0x8c0] sm:$0xf]  ;;  %v10043_v14 = vld [vmem:[#allocation5 + $0x8ec] sm:$0xf0]  ;;  %v8070_v31 = vld [vmem:[#allocation5 + $0x8c8] sm:$0xf] }
 0x1bf   : > { %2796 = vmatpush.bf16.msra.mxu2 %v7819_v42  ;;  %v8063_v43 = vor.u32 %v10043_v14, %v8062_v26  ;;  %v10007_v26 = vld [vmem:[#allocation5 + $0x7cc] sm:$0xf0] }
 0x1c0   : > { %2768 = vmatpush.bf16.msra.mxu0 %v7907_v52  ;;  %v7768_v52 = vld [vmem:[#allocation5 + $0x6a8] sm:$0xf0]  ;;  %2783 = vmatpush.bf16.msra.mxu1 %v7815_v30  ;;  %v8064_v30 = vld [vmem:[#allocation5 + $0x8f0] sm:$0xf0] }
 0x1c1   : > { %2755 = vmatpush.bf16.msrb.mxu3 %v7903_v46  ;;  %v7766_v46 = vld [vmem:[#allocation5 + $0x678] sm:$0xf]  ;;  %v7771_v55 = vor.u32 %v9964_v48, %v7768_v52  ;;  %v8016_v52 = vld [vmem:[#allocation5 + $0x890] sm:$0xf0] }
 0x1c2   : > { %v7767_v54 = vor.u32 %v9970_v47, %v7766_v46  ;;  %v10031_v46 = vld [vmem:[#allocation5 + $0x88c] sm:$0xf0]  ;;  %v8071_v47 = vor.u32 %v10044_v38, %v8070_v31  ;;  %v7920_v31 = vld [vmem:[#allocation5 + $0x7d0] sm:$0xf0]  ;;  %v7926_v38 = vld [vmem:[#allocation5 + $0x7a8] sm:$0xf] }
 0x1c3   : > { %2797 = vmatpush.bf16.msra.mxu2 %v7771_v55  ;;  %v10026_v55 = vld [vmem:[#allocation5 + $0x86c] sm:$0xf]  ;;  %v8015_v57 = vor.u32 %v10031_v46, %v8014_v45  ;;  %v7870_v45 = vld [vmem:[#allocation5 + $0x740] sm:$0xf]  ;;  %v9995_v46 = vld [vmem:[#allocation5 + $0x76c] sm:$0xf0] }
 0x1c4   : > { %2769 = vmatpush.bf16.msra.mxu0 %v7859_v5  ;;  %2784 = vmatpush.bf16.msra.mxu1 %v7767_v54  ;;  %v10032_v54 = vld [vmem:[#allocation5 + $0x894] sm:$0xf0] }
 0x1c5   : > { %2756 = vmatpush.bf16.msrb.mxu3 %v7855_v61  ;;  %v7718_v61 = vld [vmem:[#allocation5 + $0x618] sm:$0xf] }
 0x1c6   : > { %v7719_v0 = vor.u32 %v9958_v62, %v7718_v61  ;;  %v8027_v62 = vor.u32 %v10026_v55, %v8024_v56  ;;  %v9990_v55 = vld [vmem:[#allocation5 + $0x74c] sm:$0xf]  ;;  %v7880_v56 = vld [vmem:[#allocation5 + $0x778] sm:$0xf0] }
 0x1c8   : > { %2770 = vmatpush.bf16.msra.mxu0 %v7811_v22  ;;  %2785 = vmatpush.bf16.msra.mxu1 %v7719_v0  ;;  %v10037_v22 = vld [vmem:[#allocation5 + $0x8c4] sm:$0xf]  ;;  %v7968_v0 = vld [vmem:[#allocation5 + $0x830] sm:$0xf0] }
 0x1c9   : > { %v11365_v36 = vpop.f32.mrf.mxu0  ;;  %v11367_v37 = vpop.f32.mrf.mxu1  ;;  %2757 = vmatpush.bf16.msrb.mxu3 %v7807_v20  ;;  %v8067_v44 = vor.u32 %v10037_v22, %v8064_v30  ;;  %v10001_v30 = vld [vmem:[#allocation5 + $0x7a4] sm:$0xf] }
 0x1cc   : > { %v11369_v50 = vpop.f32.mrf.mxu2  ;;  %v11371_v51 = vpop.f32.mrf.mxu3  ;;  %2771 = vmatpush.bf16.msra.mxu0 %v7763_v53  ;;  %v8022_v53 = vld [vmem:[#allocation5 + $0x868] sm:$0xf] }
 0x1cd   : > { %2758 = vmatpush.bf16.msrb.mxu3 %v7759_v49  ;;  %v10025_v49 = vld [vmem:[#allocation5 + $0x864] sm:$0xf]  ;;  %v8023_v61 = vor.u32 %v10032_v54, %v8022_v53  ;;  %v7878_v53 = vld [vmem:[#allocation5 + $0x748] sm:$0xf]  ;;  %v9996_v54 = vld [vmem:[#allocation5 + $0x774] sm:$0xf0] }
 0x1ce   : > { %v8019_v58 = vor.u32 %v10025_v49, %v8016_v52  ;;  %v9989_v49 = vld [vmem:[#allocation5 + $0x744] sm:$0xf]  ;;  %v7872_v52 = vld [vmem:[#allocation5 + $0x770] sm:$0xf0] }
 0x1d0   : > { %2772 = vmatpush.bf16.msra.mxu0 %v7715_v63  ;;  %v10013_v63 = vld [vmem:[#allocation5 + $0x804] sm:$0xf] }
 0x1d1   : > { %v2030_v1 = vpop.f32.mrf.mxu0  ;;  %v2043_v2 = vpop.f32.mrf.mxu1  ;;  %2759 = vmatpush.bf16.msrb.mxu3 %v7711_v59  ;;  %v7966_v59 = vld [vmem:[#allocation5 + $0x800] sm:$0xf] }
 0x1d2   : > { %v9952_v1 = vld [vmem:[#allocation5 + $0x61c] sm:$0xf]  ;;  %v7720_v2 = vld [vmem:[#allocation5 + $0x648] sm:$0xf0] }
 0x1d3   : > { %v7723_v5 = vor.u32 %v9952_v1, %v7720_v2  ;;  %v7974_v1 = vld [vmem:[#allocation5 + $0x808] sm:$0xf]  ;;  %v10020_v2 = vld [vmem:[#allocation5 + $0x834] sm:$0xf0] }
 0x1d4   : > { %v2004_v40 = vpop.f32.mrf.mxu2  ;;  %v2017_v41 = vpop.f32.mrf.mxu3  ;;  %v7975_v14 = vor.u32 %v10020_v2, %v7974_v1  ;;  %v7830_v1 = vld [vmem:[#allocation5 + $0x6e8] sm:$0xf]  ;;  %v9984_v2 = vld [vmem:[#allocation5 + $0x714] sm:$0xf0] }
 0x1d5   : > { %2798 = vmatpush.bf16.msra.mxu2 %v7723_v5  ;;  %v8072_v40 = vld [vmem:[#allocation5 + $0x8f8] sm:$0xf0]  ;;  %v10014_v5 = vld [vmem:[#allocation5 + $0x80c] sm:$0xf] }
 0x1d6   : > { %v8075_v48 = vor.u32 %v10038_v39, %v8072_v40  ;;  %v10008_v39 = vld [vmem:[#allocation5 + $0x7d4] sm:$0xf0]  ;;  %v10002_v40 = vld [vmem:[#allocation5 + $0x7ac] sm:$0xf] }
 0x1e7   : > { %v11373_v6 = vpop.f32.mrf.mxu0 }
 0x1e8   : > { %v11375_v7 = vpop.f32.mrf.mxu1 }
 0x1ec   : > { %v11377_v8 = vpop.f32.mrf.mxu2  ;;  %v11379_v9 = vpop.f32.mrf.mxu3 }
 0x1ef   : > { %v2082_v10 = vpop.f32.mrf.mxu0 }
 0x1f0   : > { %v2095_v11 = vpop.f32.mrf.mxu1  ;;  %v7976_v10 = vld [vmem:[#allocation5 + $0x838] sm:$0xf0] }
 0x1f1   : > { %v7967_v11 = vor.u32 %v10019_v60, %v7966_v59  ;;  %v7979_v22 = vor.u32 %v10014_v5, %v7976_v10  ;;  %v7822_v59 = vld [vmem:[#allocation5 + $0x6e0] sm:$0xf]  ;;  %v9983_v60 = vld [vmem:[#allocation5 + $0x70c] sm:$0xf0]  ;;  %v9978_v5 = vld [vmem:[#allocation5 + $0x6ec] sm:$0xf] }
 0x1f2   : > { %v7832_v10 = vld [vmem:[#allocation5 + $0x718] sm:$0xf0] }
 0x1f4   : > { %v2056_v20 = vpop.f32.mrf.mxu2  ;;  %v2069_v21 = vpop.f32.mrf.mxu3 }
 0x1f5   : > { %v7971_v20 = vor.u32 %v10013_v63, %v7968_v0  ;;  %v7918_v21 = vld [vmem:[#allocation5 + $0x7a0] sm:$0xf]  ;;  %v9977_v63 = vld [vmem:[#allocation5 + $0x6e4] sm:$0xf]  ;;  %v7824_v0 = vld [vmem:[#allocation5 + $0x710] sm:$0xf0] }
 0x1fc   : > { %v2119_v41 = vpop.f32.mrf.mxu2 }
 0x1fd   : > { %v11381_v42 = vpack.c.bf16 %v2119_v41, %v2119_v41  ;;  %v7928_v41 = vld [vmem:[#allocation5 + $0x7d8] sm:$0xf0] }
 0x1ff   : > { %2708 = vmatmul.bf16.vlgmr.msra.gmra.mxu3 %v11381_v42  ;;  %2721 = vmatmul.bf16.vlgmr.msrb.gmra.mxu0 %v11381_v42 }
 0x200   : > { %2734 = vmatmul.bf16.vlgmr.msrb.gmra.mxu1 %v11381_v42  ;;  %2747 = vmatmul.bf16.vlgmr.msrb.gmra.mxu2 %v11381_v42 }
 0x201   : > { %2804 = vmatpush.bf16.msra.mxu3 %v8063_v43  ;;  %2817 = vmatpush.bf16.msrb.mxu0 %v8067_v44  ;;  %v7919_v43 = vor.u32 %v10007_v26, %v7918_v21  ;;  %v7923_v44 = vor.u32 %v10001_v30, %v7920_v31  ;;  %v7774_v21 = vld [vmem:[#allocation5 + $0x680] sm:$0xf]  ;;  %v9971_v26 = vld [vmem:[#allocation5 + $0x6ac] sm:$0xf0]  ;;  %v9965_v30 = vld [vmem:[#allocation5 + $0x684] sm:$0xf] }
 0x202   : > { %2830 = vmatpush.bf16.msrb.mxu1 %v8071_v47  ;;  %2843 = vmatpush.bf16.msrb.mxu2 %v8075_v48  ;;  %v7927_v47 = vor.u32 %v10008_v39, %v7926_v38  ;;  %v7931_v48 = vor.u32 %v10002_v40, %v7928_v41  ;;  %v7776_v31 = vld [vmem:[#allocation5 + $0x6b0] sm:$0xf0]  ;;  %v7782_v38 = vld [vmem:[#allocation5 + $0x688] sm:$0xf]  ;;  %v9972_v39 = vld [vmem:[#allocation5 + $0x6b4] sm:$0xf0] }
 0x203   : > { %v9966_v40 = vld [vmem:[#allocation5 + $0x68c] sm:$0xf]  ;;  %v7784_v41 = vld [vmem:[#allocation5 + $0x6b8] sm:$0xf0] }
 0x205   : > { %2805 = vmatpush.bf16.msra.mxu3 %v8015_v57  ;;  %2818 = vmatpush.bf16.msrb.mxu0 %v8019_v58  ;;  %v7871_v57 = vor.u32 %v9995_v46, %v7870_v45  ;;  %v7875_v58 = vor.u32 %v9989_v49, %v7872_v52  ;;  %v7726_v45 = vld [vmem:[#allocation5 + $0x620] sm:$0xf]  ;;  %v9959_v46 = vld [vmem:[#allocation5 + $0x64c] sm:$0xf0]  ;;  %v9953_v49 = vld [vmem:[#allocation5 + $0x624] sm:$0xf] }
 0x206   : > { %2831 = vmatpush.bf16.msrb.mxu1 %v8023_v61  ;;  %2844 = vmatpush.bf16.msrb.mxu2 %v8027_v62  ;;  %v7879_v61 = vor.u32 %v9996_v54, %v7878_v53  ;;  %v7883_v62 = vor.u32 %v9990_v55, %v7880_v56  ;;  %v7728_v52 = vld [vmem:[#allocation5 + $0x650] sm:$0xf0]  ;;  %v7734_v53 = vld [vmem:[#allocation5 + $0x628] sm:$0xf]  ;;  %v9960_v54 = vld [vmem:[#allocation5 + $0x654] sm:$0xf0] }
 0x207   : > { %v9954_v55 = vld [vmem:[#allocation5 + $0x62c] sm:$0xf]  ;;  %v7736_v56 = vld [vmem:[#allocation5 + $0x658] sm:$0xf0] }
 0x209   : > { %2806 = vmatpush.bf16.msra.mxu3 %v7967_v11  ;;  %2819 = vmatpush.bf16.msrb.mxu0 %v7971_v20  ;;  %v7823_v11 = vor.u32 %v9983_v60, %v7822_v59  ;;  %v7827_v20 = vor.u32 %v9977_v63, %v7824_v0  ;;  %v7727_v59 = vor.u32 %v9959_v46, %v7726_v45  ;;  %v8076_v0 = vld [vmem:[%s11768_s30 + $0x18] sm:$0x3f]  ;;  %v10111_v45 = vld [vmem:[#allocation5 + $0xb0c] sm:$0xf0] }
 0x20a   : > { %2832 = vmatpush.bf16.msrb.mxu1 %v7975_v14  ;;  %2845 = vmatpush.bf16.msrb.mxu2 %v7979_v22  ;;  %v7831_v14 = vor.u32 %v9984_v2, %v7830_v1  ;;  %v7835_v22 = vor.u32 %v9978_v5, %v7832_v10  ;;  %v7731_v60 = vor.u32 %v9953_v49, %v7728_v52  ;;  %v8418_v1 = vld [vmem:[#allocation5 + $0xbd0] sm:$0xf0]  ;;  %v8424_v2 = vld [vmem:[#allocation5 + $0xba8] sm:$0xf]  ;;  %v10136_v10 = vld [vmem:[#allocation5 + $0xbd4] sm:$0xf0] }
 0x20b   : > { %v8328_v49 = vld [vmem:[#allocation5 + $0xae8] sm:$0xf] }
 0x20d   : > { %2807 = vmatpush.bf16.msra.mxu3 %v7919_v43  ;;  %2820 = vmatpush.bf16.msrb.mxu0 %v7923_v44  ;;  %v7775_v43 = vor.u32 %v9971_v26, %v7774_v21  ;;  %v7779_v44 = vor.u32 %v9965_v30, %v7776_v31  ;;  %v8425_v21 = vor.u32 %v10136_v10, %v8424_v2  ;;  %v8376_v30 = vld [vmem:[#allocation5 + $0xb48] sm:$0xf]  ;;  %v10124_v31 = vld [vmem:[#allocation5 + $0xb74] sm:$0xf0]  ;;  %v10094_v2 = vld [vmem:[#allocation5 + $0xa8c] sm:$0xf] }
 0x20e   : > { %2833 = vmatpush.bf16.msrb.mxu1 %v7927_v47  ;;  %2846 = vmatpush.bf16.msrb.mxu2 %v7931_v48  ;;  %v7783_v47 = vor.u32 %v9972_v39, %v7782_v38  ;;  %v7787_v48 = vor.u32 %v9966_v40, %v7784_v41  ;;  %v8377_v39 = vor.u32 %v10124_v31, %v8376_v30  ;;  %v10118_v40 = vld [vmem:[#allocation5 + $0xb4c] sm:$0xf]  ;;  %v8378_v41 = vld [vmem:[#allocation5 + $0xb78] sm:$0xf0] }
 0x20f   : > { %2760 = vmatmul.bf16.vlgmr.msrb.gmra.mxu3 %v11381_v42  ;;  %2773 = vmatmul.bf16.vlgmr.msra.gmra.mxu0 %v11381_v42  ;;  %v8234_v30 = vld [vmem:[#allocation5 + $0xa58] sm:$0xf0] }
 0x210   : > { %2786 = vmatmul.bf16.vlgmr.msra.gmra.mxu1 %v11381_v42  ;;  %2799 = vmatmul.bf16.vlgmr.msra.gmra.mxu2 %v11381_v42 }
 0x211   : > { %2808 = vmatpush.bf16.msra.mxu3 %v7871_v57  ;;  %2821 = vmatpush.bf16.msrb.mxu0 %v7875_v58  ;;  %v8416_v57 = vld [vmem:[#allocation5 + $0xba0] sm:$0xf]  ;;  %v10135_v58 = vld [vmem:[#allocation5 + $0xbcc] sm:$0xf0] }
 0x212   : > { %2834 = vmatpush.bf16.msrb.mxu1 %v7879_v61  ;;  %2847 = vmatpush.bf16.msrb.mxu2 %v7883_v62  ;;  %v7735_v61 = vor.u32 %v9960_v54, %v7734_v53  ;;  %v7739_v62 = vor.u32 %v9954_v55, %v7736_v56  ;;  %v8417_v63 = vor.u32 %v10135_v58, %v8416_v57  ;;  %v10112_v53 = vld [vmem:[#allocation5 + $0xb14] sm:$0xf0]  ;;  %v10106_v54 = vld [vmem:[#allocation5 + $0xaec] sm:$0xf]  ;;  %v8330_v55 = vld [vmem:[#allocation5 + $0xb18] sm:$0xf0] }
 0x213   : > { %v8329_v56 = vor.u32 %v10112_v53, %v8328_v49  ;;  %v8333_v57 = vor.u32 %v10106_v54, %v8330_v55  ;;  %v8272_v58 = vld [vmem:[#allocation5 + $0xa80] sm:$0xf]  ;;  %v10070_v49 = vld [vmem:[#allocation5 + $0x9cc] sm:$0xf]  ;;  %v10063_v55 = vld [vmem:[#allocation5 + $0x98c] sm:$0xf0] }
 0x214   : > { %v8128_v54 = vld [vmem:[#allocation5 + $0x960] sm:$0xf] }
 0x215   : > { %2809 = vmatpush.bf16.msra.mxu3 %v7823_v11  ;;  %2822 = vmatpush.bf16.msrb.mxu0 %v7827_v20  ;;  %v10130_v11 = vld [vmem:[#allocation5 + $0xbac] sm:$0xf]  ;;  %v8426_v20 = vld [vmem:[#allocation5 + $0xbd8] sm:$0xf0] }
 0x216   : > { %2835 = vmatpush.bf16.msrb.mxu1 %v7831_v14  ;;  %2848 = vmatpush.bf16.msrb.mxu2 %v7835_v22  ;;  %v8429_v26 = vor.u32 %v10130_v11, %v8426_v20  ;;  %v10117_v14 = vld [vmem:[#allocation5 + $0xb44] sm:$0xf]  ;;  %v8370_v22 = vld [vmem:[#allocation5 + $0xb70] sm:$0xf0]  ;;  %v8224_v11 = vld [vmem:[#allocation5 + $0xa20] sm:$0xf] }
 0x217   : > { %v8373_v38 = vor.u32 %v10117_v14, %v8370_v22  ;;  %v10087_v20 = vld [vmem:[#allocation5 + $0xa4c] sm:$0xf0]  ;;  %v10082_v22 = vld [vmem:[#allocation5 + $0xa2c] sm:$0xf] }
 0x219   : > { %2810 = vmatpush.bf16.msra.mxu3 %v7775_v43  ;;  %2823 = vmatpush.bf16.msrb.mxu0 %v7779_v44  ;;  %v8381_v43 = vor.u32 %v10118_v40, %v8378_v41  ;;  %v8320_v44 = vld [vmem:[#allocation5 + $0xae0] sm:$0xf]  ;;  %v10075_v40 = vld [vmem:[#allocation5 + $0x9ec] sm:$0xf0]  ;;  %v10069_v41 = vld [vmem:[#allocation5 + $0x9c4] sm:$0xf] }
 0x21a   : > { %2836 = vmatpush.bf16.msrb.mxu1 %v7783_v47  ;;  %2849 = vmatpush.bf16.msrb.mxu2 %v7787_v48  ;;  %v8321_v46 = vor.u32 %v10111_v45, %v8320_v44  ;;  %v10105_v47 = vld [vmem:[#allocation5 + $0xae4] sm:$0xf]  ;;  %v8322_v48 = vld [vmem:[#allocation5 + $0xb10] sm:$0xf0]  ;;  %v8184_v45 = vld [vmem:[#allocation5 + $0x9c8] sm:$0xf] }
 0x21b   : > { %v8325_v52 = vor.u32 %v10105_v47, %v8322_v48  ;;  %v8178_v44 = vld [vmem:[#allocation5 + $0x9f0] sm:$0xf0] }
 0x21c   : > { %v8181_v47 = vor.u32 %v10069_v41, %v8178_v44  ;;  %v8440_v41 = vld [vmem:[#allocation5 + $0xbb8] sm:$0xf]  ;;  %v10132_v44 = vld [vmem:[#allocation5 + $0xbbc] sm:$0xf] }
 0x21d   : > { %2811 = vmatpush.bf16.msra.mxu3 %v7727_v59  ;;  %2824 = vmatpush.bf16.msrb.mxu0 %v7731_v60  ;;  %v10099_v59 = vld [vmem:[#allocation5 + $0xaac] sm:$0xf0]  ;;  %v10093_v60 = vld [vmem:[#allocation5 + $0xa84] sm:$0xf] }
 0x21e   : > { %2837 = vmatpush.bf16.msrb.mxu1 %v7735_v61  ;;  %2850 = vmatpush.bf16.msrb.mxu2 %v7739_v62  ;;  %v8273_v61 = vor.u32 %v10099_v59, %v8272_v58  ;;  %v8274_v62 = vld [vmem:[#allocation5 + $0xab0] sm:$0xf0]  ;;  %v8136_v59 = vld [vmem:[#allocation5 + $0x968] sm:$0xf] }
 0x21f   : > { %v8130_v58 = vld [vmem:[#allocation5 + $0x990] sm:$0xf0] }
 0x220   : > { %2812 = vmatmul.bf16.vlgmr.msra.gmra.mxu3 %v11381_v42  ;;  %2825 = vmatmul.bf16.vlgmr.msrb.gmra.mxu0 %v11381_v42 }
 0x221   : > { %2886 = vmatpush.msrb.mxu3 %v11314_v12  ;;  %3471 = vmatpush.bf16.msra.mxu0 %v8417_v63  ;;  %v10129_v12 = vld [vmem:[#allocation5 + $0xba4] sm:$0xf]  ;;  %v8280_v63 = vld [vmem:[#allocation5 + $0xa88] sm:$0xf] }
 0x222   : > { %2838 = vmatmul.bf16.vlgmr.msrb.gmra.mxu1 %v11381_v42  ;;  %2851 = vmatmul.bf16.vlgmr.msrb.gmra.mxu2 %v11381_v42  ;;  %v8421_v5 = vor.u32 %v10129_v12, %v8418_v1  ;;  %v8368_v42 = vld [vmem:[#allocation5 + $0xb40] sm:$0xf]  ;;  %v8277_v12 = vor.u32 %v10093_v60, %v8274_v62  ;;  %v10058_v62 = vld [vmem:[#allocation5 + $0x96c] sm:$0xf] }
 0x223   : > { %2887 = vmatpush.msrb.mxu3 %v11322_v13  ;;  %v10123_v13 = vld [vmem:[#allocation5 + $0xb6c] sm:$0xf0]  ;;  %3497 = vmatpush.bf16.msra.mxu2 %v8425_v21  ;;  %v8225_v21 = vor.u32 %v10087_v20, %v8224_v11  ;;  %v8082_v11 = vld [vmem:[#allocation5 + $0x930] sm:$0xf0]  ;;  %v8088_v20 = vld [vmem:[#allocation5 + $0x908] sm:$0xf] }
 0x224   : > { %3484 = vmatpush.bf16.msra.mxu1 %v8421_v5  ;;  %v8282_v5 = vld [vmem:[#allocation5 + $0xab8] sm:$0xf0] }
 0x225   : > { %2888 = vmatpush.msrb.mxu3 %v11330_v17  ;;  %v8369_v17 = vor.u32 %v10123_v13, %v8368_v42  ;;  %v8285_v10 = vor.u32 %v10094_v2, %v8282_v5  ;;  %v8226_v42 = vld [vmem:[#allocation5 + $0xa50] sm:$0xf0]  ;;  %v8232_v13 = vld [vmem:[#allocation5 + $0xa28] sm:$0xf]  ;;  %v10051_v2 = vld [vmem:[#allocation5 + $0x92c] sm:$0xf0] }
 0x226   : > { %v10045_v5 = vld [vmem:[#allocation5 + $0x904] sm:$0xf] }
 0x227   : > { %3510 = vmatpush.bf16.msra.mxu3 %v8429_v26  ;;  %3472 = vmatpush.bf16.msra.mxu0 %v8369_v17  ;;  %v10081_v26 = vld [vmem:[#allocation5 + $0xa24] sm:$0xf]  ;;  %v10088_v17 = vld [vmem:[#allocation5 + $0xa54] sm:$0xf0] }
 0x228   : > { %3485 = vmatpush.bf16.msra.mxu1 %v8373_v38  ;;  %3498 = vmatpush.bf16.msra.mxu2 %v8377_v39  ;;  %v8229_v14 = vor.u32 %v10081_v26, %v8226_v42  ;;  %v8233_v31 = vor.u32 %v10088_v17, %v8232_v13  ;;  %v8237_v38 = vor.u32 %v10082_v22, %v8234_v30  ;;  %v8176_v39 = vld [vmem:[#allocation5 + $0x9c0] sm:$0xf]  ;;  %v10046_v13 = vld [vmem:[#allocation5 + $0x90c] sm:$0xf]  ;;  %v8432_v17 = vld [vmem:[#allocation5 + $0xbb0] sm:$0xf] }
 0x229   : > { %v8085_v26 = vor.u32 %v10045_v5, %v8082_v11  ;;  %v10137_v30 = vld [vmem:[#allocation5 + $0xbdc] sm:$0xf0]  ;;  %v8338_v5 = vld [vmem:[#allocation5 + $0xb20] sm:$0xf0]  ;;  %v10114_v11 = vld [vmem:[#allocation5 + $0xb24] sm:$0xf0] }
 0x22b   : > { %3511 = vmatpush.bf16.msra.mxu3 %v8381_v43  ;;  %3473 = vmatpush.bf16.msra.mxu0 %v8321_v46  ;;  %v8177_v43 = vor.u32 %v10075_v40, %v8176_v39  ;;  %v10076_v46 = vld [vmem:[#allocation5 + $0x9f4] sm:$0xf0]  ;;  %v8433_v39 = vor.u32 %v10137_v30, %v8432_v17  ;;  %v8288_v30 = vld [vmem:[#allocation5 + $0xa90] sm:$0xf] }
 0x22c   : > { %3486 = vmatpush.bf16.msra.mxu1 %v8325_v52  ;;  %3499 = vmatpush.bf16.msra.mxu2 %v8329_v56  ;;  %v8185_v48 = vor.u32 %v10076_v46, %v8184_v45  ;;  %v8186_v52 = vld [vmem:[#allocation5 + $0x9f8] sm:$0xf0]  ;;  %v8129_v56 = vor.u32 %v10063_v55, %v8128_v54  ;;  %v8442_v46 = vld [vmem:[#allocation5 + $0xbe8] sm:$0xf0]  ;;  %v10119_v54 = vld [vmem:[#allocation5 + $0xb54] sm:$0xf] }
 0x22d   : > { %v8189_v53 = vor.u32 %v10070_v49, %v8186_v52  ;;  %v10125_v49 = vld [vmem:[#allocation5 + $0xb7c] sm:$0xf0]  ;;  %v8386_v55 = vld [vmem:[#allocation5 + $0xb80] sm:$0xf0] }
 0x22f   : > { %3512 = vmatpush.bf16.msra.mxu3 %v8333_v57  ;;  %3474 = vmatpush.bf16.msra.mxu0 %v8273_v61  ;;  %v10057_v57 = vld [vmem:[#allocation5 + $0x964] sm:$0xf]  ;;  %v10064_v61 = vld [vmem:[#allocation5 + $0x994] sm:$0xf0] }
 0x230   : > { %8077 = vmatmul.msk.f32.vlgmr.msrb.gmra.mxu3 %vm581_vm0, %v8076_v0  ;;  %v10100_v0 = vld [vmem:[#allocation5 + $0xab4] sm:$0xf0]  ;;  %3487 = vmatpush.bf16.msra.mxu1 %v8277_v12  ;;  %v8133_v60 = vor.u32 %v10057_v57, %v8130_v58  ;;  %v8389_v58 = vor.u32 %v10119_v54, %v8386_v55  ;;  %v10089_v54 = vld [vmem:[#allocation5 + $0xa5c] sm:$0xf0]  ;;  %v10083_v55 = vld [vmem:[#allocation5 + $0xa34] sm:$0xf] }
 0x231   : > { %v8281_v1 = vor.u32 %v10100_v0, %v8280_v63  ;;  %v8138_v63 = vld [vmem:[#allocation5 + $0x998] sm:$0xf0]  ;;  %v8137_v0 = vor.u32 %v10064_v61, %v8136_v59  ;;  %v10126_v59 = vld [vmem:[#allocation5 + $0xb84] sm:$0xf0]  ;;  %v8394_v61 = vld [vmem:[#allocation5 + $0xb88] sm:$0xf0] }
 0x232   : > { %v8141_v12 = vor.u32 %v10058_v62, %v8138_v63 }
 0x233   : > { %3500 = vmatpush.bf16.msra.mxu2 %v8281_v1  ;;  %3513 = vmatpush.bf16.msra.mxu3 %v8285_v10  ;;  %v8080_v1 = vld [vmem:[#allocation5 + $0x900] sm:$0xf] }
 0x234   : > { %3475 = vmatpush.bf16.msra.mxu0 %v8225_v21  ;;  %3488 = vmatpush.bf16.msra.mxu1 %v8229_v14  ;;  %v8081_v10 = vor.u32 %v10051_v2, %v8080_v1  ;;  %v10052_v21 = vld [vmem:[#allocation5 + $0x934] sm:$0xf0]  ;;  %v8090_v14 = vld [vmem:[#allocation5 + $0x938] sm:$0xf0]  ;;  %v10107_v1 = vld [vmem:[#allocation5 + $0xaf4] sm:$0xf] }
 0x235   : > { %v8089_v42 = vor.u32 %v10052_v21, %v8088_v20  ;;  %v8093_v22 = vor.u32 %v10046_v13, %v8090_v14  ;;  %v8341_v20 = vor.u32 %v10107_v1, %v8338_v5  ;;  %v1990_v13 = vadd.f32 %v11359_v4, %v11327_v16  ;;  %v10102_v16 = vld [vmem:[#allocation5 + $0xac4] sm:$0xf0]  ;;  %v10096_v4 = vld [vmem:[#allocation5 + $0xa9c] sm:$0xf]  ;;  %v8192_v5 = vld [vmem:[#allocation5 + $0x9d0] sm:$0xf] }
 0x237   : > { %3501 = vmatpush.bf16.msra.mxu2 %v8233_v31  ;;  %3514 = vmatpush.bf16.msra.mxu3 %v8237_v38  ;;  %v10131_v31 = vld [vmem:[#allocation5 + $0xbb4] sm:$0xf]  ;;  %v8434_v38 = vld [vmem:[#allocation5 + $0xbe0] sm:$0xf0] }
 0x238   : > { %3476 = vmatpush.bf16.msra.mxu0 %v8177_v43  ;;  %3489 = vmatpush.bf16.msra.mxu1 %v8181_v47  ;;  %v8437_v40 = vor.u32 %v10131_v31, %v8434_v38  ;;  %v10138_v43 = vld [vmem:[#allocation5 + $0xbe4] sm:$0xf0]  ;;  %v8445_v47 = vor.u32 %v10132_v44, %v8442_v46  ;;  %v10101_v31 = vld [vmem:[#allocation5 + $0xabc] sm:$0xf0]  ;;  %v8296_v44 = vld [vmem:[#allocation5 + $0xa98] sm:$0xf] }
 0x239   : > { %v8441_v45 = vor.u32 %v10138_v43, %v8440_v41  ;;  %v10095_v41 = vld [vmem:[#allocation5 + $0xa94] sm:$0xf]  ;;  %v8290_v43 = vld [vmem:[#allocation5 + $0xac0] sm:$0xf0] }
 0x23a   : > { %v8293_v46 = vor.u32 %v10095_v41, %v8290_v43  ;;  %v8144_v41 = vld [vmem:[#allocation5 + $0x970] sm:$0xf]  ;;  %v10065_v43 = vld [vmem:[#allocation5 + $0x99c] sm:$0xf0] }
 0x23b   : > { %3502 = vmatpush.bf16.msra.mxu2 %v8185_v48  ;;  %3515 = vmatpush.bf16.msra.mxu3 %v8189_v53  ;;  %v8384_v48 = vld [vmem:[#allocation5 + $0xb50] sm:$0xf] }
 0x23c   : > { %3477 = vmatpush.bf16.msra.mxu0 %v8129_v56  ;;  %3490 = vmatpush.bf16.msra.mxu1 %v8133_v60  ;;  %v8385_v53 = vor.u32 %v10125_v49, %v8384_v48  ;;  %v8392_v56 = vld [vmem:[#allocation5 + $0xb58] sm:$0xf]  ;;  %v10120_v60 = vld [vmem:[#allocation5 + $0xb5c] sm:$0xf]  ;;  %v8297_v48 = vor.u32 %v10102_v16, %v8296_v44  ;;  %v10059_v44 = vld [vmem:[#allocation5 + $0x974] sm:$0xf] }
 0x23d   : > { %v8393_v62 = vor.u32 %v10126_v59, %v8392_v56  ;;  %v8397_v63 = vor.u32 %v10120_v60, %v8394_v61  ;;  %v8242_v56 = vld [vmem:[#allocation5 + $0xa60] sm:$0xf0]  ;;  %v10090_v59 = vld [vmem:[#allocation5 + $0xa64] sm:$0xf0] }
 0x23e   : > { %v8245_v61 = vor.u32 %v10083_v55, %v8242_v56  ;;  %v10066_v16 = vld [vmem:[#allocation5 + $0x9a4] sm:$0xf0]  ;;  %v2042_v55 = vadd.f32 %v11367_v37, %v11343_v24  ;;  %v10048_v24 = vld [vmem:[#allocation5 + $0x91c] sm:$0xf]  ;;  %v8106_v37 = vld [vmem:[#allocation5 + $0x948] sm:$0xf0] }
 0x23f   : > { %3503 = vmatpush.bf16.msra.mxu2 %v8137_v0  ;;  %3516 = vmatpush.bf16.msra.mxu3 %v8141_v12  ;;  %v8336_v0 = vld [vmem:[#allocation5 + $0xaf0] sm:$0xf]  ;;  %v10113_v12 = vld [vmem:[#allocation5 + $0xb1c] sm:$0xf0] }
 0x240   : > { %3478 = vmatpush.bf16.msra.mxu0 %v8081_v10  ;;  %3491 = vmatpush.bf16.msra.mxu1 %v8085_v26  ;;  %v8337_v2 = vor.u32 %v10113_v12, %v8336_v0  ;;  %v8344_v10 = vld [vmem:[#allocation5 + $0xaf8] sm:$0xf]  ;;  %v10108_v26 = vld [vmem:[#allocation5 + $0xafc] sm:$0xf] }
 0x241   : > { %v8345_v21 = vor.u32 %v10114_v11, %v8344_v10  ;;  %v10077_v10 = vld [vmem:[#allocation5 + $0x9fc] sm:$0xf0] }
 0x243   : > { %3504 = vmatpush.bf16.msra.mxu2 %v8089_v42  ;;  %3517 = vmatpush.bf16.msra.mxu3 %v8093_v22  ;;  %v8346_v42 = vld [vmem:[#allocation5 + $0xb28] sm:$0xf0] }
 0x244   : > { %3523 = vmatpush.bf16.msrb.mxu0 %v8433_v39  ;;  %3536 = vmatpush.bf16.msrb.mxu1 %v8437_v40  ;;  %v8349_v17 = vor.u32 %v10108_v26, %v8346_v42  ;;  %v8289_v40 = vor.u32 %v10101_v31, %v8288_v30  ;;  %v8194_v26 = vld [vmem:[#allocation5 + $0xa00] sm:$0xf0]  ;;  %v8200_v42 = vld [vmem:[#allocation5 + $0x9d8] sm:$0xf]  ;;  %v10072_v30 = vld [vmem:[#allocation5 + $0x9dc] sm:$0xf] }
 0x245   : > { %v8202_v31 = vld [vmem:[#allocation5 + $0xa08] sm:$0xf0] }
 0x247   : > { %3549 = vmatpush.bf16.msrb.mxu2 %v8441_v45  ;;  %3562 = vmatpush.bf16.msrb.mxu3 %v8445_v47  ;;  %v8298_v47 = vld [vmem:[#allocation5 + $0xac8] sm:$0xf0] }
 0x248   : > { %3524 = vmatpush.bf16.msrb.mxu0 %v8385_v53  ;;  %3537 = vmatpush.bf16.msrb.mxu1 %v8389_v58  ;;  %v8301_v49 = vor.u32 %v10096_v4, %v8298_v47  ;;  %v8240_v53 = vld [vmem:[#allocation5 + $0xa30] sm:$0xf]  ;;  %v8248_v58 = vld [vmem:[#allocation5 + $0xa38] sm:$0xf]  ;;  %v8145_v4 = vor.u32 %v10065_v43, %v8144_v41 }
 0x249   : > { %v8241_v60 = vor.u32 %v10089_v54, %v8240_v53  ;;  %v8249_v0 = vor.u32 %v10090_v59, %v8248_v58  ;;  %v8096_v59 = vld [vmem:[#allocation5 + $0x910] sm:$0xf] }
 0x24b   : > { %3550 = vmatpush.bf16.msrb.mxu2 %v8393_v62  ;;  %3563 = vmatpush.bf16.msrb.mxu3 %v8397_v63  ;;  %v10084_v62 = vld [vmem:[#allocation5 + $0xa3c] sm:$0xf]  ;;  %v8250_v63 = vld [vmem:[#allocation5 + $0xa68] sm:$0xf0] }
 0x24c   : > { %3525 = vmatpush.bf16.msrb.mxu0 %v8337_v2  ;;  %3538 = vmatpush.bf16.msrb.mxu1 %v8341_v20  ;;  %v8253_v12 = vor.u32 %v10084_v62, %v8250_v63  ;;  %v8193_v20 = vor.u32 %v10077_v10, %v8192_v5  ;;  %v10054_v10 = vld [vmem:[#allocation5 + $0x944] sm:$0xf0] }
 0x24f   : > { %3551 = vmatpush.bf16.msrb.mxu2 %v8345_v21  ;;  %3564 = vmatpush.bf16.msrb.mxu3 %v8349_v17  ;;  %v10071_v21 = vld [vmem:[#allocation5 + $0x9d4] sm:$0xf] }
 0x250   : > { %3526 = vmatpush.bf16.msrb.mxu0 %v8289_v40  ;;  %3539 = vmatpush.bf16.msrb.mxu1 %v8293_v46  ;;  %v8197_v17 = vor.u32 %v10071_v21, %v8194_v26  ;;  %v8205_v40 = vor.u32 %v10072_v30, %v8202_v31  ;;  %v8152_v46 = vld [vmem:[#allocation5 + $0x978] sm:$0xf]  ;;  %v8109_v21 = vor.u32 %v10048_v24, %v8106_v37 }
 0x251   : > { %v8153_v53 = vor.u32 %v10066_v16, %v8152_v46  ;;  %v2094_v30 = vadd.f32 %v11375_v7, %v11351_v33  ;;  %v8448_v46 = vld [vmem:[#allocation5 + $0xbc0] sm:$0xf]  ;;  %v10139_v16 = vld [vmem:[#allocation5 + $0xbec] sm:$0xf0] }
 0x252   : > { %v8449_v33 = vor.u32 %v10139_v16, %v8448_v46 }
 0x253   : > { %3552 = vmatpush.bf16.msrb.mxu2 %v8297_v48  ;;  %3565 = vmatpush.bf16.msrb.mxu3 %v8301_v49  ;;  %v10060_v48 = vld [vmem:[#allocation5 + $0x97c] sm:$0xf]  ;;  %v8154_v49 = vld [vmem:[#allocation5 + $0x9a8] sm:$0xf0] }
 0x254   : > { %3527 = vmatpush.bf16.msrb.mxu0 %v8241_v60  ;;  %3540 = vmatpush.bf16.msrb.mxu1 %v8245_v61  ;;  %v8157_v54 = vor.u32 %v10060_v48, %v8154_v49  ;;  %v10053_v60 = vld [vmem:[#allocation5 + $0x93c] sm:$0xf0]  ;;  %v8456_v48 = vld [vmem:[#allocation5 + $0xbc8] sm:$0xf]  ;;  %v10140_v49 = vld [vmem:[#allocation5 + $0xbf4] sm:$0xf0] }
 0x255   : > { %v8097_v63 = vor.u32 %v10053_v60, %v8096_v59  ;;  %v8400_v59 = vld [vmem:[#allocation5 + $0xb60] sm:$0xf]  ;;  %v10127_v60 = vld [vmem:[#allocation5 + $0xb8c] sm:$0xf0] }
 0x256   : > { %v8401_v24 = vor.u32 %v10127_v60, %v8400_v59  ;;  %v8314_v59 = vld [vmem:[#allocation5 + $0xad8] sm:$0xf0] }
 0x257   : > { %3553 = vmatpush.bf16.msrb.mxu2 %v8249_v0  ;;  %3566 = vmatpush.bf16.msrb.mxu3 %v8253_v12  ;;  %v10047_v0 = vld [vmem:[#allocation5 + $0x914] sm:$0xf]  ;;  %v8098_v12 = vld [vmem:[#allocation5 + $0x940] sm:$0xf0] }
 0x258   : > { %3528 = vmatpush.bf16.msrb.mxu0 %v8193_v20  ;;  %3541 = vmatpush.bf16.msrb.mxu1 %v8197_v17  ;;  %v8101_v5 = vor.u32 %v10047_v0, %v8098_v12  ;;  %v10121_v0 = vld [vmem:[#allocation5 + $0xb64] sm:$0xf]  ;;  %v8402_v12 = vld [vmem:[#allocation5 + $0xb90] sm:$0xf0] }
 0x259   : > { %v8405_v37 = vor.u32 %v10121_v0, %v8402_v12  ;;  %v10091_v0 = vld [vmem:[#allocation5 + $0xa6c] sm:$0xf0] }
 0x25b   : > { %3567 = vmatpush.bf16.msrb.mxu3 %v8205_v40 }
 0x25c   : > { %3529 = vmatpush.bf16.msrb.mxu0 %v8145_v4  ;;  %v10133_v4 = vld [vmem:[#allocation5 + $0xbc4] sm:$0xf] }
 0x25f   : > { %3568 = vmatpush.bf16.msrb.mxu3 %v8157_v54  ;;  %v8458_v54 = vld [vmem:[#allocation5 + $0xbf8] sm:$0xf0] }
 0x260   : > { %3530 = vmatpush.bf16.msrb.mxu0 %v8097_v63 }
 0x263   : > { %3569 = vmatpush.bf16.msrb.mxu3 %v8109_v21  ;;  %v10115_v21 = vld [vmem:[#allocation5 + $0xb2c] sm:$0xf0] }
 0x27c   : > { %v11402_v52 = vpop.f32.mrf.mxu0 }
 0x27d   : > { %v11404_v57 = vpop.f32.mrf.mxu1 }
 0x282   : > { %v11408_v14 = vpop.f32.mrf.mxu3 }
 0x283   : > { %v2748_v22 = vpop.f32.mrf.mxu2 }
 0x284   : > { %v11410_v38 = vadd.f32 %v2748_v22, %v1990_v13  ;;  %v2724_v39 = vpop.f32.mrf.mxu0  ;;  %v10078_v22 = vld [vmem:[#allocation5 + $0xa04] sm:$0xf0] }
 0x285   : > { %v2737_v45 = vpop.f32.mrf.mxu1  ;;  %v8201_v39 = vor.u32 %v10078_v22, %v8200_v42 }
 0x286   : > { %v8146_v45 = vld [vmem:[#allocation5 + $0x9a0] sm:$0xf0] }
 0x287   : > { %v8149_v47 = vor.u32 %v10059_v44, %v8146_v45  ;;  %3554 = vmatpush.bf16.msrb.mxu2 %v8201_v39 }
 0x289   : > { %3542 = vmatpush.bf16.msrb.mxu1 %v8149_v47  ;;  %v8450_v47 = vld [vmem:[#allocation5 + $0xbf0] sm:$0xf0] }
 0x28a   : > { %v2711_v1 = vpop.f32.mrf.mxu3  ;;  %v8453_v7 = vor.u32 %v10133_v4, %v8450_v47  ;;  %v8304_v4 = vld [vmem:[#allocation5 + $0xaa0] sm:$0xf]  ;;  %v10103_v47 = vld [vmem:[#allocation5 + $0xacc] sm:$0xf0] }
 0x28b   : > { %v2750_v2 = vpop.f32.mrf.mxu2  ;;  %v8104_v1 = vld [vmem:[#allocation5 + $0x918] sm:$0xf]  ;;  %3555 = vmatpush.bf16.msrb.mxu2 %v8153_v53  ;;  %v10134_v53 = vld [vmem:[#allocation5 + $0xbcc] sm:$0xf]  ;;  %v8305_v60 = vor.u32 %v10103_v47, %v8304_v4  ;;  %v8218_v4 = vld [vmem:[#allocation5 + $0xa18] sm:$0xf0] }
 0x28c   : > { %v11412_v11 = vpop.f32.mrf.mxu0  ;;  %v8105_v20 = vor.u32 %v10054_v10, %v8104_v1  ;;  %v8461_v63 = vor.u32 %v10134_v53, %v8458_v54  ;;  %v8408_v1 = vld [vmem:[#allocation5 + $0xb68] sm:$0xf]  ;;  %v8410_v10 = vld [vmem:[#allocation5 + $0xb98] sm:$0xf0]  ;;  %v10097_v53 = vld [vmem:[#allocation5 + $0xaa4] sm:$0xf] }
 0x28d   : > { %v11414_v13 = vpop.f32.mrf.mxu1  ;;  %3543 = vmatpush.bf16.msrb.mxu1 %v8101_v5  ;;  %v10122_v5 = vld [vmem:[#allocation5 + $0xb6c] sm:$0xf]  ;;  %v8306_v54 = vld [vmem:[#allocation5 + $0xad0] sm:$0xf0] }
 0x28f   : > { %3556 = vmatpush.bf16.msrb.mxu2 %v8105_v20  ;;  %v8352_v20 = vld [vmem:[#allocation5 + $0xb00] sm:$0xf] }
 0x290   : > { %v8353_v46 = vor.u32 %v10115_v21, %v8352_v20  ;;  %v8266_v20 = vld [vmem:[#allocation5 + $0xa78] sm:$0xf0] }
 0x292   : > { %v11418_v56 = vpop.f32.mrf.mxu3 }
 0x293   : > { %v2800_v58 = vpop.f32.mrf.mxu2 }
 0x294   : > { %v11420_v61 = vadd.f32 %v2800_v58, %v2042_v55  ;;  %v2776_v62 = vpop.f32.mrf.mxu0 }
 0x295   : > { %v2789_v2 = vpop.f32.mrf.mxu1  ;;  %v8457_v62 = vor.u32 %v10140_v49, %v8456_v48 }
 0x296   : > { %v10128_v2 = vld [vmem:[#allocation5 + $0xb94] sm:$0xf0] }
 0x29a   : > { %v2763_v26 = vpop.f32.mrf.mxu3 }
 0x29b   : > { %v2802_v42 = vpop.f32.mrf.mxu2  ;;  %v8409_v26 = vor.u32 %v10128_v2, %v8408_v1  ;;  %v10085_v2 = vld [vmem:[#allocation5 + $0xa44] sm:$0xf] }
 0x29c   : > { %v8413_v42 = vor.u32 %v10122_v5, %v8410_v10  ;;  %v8258_v5 = vld [vmem:[#allocation5 + $0xa70] sm:$0xf0]  ;;  %v8264_v10 = vld [vmem:[#allocation5 + $0xa48] sm:$0xf] }
 0x29d   : > { %v11422_v17 = vpop.f32.mrf.mxu0 }
 0x29f   : > { %v11424_v22 = vpop.f32.mrf.mxu1 }
 0x2a3   : > { %v11428_v31 = vpop.f32.mrf.mxu3 }
 0x2a5   : > { %v2852_v39 = vpop.f32.mrf.mxu2  ;;  %v2828_v41 = vpop.f32.mrf.mxu0 }
 0x2a6   : > { %v11430_v40 = vadd.f32 %v2852_v39, %v2094_v30  ;;  %v10109_v30 = vld [vmem:[#allocation5 + $0xb04] sm:$0xf]  ;;  %v8354_v39 = vld [vmem:[#allocation5 + $0xb30] sm:$0xf0]  ;;  %v8360_v41 = vld [vmem:[#allocation5 + $0xb08] sm:$0xf] }
 0x2a7   : > { %v2841_v43 = vpop.f32.mrf.mxu1  ;;  %v8357_v16 = vor.u32 %v10109_v30, %v8354_v39  ;;  %v10079_v30 = vld [vmem:[#allocation5 + $0xa0c] sm:$0xf0] }
 0x2a8   : > { %v10116_v43 = vld [vmem:[#allocation5 + $0xb34] sm:$0xf0] }
 0x2a9   : > { %v8361_v48 = vor.u32 %v10116_v43, %v8360_v41  ;;  %v10073_v43 = vld [vmem:[#allocation5 + $0x9e4] sm:$0xf] }
 0x2ab   : > { %v2815_v44 = vpop.f32.mrf.mxu3 }
 0x2ac   : > { %v10110_v44 = vld [vmem:[#allocation5 + $0xb0c] sm:$0xf] }
 0x2ad   : > { %v2854_v45 = vpop.f32.mrf.mxu2 }
 0x2ae   : > { %v8362_v45 = vld [vmem:[#allocation5 + $0xb38] sm:$0xf0] }
 0x2af   : > { %v8365_v49 = vor.u32 %v10110_v44, %v8362_v45  ;;  %v8210_v44 = vld [vmem:[#allocation5 + $0xa10] sm:$0xf0]  ;;  %v8216_v45 = vld [vmem:[#allocation5 + $0x9e8] sm:$0xf] }
 0x2b3   : > { %v2890_v55 = vpop.f32.mrf.mxu3 }
 0x2b4   : > { %v11432_v58 = vpack.c.bf16 %v2890_v55, %v2890_v55  ;;  %v8312_v55 = vld [vmem:[#allocation5 + $0xaa8] sm:$0xf] }
 0x2b6   : > { %3479 = vmatmul.bf16.vlgmr.msra.gmra.mxu0 %v11432_v58  ;;  %3492 = vmatmul.bf16.vlgmr.msra.gmra.mxu1 %v11432_v58 }
 0x2b7   : > { %3505 = vmatmul.bf16.vlgmr.msra.gmra.mxu2 %v11432_v58  ;;  %3518 = vmatmul.bf16.vlgmr.msra.gmra.mxu3 %v11432_v58 }
 0x2b8   : > { %3575 = vmatpush.bf16.msra.mxu0 %v8449_v33  ;;  %3588 = vmatpush.bf16.msra.mxu1 %v8453_v7  ;;  %v10104_v33 = vld [vmem:[#allocation5 + $0xad4] sm:$0xf0]  ;;  %v10098_v7 = vld [vmem:[#allocation5 + $0xaac] sm:$0xf] }
 0x2b9   : > { %3601 = vmatpush.bf16.msra.mxu2 %v8457_v62  ;;  %3614 = vmatpush.bf16.msra.mxu3 %v8461_v63  ;;  %v8309_v62 = vor.u32 %v10097_v53, %v8306_v54  ;;  %v8256_v63 = vld [vmem:[#allocation5 + $0xa40] sm:$0xf]  ;;  %v8313_v12 = vor.u32 %v10104_v33, %v8312_v55  ;;  %v8317_v1 = vor.u32 %v10098_v7, %v8314_v59  ;;  %v10067_v53 = vld [vmem:[#allocation5 + $0x9ac] sm:$0xf0]  ;;  %v10061_v33 = vld [vmem:[#allocation5 + $0x984] sm:$0xf] }
 0x2ba   : > { %v8257_v21 = vor.u32 %v10091_v0, %v8256_v63  ;;  %v8162_v7 = vld [vmem:[#allocation5 + $0x9b0] sm:$0xf0]  ;;  %v8168_v59 = vld [vmem:[#allocation5 + $0x988] sm:$0xf]  ;;  %v8170_v63 = vld [vmem:[#allocation5 + $0x9b8] sm:$0xf0] }
 0x2bc   : > { %3576 = vmatpush.bf16.msra.mxu0 %v8401_v24  ;;  %3589 = vmatpush.bf16.msra.mxu1 %v8405_v37  ;;  %v10092_v24 = vld [vmem:[#allocation5 + $0xa74] sm:$0xf0]  ;;  %v10086_v37 = vld [vmem:[#allocation5 + $0xa4c] sm:$0xf] }
 0x2bd   : > { %3602 = vmatpush.bf16.msra.mxu2 %v8409_v26  ;;  %3615 = vmatpush.bf16.msra.mxu3 %v8413_v42  ;;  %v8261_v26 = vor.u32 %v10085_v2, %v8258_v5  ;;  %v8208_v42 = vld [vmem:[#allocation5 + $0x9e0] sm:$0xf]  ;;  %v8265_v39 = vor.u32 %v10092_v24, %v8264_v10  ;;  %v8269_v41 = vor.u32 %v10086_v37, %v8266_v20  ;;  %v10055_v2 = vld [vmem:[#allocation5 + $0x94c] sm:$0xf0]  ;;  %v10049_v24 = vld [vmem:[#allocation5 + $0x924] sm:$0xf] }
 0x2be   : > { %v8209_v47 = vor.u32 %v10079_v30, %v8208_v42  ;;  %v8114_v37 = vld [vmem:[#allocation5 + $0x950] sm:$0xf0]  ;;  %v8120_v20 = vld [vmem:[#allocation5 + $0x928] sm:$0xf]  ;;  %v8122_v42 = vld [vmem:[#allocation5 + $0x958] sm:$0xf0] }
 0x2c0   : > { %3577 = vmatpush.bf16.msra.mxu0 %v8353_v46  ;;  %3590 = vmatpush.bf16.msra.mxu1 %v8357_v16  ;;  %v10080_v46 = vld [vmem:[#allocation5 + $0xa14] sm:$0xf0]  ;;  %v10074_v16 = vld [vmem:[#allocation5 + $0x9ec] sm:$0xf] }
 0x2c1   : > { %3603 = vmatpush.bf16.msra.mxu2 %v8361_v48  ;;  %3616 = vmatpush.bf16.msra.mxu3 %v8365_v49  ;;  %v8213_v48 = vor.u32 %v10073_v43, %v8210_v44  ;;  %v8160_v49 = vld [vmem:[#allocation5 + $0x980] sm:$0xf]  ;;  %v8217_v54 = vor.u32 %v10080_v46, %v8216_v45  ;;  %v8221_v55 = vor.u32 %v10074_v16, %v8218_v4  ;;  %v3814_v44 = vld [vmem:[#allocation7 + $0x78] sm:$0xff]  ;;  %v3813_v45 = vld [vmem:[#allocation7 + $0x70] sm:$0xff] }
 0x2c2   : > { %v8161_v0 = vor.u32 %v10067_v53, %v8160_v49  ;;  %v3812_v46 = vld [vmem:[#allocation7 + $0x68] sm:$0xff]  ;;  %v3811_v16 = vld [vmem:[#allocation7 + $0x60] sm:$0xff]  ;;  %v3810_v4 = vld [vmem:[#allocation7 + $0x58] sm:$0xff] }
 0x2c3   : > { %v3807_v49 = vld [vmem:[#allocation7 + $0x40] sm:$0xff]  ;;  %v3806_v53 = vld [vmem:[#allocation7 + $0x38] sm:$0xff] }
 0x2c4   : > { %3578 = vmatpush.bf16.msra.mxu0 %v8305_v60  ;;  %3591 = vmatpush.bf16.msra.mxu1 %v8309_v62  ;;  %v10068_v60 = vld [vmem:[#allocation5 + $0x9b4] sm:$0xf0]  ;;  %v10062_v62 = vld [vmem:[#allocation5 + $0x98c] sm:$0xf] }
 0x2c5   : > { %3604 = vmatpush.bf16.msra.mxu2 %v8313_v12  ;;  %3617 = vmatpush.bf16.msra.mxu3 %v8317_v1  ;;  %v8165_v12 = vor.u32 %v10061_v33, %v8162_v7  ;;  %v8112_v1 = vld [vmem:[#allocation5 + $0x920] sm:$0xf]  ;;  %v8169_v5 = vor.u32 %v10068_v60, %v8168_v59  ;;  %v8173_v10 = vor.u32 %v10062_v62, %v8170_v63  ;;  %v3802_v33 = vld [vmem:[#allocation7 + $0x18] sm:$0xff]  ;;  %v3801_v7 = vld [vmem:[#allocation7 + $0x10] sm:$0xff] }
 0x2c6   : > { %3531 = vmatmul.bf16.vlgmr.msrb.gmra.mxu0 %v11432_v58  ;;  %3544 = vmatmul.bf16.vlgmr.msrb.gmra.mxu1 %v11432_v58  ;;  %v8113_v30 = vor.u32 %v10055_v2, %v8112_v1  ;;  %v3800_v59 = vld [vmem:[#allocation7 + $0x8] sm:$0xff]  ;;  %v3799_v60 = vld [vmem:[#allocation7] sm:$0xff]  ;;  %v10624_v63 = vld [vmem:[%s11252_s2 + $0x8] sm:$0xff] }
 0x2c7   : > { %3557 = vmatmul.bf16.vlgmr.msrb.gmra.mxu2 %v11432_v58  ;;  %3570 = vmatmul.bf16.vlgmr.msrb.gmra.mxu3 %v11432_v58  ;;  %v10623_v62 = vld [vmem:[%s11252_s2] sm:$0xff] }
 0x2c8   : > { %3579 = vmatpush.bf16.msra.mxu0 %v8257_v21  ;;  %3592 = vmatpush.bf16.msra.mxu1 %v8261_v26  ;;  %v10056_v21 = vld [vmem:[#allocation5 + $0x954] sm:$0xf0]  ;;  %v10050_v26 = vld [vmem:[#allocation5 + $0x92c] sm:$0xf] }
 0x2c9   : > { %3605 = vmatpush.bf16.msra.mxu2 %v8265_v39  ;;  %3618 = vmatpush.bf16.msra.mxu3 %v8269_v41  ;;  %v8117_v39 = vor.u32 %v10049_v24, %v8114_v37  ;;  %v8121_v41 = vor.u32 %v10056_v21, %v8120_v20  ;;  %v8125_v43 = vor.u32 %v10050_v26, %v8122_v42 }
 0x2ca   : > { %v1964_v24 = vadd.f32 %v11363_v29, %v11335_v19  ;;  %v1977_v37 = vadd.f32 %v11357_v3, %v11325_v15 }
 0x2cc   : > { %3580 = vmatpush.bf16.msra.mxu0 %v8209_v47  ;;  %3593 = vmatpush.bf16.msra.mxu1 %v8213_v48  ;;  %v3809_v47 = vld [vmem:[#allocation7 + $0x50] sm:$0xff]  ;;  %v3808_v48 = vld [vmem:[#allocation7 + $0x48] sm:$0xff]  ;;  %v2857_v20 = vadd.f32 %v11402_v52, %v1964_v24  ;;  %v2858_v26 = vadd.f32 %v11404_v57, %v1977_v37  ;;  %v2016_v57 = vadd.f32 %v11371_v51, %v11347_v27 }
 0x2cd   : > { %3606 = vmatpush.bf16.msra.mxu2 %v8217_v54  ;;  %3619 = vmatpush.bf16.msra.mxu3 %v8221_v55  ;;  %v3805_v54 = vld [vmem:[#allocation7 + $0x30] sm:$0xff]  ;;  %v3804_v55 = vld [vmem:[#allocation7 + $0x28] sm:$0xff] }
 0x2d0   : > { %3581 = vmatpush.bf16.msra.mxu0 %v8161_v0  ;;  %3594 = vmatpush.bf16.msra.mxu1 %v8165_v12  ;;  %v10625_v0 = vld [vmem:[%s11252_s2 + $0x10] sm:$0xff]  ;;  %v1951_v12 = vadd.f32 %v11361_v28, %v11333_v18 }
 0x2d1   : > { %3607 = vmatpush.bf16.msra.mxu2 %v8169_v5  ;;  %3620 = vmatpush.bf16.msra.mxu3 %v8173_v10 }
 0x2d2   : > { %v2856_v1 = vadd.f32 %v11408_v14, %v1951_v12 }
 0x2d4   : > { %3582 = vmatpush.bf16.msra.mxu0 %v8113_v30  ;;  %3595 = vmatpush.bf16.msra.mxu1 %v8117_v39 }
 0x2d5   : > { %3608 = vmatpush.bf16.msra.mxu2 %v8121_v41  ;;  %3621 = vmatpush.bf16.msra.mxu3 %v8125_v43 }
 0x2d7   : > { %3583 = vmatmul.bf16.vlgmr.msra.gmra.mxu0 %v11432_v58  ;;  %3596 = vmatmul.bf16.vlgmr.msra.gmra.mxu1 %v11432_v58 }
 0x2d8   : > { %3815 = vmatpush.msrb.mxu0 %v3814_v44  ;;  %3609 = vmatmul.bf16.vlgmr.msra.gmra.mxu2 %v11432_v58 }
 0x2d9   : > { %3622 = vmatmul.bf16.vlgmr.msra.gmra.mxu3 %v11432_v58  ;;  %v3803_v58 = vld [vmem:[#allocation7 + $0x20] sm:$0xff] }
 0x2da   : > { %3816 = vmatpush.msrb.mxu0 %v3813_v45  ;;  %v2003_v45 = vadd.f32 %v11369_v50, %v11345_v25 }
 0x2dc   : > { %3817 = vmatpush.msrb.mxu0 %v3812_v46 }
 0x2de   : > { %3818 = vmatpush.msrb.mxu0 %v3811_v16 }
 0x2e0   : > { %3819 = vmatpush.msrb.mxu0 %v3810_v4  ;;  %v2860_v4 = vadd.f32 %v11418_v56, %v2003_v45  ;;  %v2068_v45 = vadd.f32 %v11379_v9, %v11355_v35 }
 0x2e2   : > { %3820 = vmatpush.msrb.mxu0 %v3809_v47 }
 0x2e4   : > { %3821 = vmatpush.msrb.mxu0 %v3808_v48 }
 0x2e6   : > { %3822 = vmatpush.msrb.mxu0 %v3807_v49 }
 0x2e8   : > { %3823 = vmatpush.msrb.mxu0 %v3806_v53 }
 0x2ea   : > { %3824 = vmatpush.msrb.mxu0 %v3805_v54 }
 0x2ec   : > { %3825 = vmatpush.msrb.mxu0 %v3804_v55 }
 0x2ee   : > { %3826 = vmatpush.msrb.mxu0 %v3803_v58 }
 0x2f0   : > { %3827 = vmatpush.msrb.mxu0 %v3802_v33 }
 0x2f2   : > { %3828 = vmatpush.msrb.mxu0 %v3801_v7 }
 0x2f4   : > { %3829 = vmatpush.msrb.mxu0 %v3800_v59 }
 0x2f6   : > { %3830 = vmatpush.msrb.mxu0 %v3799_v60 }
 0x2f7   : > { %3831 = vmatmul.f32.vlgmr.msrb.gmra.mxu0 %v10623_v62 }
 0x2ff   : > { %3834 = vmatmul.f32.gmra.mxu0 %v10624_v63 }
 0x307   : > { %3837 = vmatmul.f32.gmra.mxu0 %v10625_v0 }
 0x333   : > { %v3480_v2 = vpop.f32.mrf.mxu0  ;;  %v3493_v5 = vpop.f32.mrf.mxu1 }
 0x334   : > { %v3627_v10 = vadd.f32 %v3480_v2, %v2856_v1  ;;  %v3628_v42 = vadd.f32 %v3493_v5, %v2857_v20 }
 0x336   : > { %v3640_v21 = vsel %vm3639_vm1, %v3627_v10, 0.0  ;;  %v3647_v19 = vsel %vm3639_vm1, %v3628_v42, 0.0 }
 0x337   : > { %v3641_v18 = vrot.slane %v3640_v21, 4  ;;  %v3648_v46 = vrot.slane %v3647_v19, 4 }
 0x339   : > { %v3642_v3 = vadd.f32 %v3641_v18, %v3640_v21  ;;  %v3649_v33 = vadd.f32 %v3648_v46, %v3647_v19 }
 0x33a   : > { %v3506_v28 = vpop.f32.mrf.mxu2  ;;  %v3519_v14 = vpop.f32.mrf.mxu3 }
 0x33b   : > { %v3629_v30 = vadd.f32 %v3506_v28, %v2858_v26  ;;  %v3630_v39 = vadd.f32 %v3519_v14, %v11410_v38  ;;  %v3482_v41 = vpop.f32.mrf.mxu0  ;;  %v3495_v43 = vpop.f32.mrf.mxu1  ;;  %v2861_v38 = vadd.f32 %v11412_v11, %v2016_v57  ;;  %v3643_v47 = vrot.slane %v3642_v3, 2 }
 0x33c   : > { %v2029_v11 = vadd.f32 %v11365_v36, %v11341_v23  ;;  %v3650_v63 = vrot.slane %v3649_v33, 2 }
 0x33d   : > { %v3654_v29 = vsel %vm3639_vm1, %v3629_v30, 0.0  ;;  %v3661_v15 = vsel %vm3639_vm1, %v3630_v39, 0.0  ;;  %v3644_v51 = vadd.f32 %v3643_v47, %v3642_v3 }
 0x33e   : > { %v3655_v52 = vrot.slane %v3654_v29, 4  ;;  %v3662_v44 = vrot.slane %v3661_v15, 4  ;;  %v2862_v12 = vadd.f32 %v11414_v13, %v2029_v11  ;;  %v3651_v23 = vadd.f32 %v3650_v63, %v3649_v33 }
 0x33f   : > { %v3645_v5 = vrot.slane %v3644_v51, 1 }
 0x340   : > { %v3656_v16 = vadd.f32 %v3655_v52, %v3654_v29  ;;  %v3663_v49 = vadd.f32 %v3662_v44, %v3661_v15  ;;  %v3652_v3 = vrot.slane %v3651_v23, 1 }
 0x341   : > { %v3646_v29 = vadd.f32 %v3645_v5, %v3644_v51 }
 0x342   : > { %v3657_v48 = vrot.slane %v3656_v16, 2  ;;  %v3508_v53 = vpop.f32.mrf.mxu2  ;;  %v3521_v54 = vpop.f32.mrf.mxu3  ;;  %v3664_v60 = vrot.slane %v3663_v49, 2 }
 0x343   : > { %v3532_v55 = vpop.f32.mrf.mxu0  ;;  %v3545_v58 = vpop.f32.mrf.mxu1  ;;  %v2865_v53 = vadd.f32 %v11422_v17, %v2068_v45 }
 0x344   : > { %v3658_v7 = vadd.f32 %v3657_v48, %v3656_v16  ;;  %v3631_v59 = vadd.f32 %v3532_v55, %v2860_v4  ;;  %v3632_v27 = vadd.f32 %v3545_v58, %v2861_v38  ;;  %v3665_v10 = vadd.f32 %v3664_v60, %v3663_v49 }
 0x345   : > { %v3653_v58 = vadd.f32 %v3652_v3, %v3651_v23  ;;  %v2081_v60 = vadd.f32 %v11373_v6, %v11349_v32 }
 0x346   : > { %v3668_v25 = vsel %vm3639_vm1, %v3631_v59, 0.0  ;;  %v3675_v50 = vsel %vm3639_vm1, %v3632_v27, 0.0  ;;  %v3659_v0 = vrot.slane %v3658_v7, 1  ;;  %v3666_v41 = vrot.slane %v3665_v10, 1 }
 0x347   : > { %v3669_v56 = vrot.slane %v3668_v25, 4  ;;  %v3676_v62 = vrot.slane %v3675_v50, 4 }
 0x348   : > { %v3660_v36 = vadd.f32 %v3659_v0, %v3658_v7  ;;  %v3667_v38 = vadd.f32 %v3666_v41, %v3665_v10 }
 0x349   : > { %v3670_v1 = vadd.f32 %v3669_v56, %v3668_v25  ;;  %v3677_v2 = vadd.f32 %v3676_v62, %v3675_v50  ;;  %v2866_v62 = vadd.f32 %v11424_v22, %v2081_v60  ;;  %v10232_v60 = vld [vmem:[#allocation8 + $0x2dc] sm:$0xf] }
 0x34a   : > { %v3558_v24 = vpop.f32.mrf.mxu2  ;;  %v3571_v37 = vpop.f32.mrf.mxu3  ;;  %v3724_v46 = vadd.f32 %v3660_v36, %v3646_v29  ;;  %v3725_v35 = vadd.f32 %v3667_v38, %v3653_v58 }
 0x34b   : > { %v3671_v20 = vrot.slane %v3670_v1, 2  ;;  %v3678_v21 = vrot.slane %v3677_v2, 2  ;;  %v3633_v26 = vadd.f32 %v3558_v24, %v2862_v12  ;;  %v3634_v42 = vadd.f32 %v3571_v37, %v11420_v61  ;;  %v3534_v18 = vpop.f32.mrf.mxu0  ;;  %v3547_v28 = vpop.f32.mrf.mxu1 }
 0x34c   : > { %v2055_v61 = vadd.f32 %v11377_v8, %v11353_v34 }
 0x34d   : > { %v3672_v14 = vadd.f32 %v3671_v20, %v3670_v1  ;;  %v3679_v30 = vadd.f32 %v3678_v21, %v3677_v2  ;;  %v3682_v39 = vsel %vm3639_vm1, %v3633_v26, 0.0  ;;  %v3689_v13 = vsel %vm3639_vm1, %v3634_v42, 0.0 }
 0x34e   : > { %v3683_v43 = vrot.slane %v3682_v39, 4  ;;  %v3690_v19 = vrot.slane %v3689_v13, 4  ;;  %v2864_v54 = vadd.f32 %v11428_v31, %v2055_v61 }
 0x34f   : > { %v3673_v15 = vrot.slane %v3672_v14, 1  ;;  %v3680_v52 = vrot.slane %v3679_v30, 1 }
 0x350   : > { %v3684_v44 = vadd.f32 %v3683_v43, %v3682_v39  ;;  %v3691_v57 = vadd.f32 %v3690_v19, %v3689_v13 }
 0x351   : > { %v3674_v16 = vadd.f32 %v3673_v15, %v3672_v14  ;;  %v3681_v33 = vadd.f32 %v3680_v52, %v3679_v30 }
 0x352   : > { %v3685_v4 = vrot.slane %v3684_v44, 2  ;;  %v3692_v47 = vrot.slane %v3691_v57, 2  ;;  %v3560_v48 = vpop.f32.mrf.mxu2  ;;  %v3573_v49 = vpop.f32.mrf.mxu3 }
 0x353   : > { %v3726_v55 = vadd.f32 %v3724_v46, %v3674_v16  ;;  %v3727_v50 = vadd.f32 %v3725_v35, %v3681_v33  ;;  %v3736_v46 = vld [vmem:[#allocation14] sm:$0x3]  ;;  %v8635_v33 = vld [vmem:[#allocation8 + $0x2d0] sm:$0xf] }
 0x354   : > { %v3693_v7 = vadd.f32 %v3692_v47, %v3691_v57  ;;  %v3584_v59 = vpop.f32.mrf.mxu0  ;;  %v3597_v34 = vpop.f32.mrf.mxu1  ;;  %v3686_v9 = vadd.f32 %v3685_v4, %v3684_v44  ;;  %v11491_v47 = vperm.slane %v3736_v46, 0  ;;  %v11493_v49 = vperm.slane %v3736_v46, 1  ;;  %v10235_v46 = vld [vmem:[#allocation8 + $0x2ec] sm:$0xf0] }
 0x355   : > { %v3635_v8 = vadd.f32 %v3584_v59, %v2864_v54  ;;  %v3636_v27 = vadd.f32 %v3597_v34, %v2865_v53  ;;  %v10231_v59 = vld [vmem:[#allocation8 + $0x2d4] sm:$0xf] }
 0x356   : > { %v3694_v51 = vrot.slane %v3693_v7, 1  ;;  %v3687_v63 = vrot.slane %v3686_v9, 1 }
 0x357   : > { %v3696_v25 = vsel %vm3639_vm1, %v3635_v8, 0.0  ;;  %v3703_v17 = vsel %vm3639_vm1, %v3636_v27, 0.0  ;;  %v8637_v27 = vld [vmem:[#allocation8 + $0x2e8] sm:$0xf0] }
 0x358   : > { %v3695_v31 = vadd.f32 %v3694_v51, %v3693_v7  ;;  %v3697_v11 = vrot.slane %v3696_v25, 4  ;;  %v3704_v56 = vrot.slane %v3703_v17, 4  ;;  %v3688_v21 = vadd.f32 %v3687_v63, %v3686_v9  ;;  %v10234_v7 = vld [vmem:[#allocation8 + $0x2e4] sm:$0xf0]  ;;  %v8613_v63 = vld [vmem:[#allocation8 + $0x2b8] sm:$0xf0] }
 0x359   : > { %v8636_v8 = vor.u32 %v10234_v7, %v8635_v33  ;;  %v8640_v51 = vor.u32 %v10231_v59, %v8637_v27  ;;  %v10223_v33 = vld [vmem:[#allocation8 + $0x28c] sm:$0xf0]  ;;  %v8571_v59 = vld [vmem:[#allocation8 + $0x248] sm:$0xf]  ;;  %v8547_v27 = vld [vmem:[#allocation8 + $0x218] sm:$0xf] }
 0x35a   : > { %v3698_v0 = vadd.f32 %v3697_v11, %v3696_v25  ;;  %v3705_v12 = vadd.f32 %v3704_v56, %v3703_v17  ;;  %v3729_v1 = vadd.f32 %v3727_v50, %v3695_v31  ;;  %v3728_v43 = vadd.f32 %v3726_v55, %v3688_v21  ;;  %v8645_v17 = vld [vmem:[#allocation8 + $0x2f0] sm:$0xf0]  ;;  %v8611_v50 = vld [vmem:[#allocation8 + $0x2a0] sm:$0xf]  ;;  %v10228_v31 = vld [vmem:[#allocation8 + $0x2b4] sm:$0xf0] }
 0x35b   : > { %v3610_v2 = vpop.f32.mrf.mxu2  ;;  %4229 = vmatpush.bf16.msrb.mxu2 %v8636_v8  ;;  %4242 = vmatpush.bf16.msrb.mxu3 %v8640_v51  ;;  %v8648_v11 = vor.u32 %v10232_v60, %v8645_v17  ;;  %v8612_v56 = vor.u32 %v10228_v31, %v8611_v50  ;;  %v8597_v21 = vld [vmem:[#allocation8 + $0x290] sm:$0xf0]  ;;  %v8515_v60 = vld [vmem:[#allocation8 + $0x1e0] sm:$0xf]  ;;  %v10201_v50 = vld [vmem:[#allocation8 + $0x1e4] sm:$0xf] }
 0x35c   : > { %v3699_v5 = vrot.slane %v3698_v0, 2  ;;  %v3706_v10 = vrot.slane %v3705_v12, 2  ;;  %v3637_v24 = vadd.f32 %v3610_v2, %v2866_v62  ;;  %v3623_v37 = vpop.f32.mrf.mxu3  ;;  %v3586_v32 = vpop.f32.mrf.mxu0  ;;  %v10225_v62 = vld [vmem:[#allocation8 + $0x2a4] sm:$0xf]  ;;  %v8517_v31 = vld [vmem:[#allocation8 + $0x1f8] sm:$0xf0] }
 0x35d   : > { %v3638_v6 = vadd.f32 %v3623_v37, %v11430_v40  ;;  %v3599_v20 = vpop.f32.mrf.mxu1  ;;  %4268 = vmatpush.bf16.msra.mxu0 %v8648_v11  ;;  %v8589_v32 = vld [vmem:[#allocation8 + $0x288] sm:$0xf0]  ;;  %v8523_v11 = vld [vmem:[#allocation8 + $0x1e8] sm:$0xf] }
 0x35e   : > { %v3700_v26 = vadd.f32 %v3699_v5, %v3698_v0  ;;  %v3707_v42 = vadd.f32 %v3706_v10, %v3705_v12  ;;  %v3710_v18 = vsel %vm3639_vm1, %v3637_v24, 0.0  ;;  %v8616_v0 = vor.u32 %v10225_v62, %v8613_v63  ;;  %v10226_v12 = vld [vmem:[#allocation8 + $0x2ac] sm:$0xf]  ;;  %v8587_v5 = vld [vmem:[#allocation8 + $0x270] sm:$0xf] }
 0x35f   : > { %v3711_v28 = vrot.slane %v3710_v18, 4  ;;  %v3717_v22 = vsel %vm3639_vm1, %v3638_v6, 0.0  ;;  %v10222_v10 = vld [vmem:[#allocation8 + $0x284] sm:$0xf0]  ;;  %v10219_v24 = vld [vmem:[#allocation8 + $0x274] sm:$0xf]  ;;  %4230 = vmatpush.bf16.msrb.mxu2 %v8612_v56  ;;  %v8520_v56 = vor.u32 %v10201_v50, %v8517_v31 }
 0x360   : > { %v3701_v23 = vrot.slane %v3700_v26, 1  ;;  %v3708_v36 = vrot.slane %v3707_v42, 1  ;;  %v3718_v14 = vrot.slane %v3717_v22, 4  ;;  %v8588_v37 = vor.u32 %v10222_v10, %v8587_v5  ;;  %4243 = vmatpush.bf16.msrb.mxu3 %v8616_v0  ;;  %v10220_v20 = vld [vmem:[#allocation8 + $0x27c] sm:$0xf] }
 0x361   : > { %v3712_v30 = vadd.f32 %v3711_v28, %v3710_v18  ;;  %v8592_v6 = vor.u32 %v10219_v24, %v8589_v32  ;;  %v10213_v18 = vld [vmem:[#allocation8 + $0x244] sm:$0xf]  ;;  %v8565_v28 = vld [vmem:[#allocation8 + $0x258] sm:$0xf0]  ;;  %v10205_v62 = vld [vmem:[#allocation8 + $0x1fc] sm:$0xf0] }
 0x362   : > { %v3702_v39 = vadd.f32 %v3701_v23, %v3700_v26  ;;  %v3709_v13 = vadd.f32 %v3708_v36, %v3707_v42  ;;  %v3719_v41 = vadd.f32 %v3718_v14, %v3717_v22  ;;  %v8563_v26 = vld [vmem:[#allocation8 + $0x240] sm:$0xf]  ;;  %v10216_v42 = vld [vmem:[#allocation8 + $0x254] sm:$0xf0]  ;;  %v8600_v23 = vor.u32 %v10220_v20, %v8597_v21  ;;  %v10214_v14 = vld [vmem:[#allocation8 + $0x24c] sm:$0xf] }
 0x363   : > { %v3713_v19 = vrot.slane %v3712_v30, 2  ;;  %v3612_v29 = vpop.f32.mrf.mxu2  ;;  %4231 = vmatpush.bf16.msrb.mxu2 %v8588_v37  ;;  %v8564_v36 = vor.u32 %v10216_v42, %v8563_v26  ;;  %v10202_v63 = vld [vmem:[#allocation8 + $0x1ec] sm:$0xf]  ;;  %v8525_v0 = vld [vmem:[#allocation8 + $0x200] sm:$0xf0] }
 0x364   : > { %v3720_v40 = vrot.slane %v3719_v41, 2  ;;  %v3625_v15 = vpop.f32.mrf.mxu3  ;;  %v3730_v3 = vadd.f32 %v3728_v43, %v3702_v39  ;;  %v3731_v52 = vadd.f32 %v3729_v1, %v3709_v13  ;;  %v8621_v1 = vld [vmem:[#allocation8 + $0x2c0] sm:$0xf0]  ;;  %4244 = vmatpush.bf16.msrb.mxu3 %v8592_v6  ;;  %v8568_v39 = vor.u32 %v10213_v18, %v8565_v28  ;;  %v8539_v13 = vld [vmem:[#allocation8 + $0x210] sm:$0xf] }
 0x365   : > { %v3714_v44 = vadd.f32 %v3713_v19, %v3712_v30  ;;  %v8624_v2 = vor.u32 %v10226_v12, %v8621_v1  ;;  %v8573_v30 = vld [vmem:[#allocation8 + $0x260] sm:$0xf0]  ;;  %v10207_v43 = vld [vmem:[#allocation8 + $0x214] sm:$0xf]  ;;  %v8541_v19 = vld [vmem:[#allocation8 + $0x228] sm:$0xf0]  ;;  %v8524_v12 = vor.u32 %v10205_v62, %v8523_v11  ;;  %v8528_v1 = vor.u32 %v10202_v63, %v8525_v0 }
 0x366   : > { %v3721_v57 = vadd.f32 %v3720_v40, %v3719_v41  ;;  %v10210_v41 = vld [vmem:[#allocation8 + $0x224] sm:$0xf0]  ;;  %v8576_v29 = vor.u32 %v10214_v14, %v8573_v30  ;;  %v10208_v15 = vld [vmem:[#allocation8 + $0x21c] sm:$0xf]  ;;  %v10195_v10 = vld [vmem:[#allocation8 + $0x1b4] sm:$0xf] }
 0x367   : > { %v3715_v61 = vrot.slane %v3714_v44, 1  ;;  %4269 = vmatpush.bf16.msra.mxu0 %v8624_v2  ;;  %4232 = vmatpush.bf16.msrb.mxu2 %v8564_v36  ;;  %v8540_v40 = vor.u32 %v10210_v41, %v8539_v13  ;;  %v8491_v2 = vld [vmem:[#allocation8 + $0x1b0] sm:$0xf]  ;;  %v10198_v5 = vld [vmem:[#allocation8 + $0x1c4] sm:$0xf0] }
 0x368   : > { %v3722_v45 = vrot.slane %v3721_v57, 1  ;;  %4245 = vmatpush.bf16.msrb.mxu3 %v8568_v39  ;;  %v8492_v24 = vor.u32 %v10198_v5, %v8491_v2  ;;  %v8493_v37 = vld [vmem:[#allocation8 + $0x1c8] sm:$0xf0]  ;;  %v8499_v32 = vld [vmem:[#allocation8 + $0x1b8] sm:$0xf] }
 0x369   : > { %v3716_v16 = vadd.f32 %v3715_v61, %v3714_v44  ;;  %v3841_v61 = vld [vmem:[%s11769_s26] sm:$0x7]  ;;  %v8496_v20 = vor.u32 %v10195_v10, %v8493_v37  ;;  %v10196_v26 = vld [vmem:[#allocation8 + $0x1bc] sm:$0xf]  ;;  %v8501_v42 = vld [vmem:[#allocation8 + $0x1d0] sm:$0xf0] }
 0x36a   : > { %v3723_v38 = vadd.f32 %v3722_v45, %v3721_v57  ;;  %v8643_v45 = vld [vmem:[#allocation8 + $0x2d8] sm:$0xf]  ;;  %v10199_v6 = vld [vmem:[#allocation8 + $0x1cc] sm:$0xf0]  ;;  %v8467_v18 = vld [vmem:[#allocation8 + $0x180] sm:$0xf]  ;;  %v8504_v28 = vor.u32 %v10196_v26, %v8501_v42 }
 0x36b   : > { %v3732_v4 = vadd.f32 %v3730_v3, %v3716_v16  ;;  %4270 = vmatpush.bf16.msra.mxu0 %v8600_v23  ;;  %v8549_v3 = vld [vmem:[#allocation8 + $0x230] sm:$0xf0]  ;;  %4233 = vmatpush.bf16.msrb.mxu2 %v8540_v40  ;;  %v8644_v16 = vor.u32 %v10235_v46, %v8643_v45  ;;  %v8500_v21 = vor.u32 %v10199_v6, %v8499_v32  ;;  %v10192_v23 = vld [vmem:[#allocation8 + $0x194] sm:$0xf0]  ;;  %v10189_v36 = vld [vmem:[#allocation8 + $0x184] sm:$0xf] }
 0x36c   : > { %v3733_v48 = vadd.f32 %v3731_v52, %v3723_v38  ;;  %v8544_v52 = vor.u32 %v10207_v43, %v8541_v19  ;;  %v8552_v57 = vor.u32 %v10208_v15, %v8549_v3  ;;  %v8619_v38 = vld [vmem:[#allocation8 + $0x2a8] sm:$0xf]  ;;  %v8469_v14 = vld [vmem:[#allocation8 + $0x198] sm:$0xf0]  ;;  %v8468_v30 = vor.u32 %v10192_v23, %v8467_v18  ;;  %v10193_v13 = vld [vmem:[#allocation8 + $0x19c] sm:$0xf0] }
 0x36d   : > { %v3734_v53 = vmul.f32 0.027777778, %v3732_v4  ;;  %v10229_v4 = vld [vmem:[#allocation8 + $0x2bc] sm:$0xf0]  ;;  %v8475_v39 = vld [vmem:[#allocation8 + $0x188] sm:$0xf]  ;;  %v8472_v43 = vor.u32 %v10189_v36, %v8469_v14 }
 0x36e   : > { %v3735_v54 = vmul.f32 0.027777778, %v3733_v48  ;;  %4246 = vmatpush.bf16.msrb.mxu3 %v8544_v52  ;;  %v8463_v48 = vld [vmem:[%s11769_s26 + $0x4] sm:$0x7]  ;;  %v10190_v41 = vld [vmem:[#allocation8 + $0x18c] sm:$0xf]  ;;  %v8476_v15 = vor.u32 %v10193_v13, %v8475_v39 }
 0x36f   : > { %v11496_v55 = vadd.f32 %v11491_v47, %v3734_v53  ;;  %4271 = vmatpush.bf16.msra.mxu0 %v8576_v29  ;;  %v8620_v53 = vor.u32 %v10229_v4, %v8619_v38  ;;  %v8477_v19 = vld [vmem:[#allocation8 + $0x1a0] sm:$0xf0]  ;;  %v8651_v29 = vld [vmem:[#allocation8 + $0x2e0] sm:$0xf]  ;;  %v10236_v40 = vld [vmem:[#allocation8 + $0x2f4] sm:$0xf0] }
 0x370   : > { %v11499_v58 = vadd.f32 %v11493_v49, %v3735_v54  ;;  %v8595_v54 = vld [vmem:[#allocation8 + $0x278] sm:$0xf]  ;;  %v8480_v3 = vor.u32 %v10190_v41, %v8477_v19  ;;  %v8652_v52 = vor.u32 %v10236_v40, %v8651_v29  ;;  %v8827_v45 = vld [vmem:[#allocation8 + $0x150] sm:$0xf]  ;;  %v10183_v38 = vld [vmem:[#allocation8 + $0x154] sm:$0xf] }
 0x371   : > { %v3745_v34 = vsel %vm3744_vm2, %v11496_v55, 0.0  ;;  %v8596_v7 = vor.u32 %v10223_v33, %v8595_v54  ;;  %v8829_v4 = vld [vmem:[#allocation8 + $0x168] sm:$0xf0]  ;;  %v8627_v54 = vld [vmem:[#allocation8 + $0x2b0] sm:$0xf] }
 0x372   : > { %v3746_v9 = vsel %vm3744_vm2, %v11499_v58, 0.0  ;;  %4247 = vmatpush.bf16.msrb.mxu3 %v8520_v56  ;;  %v10230_v33 = vld [vmem:[#allocation8 + $0x2c4] sm:$0xf0]  ;;  %v10224_v50 = vld [vmem:[#allocation8 + $0x294] sm:$0xf0] }
 0x373   : > { %v3747_v25 = vadd.f32 %v3746_v9, %v3745_v34  ;;  %4272 = vmatpush.bf16.msra.mxu0 %v8552_v57  ;;  %v10217_v34 = vld [vmem:[#allocation8 + $0x25c] sm:$0xf0]  ;;  %v10211_v9 = vld [vmem:[#allocation8 + $0x22c] sm:$0xf0]  ;;  %v10233_v57 = vld [vmem:[#allocation8 + $0x2e4] sm:$0xf] }
 0x374   : > { %v11503_v35 = vpop.f32.mrf.mxu0  ;;  %v8572_v8 = vor.u32 %v10217_v34, %v8571_v59  ;;  %v8548_v51 = vor.u32 %v10211_v9, %v8547_v27  ;;  %v8628_v59 = vor.u32 %v10230_v33, %v8627_v54  ;;  %v8629_v34 = vld [vmem:[#allocation8 + $0x2c8] sm:$0xf0]  ;;  %v10180_v27 = vld [vmem:[#allocation8 + $0x134] sm:$0xf0]  ;;  %v10177_v9 = vld [vmem:[#allocation8 + $0x124] sm:$0xf] }
 0x375   : > { %3748 = vadd.xlane.f32.xlu0 %v3747_v25  ;;  %v10204_v25 = vld [vmem:[#allocation8 + $0x1f4] sm:$0xf0]  ;;  %v10221_v31 = vld [vmem:[#allocation8 + $0x284] sm:$0xf]  ;;  %v8605_v56 = vld [vmem:[#allocation8 + $0x298] sm:$0xf0] }
 0x376   : > { %v8516_v17 = vor.u32 %v10204_v25, %v8515_v60  ;;  %4248 = vmatpush.bf16.msrb.mxu3 %v8496_v20  ;;  %v8603_v60 = vld [vmem:[#allocation8 + $0x280] sm:$0xf]  ;;  %v8779_v62 = vld [vmem:[#allocation8 + $0xf0] sm:$0xf]  ;;  %v10174_v63 = vld [vmem:[#allocation8 + $0x104] sm:$0xf0]  ;;  %v8608_v10 = vor.u32 %v10221_v31, %v8605_v56 }
 0x377   : > { %4273 = vmatpush.bf16.msra.mxu0 %v8528_v1  ;;  %v8604_v0 = vor.u32 %v10224_v50, %v8603_v60  ;;  %v8781_v1 = vld [vmem:[#allocation8 + $0x108] sm:$0xf0]  ;;  %v8579_v2 = vld [vmem:[#allocation8 + $0x250] sm:$0xf]  ;;  %v10218_v5 = vld [vmem:[#allocation8 + $0x264] sm:$0xf0] }
 0x378   : > { %4234 = vmatpush.bf16.msrb.mxu2 %v8516_v17  ;;  %v10215_v37 = vld [vmem:[#allocation8 + $0x254] sm:$0xf]  ;;  %v8581_v6 = vld [vmem:[#allocation8 + $0x268] sm:$0xf0]  ;;  %v8755_v20 = vld [vmem:[#allocation8 + $0xc0] sm:$0xf]  ;;  %v8580_v26 = vor.u32 %v10218_v5, %v8579_v2 }
 0x379   : > { %v10165_v42 = vld [vmem:[#allocation8 + $0xc4] sm:$0xf]  ;;  %v8757_v18 = vld [vmem:[#allocation8 + $0xd8] sm:$0xf0]  ;;  %v10212_v23 = vld [vmem:[#allocation8 + $0x234] sm:$0xf0]  ;;  %v8584_v36 = vor.u32 %v10215_v37, %v8581_v6 }
 0x37a   : > { %4249 = vmatpush.bf16.msrb.mxu3 %v8472_v43  ;;  %v8760_v39 = vor.u32 %v10165_v42, %v8757_v18  ;;  %v8557_v13 = vld [vmem:[#allocation8 + $0x238] sm:$0xf0]  ;;  %v8731_v41 = vld [vmem:[#allocation8 + $0x90] sm:$0xf]  ;;  %v10162_v43 = vld [vmem:[#allocation8 + $0xa4] sm:$0xf0] }
 0x37b   : > { %4274 = vmatpush.bf16.msra.mxu0 %v8504_v28  ;;  %v8555_v28 = vld [vmem:[#allocation8 + $0x220] sm:$0xf]  ;;  %v10159_v29 = vld [vmem:[#allocation8 + $0x94] sm:$0xf]  ;;  %v8733_v40 = vld [vmem:[#allocation8 + $0xa8] sm:$0xf0] }
 0x37c   : > { %v11507_v22 = vpop.f32.mrf.mxu0  ;;  %4235 = vmatpush.bf16.msrb.mxu2 %v8492_v24  ;;  %v8780_v24 = vor.u32 %v10174_v63, %v8779_v62  ;;  %v8556_v19 = vor.u32 %v10212_v23, %v8555_v28  ;;  %v8709_v54 = vld [vmem:[#allocation8 + $0x78] sm:$0xf0]  ;;  %v10150_v60 = vld [vmem:[#allocation8 + $0x44] sm:$0xf0]  ;;  %v10147_v50 = vld [vmem:[#allocation8 + $0x34] sm:$0xf] }
 0x37d   : > { %v8685_v31 = vld [vmem:[#allocation8 + $0x48] sm:$0xf0]  ;;  %v8483_v56 = vld [vmem:[#allocation8 + $0x190] sm:$0xf]  ;;  %v10194_v62 = vld [vmem:[#allocation8 + $0x1a4] sm:$0xf0] }
 0x37e   : > { %v8484_v63 = vor.u32 %v10194_v62, %v8483_v56  ;;  %v10144_v5 = vld [vmem:[#allocation8 + $0x14] sm:$0xf0]  ;;  %v8837_v42 = vld [vmem:[#allocation8 + $0x170] sm:$0xf0]  ;;  %v8843_v18 = vld [vmem:[#allocation8 + $0x160] sm:$0xf] }
 0x37f   : > { %4275 = vmatpush.bf16.msra.mxu0 %v8480_v3  ;;  %v8732_v3 = vor.u32 %v10162_v43, %v8731_v41  ;;  %v10188_v28 = vld [vmem:[#allocation8 + $0x174] sm:$0xf0]  ;;  %v10185_v23 = vld [vmem:[#allocation8 + $0x164] sm:$0xf]  ;;  %v8811_v41 = vld [vmem:[#allocation8 + $0x128] sm:$0xf] }
 0x380   : > { %4236 = vmatpush.bf16.msrb.mxu2 %v8468_v30  ;;  %v10209_v30 = vld [vmem:[#allocation8 + $0x224] sm:$0xf]  ;;  %v10181_v43 = vld [vmem:[#allocation8 + $0x13c] sm:$0xf0]  ;;  %v10167_v56 = vld [vmem:[#allocation8 + $0xd4] sm:$0xf] }
 0x381   : > { %v8773_v62 = vld [vmem:[#allocation8 + $0xe8] sm:$0xf0] }
 0x384   : > { %v11509_v44 = vpop.f32.mrf.mxu0  ;;  %4281 = vmatpush.bf16.msra.mxu2 %v8652_v52  ;;  %v8736_v52 = vor.u32 %v10159_v29, %v8733_v40  ;;  %v10178_v40 = vld [vmem:[#allocation8 + $0x12c] sm:$0xf] }
 0x385   : > { %3858 = vmatpush.msrb.mxu1 %v11509_v44 }
 0x387   : > { %3859 = vmatpush.msrb.mxu1 %v11507_v22 }
 0x388   : > { %4282 = vmatpush.bf16.msra.mxu2 %v8628_v59  ;;  %v8507_v59 = vld [vmem:[#allocation8 + $0x1c0] sm:$0xf] }
 0x389   : > { %3860 = vmatpush.msrb.mxu1 %v11503_v35 }
 0x38a   : > { %8462 = vmatmul.msk.f32.vlgmr.msrb.gmra.mxu1 %vm581_vm0, %v3841_v61  ;;  %v8653_v61 = vld [vmem:[#allocation8 + $0x2f8] sm:$0xf0] }
 0x38b   : > { %3932 = vmatpush.msra.mxu1 %v11509_v44  ;;  %v8656_v46 = vor.u32 %v10233_v57, %v8653_v61  ;;  %v8531_v57 = vld [vmem:[#allocation8 + $0x1f0] sm:$0xf]  ;;  %v10206_v61 = vld [vmem:[#allocation8 + $0x204] sm:$0xf0] }
 0x38c   : > { %4283 = vmatpush.bf16.msra.mxu2 %v8604_v0  ;;  %v10191_v0 = vld [vmem:[#allocation8 + $0x194] sm:$0xf] }
 0x38d   : > { %3933 = vmatpush.msra.mxu1 %v11507_v22  ;;  %4294 = vmatpush.bf16.msra.mxu3 %v8656_v46  ;;  %v10203_v46 = vld [vmem:[#allocation8 + $0x1f4] sm:$0xf] }
 0x38f   : > { %3934 = vmatpush.msra.mxu1 %v11503_v35 }
 0x390   : > { %4284 = vmatpush.bf16.msra.mxu2 %v8580_v26  ;;  %v10184_v26 = vld [vmem:[#allocation8 + $0x15c] sm:$0xf] }
 0x391   : > { %4255 = vmatpush.bf16.msrb.mxu1 %v8644_v16  ;;  %v10186_v16 = vld [vmem:[#allocation8 + $0x164] sm:$0xf0] }
 0x392   : > { %8464 = vmatmul.msk.f32.vlgmr.msra.gmra.mxu1 %vm581_vm0, %v8463_v48  ;;  %v8828_v48 = vor.u32 %v10186_v16, %v8827_v45  ;;  %v8532_v45 = vor.u32 %v10206_v61, %v8531_v57  ;;  %v8533_v16 = vld [vmem:[#allocation8 + $0x208] sm:$0xf0]  ;;  %v10179_v57 = vld [vmem:[#allocation8 + $0x134] sm:$0xf] }
 0x393   : > { %v8821_v61 = vld [vmem:[#allocation8 + $0x148] sm:$0xf0] }
 0x394   : > { %4285 = vmatpush.bf16.msra.mxu2 %v8556_v19  ;;  %v8844_v19 = vor.u32 %v10188_v28, %v8843_v18  ;;  %v8715_v18 = vld [vmem:[#allocation8 + $0x68] sm:$0xf]  ;;  %v10157_v28 = vld [vmem:[#allocation8 + $0x7c] sm:$0xf0] }
 0x395   : > { %4256 = vmatpush.bf16.msrb.mxu1 %v8620_v53  ;;  %v8832_v53 = vor.u32 %v10183_v38, %v8829_v4  ;;  %v8707_v38 = vld [vmem:[#allocation8 + $0x60] sm:$0xf]  ;;  %v8536_v4 = vor.u32 %v10203_v46, %v8533_v16  ;;  %v8787_v16 = vld [vmem:[#allocation8 + $0xf8] sm:$0xf] }
 0x397   : > { %4560 = vmatpush.bf16.msrb.mxu0 %v8832_v53  ;;  %v10153_v53 = vld [vmem:[#allocation8 + $0x64] sm:$0xf] }
 0x398   : > { %4286 = vmatpush.bf16.msra.mxu2 %v8532_v45  ;;  %v8812_v45 = vor.u32 %v10181_v43, %v8811_v41  ;;  %v8723_v41 = vld [vmem:[#allocation8 + $0x70] sm:$0xf]  ;;  %v10158_v43 = vld [vmem:[#allocation8 + $0x84] sm:$0xf0] }
 0x399   : > { %4257 = vmatpush.bf16.msrb.mxu1 %v8596_v7  ;;  %v10227_v7 = vld [vmem:[#allocation8 + $0x2b4] sm:$0xf] }
 0x39a   : > { %v8632_v25 = vor.u32 %v10227_v7, %v8629_v34  ;;  %v8712_v7 = vor.u32 %v10153_v53, %v8709_v54  ;;  %v10200_v34 = vld [vmem:[#allocation8 + $0x1d4] sm:$0xf0]  ;;  %v10172_v53 = vld [vmem:[#allocation8 + $0xfc] sm:$0xf]  ;;  %v8789_v54 = vld [vmem:[#allocation8 + $0x110] sm:$0xf0] }
 0x39c   : > { %4295 = vmatpush.bf16.msra.mxu3 %v8632_v25 }
 0x39d   : > { %4258 = vmatpush.bf16.msrb.mxu1 %v8572_v8  ;;  %v8803_v8 = vld [vmem:[#allocation8 + $0x120] sm:$0xf] }
 0x39e   : > { %v8804_v17 = vor.u32 %v10180_v27, %v8803_v8  ;;  %v10197_v8 = vld [vmem:[#allocation8 + $0x1c4] sm:$0xf]  ;;  %v8508_v27 = vor.u32 %v10200_v34, %v8507_v59  ;;  %v8797_v34 = vld [vmem:[#allocation8 + $0x118] sm:$0xf0] }
 0x39f   : > { %v10173_v59 = vld [vmem:[#allocation8 + $0x104] sm:$0xf] }
 0x3a0   : > { %4296 = vmatpush.bf16.msra.mxu3 %v8608_v10  ;;  %4287 = vmatpush.bf16.msra.mxu2 %v8508_v27  ;;  %v10141_v10 = vld [vmem:[#allocation8 + $0x4] sm:$0xf]  ;;  %v8792_v27 = vor.u32 %v10172_v53, %v8789_v54  ;;  %v8667_v53 = vld [vmem:[#allocation8 + $0x8] sm:$0xf]  ;;  %v10145_v54 = vld [vmem:[#allocation8 + $0x1c] sm:$0xf0] }
 0x3a1   : > { %4259 = vmatpush.bf16.msrb.mxu1 %v8548_v51  ;;  %v8805_v51 = vld [vmem:[#allocation8 + $0x138] sm:$0xf0] }
 0x3a2   : > { %v8808_v11 = vor.u32 %v10177_v9, %v8805_v51  ;;  %v8509_v9 = vld [vmem:[#allocation8 + $0x1d8] sm:$0xf0]  ;;  %v8683_v51 = vld [vmem:[#allocation8 + $0x30] sm:$0xf] }
 0x3a3   : > { %v8512_v25 = vor.u32 %v10197_v8, %v8509_v9  ;;  %v8763_v9 = vld [vmem:[#allocation8 + $0xc8] sm:$0xf] }
 0x3a4   : > { %4561 = vmatpush.bf16.msrb.mxu0 %v8808_v11  ;;  %4297 = vmatpush.bf16.msra.mxu3 %v8584_v36  ;;  %v8688_v11 = vor.u32 %v10147_v50, %v8685_v31  ;;  %v8845_v36 = vld [vmem:[#allocation8 + $0x178] sm:$0xf0]  ;;  %v8765_v50 = vld [vmem:[#allocation8 + $0xe0] sm:$0xf0]  ;;  %v8771_v31 = vld [vmem:[#allocation8 + $0xd0] sm:$0xf] }
 0x3a5   : > { %4260 = vmatpush.bf16.msrb.mxu1 %v8524_v12  ;;  %v10171_v12 = vld [vmem:[#allocation8 + $0xf4] sm:$0xf]  ;;  %4288 = vmatpush.bf16.msra.mxu2 %v8484_v63  ;;  %v8848_v29 = vor.u32 %v10185_v23, %v8845_v36 }
 0x3a6   : > { %v8784_v32 = vor.u32 %v10171_v12, %v8781_v1  ;;  %v8485_v12 = vld [vmem:[#allocation8 + $0x1a8] sm:$0xf0]  ;;  %v8659_v1 = vld [vmem:[#allocation8] sm:$0xf] }
 0x3a7   : > { %v8488_v2 = vor.u32 %v10191_v0, %v8485_v12  ;;  %v8660_v37 = vor.u32 %v10144_v5, %v8659_v1  ;;  %v8739_v12 = vld [vmem:[#allocation8 + $0x98] sm:$0xf]  ;;  %v10163_v1 = vld [vmem:[#allocation8 + $0xac] sm:$0xf0]  ;;  %v8776_v5 = vor.u32 %v10167_v56, %v8773_v62  ;;  %v9005_v62 = vld [vmem:[#allocation8 + $0x428] sm:$0xf] }
 0x3a8   : > { %4562 = vmatpush.bf16.msrb.mxu0 %v8784_v32 }
 0x3a9   : > { %4261 = vmatpush.bf16.msrb.mxu1 %v8500_v21  ;;  %v10168_v21 = vld [vmem:[#allocation8 + $0xd4] sm:$0xf0] }
 0x3aa   : > { %v8756_v14 = vor.u32 %v10168_v21, %v8755_v20  ;;  %v8835_v20 = vld [vmem:[#allocation8 + $0x158] sm:$0xf]  ;;  %v10187_v21 = vld [vmem:[#allocation8 + $0x16c] sm:$0xf0] }
 0x3ac   : > { %4563 = vmatpush.bf16.msrb.mxu0 %v8760_v39  ;;  %v8836_v39 = vor.u32 %v10187_v21, %v8835_v20  ;;  %v10161_v20 = vld [vmem:[#allocation8 + $0xa4] sm:$0xf]  ;;  %v8749_v21 = vld [vmem:[#allocation8 + $0xb8] sm:$0xf0] }
 0x3ad   : > { %4262 = vmatpush.bf16.msrb.mxu1 %v8476_v15  ;;  %v8560_v15 = vor.u32 %v10209_v30, %v8557_v13  ;;  %v8840_v13 = vor.u32 %v10184_v26, %v8837_v42  ;;  %v8740_v26 = vor.u32 %v10163_v1, %v8739_v12  ;;  %v8981_v12 = vld [vmem:[#allocation8 + $0x3f8] sm:$0xf]  ;;  %v10271_v1 = vld [vmem:[#allocation8 + $0x40c] sm:$0xf0] }
 0x3af   : > { %4298 = vmatpush.bf16.msra.mxu3 %v8560_v15  ;;  %v8813_v15 = vld [vmem:[#allocation8 + $0x140] sm:$0xf0] }
 0x3b0   : > { %4564 = vmatpush.bf16.msrb.mxu0 %v8736_v52  ;;  %v10182_v52 = vld [vmem:[#allocation8 + $0x144] sm:$0xf0]  ;;  %v8816_v46 = vor.u32 %v10178_v40, %v8813_v15  ;;  %v8691_v15 = vld [vmem:[#allocation8 + $0x38] sm:$0xf] }
 0x3b1   : > { %4547 = vmatpush.bf16.msra.mxu1 %v8828_v48  ;;  %v10156_v48 = vld [vmem:[#allocation8 + $0x74] sm:$0xf0] }
 0x3b2   : > { %v8708_v33 = vor.u32 %v10156_v48, %v8707_v38  ;;  %v10175_v38 = vld [vmem:[#allocation8 + $0x10c] sm:$0xf0]  ;;  %v8824_v48 = vor.u32 %v10179_v57, %v8821_v61  ;;  %v10148_v61 = vld [vmem:[#allocation8 + $0x3c] sm:$0xf] }
 0x3b3   : > { %4299 = vmatpush.bf16.msra.mxu3 %v8536_v4  ;;  %v8788_v8 = vor.u32 %v10175_v38, %v8787_v16  ;;  %v10149_v16 = vld [vmem:[#allocation8 + $0x44] sm:$0xf]  ;;  %v8701_v38 = vld [vmem:[#allocation8 + $0x58] sm:$0xf0] }
 0x3b4   : > { %4565 = vmatpush.bf16.msrb.mxu0 %v8712_v7  ;;  %v10176_v7 = vld [vmem:[#allocation8 + $0x114] sm:$0xf0] }
 0x3b5   : > { %4548 = vmatpush.bf16.msra.mxu1 %v8804_v17  ;;  %v8684_v17 = vor.u32 %v10150_v60, %v8683_v51  ;;  %v10169_v51 = vld [vmem:[#allocation8 + $0xdc] sm:$0xf0] }
 0x3b6   : > { %v8764_v63 = vor.u32 %v10169_v51, %v8763_v9  ;;  %v10143_v9 = vld [vmem:[#allocation8 + $0x14] sm:$0xf]  ;;  %v8677_v51 = vld [vmem:[#allocation8 + $0x28] sm:$0xf0] }
 0x3b7   : > { %4300 = vmatpush.bf16.msra.mxu3 %v8512_v25  ;;  %v8800_v25 = vor.u32 %v10173_v59, %v8797_v34  ;;  %v10142_v59 = vld [vmem:[#allocation8 + $0xc] sm:$0xf]  ;;  %v8669_v34 = vld [vmem:[#allocation8 + $0x20] sm:$0xf0] }
 0x3b8   : > { %4566 = vmatpush.bf16.msrb.mxu0 %v8688_v11  ;;  %v10170_v11 = vld [vmem:[#allocation8 + $0xe4] sm:$0xf0] }
 0x3b9   : > { %4549 = vmatpush.bf16.msra.mxu1 %v8780_v24  ;;  %v8661_v24 = vld [vmem:[#allocation8 + $0x18] sm:$0xf0] }
 0x3ba   : > { %v8664_v32 = vor.u32 %v10141_v10, %v8661_v24  ;;  %v10160_v10 = vld [vmem:[#allocation8 + $0x9c] sm:$0xf]  ;;  %v8741_v24 = vld [vmem:[#allocation8 + $0xb0] sm:$0xf0] }
 0x3bb   : > { %4301 = vmatpush.bf16.msra.mxu3 %v8488_v2  ;;  %v8772_v2 = vor.u32 %v10170_v11, %v8771_v31  ;;  %v8744_v42 = vor.u32 %v10160_v10, %v8741_v24  ;;  %v9029_v31 = vld [vmem:[#allocation8 + $0x458] sm:$0xf]  ;;  %v10283_v11 = vld [vmem:[#allocation8 + $0x46c] sm:$0xf0]  ;;  %v10265_v10 = vld [vmem:[#allocation8 + $0x3dc] sm:$0xf0] }
 0x3bc   : > { %4567 = vmatpush.bf16.msrb.mxu0 %v8664_v32  ;;  %v10164_v32 = vld [vmem:[#allocation8 + $0xb4] sm:$0xf0]  ;;  %v9030_v56 = vor.u32 %v10283_v11, %v9029_v31 }
 0x3bd   : > { %4550 = vmatpush.bf16.msra.mxu1 %v8756_v14 }
 0x3c1   : > { %4551 = vmatpush.bf16.msra.mxu1 %v8732_v3  ;;  %v8819_v3 = vld [vmem:[#allocation8 + $0x130] sm:$0xf] }
 0x3c2   : > { %v8820_v4 = vor.u32 %v10182_v52, %v8819_v3  ;;  %v10151_v3 = vld [vmem:[#allocation8 + $0x4c] sm:$0xf0]  ;;  %v8724_v52 = vor.u32 %v10158_v43, %v8723_v41  ;;  %v10282_v43 = vld [vmem:[#allocation8 + $0x464] sm:$0xf0] }
 0x3c3   : > { %v9021_v41 = vld [vmem:[#allocation8 + $0x450] sm:$0xf] }
 0x3c5   : > { %4552 = vmatpush.bf16.msra.mxu1 %v8708_v33  ;;  %v8795_v33 = vld [vmem:[#allocation8 + $0x100] sm:$0xf] }
 0x3c6   : > { %v8796_v60 = vor.u32 %v10176_v7, %v8795_v33  ;;  %v8704_v7 = vor.u32 %v10149_v16, %v8701_v38  ;;  %v8949_v38 = vld [vmem:[#allocation8 + $0x3c0] sm:$0xf] }
 0x3c9   : > { %4553 = vmatpush.bf16.msra.mxu1 %v8684_v17  ;;  %v10166_v17 = vld [vmem:[#allocation8 + $0xcc] sm:$0xf] }
 0x3ca   : > { %v8768_v0 = vor.u32 %v10166_v17, %v8765_v50  ;;  %v8680_v50 = vor.u32 %v10143_v9, %v8677_v51  ;;  %v10255_v9 = vld [vmem:[#allocation8 + $0x394] sm:$0xf] }
 0x3cd   : > { %4554 = vmatpush.bf16.msra.mxu1 %v8660_v37  ;;  %v8747_v37 = vld [vmem:[#allocation8 + $0xa0] sm:$0xf] }
 0x3ce   : > { %v8748_v36 = vor.u32 %v10164_v32, %v8747_v37  ;;  %v8933_v37 = vld [vmem:[#allocation8 + $0x398] sm:$0xf]  ;;  %v10259_v32 = vld [vmem:[#allocation8 + $0x3ac] sm:$0xf0] }
 0x407   : > { %v11525_v6 = vpop.f32.mrf.mxu1 }
 0x408   : > { %v11535_v23 = vpack.c.bf16 %v11525_v6, %v11525_v6  ;;  %v8716_v6 = vor.u32 %v10157_v28, %v8715_v18  ;;  %v8885_v28 = vld [vmem:[#allocation8 + $0x338] sm:$0xf] }
 0x40f   : > { %v3936_v14 = vpop.f32.mrf.mxu1 }
 0x410   : > { %v11527_v30 = vpack.c.bf16 %v3936_v14, %v3936_v14  ;;  %v8752_v14 = vor.u32 %v10161_v20, %v8749_v21  ;;  %v8849_v20 = vld [vmem:[%s11769_s26 + $0x8] sm:$0x7]  ;;  %v8934_v21 = vor.u32 %v10259_v32, %v8933_v37  ;;  %v8877_v37 = vld [vmem:[#allocation8 + $0x330] sm:$0xf]  ;;  %v10246_v32 = vld [vmem:[#allocation8 + $0x344] sm:$0xf0] }
 0x412   : > { %4237 = vmatmul.bf16.vlgmr.msrb.gmra.mxu2 %v11527_v30  ;;  %4250 = vmatmul.bf16.vlgmr.msrb.gmra.mxu3 %v11527_v30 }
 0x413   : > { %4263 = vmatmul.bf16.vlgmr.msrb.gmra.mxu1 %v11527_v30  ;;  %4276 = vmatmul.bf16.vlgmr.msra.gmra.mxu0 %v11527_v30 }
 0x414   : > { %4573 = vmatpush.bf16.msrb.mxu2 %v8836_v39  ;;  %4586 = vmatpush.bf16.msrb.mxu3 %v8840_v13  ;;  %v10154_v39 = vld [vmem:[#allocation8 + $0x6c] sm:$0xf]  ;;  %v8717_v13 = vld [vmem:[#allocation8 + $0x80] sm:$0xf0] }
 0x415   : > { %4599 = vmatpush.bf16.msrb.mxu1 %v8844_v19  ;;  %4612 = vmatpush.bf16.msra.mxu0 %v8848_v29  ;;  %v10155_v19 = vld [vmem:[#allocation8 + $0x74] sm:$0xf]  ;;  %v8725_v29 = vld [vmem:[#allocation8 + $0x88] sm:$0xf0]  ;;  %v8720_v40 = vor.u32 %v10154_v39, %v8717_v13  ;;  %v10241_v39 = vld [vmem:[#allocation8 + $0x31c] sm:$0xf0] }
 0x416   : > { %v8728_v57 = vor.u32 %v10155_v19, %v8725_v29  ;;  %v10279_v19 = vld [vmem:[#allocation8 + $0x454] sm:$0xf]  ;;  %v9022_v29 = vor.u32 %v10282_v43, %v9021_v41  ;;  %v8853_v41 = vld [vmem:[#allocation8 + $0x300] sm:$0xf]  ;;  %v10240_v43 = vld [vmem:[#allocation8 + $0x314] sm:$0xf0] }
 0x418   : > { %4574 = vmatpush.bf16.msrb.mxu2 %v8812_v45  ;;  %4587 = vmatpush.bf16.msrb.mxu3 %v8816_v46  ;;  %v8693_v45 = vld [vmem:[#allocation8 + $0x50] sm:$0xf0]  ;;  %v10152_v46 = vld [vmem:[#allocation8 + $0x54] sm:$0xf0] }
 0x419   : > { %4600 = vmatpush.bf16.msrb.mxu1 %v8820_v4  ;;  %4613 = vmatpush.bf16.msra.mxu0 %v8824_v48  ;;  %v8692_v4 = vor.u32 %v10151_v3, %v8691_v15  ;;  %v8696_v48 = vor.u32 %v10148_v61, %v8693_v45  ;;  %v8997_v15 = vld [vmem:[#allocation8 + $0x420] sm:$0xf]  ;;  %v10276_v3 = vld [vmem:[#allocation8 + $0x434] sm:$0xf0]  ;;  %v8999_v61 = vld [vmem:[#allocation8 + $0x438] sm:$0xf0] }
 0x41a   : > { %v8973_v45 = vld [vmem:[#allocation8 + $0x3f0] sm:$0xf] }
 0x41c   : > { %4575 = vmatpush.bf16.msrb.mxu2 %v8788_v8  ;;  %4588 = vmatpush.bf16.msrb.mxu3 %v8792_v27  ;;  %v8675_v8 = vld [vmem:[#allocation8 + $0x10] sm:$0xf]  ;;  %v10146_v27 = vld [vmem:[#allocation8 + $0x24] sm:$0xf0] }
 0x41d   : > { %4601 = vmatpush.bf16.msrb.mxu1 %v8796_v60  ;;  %4614 = vmatpush.bf16.msra.mxu0 %v8800_v25  ;;  %v8668_v60 = vor.u32 %v10145_v54, %v8667_v53  ;;  %v8672_v25 = vor.u32 %v10142_v59, %v8669_v34  ;;  %v8676_v17 = vor.u32 %v10146_v27, %v8675_v8  ;;  %v8951_v54 = vld [vmem:[#allocation8 + $0x3d8] sm:$0xf0]  ;;  %v8925_v8 = vld [vmem:[#allocation8 + $0x390] sm:$0xf]  ;;  %v10258_v27 = vld [vmem:[#allocation8 + $0x3a4] sm:$0xf0] }
 0x41e   : > { %v8926_v51 = vor.u32 %v10258_v27, %v8925_v8  ;;  %v8887_v8 = vld [vmem:[#allocation8 + $0x350] sm:$0xf0]  ;;  %v8989_v27 = vld [vmem:[#allocation8 + $0x400] sm:$0xf] }
 0x420   : > { %4576 = vmatpush.bf16.msrb.mxu2 %v8764_v63  ;;  %4589 = vmatpush.bf16.msrb.mxu3 %v8768_v0  ;;  %v10277_v63 = vld [vmem:[#allocation8 + $0x43c] sm:$0xf0] }
 0x421   : > { %4602 = vmatpush.bf16.msrb.mxu1 %v8772_v2  ;;  %4615 = vmatpush.bf16.msra.mxu0 %v8776_v5  ;;  %v9006_v0 = vor.u32 %v10277_v63, %v9005_v62  ;;  %v8982_v2 = vor.u32 %v10271_v1, %v8981_v12  ;;  %v8957_v5 = vld [vmem:[#allocation8 + $0x3c8] sm:$0xf]  ;;  %v8901_v62 = vld [vmem:[#allocation8 + $0x360] sm:$0xf]  ;;  %v10252_v63 = vld [vmem:[#allocation8 + $0x374] sm:$0xf0] }
 0x422   : > { %4289 = vmatmul.bf16.vlgmr.msra.gmra.mxu2 %v11527_v30  ;;  %4302 = vmatmul.bf16.vlgmr.msra.gmra.mxu3 %v11527_v30  ;;  %v8699_v30 = vld [vmem:[#allocation8 + $0x40] sm:$0xf]  ;;  %v8958_v24 = vor.u32 %v10265_v10, %v8957_v5  ;;  %v8902_v12 = vor.u32 %v10252_v63, %v8901_v62  ;;  %v8903_v1 = vld [vmem:[#allocation8 + $0x378] sm:$0xf0]  ;;  %v8983_v5 = vld [vmem:[#allocation8 + $0x410] sm:$0xf0] }
 0x423   : > { %4555 = vmatmul.bf16.vlgmr.msra.gmra.mxu1 %v11535_v23  ;;  %4568 = vmatmul.bf16.vlgmr.msrb.gmra.mxu0 %v11535_v23  ;;  %v8700_v33 = vor.u32 %v10152_v46, %v8699_v30  ;;  %v10270_v30 = vld [vmem:[#allocation8 + $0x404] sm:$0xf0]  ;;  %v10267_v46 = vld [vmem:[#allocation8 + $0x3f4] sm:$0xf] }
 0x424   : > { %4577 = vmatpush.bf16.msrb.mxu2 %v8740_v26  ;;  %4590 = vmatpush.bf16.msrb.mxu3 %v8744_v42  ;;  %v8909_v26 = vld [vmem:[#allocation8 + $0x368] sm:$0xf]  ;;  %v10253_v42 = vld [vmem:[#allocation8 + $0x37c] sm:$0xf0] }
 0x425   : > { %4603 = vmatpush.bf16.msrb.mxu1 %v8748_v36  ;;  %4616 = vmatpush.bf16.msra.mxu0 %v8752_v14  ;;  %v8910_v18 = vor.u32 %v10253_v42, %v8909_v26  ;;  %v8861_v14 = vld [vmem:[#allocation8 + $0x308] sm:$0xf]  ;;  %v8879_v26 = vld [vmem:[#allocation8 + $0x348] sm:$0xf0] }
 0x426   : > { %v8862_v13 = vor.u32 %v10241_v39, %v8861_v14 }
 0x428   : > { %4578 = vmatpush.bf16.msrb.mxu2 %v8716_v6  ;;  %4591 = vmatpush.bf16.msrb.mxu3 %v8720_v40  ;;  %v9023_v6 = vld [vmem:[#allocation8 + $0x468] sm:$0xf0] }
 0x429   : > { %4604 = vmatpush.bf16.msrb.mxu1 %v8724_v52  ;;  %4617 = vmatpush.bf16.msra.mxu0 %v8728_v57  ;;  %v9026_v40 = vor.u32 %v10279_v19, %v9023_v6  ;;  %v10273_v52 = vld [vmem:[#allocation8 + $0x424] sm:$0xf]  ;;  %v8998_v57 = vor.u32 %v10276_v3, %v8997_v15  ;;  %v8855_v6 = vld [vmem:[#allocation8 + $0x318] sm:$0xf0]  ;;  %v8935_v15 = vld [vmem:[#allocation8 + $0x3b0] sm:$0xf0] }
 0x42a   : > { %v10237_v19 = vld [vmem:[#allocation8 + $0x304] sm:$0xf] }
 0x42b   : > { %v8858_v3 = vor.u32 %v10237_v19, %v8855_v6  ;;  %v10251_v19 = vld [vmem:[#allocation8 + $0x374] sm:$0xf] }
 0x42c   : > { %4579 = vmatpush.bf16.msrb.mxu2 %v8692_v4  ;;  %4592 = vmatpush.bf16.msrb.mxu3 %v8696_v48  ;;  %v10264_v4 = vld [vmem:[#allocation8 + $0x3d4] sm:$0xf0]  ;;  %v10261_v48 = vld [vmem:[#allocation8 + $0x3c4] sm:$0xf] }
 0x42d   : > { %4605 = vmatpush.bf16.msrb.mxu1 %v8700_v33  ;;  %4618 = vmatpush.bf16.msra.mxu0 %v8704_v7  ;;  %v8950_v53 = vor.u32 %v10264_v4, %v8949_v38  ;;  %v10280_v33 = vld [vmem:[#allocation8 + $0x45c] sm:$0xf]  ;;  %v9031_v7 = vld [vmem:[#allocation8 + $0x470] sm:$0xf0]  ;;  %v8954_v59 = vor.u32 %v10261_v48, %v8951_v54  ;;  %v8911_v38 = vld [vmem:[#allocation8 + $0x380] sm:$0xf0] }
 0x42e   : > { %v9034_v34 = vor.u32 %v10280_v33, %v9031_v7  ;;  %v9013_v4 = vld [vmem:[#allocation8 + $0x430] sm:$0xf]  ;;  %v10275_v54 = vld [vmem:[#allocation8 + $0x434] sm:$0xf]  ;;  %v9015_v33 = vld [vmem:[#allocation8 + $0x448] sm:$0xf0] }
 0x430   : > { %4580 = vmatpush.bf16.msrb.mxu2 %v8668_v60  ;;  %4593 = vmatpush.bf16.msrb.mxu3 %v8672_v25  ;;  %v8927_v60 = vld [vmem:[#allocation8 + $0x3a8] sm:$0xf0] }
 0x431   : > { %4606 = vmatpush.bf16.msrb.mxu1 %v8676_v17  ;;  %4619 = vmatpush.bf16.msra.mxu0 %v8680_v50  ;;  %v8930_v25 = vor.u32 %v10255_v9, %v8927_v60  ;;  %v10274_v17 = vld [vmem:[#allocation8 + $0x42c] sm:$0xf]  ;;  %v9007_v50 = vld [vmem:[#allocation8 + $0x440] sm:$0xf0] }
 0x432   : > { %v9010_v31 = vor.u32 %v10274_v17, %v9007_v50  ;;  %v10269_v17 = vld [vmem:[#allocation8 + $0x404] sm:$0xf]  ;;  %v8991_v50 = vld [vmem:[#allocation8 + $0x418] sm:$0xf0] }
 0x433   : > { %4581 = vmatmul.bf16.vlgmr.msrb.gmra.mxu2 %v11535_v23  ;;  %4594 = vmatmul.bf16.vlgmr.msrb.gmra.mxu3 %v11535_v23 }
 0x434   : > { %4643 = vmatpush.msra.mxu2 %v11509_v44  ;;  %4607 = vmatmul.bf16.vlgmr.msrb.gmra.mxu1 %v11535_v23 }
 0x435   : > { %4620 = vmatmul.bf16.vlgmr.msra.gmra.mxu0 %v11535_v23  ;;  %v10247_v23 = vld [vmem:[#allocation8 + $0x34c] sm:$0xf0]  ;;  %4940 = vmatpush.bf16.msra.mxu3 %v9022_v29  ;;  %v8854_v29 = vor.u32 %v10240_v43, %v8853_v41  ;;  %v10254_v43 = vld [vmem:[#allocation8 + $0x384] sm:$0xf0] }
 0x436   : > { %4644 = vmatpush.msra.mxu2 %v11507_v22  ;;  %v8886_v36 = vor.u32 %v10247_v23, %v8885_v28  ;;  %4953 = vmatpush.bf16.msra.mxu1 %v9026_v40  ;;  %v10262_v23 = vld [vmem:[#allocation8 + $0x3cc] sm:$0xf]  ;;  %v10256_v40 = vld [vmem:[#allocation8 + $0x39c] sm:$0xf]  ;;  %v8917_v41 = vld [vmem:[#allocation8 + $0x370] sm:$0xf] }
 0x437   : > { %4979 = vmatpush.bf16.msrb.mxu0 %v9034_v34  ;;  %v10244_v34 = vld [vmem:[#allocation8 + $0x33c] sm:$0xf] }
 0x438   : > { %4645 = vmatpush.msra.mxu2 %v11503_v35  ;;  %v8890_v60 = vor.u32 %v10244_v34, %v8887_v8 }
 0x439   : > { %4941 = vmatpush.bf16.msra.mxu3 %v8998_v57  ;;  %v9037_v57 = vld [vmem:[#allocation8 + $0x460] sm:$0xf] }
 0x43a   : > { %4966 = vmatpush.bf16.msrb.mxu2 %v9030_v56 }
 0x43b   : > { %4980 = vmatpush.bf16.msrb.mxu0 %v9010_v31 }
 0x43e   : > { %4967 = vmatpush.bf16.msrb.mxu2 %v9006_v0  ;;  %v10249_v0 = vld [vmem:[#allocation8 + $0x364] sm:$0xf] }
 0x43f   : > { %v8906_v10 = vor.u32 %v10249_v0, %v8903_v1  ;;  %v8994_v0 = vor.u32 %v10269_v17, %v8991_v50  ;;  %v9191_v17 = vld [vmem:[#allocation8 + $0x5a0] sm:$0xf]  ;;  %v10324_v50 = vld [vmem:[#allocation8 + $0x5b4] sm:$0xf0] }
 0x442   : > { %4968 = vmatpush.bf16.msrb.mxu2 %v8982_v2  ;;  %v10268_v2 = vld [vmem:[#allocation8 + $0x3fc] sm:$0xf] }
 0x443   : > { %8850 = vmatmul.msk.f32.vlgmr.msra.gmra.mxu2 %vm581_vm0, %v8849_v20  ;;  %v10243_v20 = vld [vmem:[#allocation8 + $0x334] sm:$0xf] }
 0x444   : > { %v8882_v28 = vor.u32 %v10243_v20, %v8879_v26  ;;  %v8967_v20 = vld [vmem:[#allocation8 + $0x3e8] sm:$0xf0] }
 0x446   : > { %4969 = vmatpush.bf16.msrb.mxu2 %v8958_v24  ;;  %v8986_v24 = vor.u32 %v10268_v2, %v8983_v5  ;;  %v10238_v2 = vld [vmem:[#allocation8 + $0x30c] sm:$0xf]  ;;  %v8863_v5 = vld [vmem:[#allocation8 + $0x320] sm:$0xf0] }
 0x448   : > { %4981 = vmatpush.bf16.msrb.mxu0 %v8986_v24  ;;  %v8866_v24 = vor.u32 %v10238_v2, %v8863_v5  ;;  %v10318_v2 = vld [vmem:[#allocation8 + $0x584] sm:$0xf0]  ;;  %v10327_v5 = vld [vmem:[#allocation8 + $0x5d4] sm:$0xf] }
 0x44a   : > { %4970 = vmatpush.bf16.msrb.mxu2 %v8934_v21  ;;  %v8878_v21 = vor.u32 %v10246_v32, %v8877_v37  ;;  %v10266_v37 = vld [vmem:[#allocation8 + $0x3e4] sm:$0xf0]  ;;  %v10263_v32 = vld [vmem:[#allocation8 + $0x3d4] sm:$0xf] }
 0x44b   : > { %v8970_v26 = vor.u32 %v10263_v32, %v8967_v20  ;;  %v10312_v32 = vld [vmem:[#allocation8 + $0x554] sm:$0xf0]  ;;  %v10328_v20 = vld [vmem:[#allocation8 + $0x5dc] sm:$0xf] }
 0x44e   : > { %4971 = vmatpush.bf16.msrb.mxu2 %v8910_v18 }
 0x452   : > { %4972 = vmatpush.bf16.msrb.mxu2 %v8886_v36  ;;  %v8959_v36 = vld [vmem:[#allocation8 + $0x3e0] sm:$0xf0] }
 0x453   : > { %v8962_v14 = vor.u32 %v10262_v23, %v8959_v36  ;;  %v10260_v23 = vld [vmem:[#allocation8 + $0x3b4] sm:$0xf0]  ;;  %v10257_v36 = vld [vmem:[#allocation8 + $0x3a4] sm:$0xf] }
 0x455   : > { %4982 = vmatpush.bf16.msrb.mxu0 %v8962_v14 }
 0x456   : > { %4973 = vmatpush.bf16.msrb.mxu2 %v8862_v13 }
 0x45a   : > { %5042 = vmatpush.msra.mxu2 %v11509_v44  ;;  %v9002_v44 = vor.u32 %v10273_v52, %v8999_v61  ;;  %v8938_v52 = vor.u32 %v10256_v40, %v8935_v15  ;;  %v10284_v61 = vld [vmem:[#allocation8 + $0x474] sm:$0xf0]  ;;  %v8918_v15 = vor.u32 %v10254_v43, %v8917_v41  ;;  %v9119_v43 = vld [vmem:[#allocation8 + $0x510] sm:$0xf] }
 0x45c   : > { %5043 = vmatpush.msra.mxu2 %v11507_v22  ;;  %v8975_v22 = vld [vmem:[#allocation8 + $0x408] sm:$0xf0]  ;;  %4954 = vmatpush.bf16.msra.mxu1 %v9002_v44  ;;  %v9039_v44 = vld [vmem:[#allocation8 + $0x478] sm:$0xf0] }
 0x45d   : > { %v8978_v16 = vor.u32 %v10267_v46, %v8975_v22  ;;  %4983 = vmatpush.bf16.msrb.mxu0 %v8938_v52  ;;  %v8893_v52 = vld [vmem:[#allocation8 + $0x340] sm:$0xf] }
 0x45e   : > { %5044 = vmatpush.msra.mxu2 %v11503_v35  ;;  %v8974_v35 = vor.u32 %v10270_v30, %v8973_v45  ;;  %v10281_v45 = vld [vmem:[#allocation8 + $0x464] sm:$0xf]  ;;  %v9038_v30 = vor.u32 %v10284_v61, %v9037_v57  ;;  %v10248_v57 = vld [vmem:[#allocation8 + $0x354] sm:$0xf0] }
 0x45f   : > { %v9042_v46 = vor.u32 %v10281_v45, %v9039_v44  ;;  %v10245_v61 = vld [vmem:[#allocation8 + $0x344] sm:$0xf]  ;;  %v8895_v45 = vld [vmem:[#allocation8 + $0x358] sm:$0xf0]  ;;  %v8894_v44 = vor.u32 %v10248_v57, %v8893_v52  ;;  %v9169_v52 = vld [vmem:[#allocation8 + $0x588] sm:$0xf0] }
 0x460   : > { %4942 = vmatpush.bf16.msra.mxu3 %v8974_v35  ;;  %4955 = vmatpush.bf16.msra.mxu1 %v8978_v16  ;;  %v10250_v16 = vld [vmem:[#allocation8 + $0x36c] sm:$0xf]  ;;  %v9175_v57 = vld [vmem:[#allocation8 + $0x578] sm:$0xf] }
 0x461   : > { %v8914_v48 = vor.u32 %v10250_v16, %v8911_v38  ;;  %v8869_v16 = vld [vmem:[#allocation8 + $0x310] sm:$0xf]  ;;  %v10242_v38 = vld [vmem:[#allocation8 + $0x324] sm:$0xf0] }
 0x463   : > { %4984 = vmatpush.bf16.msrb.mxu0 %v8914_v48  ;;  %v10239_v48 = vld [vmem:[#allocation8 + $0x314] sm:$0xf] }
 0x464   : > { %4943 = vmatpush.bf16.msra.mxu3 %v8950_v53  ;;  %4956 = vmatpush.bf16.msra.mxu1 %v8954_v59  ;;  %v10278_v53 = vld [vmem:[#allocation8 + $0x444] sm:$0xf0]  ;;  %v9018_v59 = vor.u32 %v10275_v54, %v9015_v33  ;;  %v8870_v54 = vor.u32 %v10242_v38, %v8869_v16  ;;  %v9145_v16 = vld [vmem:[#allocation8 + $0x558] sm:$0xf0] }
 0x465   : > { %v9014_v7 = vor.u32 %v10278_v53, %v9013_v4  ;;  %v8871_v53 = vld [vmem:[#allocation8 + $0x328] sm:$0xf0]  ;;  %v9151_v38 = vld [vmem:[#allocation8 + $0x548] sm:$0xf] }
 0x467   : > { %4985 = vmatpush.bf16.msrb.mxu0 %v8890_v60  ;;  %v10330_v60 = vld [vmem:[#allocation8 + $0x5e4] sm:$0xf0] }
 0x468   : > { %4944 = vmatpush.bf16.msra.mxu3 %v8926_v51  ;;  %4957 = vmatpush.bf16.msra.mxu1 %v8930_v25  ;;  %v10272_v25 = vld [vmem:[#allocation8 + $0x414] sm:$0xf0] }
 0x469   : > { %v8990_v63 = vor.u32 %v10272_v25, %v8989_v27 }
 0x46b   : > { %4986 = vmatpush.bf16.msrb.mxu0 %v8866_v24  ;;  %v10331_v24 = vld [vmem:[#allocation8 + $0x5ec] sm:$0xf0] }
 0x46c   : > { %4945 = vmatpush.bf16.msra.mxu3 %v8902_v12  ;;  %4958 = vmatpush.bf16.msra.mxu1 %v8906_v10  ;;  %v8965_v10 = vld [vmem:[#allocation8 + $0x3d0] sm:$0xf] }
 0x470   : > { %4946 = vmatpush.bf16.msra.mxu3 %v8878_v21  ;;  %4959 = vmatpush.bf16.msra.mxu1 %v8882_v28  ;;  %v8966_v21 = vor.u32 %v10266_v37, %v8965_v10  ;;  %v8941_v28 = vld [vmem:[#allocation8 + $0x3a0] sm:$0xf]  ;;  %v9223_v10 = vld [vmem:[#allocation8 + $0x5d8] sm:$0xf] }
 0x471   : > { %v8942_v14 = vor.u32 %v10260_v23, %v8941_v28  ;;  %v9143_v37 = vld [vmem:[#allocation8 + $0x540] sm:$0xf]  ;;  %v9224_v28 = vor.u32 %v10331_v24, %v9223_v10  ;;  %v10321_v23 = vld [vmem:[#allocation8 + $0x5a4] sm:$0xf]  ;;  %v9071_v24 = vld [vmem:[#allocation8 + $0x4b0] sm:$0xf] }
 0x474   : > { %4947 = vmatpush.bf16.msra.mxu3 %v8854_v29  ;;  %4960 = vmatpush.bf16.msra.mxu1 %v8858_v3  ;;  %v8919_v29 = vld [vmem:[#allocation8 + $0x388] sm:$0xf0] }
 0x475   : > { %v8922_v3 = vor.u32 %v10251_v19, %v8919_v29  ;;  %v10306_v19 = vld [vmem:[#allocation8 + $0x524] sm:$0xf0]  ;;  %v10322_v29 = vld [vmem:[#allocation8 + $0x5ac] sm:$0xf] }
 0x478   : > { %4992 = vmatpush.bf16.msrb.mxu3 %v9038_v30  ;;  %5005 = vmatpush.bf16.msrb.mxu1 %v9042_v46 }
 0x47c   : > { %4993 = vmatpush.bf16.msrb.mxu3 %v9014_v7  ;;  %5006 = vmatpush.bf16.msrb.mxu1 %v9018_v59  ;;  %v8874_v59 = vor.u32 %v10239_v48, %v8871_v53  ;;  %v10313_v48 = vld [vmem:[#allocation8 + $0x55c] sm:$0xf0] }
 0x480   : > { %4994 = vmatpush.bf16.msrb.mxu3 %v8990_v63  ;;  %5007 = vmatpush.bf16.msrb.mxu1 %v8994_v0 }
 0x484   : > { %4995 = vmatpush.bf16.msrb.mxu3 %v8966_v21  ;;  %5008 = vmatpush.bf16.msrb.mxu1 %v8970_v26  ;;  %v9225_v21 = vld [vmem:[#allocation8 + $0x5f0] sm:$0xf0] }
 0x485   : > { %v9228_v41 = vor.u32 %v10328_v20, %v9225_v21  ;;  %v9073_v21 = vld [vmem:[#allocation8 + $0x4c8] sm:$0xf0] }
 0x488   : > { %4996 = vmatpush.bf16.msrb.mxu3 %v8942_v14  ;;  %v9199_v14 = vld [vmem:[#allocation8 + $0x5a8] sm:$0xf] }
 0x48c   : > { %4997 = vmatpush.bf16.msrb.mxu3 %v8918_v15 }
 0x490   : > { %v11555_v11 = vpop.f32.mrf.mxu1  ;;  %v11557_v56 = vpop.f32.mrf.mxu0  ;;  %4998 = vmatpush.bf16.msrb.mxu3 %v8894_v44 }
 0x494   : > { %4999 = vmatpush.bf16.msrb.mxu3 %v8870_v54  ;;  %v9152_v54 = vor.u32 %v10313_v48, %v9151_v38  ;;  %v5523_v38 = vld [vmem:[#allocation10 + $0x70] sm:$0xff]  ;;  %v10298_v48 = vld [vmem:[#allocation8 + $0x4ec] sm:$0xf] }
 0x495   : > { %v4238_v42 = vpop.f32.mrf.mxu2  ;;  %v4251_v18 = vpop.f32.mrf.mxu3 }
 0x498   : > { %v4266_v39 = vpop.f32.mrf.mxu1  ;;  %v4279_v13 = vpop.f32.mrf.mxu0 }
 0x499   : > { %v8943_v39 = vld [vmem:[#allocation8 + $0x3b8] sm:$0xf0] }
 0x49a   : > { %v8946_v13 = vor.u32 %v10257_v36, %v8943_v39  ;;  %v9193_v36 = vld [vmem:[#allocation8 + $0x5b8] sm:$0xf0]  ;;  %v10325_v39 = vld [vmem:[#allocation8 + $0x5bc] sm:$0xf0] }
 0x49b   : > { %v9200_v15 = vor.u32 %v10325_v39, %v9199_v14  ;;  %v9047_v39 = vld [vmem:[#allocation8 + $0x480] sm:$0xf] }
 0x49c   : > { %5009 = vmatpush.bf16.msrb.mxu1 %v8946_v13  ;;  %v9144_v13 = vor.u32 %v10312_v32, %v9143_v37  ;;  %v10294_v37 = vld [vmem:[#allocation8 + $0x4c4] sm:$0xf0]  ;;  %v10291_v32 = vld [vmem:[#allocation8 + $0x4b4] sm:$0xf] }
 0x49d   : > { %v4240_v22 = vpop.f32.mrf.mxu2  ;;  %v4253_v35 = vpop.f32.mrf.mxu3  ;;  %v9072_v20 = vor.u32 %v10294_v37, %v9071_v24  ;;  %v10286_v24 = vld [vmem:[#allocation8 + $0x48c] sm:$0xf]  ;;  %v9057_v37 = vld [vmem:[#allocation8 + $0x4a0] sm:$0xf0] }
 0x49e   : > { %v8898_v35 = vor.u32 %v10245_v61, %v8895_v45  ;;  %v10319_v61 = vld [vmem:[#allocation8 + $0x58c] sm:$0xf0]  ;;  %v9120_v45 = vor.u32 %v10306_v19, %v9119_v43  ;;  %v9049_v19 = vld [vmem:[#allocation8 + $0x498] sm:$0xf0] }
 0x4a0   : > { %v4556_v9 = vpop.f32.mrf.mxu1  ;;  %v4569_v51 = vpop.f32.mrf.mxu0  ;;  %5010 = vmatpush.bf16.msrb.mxu1 %v8922_v3  ;;  %v10315_v3 = vld [vmem:[#allocation8 + $0x574] sm:$0xf] }
 0x4a1   : > { %v11559_v31 = vadd.f32 %v4556_v9, %v4238_v42  ;;  %v11561_v62 = vadd.f32 %v4569_v51, %v4251_v18  ;;  %v9215_v51 = vld [vmem:[#allocation8 + $0x5d0] sm:$0xf]  ;;  %v9172_v44 = vor.u32 %v10315_v3, %v9169_v52  ;;  %v10304_v3 = vld [vmem:[#allocation8 + $0x51c] sm:$0xf]  ;;  %v9129_v52 = vld [vmem:[#allocation8 + $0x530] sm:$0xf0] }
 0x4a2   : > { %v9216_v25 = vor.u32 %v10330_v60, %v9215_v51 }
 0x4a4   : > { %5011 = vmatpush.bf16.msrb.mxu1 %v8898_v35  ;;  %5339 = vmatpush.bf16.msra.mxu0 %v9216_v25  ;;  %v10309_v35 = vld [vmem:[#allocation8 + $0x544] sm:$0xf]  ;;  %v9095_v25 = vld [vmem:[#allocation8 + $0x4e0] sm:$0xf] }
 0x4a5   : > { %v4290_v12 = vpop.f32.mrf.mxu2  ;;  %v4303_v1 = vpop.f32.mrf.mxu3  ;;  %v9148_v53 = vor.u32 %v10309_v35, %v9145_v16  ;;  %v5524_v16 = vld [vmem:[#allocation10 + $0x78] sm:$0xff] }
 0x4a8   : > { %v4558_v42 = vpop.f32.mrf.mxu1  ;;  %v4571_v18 = vpop.f32.mrf.mxu0  ;;  %5012 = vmatpush.bf16.msrb.mxu1 %v8874_v59  ;;  %v9127_v59 = vld [vmem:[#allocation8 + $0x518] sm:$0xf] }
 0x4ad   : > { %v4292_v6 = vpop.f32.mrf.mxu2  ;;  %v4305_v40 = vpop.f32.mrf.mxu3 }
 0x4ae   : > { %v9201_v6 = vld [vmem:[#allocation8 + $0x5c0] sm:$0xf0]  ;;  %v9196_v40 = vor.u32 %v10321_v23, %v9193_v36  ;;  %v10310_v23 = vld [vmem:[#allocation8 + $0x54c] sm:$0xf] }
 0x4af   : > { %v9153_v36 = vld [vmem:[#allocation8 + $0x560] sm:$0xf0] }
 0x4b0   : > { %v9156_v14 = vor.u32 %v10310_v23, %v9153_v36  ;;  %v5518_v23 = vld [vmem:[#allocation10 + $0x48] sm:$0xff]  ;;  %v5517_v36 = vld [vmem:[#allocation10 + $0x40] sm:$0xff] }
 0x4b1   : > { %v4608_v30 = vpop.f32.mrf.mxu1 }
 0x4b2   : > { %v11563_v46 = vadd.f32 %v4608_v30, %v4290_v12  ;;  %v4621_v22 = vpop.f32.mrf.mxu0  ;;  %v9192_v12 = vor.u32 %v10324_v50, %v9191_v17  ;;  %v9204_v30 = vor.u32 %v10322_v29, %v9201_v6  ;;  %v10300_v17 = vld [vmem:[#allocation8 + $0x4f4] sm:$0xf0]  ;;  %v10297_v50 = vld [vmem:[#allocation8 + $0x4e4] sm:$0xf]  ;;  %v9055_v29 = vld [vmem:[#allocation8 + $0x488] sm:$0xf] }
 0x4b3   : > { %v11565_v4 = vadd.f32 %v4621_v22, %v4303_v1  ;;  %v9167_v1 = vld [vmem:[#allocation8 + $0x570] sm:$0xf]  ;;  %v9176_v22 = vor.u32 %v10319_v61, %v9175_v57  ;;  %v10289_v6 = vld [vmem:[#allocation8 + $0x49c] sm:$0xf0]  ;;  %v9132_v61 = vor.u32 %v10304_v3, %v9129_v52  ;;  %v10299_v3 = vld [vmem:[#allocation8 + $0x4f4] sm:$0xf] }
 0x4b4   : > { %5340 = vmatpush.bf16.msra.mxu0 %v9192_v12  ;;  %v9103_v12 = vld [vmem:[#allocation8 + $0x4e8] sm:$0xf]  ;;  %v9231_v57 = vld [vmem:[#allocation8 + $0x5e0] sm:$0xf] }
 0x4b6   : > { %v4582_v33 = vpop.f32.mrf.mxu2  ;;  %v4595_v7 = vpop.f32.mrf.mxu3 }
 0x4b7   : > { %v11568_v34 = vadd.f32 %v4582_v33, %v11555_v11  ;;  %v11571_v8 = vadd.f32 %v4595_v7, %v11557_v56  ;;  %v9168_v11 = vor.u32 %v10318_v2, %v9167_v1  ;;  %v9217_v56 = vld [vmem:[#allocation8 + $0x5e8] sm:$0xf0]  ;;  %v10303_v33 = vld [vmem:[#allocation8 + $0x514] sm:$0xf]  ;;  %v10301_v1 = vld [vmem:[#allocation8 + $0x4fc] sm:$0xf0] }
 0x4b8   : > { %v9220_v18 = vor.u32 %v10327_v5, %v9217_v56  ;;  %v9121_v7 = vld [vmem:[#allocation8 + $0x528] sm:$0xf0]  ;;  %v10316_v5 = vld [vmem:[#allocation8 + $0x57c] sm:$0xf]  ;;  %v9177_v56 = vld [vmem:[#allocation8 + $0x590] sm:$0xf0] }
 0x4b9   : > { %v4610_v27 = vpop.f32.mrf.mxu1  ;;  %5341 = vmatpush.bf16.msra.mxu0 %v9168_v11  ;;  %v9124_v51 = vor.u32 %v10303_v33, %v9121_v7  ;;  %v9104_v11 = vor.u32 %v10301_v1, %v9103_v12  ;;  %v9180_v10 = vor.u32 %v10316_v5, %v9177_v56  ;;  %v10326_v7 = vld [vmem:[#allocation8 + $0x5c4] sm:$0xf0]  ;;  %v10320_v12 = vld [vmem:[#allocation8 + $0x594] sm:$0xf0]  ;;  %v10317_v1 = vld [vmem:[#allocation8 + $0x584] sm:$0xf] }
 0x4ba   : > { %v4623_v9 = vpop.f32.mrf.mxu0  ;;  %v10307_v27 = vld [vmem:[#allocation8 + $0x52c] sm:$0xf0]  ;;  %v5520_v5 = vld [vmem:[#allocation10 + $0x58] sm:$0xff] }
 0x4bb   : > { %v9043_v9 = vld [vmem:[%s11769_s26 + $0xc] sm:$0x7]  ;;  %v9128_v60 = vor.u32 %v10307_v27, %v9127_v59  ;;  %v10323_v59 = vld [vmem:[#allocation8 + $0x5b4] sm:$0xf]  ;;  %v9209_v27 = vld [vmem:[#allocation8 + $0x5c8] sm:$0xf0] }
 0x4bd   : > { %5342 = vmatpush.bf16.msra.mxu0 %v9144_v13  ;;  %v10288_v13 = vld [vmem:[#allocation8 + $0x494] sm:$0xf0] }
 0x4be   : > { %v4584_v63 = vpop.f32.mrf.mxu2  ;;  %v4597_v0 = vpop.f32.mrf.mxu3  ;;  %v9048_v43 = vor.u32 %v10288_v13, %v9047_v39  ;;  %v10308_v39 = vld [vmem:[#allocation8 + $0x534] sm:$0xf0]  ;;  %v10305_v13 = vld [vmem:[#allocation8 + $0x524] sm:$0xf] }
 0x4bf   : > { %v9096_v63 = vor.u32 %v10300_v17, %v9095_v25  ;;  %v9097_v0 = vld [vmem:[#allocation8 + $0x4f8] sm:$0xf0]  ;;  %v5521_v25 = vld [vmem:[#allocation10 + $0x60] sm:$0xff] }
 0x4c0   : > { %v9100_v2 = vor.u32 %v10297_v50, %v9097_v0  ;;  %v10292_v17 = vld [vmem:[#allocation8 + $0x4bc] sm:$0xf]  ;;  %v9081_v50 = vld [vmem:[#allocation8 + $0x4d0] sm:$0xf0]  ;;  %v9183_v0 = vld [vmem:[#allocation8 + $0x580] sm:$0xf] }
 0x4c1   : > { %5343 = vmatpush.bf16.msra.mxu0 %v9120_v45  ;;  %v10332_v45 = vld [vmem:[#allocation8 + $0x5f4] sm:$0xf0] }
 0x4c5   : > { %5344 = vmatpush.bf16.msra.mxu0 %v9096_v63  ;;  %v9084_v63 = vor.u32 %v10292_v17, %v9081_v50  ;;  %v5510_v50 = vld [vmem:[#allocation10 + $0x8] sm:$0xff] }
 0x4c6   : > { %v4647_v26 = vpop.f32.mrf.mxu2 }
 0x4c7   : > { %v4650_v42 = vpack.c.bf16 %v4647_v26, %v4647_v26  ;;  %v9079_v26 = vld [vmem:[#allocation8 + $0x4b8] sm:$0xf] }
 0x4c9   : > { %4948 = vmatmul.bf16.vlgmr.msra.gmra.mxu3 %v4650_v42  ;;  %4961 = vmatmul.bf16.vlgmr.msra.gmra.mxu1 %v4650_v42 }
 0x4ca   : > { %4974 = vmatmul.bf16.vlgmr.msrb.gmra.mxu2 %v4650_v42  ;;  %4987 = vmatmul.bf16.vlgmr.msrb.gmra.mxu0 %v4650_v42 }
 0x4cb   : > { %5352 = vmatpush.bf16.msrb.mxu2 %v9220_v18  ;;  %5365 = vmatpush.bf16.msra.mxu3 %v9224_v28  ;;  %v9076_v18 = vor.u32 %v10291_v32, %v9073_v21  ;;  %v9159_v32 = vld [vmem:[#allocation8 + $0x550] sm:$0xf]  ;;  %v10314_v21 = vld [vmem:[#allocation8 + $0x564] sm:$0xf0] }
 0x4cc   : > { %5378 = vmatpush.bf16.msra.mxu1 %v9228_v41  ;;  %5345 = vmatpush.bf16.msra.mxu0 %v9072_v20  ;;  %v10285_v41 = vld [vmem:[#allocation8 + $0x484] sm:$0xf]  ;;  %v9060_v20 = vor.u32 %v10286_v24, %v9057_v37 }
 0x4cf   : > { %5353 = vmatpush.bf16.msrb.mxu2 %v9196_v40  ;;  %5366 = vmatpush.bf16.msra.mxu3 %v9200_v15  ;;  %v9052_v40 = vor.u32 %v10285_v41, %v9049_v19  ;;  %v9056_v15 = vor.u32 %v10289_v6, %v9055_v29  ;;  %v5516_v29 = vld [vmem:[#allocation10 + $0x38] sm:$0xff]  ;;  %v5515_v6 = vld [vmem:[#allocation10 + $0x30] sm:$0xff] }
 0x4d0   : > { %5379 = vmatpush.bf16.msra.mxu1 %v9204_v30  ;;  %5346 = vmatpush.bf16.msra.mxu0 %v9048_v43  ;;  %v10329_v30 = vld [vmem:[#allocation8 + $0x5e4] sm:$0xf]  ;;  %v9137_v43 = vld [vmem:[#allocation8 + $0x538] sm:$0xf0] }
 0x4d1   : > { %v9140_v19 = vor.u32 %v10305_v13, %v9137_v43 }
 0x4d3   : > { %5354 = vmatpush.bf16.msrb.mxu2 %v9172_v44  ;;  %5367 = vmatpush.bf16.msra.mxu3 %v9176_v22  ;;  %v9233_v44 = vld [vmem:[#allocation8 + $0x5f8] sm:$0xf0]  ;;  %v9232_v22 = vor.u32 %v10332_v45, %v9231_v57  ;;  %v9113_v57 = vld [vmem:[#allocation8 + $0x508] sm:$0xf0]  ;;  %v5513_v45 = vld [vmem:[#allocation10 + $0x20] sm:$0xff] }
 0x4d4   : > { %5380 = vmatpush.bf16.msra.mxu1 %v9180_v10  ;;  %v9236_v35 = vor.u32 %v10329_v30, %v9233_v44  ;;  %v5519_v10 = vld [vmem:[#allocation10 + $0x50] sm:$0xff]  ;;  %v9116_v30 = vor.u32 %v10299_v3, %v9113_v57  ;;  %v9087_v44 = vld [vmem:[#allocation8 + $0x4c0] sm:$0xf] }
 0x4d5   : > { %5391 = vmatpush.bf16.msrb.mxu0 %v9232_v22  ;;  %v10296_v22 = vld [vmem:[#allocation8 + $0x4d4] sm:$0xf0] }
 0x4d7   : > { %5355 = vmatpush.bf16.msrb.mxu2 %v9148_v53  ;;  %5368 = vmatpush.bf16.msra.mxu3 %v9152_v54  ;;  %v9105_v53 = vld [vmem:[#allocation8 + $0x500] sm:$0xf0]  ;;  %v9207_v54 = vld [vmem:[#allocation8 + $0x5b0] sm:$0xf] }
 0x4d8   : > { %5381 = vmatpush.bf16.msra.mxu1 %v9156_v14  ;;  %v9108_v33 = vor.u32 %v10298_v48, %v9105_v53  ;;  %v9135_v14 = vld [vmem:[#allocation8 + $0x520] sm:$0xf] }
 0x4d9   : > { %5000 = vmatmul.bf16.vlgmr.msrb.gmra.mxu3 %v4650_v42  ;;  %5013 = vmatmul.bf16.vlgmr.msrb.gmra.mxu1 %v4650_v42  ;;  %v10295_v42 = vld [vmem:[#allocation8 + $0x4cc] sm:$0xf0]  ;;  %v9136_v41 = vor.u32 %v10308_v39, %v9135_v14 }
 0x4da   : > { %9044 = vmatmul.msk.f32.vlgmr.msra.gmra.mxu2 %vm581_vm0, %v9043_v9  ;;  %v9080_v28 = vor.u32 %v10295_v42, %v9079_v26  ;;  %v9208_v9 = vor.u32 %v10326_v7, %v9207_v54  ;;  %v10311_v26 = vld [vmem:[#allocation8 + $0x554] sm:$0xf]  ;;  %v9161_v42 = vld [vmem:[#allocation8 + $0x568] sm:$0xf0]  ;;  %v9088_v54 = vor.u32 %v10296_v22, %v9087_v44  ;;  %v5512_v7 = vld [vmem:[#allocation10 + $0x18] sm:$0xff] }
 0x4db   : > { %5356 = vmatpush.bf16.msrb.mxu2 %v9124_v51  ;;  %5369 = vmatpush.bf16.msra.mxu3 %v9128_v60  ;;  %v9212_v51 = vor.u32 %v10323_v59, %v9209_v27  ;;  %v5522_v60 = vld [vmem:[#allocation10 + $0x68] sm:$0xff]  ;;  %v9063_v59 = vld [vmem:[#allocation8 + $0x490] sm:$0xf] }
 0x4dc   : > { %5382 = vmatpush.bf16.msra.mxu1 %v9132_v61  ;;  %5392 = vmatpush.bf16.msrb.mxu0 %v9208_v9  ;;  %v5514_v61 = vld [vmem:[#allocation10 + $0x28] sm:$0xff] }
 0x4dd   : > { %v10290_v9 = vld [vmem:[#allocation8 + $0x4a4] sm:$0xf0] }
 0x4de   : > { %v9064_v17 = vor.u32 %v10290_v9, %v9063_v59  ;;  %v10393_v9 = vld [vmem:[#allocation13 + $0x1e4] sm:$0xf] }
 0x4df   : > { %5357 = vmatpush.bf16.msrb.mxu2 %v9100_v2  ;;  %5370 = vmatpush.bf16.msra.mxu3 %v9104_v11  ;;  %v9184_v2 = vor.u32 %v10320_v12, %v9183_v0  ;;  %v9185_v11 = vld [vmem:[#allocation8 + $0x598] sm:$0xf0] }
 0x4e0   : > { %5383 = vmatpush.bf16.msra.mxu1 %v9108_v33  ;;  %v9188_v56 = vor.u32 %v10317_v1, %v9185_v11  ;;  %v5509_v1 = vld [vmem:[#allocation10] sm:$0xff] }
 0x4e1   : > { %5393 = vmatpush.bf16.msrb.mxu0 %v9184_v2 }
 0x4e3   : > { %5358 = vmatpush.bf16.msrb.mxu2 %v9076_v18  ;;  %5371 = vmatpush.bf16.msra.mxu3 %v9080_v28  ;;  %v9160_v18 = vor.u32 %v10314_v21, %v9159_v32  ;;  %v9164_v28 = vor.u32 %v10311_v26, %v9161_v42  ;;  %v10626_v26 = vld [vmem:[%s11252_s2] sm:$0xff]  ;;  %v10627_v42 = vld [vmem:[%s11252_s2 + $0x8] sm:$0xff] }
 0x4e4   : > { %5384 = vmatpush.bf16.msra.mxu1 %v9084_v63 }
 0x4e5   : > { %5394 = vmatpush.bf16.msrb.mxu0 %v9160_v18 }
 0x4e7   : > { %5359 = vmatpush.bf16.msrb.mxu2 %v9052_v40  ;;  %5372 = vmatpush.bf16.msra.mxu3 %v9056_v15  ;;  %v9111_v40 = vld [vmem:[#allocation8 + $0x4f0] sm:$0xf]  ;;  %v10302_v15 = vld [vmem:[#allocation8 + $0x504] sm:$0xf0] }
 0x4e8   : > { %5385 = vmatpush.bf16.msra.mxu1 %v9060_v20  ;;  %v9112_v52 = vor.u32 %v10302_v15, %v9111_v40 }
 0x4e9   : > { %5395 = vmatpush.bf16.msrb.mxu0 %v9136_v41 }
 0x4eb   : > { %5525 = vmatpush.msrb.mxu3 %v5524_v16  ;;  %5404 = vmatpush.bf16.msra.mxu2 %v9236_v35  ;;  %v10293_v35 = vld [vmem:[#allocation8 + $0x4c4] sm:$0xf] }
 0x4ed   : > { %5526 = vmatpush.msrb.mxu3 %v5523_v38  ;;  %v9089_v38 = vld [vmem:[#allocation8 + $0x4d8] sm:$0xf0]  ;;  %5396 = vmatpush.bf16.msrb.mxu0 %v9112_v52 }
 0x4ee   : > { %v9092_v33 = vor.u32 %v10293_v35, %v9089_v38 }
 0x4ef   : > { %5527 = vmatpush.msrb.mxu3 %v5522_v60  ;;  %5405 = vmatpush.bf16.msra.mxu2 %v9212_v51  ;;  %v10287_v51 = vld [vmem:[#allocation8 + $0x494] sm:$0xf]  ;;  %v9065_v60 = vld [vmem:[#allocation8 + $0x4a8] sm:$0xf0] }
 0x4f1   : > { %5528 = vmatpush.msrb.mxu3 %v5521_v25  ;;  %v5511_v25 = vld [vmem:[#allocation10 + $0x10] sm:$0xff]  ;;  %5397 = vmatpush.bf16.msrb.mxu0 %v9088_v54 }
 0x4f3   : > { %5529 = vmatpush.msrb.mxu3 %v5520_v5  ;;  %5406 = vmatpush.bf16.msra.mxu2 %v9188_v56 }
 0x4f5   : > { %5530 = vmatpush.msrb.mxu3 %v5519_v10  ;;  %5398 = vmatpush.bf16.msrb.mxu0 %v9064_v17 }
 0x4f7   : > { %5531 = vmatpush.msrb.mxu3 %v5518_v23  ;;  %5407 = vmatpush.bf16.msra.mxu2 %v9164_v28 }
 0x4f9   : > { %5532 = vmatpush.msrb.mxu3 %v5517_v36 }
 0x4fb   : > { %5533 = vmatpush.msrb.mxu3 %v5516_v29  ;;  %5408 = vmatpush.bf16.msra.mxu2 %v9140_v19 }
 0x4fd   : > { %5534 = vmatpush.msrb.mxu3 %v5515_v6 }
 0x4ff   : > { %5535 = vmatpush.msrb.mxu3 %v5514_v61  ;;  %5409 = vmatpush.bf16.msra.mxu2 %v9116_v30 }
 0x501   : > { %5536 = vmatpush.msrb.mxu3 %v5513_v45 }
 0x503   : > { %5537 = vmatpush.msrb.mxu3 %v5512_v7  ;;  %5410 = vmatpush.bf16.msra.mxu2 %v9092_v33 }
 0x505   : > { %5538 = vmatpush.msrb.mxu3 %v5511_v25 }
 0x507   : > { %5539 = vmatpush.msrb.mxu3 %v5510_v50 }
 0x509   : > { %5540 = vmatpush.msrb.mxu3 %v5509_v1 }
 0x546   : > { %v4962_v16 = vpop.f32.mrf.mxu1 }
 0x547   : > { %v11578_v48 = vadd.f32 %v4962_v16, %v11561_v62  ;;  %v4988_v53 = vpop.f32.mrf.mxu0  ;;  %v9068_v62 = vor.u32 %v10287_v51, %v9065_v60  ;;  %v9355_v51 = vld [vmem:[#allocation13 + $0x1f0] sm:$0xf0] }
 0x548   : > { %v5021_v27 = vadd.f32 %v4988_v53, %v11571_v8 }
 0x549   : > { %5411 = vmatpush.bf16.msra.mxu2 %v9068_v62  ;;  %v9358_v62 = vor.u32 %v10393_v9, %v9355_v51  ;;  %v9353_v9 = vld [vmem:[#allocation13 + $0x1e0] sm:$0xf]  ;;  %v10395_v51 = vld [vmem:[#allocation13 + $0x1ec] sm:$0xf0] }
 0x54c   : > { %v4949_v63 = vpop.f32.mrf.mxu3 }
 0x54d   : > { %v5018_v0 = vadd.f32 %v4949_v63, %v11559_v31  ;;  %v4975_v12 = vpop.f32.mrf.mxu2  ;;  %v10389_v63 = vld [vmem:[#allocation13 + $0x1c4] sm:$0xf] }
 0x54e   : > { %v5020_v2 = vadd.f32 %v4975_v12, %v11568_v34  ;;  %v4964_v8 = vpop.f32.mrf.mxu1 }
 0x54f   : > { %v4990_v11 = vpop.f32.mrf.mxu0 }
 0x554   : > { %v4951_v5 = vpop.f32.mrf.mxu3 }
 0x555   : > { %v4977_v56 = vpop.f32.mrf.mxu2 }
 0x556   : > { %v5014_v10 = vpop.f32.mrf.mxu1 }
 0x557   : > { %v11584_v24 = vadd.f32 %v5014_v10, %v11565_v4  ;;  %v10628_v4 = vld [vmem:[%s11252_s2 + $0x10] sm:$0xff]  ;;  %s6918_s2 = sshll.u32 %s11248_s3, 1 }
 0x558   : > { %s576_s14 = scalar_lea.vmem [#allocation19], %s6918_s2 }
 0x559   : > { %s6736_s5 = sshll.u32 %s576_s14, 4  ;;  %s6737_s5 = int_to_ptr.vmem [resolvable:$true] %s6736_s5 }
 0x55c   : > { %v5001_v37 = vpop.f32.mrf.mxu3 }
 0x55d   : > { %v5022_v31 = vadd.f32 %v5001_v37, %v11563_v46  ;;  %v5046_v32 = vpop.f32.mrf.mxu2 }
 0x55e   : > { %v5049_v34 = vpack.c.bf16 %v5046_v32, %v5046_v32  ;;  %v5016_v20 = vpop.f32.mrf.mxu1 }
 0x55f   : > { %v10385_v20 = vld [vmem:[#allocation13 + $0x1a4] sm:$0xf] }
 0x560   : > { %5347 = vmatmul.bf16.vlgmr.msra.gmra.mxu0 %v5049_v34  ;;  %5360 = vmatmul.bf16.vlgmr.msrb.gmra.mxu2 %v5049_v34 }
 0x561   : > { %5373 = vmatmul.bf16.vlgmr.msra.gmra.mxu3 %v5049_v34  ;;  %5386 = vmatmul.bf16.vlgmr.msra.gmra.mxu1 %v5049_v34 }
 0x562   : > { %5840 = vmatpush.bf16.msrb.mxu2 %v9358_v62  ;;  %v9259_v62 = vld [vmem:[#allocation13 + $0x130] sm:$0xf0] }
 0x564   : > { %v5003_v21 = vpop.f32.mrf.mxu3 }
 0x565   : > { %v9323_v21 = vld [vmem:[#allocation13 + $0x1b0] sm:$0xf0] }
 0x570   : > { %5399 = vmatmul.bf16.vlgmr.msrb.gmra.mxu0 %v5049_v34  ;;  %5412 = vmatmul.bf16.vlgmr.msra.gmra.mxu2 %v5049_v34 }
 0x571   : > { %5541 = vmatmul.f32.vlgmr.msrb.gmra.mxu3 %v10626_v26 }
 0x579   : > { %5544 = vmatmul.f32.gmra.mxu3 %v10627_v42 }
 0x581   : > { %5547 = vmatmul.f32.gmra.mxu3 %v10628_v4  ;;  %v9326_v4 = vor.u32 %v10385_v20, %v9323_v21  ;;  %v10390_v21 = vld [vmem:[#allocation13 + $0x1cc] sm:$0xf] }
 0x5dd   : > { %v5348_v18 = vpop.f32.mrf.mxu0 }
 0x5de   : > { %v5417_v28 = vadd.f32 %v5348_v18, %v5018_v0  ;;  %v5387_v46 = vpop.f32.mrf.mxu1  ;;  %v9339_v0 = vld [vmem:[#allocation13 + $0x1d0] sm:$0xf0] }
 0x5df   : > { %v5420_v23 = vadd.f32 %v5387_v46, %v5021_v27 }
 0x5e0   : > { %v5424_v36 = vsel %vm5423_vm3, %v5417_v28, 0.0 }
 0x5e1   : > { %v5425_v14 = vrot.slane %v5424_v36, 4  ;;  %v5445_v39 = vsel %vm5423_vm3, %v5420_v23, 0.0 }
 0x5e2   : > { %v5446_v13 = vrot.slane %v5445_v39, 4 }
 0x5e3   : > { %v5426_v41 = vadd.f32 %v5425_v14, %v5424_v36  ;;  %v5361_v43 = vpop.f32.mrf.mxu2  ;;  %v10381_v14 = vld [vmem:[#allocation13 + $0x184] sm:$0xf] }
 0x5e4   : > { %v5447_v19 = vadd.f32 %v5446_v13, %v5445_v39  ;;  %v5418_v29 = vadd.f32 %v5361_v43, %v11578_v48  ;;  %v5374_v6 = vpop.f32.mrf.mxu3  ;;  %v9307_v39 = vld [vmem:[#allocation13 + $0x190] sm:$0xf0]  ;;  %v10396_v43 = vld [vmem:[#allocation13 + $0x1f4] sm:$0xf0] }
 0x5e5   : > { %v5419_v40 = vadd.f32 %v5374_v6, %v5020_v2  ;;  %v5350_v15 = vpop.f32.mrf.mxu0  ;;  %v5427_v3 = vrot.slane %v5426_v41, 2  ;;  %v9342_v2 = vor.u32 %v10389_v63, %v9339_v0  ;;  %v9310_v13 = vor.u32 %v10381_v14, %v9307_v39  ;;  %v9363_v63 = vld [vmem:[#allocation13 + $0x1f8] sm:$0xf0]  ;;  %v9297_v39 = vld [vmem:[#allocation13 + $0x168] sm:$0xf] }
 0x5e6   : > { %v5448_v52 = vrot.slane %v5447_v19, 2  ;;  %v5431_v57 = vsel %vm5423_vm3, %v5418_v29, 0.0  ;;  %v5389_v61 = vpop.f32.mrf.mxu1 }
 0x5e7   : > { %v5432_v45 = vrot.slane %v5431_v57, 4  ;;  %v5438_v30 = vsel %vm5423_vm3, %v5419_v40, 0.0  ;;  %v5428_v16 = vadd.f32 %v5427_v3, %v5426_v41  ;;  %5841 = vmatpush.bf16.msrb.mxu2 %v9342_v2  ;;  %v9361_v41 = vld [vmem:[#allocation13 + $0x1e8] sm:$0xf]  ;;  %v10377_v3 = vld [vmem:[#allocation13 + $0x164] sm:$0xf] }
 0x5e8   : > { %v5439_v44 = vrot.slane %v5438_v30, 4  ;;  %v5449_v22 = vadd.f32 %v5448_v52, %v5447_v19  ;;  %v9291_v52 = vld [vmem:[#allocation13 + $0x170] sm:$0xf0]  ;;  %v5609_v2 = vld [vmem:[#allocation11 + $0x2] sm:$0x3] }
 0x5e9   : > { %v5433_v35 = vadd.f32 %v5432_v45, %v5431_v57  ;;  %v5429_v60 = vrot.slane %v5428_v16, 1  ;;  %v9294_v61 = vor.u32 %v10377_v3, %v9291_v52  ;;  %v9345_v45 = vld [vmem:[#allocation13 + $0x1c8] sm:$0xf]  ;;  %v10357_v3 = vld [vmem:[#allocation13 + $0xc4] sm:$0xf] }
 0x5ea   : > { %v5440_v38 = vadd.f32 %v5439_v44, %v5438_v30  ;;  %v5450_v7 = vrot.slane %v5449_v22, 1  ;;  %v10392_v30 = vld [vmem:[#allocation13 + $0x1d4] sm:$0xf0]  ;;  %v9467_v52 = vld [vmem:[#allocation13 + $0xd0] sm:$0xf0] }
 0x5eb   : > { %v5434_v53 = vrot.slane %v5433_v35, 2  ;;  %v5363_v54 = vpop.f32.mrf.mxu2  ;;  %v5430_v56 = vadd.f32 %v5429_v60, %v5428_v16  ;;  %5842 = vmatpush.bf16.msrb.mxu2 %v9326_v4  ;;  %v9347_v4 = vld [vmem:[#allocation13 + $0x1d8] sm:$0xf0] }
 0x5ec   : > { %v5441_v33 = vrot.slane %v5440_v38, 2  ;;  %v5376_v48 = vpop.f32.mrf.mxu3  ;;  %v5451_v8 = vadd.f32 %v5450_v7, %v5449_v22  ;;  %v9329_v54 = vld [vmem:[#allocation13 + $0x1a8] sm:$0xf] }
 0x5ed   : > { %v5435_v59 = vadd.f32 %v5434_v53, %v5433_v35  ;;  %v5400_v27 = vpop.f32.mrf.mxu0  ;;  %v9346_v35 = vor.u32 %v10392_v30, %v9345_v45  ;;  %v9275_v53 = vld [vmem:[#allocation13 + $0x150] sm:$0xf0]  ;;  %v9470_v45 = vor.u32 %v10357_v3, %v9467_v52  ;;  %v10376_v30 = vld [vmem:[#allocation13 + $0x154] sm:$0xf0]  ;;  %v9481_v3 = vld [vmem:[#allocation13 + $0xe0] sm:$0xf] }
 0x5ee   : > { %v5442_v25 = vadd.f32 %v5441_v33, %v5440_v38  ;;  %v5421_v17 = vadd.f32 %v5400_v27, %v5022_v31  ;;  %v10373_v38 = vld [vmem:[#allocation13 + $0x144] sm:$0xf]  ;;  %v10388_v33 = vld [vmem:[#allocation13 + $0x1b4] sm:$0xf0]  ;;  %v10366_v52 = vld [vmem:[#allocation13 + $0x10c] sm:$0xf] }
 0x5ef   : > { %v5436_v50 = vrot.slane %v5435_v59, 1  ;;  %5843 = vmatpush.bf16.msrb.mxu2 %v9310_v13  ;;  %v9330_v27 = vor.u32 %v10388_v33, %v9329_v54  ;;  %v10380_v13 = vld [vmem:[#allocation13 + $0x174] sm:$0xf0]  ;;  %v9315_v54 = vld [vmem:[#allocation13 + $0x198] sm:$0xf0] }
 0x5f0   : > { %v5443_v12 = vrot.slane %v5442_v25, 1  ;;  %v5452_v1 = vsel %vm5423_vm3, %v5421_v17, 0.0  ;;  %v10369_v17 = vld [vmem:[#allocation13 + $0x124] sm:$0xf] }
 0x5f1   : > { %v5437_v11 = vadd.f32 %v5436_v50, %v5435_v59  ;;  %v5453_v5 = vrot.slane %v5452_v1, 4  ;;  %v9278_v59 = vor.u32 %v10373_v38, %v9275_v53  ;;  %v9262_v0 = vor.u32 %v10369_v17, %v9259_v62  ;;  %v10382_v53 = vld [vmem:[#allocation13 + $0x18c] sm:$0xf]  ;;  %v10353_v33 = vld [vmem:[#allocation13 + $0xa4] sm:$0xf] }
 0x5f2   : > { %v5444_v10 = vadd.f32 %v5443_v12, %v5442_v25  ;;  %v10394_v25 = vld [vmem:[#allocation13 + $0x1ec] sm:$0xf]  ;;  %v9313_v12 = vld [vmem:[#allocation13 + $0x188] sm:$0xf]  ;;  %v9318_v17 = vor.u32 %v10382_v53, %v9315_v54  ;;  %v10359_v54 = vld [vmem:[#allocation13 + $0xcc] sm:$0xf0] }
 0x5f3   : > { %v5454_v37 = vadd.f32 %v5453_v5, %v5452_v1  ;;  %v5413_v32 = vpop.f32.mrf.mxu2  ;;  %v5467_v34 = vadd.f32 %v5451_v8, %v5437_v11  ;;  %5844 = vmatpush.bf16.msrb.mxu2 %v9294_v61  ;;  %v10384_v1 = vld [vmem:[#allocation13 + $0x194] sm:$0xf0]  ;;  %v9366_v20 = vor.u32 %v10394_v25, %v9363_v63  ;;  %v9281_v61 = vld [vmem:[#allocation13 + $0x148] sm:$0xf]  ;;  %v10379_v25 = vld [vmem:[#allocation13 + $0x16c] sm:$0xf0] }
 0x5f4   : > { %v5422_v31 = vadd.f32 %v5413_v32, %v11584_v24  ;;  %v11597_v26 = vpop.f32.mrf.mxu3  ;;  %v5466_v42 = vadd.f32 %v5444_v10, %v5430_v56  ;;  %v9362_v24 = vor.u32 %v10396_v43, %v9361_v41  ;;  %v9314_v5 = vor.u32 %v10384_v1, %v9313_v12  ;;  %v5551_v56 = vld [vmem:[#allocation11] sm:$0x3]  ;;  %v9337_v10 = vld [vmem:[#allocation13 + $0x1c0] sm:$0xf]  ;;  %v10378_v62 = vld [vmem:[#allocation13 + $0x16c] sm:$0xf] }
 0x5f5   : > { %v5455_v18 = vrot.slane %v5454_v37, 2  ;;  %v5402_v28 = vpop.f32.mrf.mxu0  ;;  %v9321_v43 = vld [vmem:[#allocation13 + $0x1a0] sm:$0xf]  ;;  %v9299_v63 = vld [vmem:[#allocation13 + $0x178] sm:$0xf0] }
 0x5f6   : > { %v5459_v46 = vsel %vm5423_vm3, %v5422_v31, 0.0  ;;  %5853 = vmatpush.bf16.msra.mxu3 %v9362_v24  ;;  %v10365_v31 = vld [vmem:[#allocation13 + $0x104] sm:$0xf]  ;;  %v10387_v24 = vld [vmem:[#allocation13 + $0x1ac] sm:$0xf0] }
 0x5f7   : > { %v5456_v23 = vadd.f32 %v5455_v18, %v5454_v37  ;;  %v5460_v36 = vrot.slane %v5459_v46, 4  ;;  %5845 = vmatpush.bf16.msrb.mxu2 %v9278_v59  ;;  %v10391_v37 = vld [vmem:[#allocation13 + $0x1cc] sm:$0xf0]  ;;  %v10361_v28 = vld [vmem:[#allocation13 + $0xe4] sm:$0xf] }
 0x5f8   : > { %v9435_v12 = vld [vmem:[#allocation13 + $0x90] sm:$0xf0]  ;;  %v9249_v1 = vld [vmem:[#allocation13 + $0x108] sm:$0xf] }
 0x5f9   : > { %v5457_v19 = vrot.slane %v5456_v23, 1  ;;  %v5461_v29 = vadd.f32 %v5460_v36, %v5459_v46  ;;  %v9483_v46 = vld [vmem:[#allocation13 + $0xf0] sm:$0xf0] }
 0x5fa   : > { %5854 = vmatpush.bf16.msra.mxu3 %v9346_v35  ;;  %v9486_v14 = vor.u32 %v10361_v28, %v9483_v46  ;;  %v9322_v35 = vor.u32 %v10387_v24, %v9321_v43  ;;  %v9419_v28 = vld [vmem:[#allocation13 + $0x70] sm:$0xf0]  ;;  %v9473_v46 = vld [vmem:[#allocation13 + $0xc8] sm:$0xf]  ;;  %v10371_v43 = vld [vmem:[#allocation13 + $0x12c] sm:$0xf0] }
 0x5fb   : > { %v5458_v6 = vadd.f32 %v5457_v19, %v5456_v23  ;;  %v5462_v40 = vrot.slane %v5461_v29, 2  ;;  %v5415_v15 = vpop.f32.mrf.mxu2  ;;  %5846 = vmatpush.bf16.msrb.mxu2 %v9262_v0  ;;  %v9298_v19 = vor.u32 %v10380_v13, %v9297_v39  ;;  %v10349_v0 = vld [vmem:[#allocation13 + $0x84] sm:$0xf]  ;;  %v9257_v13 = vld [vmem:[#allocation13 + $0x120] sm:$0xf] }
 0x5fc   : > { %v11600_v57 = vpop.f32.mrf.mxu3  ;;  %v9331_v15 = vld [vmem:[#allocation13 + $0x1b8] sm:$0xf0]  ;;  %v9258_v24 = vor.u32 %v10371_v43, %v9257_v13  ;;  %v11036_v43 = vmov 256.0  }
 0x5fd   : > { %v5463_v44 = vadd.f32 %v5462_v40, %v5461_v29  ;;  %v5468_v22 = vadd.f32 %v5466_v42, %v5458_v6  ;;  %v9243_v42 = vld [vmem:[#allocation13 + $0x110] sm:$0xf0]  ;;  %v9338_v29 = vor.u32 %v10391_v37, %v9337_v10  ;;  %v9350_v6 = vor.u32 %v10390_v21, %v9347_v4  ;;  %v10386_v40 = vld [vmem:[#allocation13 + $0x1ac] sm:$0xf]  ;;  %v9489_v10 = vld [vmem:[#allocation13 + $0xe8] sm:$0xf] }
 0x5fe   : > { %5855 = vmatpush.bf16.msra.mxu3 %v9330_v27  ;;  %v9246_v18 = vor.u32 %v10365_v31, %v9243_v42  ;;  %v9334_v38 = vor.u32 %v10386_v40, %v9331_v15  ;;  %v10372_v27 = vld [vmem:[#allocation13 + $0x134] sm:$0xf0]  ;;  %v9302_v21 = vor.u32 %v10378_v62, %v9299_v63  ;;  %v10374_v31 = vld [vmem:[#allocation13 + $0x14c] sm:$0xf]  ;;  %v9283_v42 = vld [vmem:[#allocation13 + $0x158] sm:$0xf0]  ;;  %10612 = vrcp.f32 %v11036_v43 }
 0x5ff   : > { %v5464_v16 = vrot.slane %v5463_v44, 1  ;;  %v5470_v7 = vmul.f32 0.11111111, %v5468_v22  ;;  %v9282_v22 = vor.u32 %v10376_v30, %v9281_v61  ;;  %v10364_v37 = vld [vmem:[#allocation13 + $0xf4] sm:$0xf0] }
 0x600   : > { %5847 = vmatpush.bf16.msrb.mxu2 %v9246_v18  ;;  %v9490_v4 = vor.u32 %v10364_v37, %v9489_v10  ;;  %v10345_v18 = vld [vmem:[#allocation13 + $0x64] sm:$0xf]  ;;  %v10367_v40 = vld [vmem:[#allocation13 + $0x10c] sm:$0xf0]  ;;  %v9251_v61 = vld [vmem:[#allocation13 + $0x118] sm:$0xf0] }
 0x601   : > { %v5465_v48 = vadd.f32 %v5464_v16, %v5463_v44  ;;  %v11607_v11 = vadd.f32 %v5470_v7, %v11491_v47  ;;  %v9305_v44 = vld [vmem:[#allocation13 + $0x180] sm:$0xf]  ;;  %v10383_v16 = vld [vmem:[#allocation13 + $0x18c] sm:$0xf0]  ;;  %v9265_v7 = vld [vmem:[#allocation13 + $0x128] sm:$0xf] }
 0x602   : > { %5856 = vmatpush.bf16.msra.mxu3 %v9314_v5  ;;  %v9273_v5 = vld [vmem:[#allocation13 + $0x140] sm:$0xf]  ;;  %v10362_v30 = vld [vmem:[#allocation13 + $0xec] sm:$0xf]  ;;  %v10347_v63 = vld [vmem:[#allocation13 + $0x6c] sm:$0xf0] }
 0x603   : > { %v5469_v60 = vadd.f32 %v5467_v34, %v5465_v48  ;;  %v9354_v34 = vor.u32 %v10395_v51, %v9353_v9  ;;  %v5474_v23 = vsel %vm3744_vm2, %v11607_v11, 0.0  ;;  %v9451_v48 = vld [vmem:[#allocation13 + $0xb0] sm:$0xf0]  ;;  %v9289_v9 = vld [vmem:[#allocation13 + $0x160] sm:$0xf]  ;;  %v9266_v51 = vor.u32 %v10372_v27, %v9265_v7 }
 0x604   : > { %v11602_v50 = vpop.f32.mrf.mxu3  ;;  %6052 = vmatpush.bf16.msra.mxu2 %v9486_v14  ;;  %v9454_v59 = vor.u32 %v10353_v33, %v9451_v48  ;;  %v10358_v33 = vld [vmem:[#allocation13 + $0xcc] sm:$0xf]  ;;  %v9475_v48 = vld [vmem:[#allocation13 + $0xd8] sm:$0xf0]  ;;  %v9449_v27 = vld [vmem:[#allocation13 + $0xa0] sm:$0xf] }
 0x605   : > { %5568 = vmatpush.msrb.mxu1 %v11602_v50  ;;  %5626 = vmatpush.msra.mxu0 %v11602_v50  ;;  %v5471_v8 = vmul.f32 0.11111111, %v5469_v60  ;;  %v9306_v60 = vor.u32 %v10383_v16, %v9305_v44  ;;  %v9491_v44 = vld [vmem:[#allocation13 + $0xf8] sm:$0xf0]  ;;  %v9417_v62 = vld [vmem:[#allocation13 + $0x60] sm:$0xf] }
 0x606   : > { %5857 = vmatpush.bf16.msra.mxu3 %v9298_v19  ;;  %v10370_v19 = vld [vmem:[#allocation13 + $0x12c] sm:$0xf]  ;;  %v9494_v53 = vor.u32 %v10362_v30, %v9491_v44  ;;  %v9457_v10 = vld [vmem:[#allocation13 + $0xa8] sm:$0xf]  ;;  %v10356_v37 = vld [vmem:[#allocation13 + $0xb4] sm:$0xf0] }
 0x607   : > { %5569 = vmatpush.msrb.mxu1 %v11600_v57  ;;  %5627 = vmatpush.msra.mxu0 %v11600_v57  ;;  %v11612_v32 = vadd.f32 %v5471_v8, %v11493_v49  ;;  %v10368_v8 = vld [vmem:[#allocation13 + $0x114] sm:$0xf0]  ;;  %v9427_v44 = vld [vmem:[#allocation13 + $0x78] sm:$0xf0]  ;;  %v10419_v43 = vld [vmem:[#allocation13 + $0x2ac] sm:$0xf0] }
 0x608   : > { %6053 = vmatpush.bf16.msra.mxu2 %v9470_v45  ;;  %v10363_v45 = vld [vmem:[#allocation13 + $0xec] sm:$0xf0] }
 0x609   : > { %5570 = vmatpush.msrb.mxu1 %v11597_v26  ;;  %5628 = vmatpush.msra.mxu0 %v11597_v26  ;;  %v5475_v36 = vsel %vm3744_vm2, %v11612_v32, 0.0  ;;  %v9482_v16 = vor.u32 %v10363_v45, %v9481_v3  ;;  %v10346_v45 = vld [vmem:[#allocation13 + $0x6c] sm:$0xf] }
 0x60a   : > { %9238 = vmatmul.msk.f32.vlgmr.msra.gmra.mxu0 %vm581_vm0, %v5609_v2  ;;  %v5476_v41 = vadd.f32 %v5475_v36, %v5474_v23  ;;  %9237 = vmatmul.msk.f32.vlgmr.msrb.gmra.mxu1 %vm581_vm0, %v5551_v56  ;;  %v9438_v2 = vor.u32 %v10349_v0, %v9435_v12  ;;  %v9250_v56 = vor.u32 %v10368_v8, %v9249_v1  ;;  %v10360_v36 = vld [vmem:[#allocation13 + $0xd4] sm:$0xf0]  ;;  %v9401_v12 = vld [vmem:[#allocation13 + $0x40] sm:$0xf]  ;;  %v10343_v1 = vld [vmem:[#allocation13 + $0x4c] sm:$0xf0] }
 0x60b   : > { %5827 = vmatpush.bf16.msra.mxu1 %v9354_v34  ;;  %5866 = vmatpush.bf16.msrb.mxu0 %v9366_v20  ;;  %v9290_v34 = vor.u32 %v10379_v25, %v9289_v9  ;;  %v10375_v20 = vld [vmem:[#allocation13 + $0x14c] sm:$0xf0]  ;;  %v9422_v23 = vor.u32 %v10345_v18, %v9419_v28  ;;  %v9474_v14 = vor.u32 %v10360_v36, %v9473_v46  ;;  %v10337_v18 = vld [vmem:[#allocation13 + $0x24] sm:$0xf]  ;;  %v9387_v46 = vld [vmem:[#allocation13 + $0x30] sm:$0xf0] }
 0x60c   : > { %5477 = vadd.xlane.f32.xlu0 %v5476_v41  ;;  %5858 = vmatpush.bf16.msra.mxu3 %v9282_v22  ;;  %v9274_v39 = vor.u32 %v10375_v20, %v9273_v5  ;;  %v9286_v41 = vor.u32 %v10374_v31, %v9283_v42  ;;  %v10355_v9 = vld [vmem:[#allocation13 + $0xac] sm:$0xf0]  ;;  %v9418_v0 = vor.u32 %v10347_v63, %v9417_v62  ;;  %v9403_v5 = vld [vmem:[#allocation13 + $0x50] sm:$0xf0]  ;;  %v9385_v42 = vld [vmem:[#allocation13 + $0x20] sm:$0xf] }
 0x60d   : > { %6054 = vmatpush.bf16.msra.mxu2 %v9454_v59  ;;  %v9478_v59 = vor.u32 %v10358_v33, %v9475_v48  ;;  %v10351_v25 = vld [vmem:[#allocation13 + $0x8c] sm:$0xf0]  ;;  %v9402_v8 = vor.u32 %v10343_v1, %v9401_v12  ;;  %v9458_v20 = vor.u32 %v10356_v37, %v9457_v10  ;;  %v9441_v36 = vld [vmem:[#allocation13 + $0x88] sm:$0xf]  ;;  %v9411_v48 = vld [vmem:[#allocation13 + $0x58] sm:$0xf0]  ;;  %v11622_v1 = vpop.xlane.xlu0 %3748 }
 0x60e   : > { %v9377_v62 = vld [vmem:[#allocation13 + $0x8] sm:$0xf]  ;;  %v10336_v63 = vld [vmem:[#allocation13 + $0x14] sm:$0xf0] }
 0x60f   : > { %5828 = vmatpush.bf16.msra.mxu1 %v9338_v29  ;;  %5867 = vmatpush.bf16.msrb.mxu0 %v9350_v6  ;;  %v9267_v29 = vld [vmem:[#allocation13 + $0x138] sm:$0xf0]  ;;  %v9241_v6 = vld [vmem:[#allocation13 + $0x100] sm:$0xf] }
 0x610   : > { %5859 = vmatpush.bf16.msra.mxu3 %v9266_v51  ;;  %v9270_v15 = vor.u32 %v10370_v19, %v9267_v29  ;;  %v9242_v22 = vor.u32 %v10367_v40, %v9241_v6  ;;  %v9450_v51 = vor.u32 %v10355_v9, %v9449_v27  ;;  %v9369_v29 = vld [vmem:[#allocation13] sm:$0xf]  ;;  %v10333_v6 = vld [vmem:[#allocation13 + $0x4] sm:$0xf]  ;;  %v10340_v27 = vld [vmem:[#allocation13 + $0x34] sm:$0xf0] }
 0x611   : > { %6055 = vmatpush.bf16.msra.mxu2 %v9438_v2  ;;  %v10341_v2 = vld [vmem:[#allocation13 + $0x44] sm:$0xf]  ;;  %v10338_v9 = vld [vmem:[#allocation13 + $0x2c] sm:$0xf] }
 0x613   : > { %5829 = vmatpush.bf16.msra.mxu1 %v9322_v35  ;;  %5868 = vmatpush.bf16.msrb.mxu0 %v9334_v38  ;;  %v9254_v35 = vor.u32 %v10366_v52, %v9251_v61  ;;  %v9465_v38 = vld [vmem:[#allocation13 + $0xc0] sm:$0xf]  ;;  %v9425_v52 = vld [vmem:[#allocation13 + $0x68] sm:$0xf]  ;;  %v10348_v61 = vld [vmem:[#allocation13 + $0x74] sm:$0xf0] }
 0x614   : > { %5860 = vmatpush.bf16.msra.mxu3 %v9250_v56  ;;  %v9466_v7 = vor.u32 %v10359_v54, %v9465_v38  ;;  %v9406_v56 = vor.u32 %v10341_v2, %v9403_v5  ;;  %v9426_v30 = vor.u32 %v10348_v61, %v9425_v52  ;;  %v10344_v38 = vld [vmem:[#allocation13 + $0x54] sm:$0xf0]  ;;  %v9378_v2 = vor.u32 %v10336_v63, %v9377_v62  ;;  %v10421_v62 = vld [vmem:[#allocation13 + $0x2c4] sm:$0xf]  ;;  %v9602_v63 = vld [vmem:[#allocation13 + $0x2c8] sm:$0xf] }
 0x615   : > { %6056 = vmatpush.bf16.msra.mxu2 %v9422_v23  ;;  %v9390_v23 = vor.u32 %v10337_v18, %v9387_v46  ;;  %v10427_v18 = vld [vmem:[#allocation13 + $0x2ec] sm:$0xf0] }
 0x617   : > { %5830 = vmatpush.bf16.msra.mxu1 %v9306_v60  ;;  %5869 = vmatpush.bf16.msrb.mxu0 %v9318_v17  ;;  %v9433_v60 = vld [vmem:[#allocation13 + $0x80] sm:$0xf] }
 0x618   : > { %6065 = vmatpush.bf16.msrb.mxu3 %v9490_v4  ;;  %v9434_v17 = vor.u32 %v10351_v25, %v9433_v60  ;;  %v10339_v4 = vld [vmem:[#allocation13 + $0x2c] sm:$0xf0]  ;;  %v9395_v25 = vld [vmem:[#allocation13 + $0x38] sm:$0xf0] }
 0x619   : > { %6057 = vmatpush.bf16.msra.mxu2 %v9406_v56  ;;  %v9386_v28 = vor.u32 %v10339_v4, %v9385_v42  ;;  %v9610_v4 = vld [vmem:[#allocation13 + $0x2e0] sm:$0xf] }
 0x61b   : > { %5831 = vmatpush.bf16.msra.mxu1 %v9290_v34  ;;  %5870 = vmatpush.bf16.msrb.mxu0 %v9302_v21  ;;  %v10354_v34 = vld [vmem:[#allocation13 + $0xac] sm:$0xf]  ;;  %v9459_v21 = vld [vmem:[#allocation13 + $0xb8] sm:$0xf0] }
 0x61c   : > { %6066 = vmatpush.bf16.msrb.mxu3 %v9474_v14  ;;  %v9462_v31 = vor.u32 %v10354_v34, %v9459_v21  ;;  %v10352_v14 = vld [vmem:[#allocation13 + $0x94] sm:$0xf0] }
 0x61d   : > { %v9442_v13 = vor.u32 %v10352_v14, %v9441_v36  ;;  %6058 = vmatpush.bf16.msra.mxu2 %v9390_v23 }
 0x61f   : > { %5832 = vmatpush.bf16.msra.mxu1 %v9274_v39  ;;  %5871 = vmatpush.bf16.msrb.mxu0 %v9286_v41  ;;  %v10350_v39 = vld [vmem:[#allocation13 + $0x8c] sm:$0xf]  ;;  %v9443_v41 = vld [vmem:[#allocation13 + $0x98] sm:$0xf0] }
 0x620   : > { %6067 = vmatpush.bf16.msrb.mxu3 %v9458_v20  ;;  %v9446_v19 = vor.u32 %v10350_v39, %v9443_v41  ;;  %v9594_v39 = vld [vmem:[#allocation13 + $0x2c0] sm:$0xf] }
 0x621   : > { %v9578_v41 = vld [vmem:[#allocation13 + $0x2a0] sm:$0xf] }
 0x623   : > { %5833 = vmatpush.bf16.msra.mxu1 %v9258_v24  ;;  %5872 = vmatpush.bf16.msrb.mxu0 %v9270_v15  ;;  %v10335_v24 = vld [vmem:[#allocation13 + $0xc] sm:$0xf0]  ;;  %v9371_v15 = vld [vmem:[#allocation13 + $0x10] sm:$0xf0] }
 0x624   : > { %6068 = vmatpush.bf16.msrb.mxu3 %v9442_v13  ;;  %v9370_v40 = vor.u32 %v10335_v24, %v9369_v29  ;;  %v9374_v3 = vor.u32 %v10333_v6, %v9371_v15  ;;  %v9562_v29 = vld [vmem:[#allocation13 + $0x280] sm:$0xf]  ;;  %v10415_v24 = vld [vmem:[#allocation13 + $0x28c] sm:$0xf0] }
 0x625   : > { %v9546_v15 = vld [vmem:[#allocation13 + $0x260] sm:$0xf] }
 0x626   : > { %6059 = vmatpush.bf16.msra.mxu2 %v9374_v3  ;;  %v10411_v3 = vld [vmem:[#allocation13 + $0x26c] sm:$0xf0] }
 0x627   : > { %5834 = vmatpush.bf16.msra.mxu1 %v9242_v22  ;;  %5873 = vmatpush.bf16.msrb.mxu0 %v9254_v35  ;;  %v10613_v22 = vpop.eup %10612  ;;  %v9430_v35 = vor.u32 %v10346_v45, %v9427_v44  ;;  %v9547_v61 = vor.u32 %v10411_v3, %v9546_v15  ;;  %v9530_v45 = vld [vmem:[#allocation13 + $0x240] sm:$0xf]  ;;  %v9556_v15 = vld [vmem:[#allocation13 + $0x278] sm:$0xf0] }
 0x628   : > { %6069 = vmatpush.bf16.msrb.mxu3 %v9426_v30  ;;  %v3751_v54 = vmul.f32 256.0, %v10613_v22  ;;  %vm3755_vm4 = vweird.f32 %v10613_v22  ;;  %v10407_v30 = vld [vmem:[#allocation13 + $0x24c] sm:$0xf0] }
 0x629   : > { %v9531_v44 = vor.u32 %v10407_v30, %v9530_v45  ;;  %v9532_v45 = vld [vmem:[#allocation13 + $0x250] sm:$0xf0]  ;;  %v9538_v30 = vld [vmem:[#allocation13 + $0x248] sm:$0xf] }
 0x62b   : > { %6039 = vmatpush.bf16.msrb.mxu1 %v9482_v16  ;;  %6078 = vmatpush.bf16.msra.mxu0 %v9494_v53  ;;  %v9409_v16 = vld [vmem:[#allocation13 + $0x48] sm:$0xf]  ;;  %v10342_v53 = vld [vmem:[#allocation13 + $0x4c] sm:$0xf] }
 0x62c   : > { %v9410_v33 = vor.u32 %v10344_v38, %v9409_v16  ;;  %v9498_v38 = vld [vmem:[#allocation13 + $0x200] sm:$0xf] }
 0x62e   : > { %6070 = vmatpush.bf16.msrb.mxu3 %v9410_v33  ;;  %v6092_v33 = vld [vmem:[#allocation11 + $0x4] sm:$0x3] }
 0x62f   : > { %6040 = vmatpush.bf16.msrb.mxu1 %v9466_v7  ;;  %6079 = vmatpush.bf16.msra.mxu0 %v9478_v59  ;;  %v9414_v7 = vor.u32 %v10342_v53, %v9411_v48  ;;  %v9393_v59 = vld [vmem:[#allocation13 + $0x28] sm:$0xf]  ;;  %v10399_v53 = vld [vmem:[#allocation13 + $0x20c] sm:$0xf0]  ;;  %v10425_v48 = vld [vmem:[#allocation13 + $0x2e4] sm:$0xf] }
 0x630   : > { %v9394_v60 = vor.u32 %v10340_v27, %v9393_v59  ;;  %v9618_v59 = vld [vmem:[#allocation13 + $0x2e8] sm:$0xf] }
 0x632   : > { %6071 = vmatpush.bf16.msrb.mxu3 %v9394_v60  ;;  %v9620_v60 = vld [vmem:[#allocation13 + $0x2f8] sm:$0xf0] }
 0x633   : > { %6041 = vmatpush.bf16.msrb.mxu1 %v9450_v51  ;;  %6080 = vmatpush.bf16.msra.mxu0 %v9462_v31  ;;  %v3752_v51 = vsub.f32 1.0, %v3751_v54  ;;  %v9499_v54 = vor.u32 %v10399_v53, %v9498_v38  ;;  %v9540_v38 = vld [vmem:[#allocation13 + $0x258] sm:$0xf0]  ;;  %v10401_v53 = vld [vmem:[#allocation13 + $0x224] sm:$0xf] }
 0x635   : > { %v3753_v12 = vmul.f32 %v10613_v22, %v3752_v51  ;;  %v10426_v51 = vld [vmem:[#allocation13 + $0x2ec] sm:$0xf] }
 0x636   : > { %6072 = vmatpush.bf16.msrb.mxu3 %v9378_v2  ;;  %v9604_v2 = vld [vmem:[#allocation13 + $0x2d8] sm:$0xf0] }
 0x637   : > { %6042 = vmatpush.bf16.msrb.mxu1 %v9434_v17  ;;  %6081 = vmatpush.bf16.msra.mxu0 %v9446_v19  ;;  %v9398_v17 = vor.u32 %v10338_v9, %v9395_v25  ;;  %v3754_v56 = vadd.f32 %v10613_v22, %v3753_v12  ;;  %v9579_v19 = vor.u32 %v10419_v43, %v9578_v41  ;;  %v10428_v9 = vld [vmem:[#allocation13 + $0x2f4] sm:$0xf0]  ;;  %v10409_v43 = vld [vmem:[#allocation13 + $0x264] sm:$0xf] }
 0x638   : > { %v9619_v25 = vor.u32 %v10428_v9, %v9618_v59  ;;  %v10424_v12 = vld [vmem:[#allocation13 + $0x2d4] sm:$0xf0] }
 0x639   : > { %v11624_v10 = vsel %vm3755_vm4, %v10613_v22, %v3754_v56  ;;  %v9514_v22 = vld [vmem:[#allocation13 + $0x220] sm:$0xf]  ;;  %v9580_v56 = vld [vmem:[#allocation13 + $0x2b0] sm:$0xf0]  ;;  %v10404_v59 = vld [vmem:[#allocation13 + $0x234] sm:$0xf0] }
 0x63b   : > { %6043 = vmatpush.bf16.msrb.mxu1 %v9418_v0  ;;  %6082 = vmatpush.bf16.msra.mxu0 %v9430_v35  ;;  %v10334_v0 = vld [vmem:[#allocation13 + $0xc] sm:$0xf]  ;;  %v10403_v35 = vld [vmem:[#allocation13 + $0x22c] sm:$0xf0] }
 0x63c   : > { %v9515_v16 = vor.u32 %v10403_v35, %v9514_v22  ;;  %v10408_v22 = vld [vmem:[#allocation13 + $0x254] sm:$0xf0]  ;;  %v10406_v35 = vld [vmem:[#allocation13 + $0x24c] sm:$0xf] }
 0x63f   : > { %6044 = vmatpush.bf16.msrb.mxu1 %v9402_v8  ;;  %6083 = vmatpush.bf16.msra.mxu0 %v9414_v7  ;;  %v9379_v8 = vld [vmem:[#allocation13 + $0x18] sm:$0xf0]  ;;  %v9612_v7 = vld [vmem:[#allocation13 + $0x2f0] sm:$0xf0] }
 0x640   : > { %v9382_v5 = vor.u32 %v10334_v0, %v9379_v8  ;;  %v9615_v27 = vor.u32 %v10425_v48, %v9612_v7  ;;  %v9522_v7 = vld [vmem:[#allocation13 + $0x228] sm:$0xf] }
 0x641   : > { %v9523_v9 = vor.u32 %v10404_v59, %v9522_v7 }
 0x643   : > { %6045 = vmatpush.bf16.msrb.mxu1 %v9386_v28  ;;  %6084 = vmatpush.bf16.msra.mxu0 %v9398_v17  ;;  %v9623_v17 = vor.u32 %v10426_v51, %v9620_v60  ;;  %v9524_v51 = vld [vmem:[#allocation13 + $0x238] sm:$0xf0] }
 0x647   : > { %6046 = vmatpush.bf16.msrb.mxu1 %v9370_v40  ;;  %6085 = vmatpush.bf16.msra.mxu0 %v9382_v5  ;;  %v9563_v40 = vor.u32 %v10415_v24, %v9562_v29  ;;  %v10417_v5 = vld [vmem:[#allocation13 + $0x2a4] sm:$0xf]  ;;  %v9554_v29 = vld [vmem:[#allocation13 + $0x268] sm:$0xf] }
 0x67f   : > { %v5478_v37 = vpop.xlane.xlu0 %5477 }
 0x680   : > { %v5479_v34 = vmul.f32 %v5478_v37, %v11624_v10  ;;  %v9586_v37 = vld [vmem:[#allocation13 + $0x2a8] sm:$0xf] }
 0x682   : > { %v11628_v20 = vsub.f32 %v11607_v11, %v5479_v34  ;;  %v11631_v21 = vsub.f32 %v11612_v32, %v5479_v34  ;;  %v9611_v11 = vor.u32 %v10427_v18, %v9610_v4  ;;  %v10423_v32 = vld [vmem:[#allocation13 + $0x2cc] sm:$0xf0]  ;;  %v9583_v34 = vor.u32 %v10417_v5, %v9580_v56  ;;  %v9588_v4 = vld [vmem:[#allocation13 + $0x2b8] sm:$0xf0] }
 0x683   : > { %v9595_v13 = vor.u32 %v10423_v32, %v9594_v39  ;;  %v10414_v39 = vld [vmem:[#allocation13 + $0x28c] sm:$0xf]  ;;  %v9572_v32 = vld [vmem:[#allocation13 + $0x298] sm:$0xf0] }
 0x684   : > { %v5482_v31 = vmul.f32 %v11628_v20, %v11628_v20  ;;  %v5483_v42 = vmul.f32 %v11631_v21, %v11631_v21  ;;  %v9575_v41 = vor.u32 %v10414_v39, %v9572_v32  ;;  %v9741_v39 = vld [vmem:[#allocation13 + $0x3f0] sm:$0xf0]  ;;  %v9747_v32 = vld [vmem:[#allocation13 + $0x3e8] sm:$0xf] }
 0x686   : > { %v5484_v28 = vsel %vm3744_vm2, %v5482_v31, 0.0  ;;  %v5485_v46 = vsel %vm3744_vm2, %v5483_v42, 0.0  ;;  %v10420_v31 = vld [vmem:[#allocation13 + $0x2b4] sm:$0xf0]  ;;  %v10418_v42 = vld [vmem:[#allocation13 + $0x2ac] sm:$0xf] }
 0x687   : > { %v5630_v23 = vpop.f32.mrf.mxu0  ;;  %v5486_v36 = vadd.f32 %v5485_v46, %v5484_v28  ;;  %v5572_v6 = vpop.f32.mrf.mxu1  ;;  %v9587_v18 = vor.u32 %v10420_v31, %v9586_v37  ;;  %v9591_v28 = vor.u32 %v10418_v42, %v9588_v4  ;;  %v10413_v46 = vld [vmem:[#allocation13 + $0x284] sm:$0xf] }
 0x688   : > { %v5633_v14 = vpack.c.bf16 %v5630_v23, %v5630_v23  ;;  %v5575_v52 = vpack.c.bf16 %v5572_v6, %v5572_v6  ;;  %v9564_v23 = vld [vmem:[#allocation13 + $0x290] sm:$0xf0]  ;;  %v10412_v6 = vld [vmem:[#allocation13 + $0x274] sm:$0xf0] }
 0x689   : > { %5487 = vadd.xlane.f32.xlu2 %v5486_v36  ;;  %v9570_v36 = vld [vmem:[#allocation13 + $0x288] sm:$0xf]  ;;  %v9555_v3 = vor.u32 %v10412_v6, %v9554_v29  ;;  %v10453_v6 = vld [vmem:[#allocation13 + $0x3c4] sm:$0xf] }
 0x68a   : > { %5835 = vmatmul.bf16.vlgmr.msra.gmra.mxu1 %v5633_v14  ;;  %5848 = vmatmul.bf16.vlgmr.msrb.gmra.mxu2 %v5633_v14 }
 0x68b   : > { %5861 = vmatmul.bf16.vlgmr.msra.gmra.mxu3 %v5633_v14  ;;  %5874 = vmatmul.bf16.vlgmr.msrb.gmra.mxu0 %v5633_v14  ;;  %v9567_v14 = vor.u32 %v10413_v46, %v9564_v23  ;;  %v9739_v23 = vld [vmem:[#allocation13 + $0x3e0] sm:$0xf] }
 0x68c   : > { %6109 = vmatpush.msra.mxu1 %v11602_v50  ;;  %6310 = vmatpush.bf16.msrb.mxu2 %v9611_v11  ;;  %v10416_v11 = vld [vmem:[#allocation13 + $0x294] sm:$0xf0] }
 0x68d   : > { %6323 = vmatpush.bf16.msra.mxu3 %v9615_v27  ;;  %6336 = vmatpush.bf16.msrb.mxu0 %v9619_v25  ;;  %v10402_v27 = vld [vmem:[#allocation13 + $0x22c] sm:$0xf]  ;;  %v10397_v25 = vld [vmem:[#allocation13 + $0x204] sm:$0xf] }
 0x68e   : > { %6110 = vmatpush.msra.mxu1 %v11600_v57  ;;  %v9527_v60 = vor.u32 %v10402_v27, %v9524_v51  ;;  %v10454_v27 = vld [vmem:[#allocation13 + $0x3cc] sm:$0xf] }
 0x690   : > { %6111 = vmatpush.msra.mxu1 %v11597_v26  ;;  %6311 = vmatpush.bf16.msrb.mxu2 %v9595_v13  ;;  %v9571_v13 = vor.u32 %v10416_v11, %v9570_v36  ;;  %v10459_v36 = vld [vmem:[#allocation13 + $0x3ec] sm:$0xf0] }
 0x691   : > { %v9740_v11 = vor.u32 %v10459_v36, %v9739_v23 }
 0x694   : > { %6312 = vmatpush.bf16.msrb.mxu2 %v9579_v19  ;;  %v9548_v19 = vld [vmem:[#allocation13 + $0x270] sm:$0xf0] }
 0x695   : > { %v9551_v24 = vor.u32 %v10409_v43, %v9548_v19  ;;  %v9723_v19 = vld [vmem:[#allocation13 + $0x3c0] sm:$0xf] }
 0x698   : > { %6313 = vmatpush.bf16.msrb.mxu2 %v9563_v40  ;;  %v10410_v40 = vld [vmem:[#allocation13 + $0x26c] sm:$0xf] }
 0x69a   : > { %6047 = vmatmul.bf16.vlgmr.msrb.gmra.mxu1 %v5575_v52  ;;  %6060 = vmatmul.bf16.vlgmr.msra.gmra.mxu2 %v5575_v52 }
 0x69b   : > { %6073 = vmatmul.bf16.vlgmr.msrb.gmra.mxu3 %v5575_v52  ;;  %6086 = vmatmul.bf16.vlgmr.msra.gmra.mxu0 %v5575_v52  ;;  %v9559_v52 = vor.u32 %v10410_v40, %v9556_v15  ;;  %v9725_v40 = vld [vmem:[#allocation13 + $0x3d0] sm:$0xf0] }
 0x69c   : > { %6314 = vmatpush.bf16.msrb.mxu2 %v9547_v61  ;;  %6349 = vmatpush.bf16.msrb.mxu1 %v9623_v17  ;;  %v10405_v61 = vld [vmem:[#allocation13 + $0x244] sm:$0xf]  ;;  %v9500_v17 = vld [vmem:[#allocation13 + $0x210] sm:$0xf0] }
 0x6a0   : > { %6315 = vmatpush.bf16.msrb.mxu2 %v9531_v44  ;;  %v9535_v44 = vor.u32 %v10405_v61, %v9532_v45  ;;  %v9728_v61 = vor.u32 %v10453_v6, %v9725_v40  ;;  %v9731_v45 = vld [vmem:[#allocation13 + $0x3c8] sm:$0xf]  ;;  %v10444_v6 = vld [vmem:[#allocation13 + $0x374] sm:$0xf0]  ;;  %v10442_v40 = vld [vmem:[#allocation13 + $0x36c] sm:$0xf] }
 0x6a4   : > { %6316 = vmatpush.bf16.msrb.mxu2 %v9515_v16  ;;  %v9539_v16 = vor.u32 %v10408_v22, %v9538_v30  ;;  %v10456_v30 = vld [vmem:[#allocation13 + $0x3d4] sm:$0xf0] }
 0x6a8   : > { %6317 = vmatpush.bf16.msrb.mxu2 %v9499_v54  ;;  %v9516_v54 = vld [vmem:[#allocation13 + $0x230] sm:$0xf0] }
 0x6a9   : > { %v9519_v48 = vor.u32 %v10401_v53, %v9516_v54  ;;  %v10458_v53 = vld [vmem:[#allocation13 + $0x3ec] sm:$0xf]  ;;  %v9749_v54 = vld [vmem:[#allocation13 + $0x3f8] sm:$0xf0] }
 0x6aa   : > { %9495 = vmatmul.msk.f32.vlgmr.msra.gmra.mxu1 %vm581_vm0, %v6092_v33  ;;  %v9543_v33 = vor.u32 %v10406_v35, %v9540_v38  ;;  %v9732_v35 = vor.u32 %v10456_v30, %v9731_v45  ;;  %v9752_v59 = vor.u32 %v10458_v53, %v9749_v54  ;;  %v9659_v45 = vld [vmem:[#allocation13 + $0x340] sm:$0xf]  ;;  %v10439_v30 = vld [vmem:[#allocation13 + $0x34c] sm:$0xf0]  ;;  %v10440_v53 = vld [vmem:[#allocation13 + $0x354] sm:$0xf0] }
 0x6ac   : > { %6384 = vmatpush.msra.mxu2 %v11602_v50  ;;  %v9596_v50 = vld [vmem:[#allocation13 + $0x2d0] sm:$0xf0] }
 0x6ad   : > { %v9599_v0 = vor.u32 %v10421_v62, %v9596_v50  ;;  %v9506_v62 = vld [vmem:[#allocation13 + $0x208] sm:$0xf] }
 0x6ae   : > { %6385 = vmatpush.msra.mxu2 %v11600_v57  ;;  %v10422_v57 = vld [vmem:[#allocation13 + $0x2cc] sm:$0xf] }
 0x6af   : > { %v9607_v8 = vor.u32 %v10422_v57, %v9604_v2  ;;  %6324 = vmatpush.bf16.msra.mxu3 %v9599_v0  ;;  %v10400_v0 = vld [vmem:[#allocation13 + $0x214] sm:$0xf0]  ;;  %v9508_v57 = vld [vmem:[#allocation13 + $0x218] sm:$0xf0] }
 0x6b0   : > { %6386 = vmatpush.msra.mxu2 %v11597_v26  ;;  %v9603_v26 = vor.u32 %v10424_v12, %v9602_v63  ;;  %v9503_v63 = vor.u32 %v10397_v25, %v9500_v17  ;;  %v10398_v12 = vld [vmem:[#allocation13 + $0x20c] sm:$0xf]  ;;  %v9707_v25 = vld [vmem:[#allocation13 + $0x3a0] sm:$0xf]  ;;  %v10451_v17 = vld [vmem:[#allocation13 + $0x3ac] sm:$0xf0] }
 0x6b1   : > { %6350 = vmatpush.bf16.msrb.mxu1 %v9607_v8  ;;  %v9511_v8 = vor.u32 %v10398_v12, %v9508_v57  ;;  %v10452_v12 = vld [vmem:[#allocation13 + $0x3b4] sm:$0xf0] }
 0x6b2   : > { %6337 = vmatpush.bf16.msrb.mxu0 %v9603_v26  ;;  %v9507_v26 = vor.u32 %v10400_v0, %v9506_v62  ;;  %v10449_v62 = vld [vmem:[#allocation13 + $0x3a4] sm:$0xf]  ;;  %v9715_v0 = vld [vmem:[#allocation13 + $0x3a8] sm:$0xf] }
 0x6b3   : > { %6325 = vmatpush.bf16.msra.mxu3 %v9583_v34 }
 0x6b5   : > { %6351 = vmatpush.bf16.msrb.mxu1 %v9591_v28 }
 0x6b6   : > { %6338 = vmatpush.bf16.msrb.mxu0 %v9587_v18 }
 0x6b7   : > { %6326 = vmatpush.bf16.msra.mxu3 %v9567_v14  ;;  %v10457_v14 = vld [vmem:[#allocation13 + $0x3e4] sm:$0xf] }
 0x6b9   : > { %6352 = vmatpush.bf16.msrb.mxu1 %v9575_v41  ;;  %v9744_v41 = vor.u32 %v10457_v14, %v9741_v39  ;;  %v10446_v14 = vld [vmem:[#allocation13 + $0x38c] sm:$0xf]  ;;  %v9675_v39 = vld [vmem:[#allocation13 + $0x360] sm:$0xf] }
 0x6ba   : > { %6339 = vmatpush.bf16.msrb.mxu0 %v9571_v13  ;;  %v10460_v13 = vld [vmem:[#allocation13 + $0x3f4] sm:$0xf0] }
 0x6bb   : > { %6327 = vmatpush.bf16.msra.mxu3 %v9551_v24  ;;  %v9748_v43 = vor.u32 %v10460_v13, %v9747_v32  ;;  %v10455_v24 = vld [vmem:[#allocation13 + $0x3cc] sm:$0xf0] }
 0x6bc   : > { %v10443_v13 = vld [vmem:[#allocation13 + $0x36c] sm:$0xf0] }
 0x6bd   : > { %6353 = vmatpush.bf16.msrb.mxu1 %v9559_v52  ;;  %v9724_v52 = vor.u32 %v10455_v24, %v9723_v19  ;;  %v9676_v19 = vor.u32 %v10443_v13, %v9675_v39  ;;  %v9683_v24 = vld [vmem:[#allocation13 + $0x368] sm:$0xf] }
 0x6be   : > { %6340 = vmatpush.bf16.msrb.mxu0 %v9555_v3 }
 0x6bf   : > { %6328 = vmatpush.bf16.msra.mxu3 %v9535_v44 }
 0x6c1   : > { %6354 = vmatpush.bf16.msrb.mxu1 %v9543_v33 }
 0x6c2   : > { %6341 = vmatpush.bf16.msrb.mxu0 %v9539_v16 }
 0x6c3   : > { %6329 = vmatpush.bf16.msra.mxu3 %v9519_v48 }
 0x6c5   : > { %6355 = vmatpush.bf16.msrb.mxu1 %v9527_v60  ;;  %v6367_v60 = vld [vmem:[#allocation11 + $0x6] sm:$0x3] }
 0x6c6   : > { %6342 = vmatpush.bf16.msrb.mxu0 %v9523_v9  ;;  %v9733_v9 = vld [vmem:[#allocation13 + $0x3d8] sm:$0xf0] }
 0x6c7   : > { %6330 = vmatpush.bf16.msra.mxu3 %v9503_v63  ;;  %v9736_v51 = vor.u32 %v10454_v27, %v9733_v9  ;;  %v9709_v63 = vld [vmem:[#allocation13 + $0x3b0] sm:$0xf0]  ;;  %v10435_v9 = vld [vmem:[#allocation13 + $0x32c] sm:$0xf0] }
 0x6c8   : > { %v9712_v57 = vor.u32 %v10449_v62, %v9709_v63  ;;  %v9651_v62 = vld [vmem:[#allocation13 + $0x328] sm:$0xf]  ;;  %v10434_v63 = vld [vmem:[#allocation13 + $0x32c] sm:$0xf] }
 0x6c9   : > { %6356 = vmatpush.bf16.msrb.mxu1 %v9511_v8  ;;  %v9717_v8 = vld [vmem:[#allocation13 + $0x3b8] sm:$0xf0] }
 0x6ca   : > { %6343 = vmatpush.bf16.msrb.mxu0 %v9507_v26  ;;  %v10450_v26 = vld [vmem:[#allocation13 + $0x3ac] sm:$0xf] }
 0x6cb   : > { %6585 = vmatpush.bf16.msrb.mxu3 %v9740_v11  ;;  %v9701_v11 = vld [vmem:[#allocation13 + $0x398] sm:$0xf0] }
 0x6cc   : > { %v9704_v32 = vor.u32 %v10446_v14, %v9701_v11 }
 0x6cd   : > { %6611 = vmatpush.bf16.msra.mxu1 %v9748_v43  ;;  %v9677_v43 = vld [vmem:[#allocation13 + $0x370] sm:$0xf0] }
 0x6ce   : > { %6598 = vmatpush.bf16.msra.mxu0 %v9744_v41  ;;  %v10441_v41 = vld [vmem:[#allocation13 + $0x364] sm:$0xf] }
 0x6cf   : > { %6586 = vmatpush.bf16.msrb.mxu3 %v9724_v52  ;;  %v9685_v52 = vld [vmem:[#allocation13 + $0x378] sm:$0xf0] }
 0x6d1   : > { %6612 = vmatpush.bf16.msra.mxu1 %v9732_v35  ;;  %v9660_v35 = vor.u32 %v10439_v30, %v9659_v45 }
 0x6d2   : > { %6599 = vmatpush.bf16.msra.mxu0 %v9728_v61  ;;  %v9688_v61 = vor.u32 %v10442_v40, %v9685_v52 }
 0x6d6   : > { %6600 = vmatpush.bf16.msra.mxu0 %v9712_v57 }
 0x707   : > { %v5836_v50 = vpop.f32.mrf.mxu1 }
 0x708   : > { %v5875_v2 = vpop.f32.mrf.mxu0 }
 0x70d   : > { %v5849_v5 = vpop.f32.mrf.mxu2 }
 0x70e   : > { %v5862_v56 = vpop.f32.mrf.mxu3 }
 0x70f   : > { %v5838_v37 = vpop.f32.mrf.mxu1 }
 0x710   : > { %v5877_v34 = vpop.f32.mrf.mxu0  ;;  %v10447_v37 = vld [vmem:[#allocation13 + $0x38c] sm:$0xf0] }
 0x711   : > { %v10445_v34 = vld [vmem:[#allocation13 + $0x384] sm:$0xf] }
 0x715   : > { %v5851_v31 = vpop.f32.mrf.mxu2 }
 0x716   : > { %v5864_v42 = vpop.f32.mrf.mxu3 }
 0x717   : > { %v6048_v4 = vpop.f32.mrf.mxu1  ;;  %v9693_v42 = vld [vmem:[#allocation13 + $0x390] sm:$0xf0] }
 0x718   : > { %v11646_v18 = vadd.f32 %v6048_v4, %v5836_v50  ;;  %v6087_v28 = vpop.f32.mrf.mxu0  ;;  %v9708_v50 = vor.u32 %v10451_v17, %v9707_v25  ;;  %v9699_v4 = vld [vmem:[#allocation13 + $0x388] sm:$0xf]  ;;  %v9696_v23 = vor.u32 %v10445_v34, %v9693_v42  ;;  %v10432_v34 = vld [vmem:[#allocation13 + $0x314] sm:$0xf0] }
 0x719   : > { %v11648_v46 = vadd.f32 %v6087_v28, %v5875_v2  ;;  %v9716_v2 = vor.u32 %v10452_v12, %v9715_v0  ;;  %v10448_v28 = vld [vmem:[#allocation13 + $0x394] sm:$0xf0]  ;;  %v9653_v12 = vld [vmem:[#allocation13 + $0x338] sm:$0xf0] }
 0x71a   : > { %6587 = vmatpush.bf16.msrb.mxu3 %v9708_v50  ;;  %v9700_v36 = vor.u32 %v10448_v28, %v9699_v4  ;;  %6601 = vmatpush.bf16.msra.mxu0 %v9696_v23  ;;  %v10436_v50 = vld [vmem:[#allocation13 + $0x334] sm:$0xf0]  ;;  %v9656_v57 = vor.u32 %v10434_v63, %v9653_v12  ;;  %v10430_v4 = vld [vmem:[#allocation13 + $0x30c] sm:$0xf]  ;;  %v9637_v28 = vld [vmem:[#allocation13 + $0x318] sm:$0xf0] }
 0x71b   : > { %6613 = vmatpush.bf16.msra.mxu1 %v9716_v2  ;;  %v9652_v0 = vor.u32 %v10436_v50, %v9651_v62  ;;  %v9627_v2 = vld [vmem:[#allocation13 + $0x300] sm:$0xf]  ;;  %v9640_v23 = vor.u32 %v10430_v4, %v9637_v28 }
 0x71d   : > { %v6061_v29 = vpop.f32.mrf.mxu2 }
 0x71e   : > { %v11650_v15 = vadd.f32 %v6061_v29, %v5849_v5  ;;  %v6074_v3 = vpop.f32.mrf.mxu3  ;;  %v9720_v5 = vor.u32 %v10450_v26, %v9717_v8  ;;  %v9680_v29 = vor.u32 %v10441_v41, %v9677_v43  ;;  %v10431_v26 = vld [vmem:[#allocation13 + $0x30c] sm:$0xf0]  ;;  %v10429_v8 = vld [vmem:[#allocation13 + $0x304] sm:$0xf] }
 0x71f   : > { %v11652_v44 = vadd.f32 %v6074_v3, %v5862_v56  ;;  %v6050_v22 = vpop.f32.mrf.mxu1  ;;  %v9691_v56 = vld [vmem:[#allocation13 + $0x380] sm:$0xf]  ;;  %6614 = vmatpush.bf16.msra.mxu1 %v9700_v36  ;;  %v9684_v3 = vor.u32 %v10444_v6, %v9683_v24 }
 0x720   : > { %v6089_v16 = vpop.f32.mrf.mxu0  ;;  %v9692_v31 = vor.u32 %v10447_v37, %v9691_v56  ;;  %6602 = vmatpush.bf16.msra.mxu0 %v9680_v29  ;;  %v10437_v22 = vld [vmem:[#allocation13 + $0x344] sm:$0xf]  ;;  %v9629_v56 = vld [vmem:[#allocation13 + $0x310] sm:$0xf0]  ;;  %v9635_v37 = vld [vmem:[#allocation13 + $0x308] sm:$0xf] }
 0x721   : > { %v9661_v16 = vld [vmem:[#allocation13 + $0x350] sm:$0xf0]  ;;  %v9636_v42 = vor.u32 %v10432_v34, %v9635_v37 }
 0x722   : > { %6588 = vmatpush.bf16.msrb.mxu3 %v9692_v31  ;;  %v9664_v54 = vor.u32 %v10437_v22, %v9661_v16  ;;  %v9632_v31 = vor.u32 %v10429_v8, %v9629_v56 }
 0x723   : > { %6615 = vmatpush.bf16.msra.mxu1 %v9684_v3 }
 0x724   : > { %6603 = vmatpush.bf16.msra.mxu0 %v9664_v54 }
 0x725   : > { %v6063_v38 = vpop.f32.mrf.mxu2 }
 0x726   : > { %v6076_v33 = vpop.f32.mrf.mxu3  ;;  %6589 = vmatpush.bf16.msrb.mxu3 %v9676_v19  ;;  %v9667_v38 = vld [vmem:[#allocation13 + $0x348] sm:$0xf] }
 0x727   : > { %v6113_v48 = vpop.f32.mrf.mxu1  ;;  %v9668_v33 = vor.u32 %v10440_v53, %v9667_v38 }
 0x728   : > { %v6116_v7 = vpack.c.bf16 %v6113_v48, %v6113_v48  ;;  %v10438_v48 = vld [vmem:[#allocation13 + $0x34c] sm:$0xf] }
 0x729   : > { %6616 = vmatpush.bf16.msra.mxu1 %v9668_v33 }
 0x72a   : > { %6318 = vmatmul.bf16.vlgmr.msrb.gmra.mxu2 %v6116_v7  ;;  %6331 = vmatmul.bf16.vlgmr.msra.gmra.mxu3 %v6116_v7 }
 0x72b   : > { %6344 = vmatmul.bf16.vlgmr.msrb.gmra.mxu0 %v6116_v7  ;;  %6357 = vmatmul.bf16.vlgmr.msrb.gmra.mxu1 %v6116_v7  ;;  %v9669_v7 = vld [vmem:[#allocation13 + $0x358] sm:$0xf0] }
 0x72c   : > { %6624 = vmatpush.bf16.msrb.mxu2 %v9752_v59  ;;  %v9643_v59 = vld [vmem:[#allocation13 + $0x320] sm:$0xf]  ;;  %6590 = vmatpush.bf16.msrb.mxu3 %v9660_v35  ;;  %v9672_v27 = vor.u32 %v10438_v48, %v9669_v7 }
 0x72d   : > { %v9644_v25 = vor.u32 %v10435_v9, %v9643_v59  ;;  %6617 = vmatpush.bf16.msra.mxu1 %v9652_v0 }
 0x730   : > { %6625 = vmatpush.bf16.msrb.mxu2 %v9736_v51  ;;  %v10433_v51 = vld [vmem:[#allocation13 + $0x324] sm:$0xf]  ;;  %6591 = vmatpush.bf16.msrb.mxu3 %v9644_v25 }
 0x731   : > { %6618 = vmatpush.bf16.msra.mxu1 %v9636_v42 }
 0x734   : > { %6626 = vmatpush.bf16.msrb.mxu2 %v9720_v5  ;;  %v9628_v5 = vor.u32 %v10431_v26, %v9627_v2 }
 0x736   : > { %6592 = vmatpush.bf16.msrb.mxu3 %v9628_v5 }
 0x738   : > { %6627 = vmatpush.bf16.msrb.mxu2 %v9704_v32 }
 0x73a   : > { %9624 = vmatmul.msk.f32.vlgmr.msra.gmra.mxu2 %vm581_vm0, %v6367_v60  ;;  %v9645_v60 = vld [vmem:[#allocation13 + $0x330] sm:$0xf0] }
 0x73b   : > { %v9648_v17 = vor.u32 %v10433_v51, %v9645_v60 }
 0x73c   : > { %6628 = vmatpush.bf16.msrb.mxu2 %v9688_v61 }
 0x73d   : > { %6604 = vmatpush.bf16.msra.mxu0 %v9648_v17 }
 0x740   : > { %6629 = vmatpush.bf16.msrb.mxu2 %v9672_v27 }
 0x741   : > { %6605 = vmatpush.bf16.msra.mxu0 %v9632_v31 }
 0x744   : > { %6630 = vmatpush.bf16.msrb.mxu2 %v9656_v57 }
 0x748   : > { %6631 = vmatpush.bf16.msrb.mxu2 %v9640_v23  ;;  %v3757_v23 = vmul.f32 %v11624_v10, %v11622_v1 }
 0x7a8   : > { %v6345_v36 = vpop.f32.mrf.mxu0  ;;  %v6358_v14 = vpop.f32.mrf.mxu1 }
 0x7a9   : > { %v6364_v11 = vadd.f32 %v6345_v36, %v11652_v44  ;;  %v6365_v39 = vadd.f32 %v6358_v14, %v11648_v46 }
 0x7ad   : > { %v6319_v32 = vpop.f32.mrf.mxu2  ;;  %v6332_v13 = vpop.f32.mrf.mxu3 }
 0x7ae   : > { %v6362_v41 = vadd.f32 %v6319_v32, %v11646_v18  ;;  %v6363_v43 = vadd.f32 %v6332_v13, %v11650_v15  ;;  %v3758_v32 = vsub.f32 %v11496_v55, %v3757_v23  ;;  %v3759_v13 = vsub.f32 %v11499_v58, %v3757_v23 }
 0x7b0   : > { %v6347_v19 = vpop.f32.mrf.mxu0  ;;  %v6360_v29 = vpop.f32.mrf.mxu1 }
 0x7b5   : > { %v6321_v24 = vpop.f32.mrf.mxu2  ;;  %v6334_v6 = vpop.f32.mrf.mxu3 }
 0x7b6   : > { %v3760_v24 = vmul.f32 %v3758_v32, %v3758_v32  ;;  %v3761_v6 = vmul.f32 %v3759_v13, %v3759_v13 }
 0x7b8   : > { %v3762_v1 = vsel %vm3744_vm2, %v3760_v24, 0.0 }
 0x7bd   : > { %v6388_v40 = vpop.f32.mrf.mxu2 }
 0x7be   : > { %v6391_v3 = vpack.c.bf16 %v6388_v40, %v6388_v40  ;;  %v3763_v40 = vsel %vm3744_vm2, %v3761_v6, 0.0 }
 0x7c0   : > { %6593 = vmatmul.bf16.vlgmr.msrb.gmra.mxu3 %v6391_v3  ;;  %6606 = vmatmul.bf16.vlgmr.msra.gmra.mxu0 %v6391_v3 }
 0x7c1   : > { %6619 = vmatmul.bf16.vlgmr.msra.gmra.mxu1 %v6391_v3  ;;  %6632 = vmatmul.bf16.vlgmr.msrb.gmra.mxu2 %v6391_v3  ;;  %v3764_v3 = vadd.f32 %v3763_v40, %v3762_v1 }
 0x83d   : > { %v6607_v52 = vpop.f32.mrf.mxu0 }
 0x83e   : > { %v6638_v44 = vadd.f32 %v6607_v52, %v6363_v43  ;;  %v6620_v46 = vpop.f32.mrf.mxu1 }
 0x83f   : > { %v6639_v61 = vadd.f32 %v6620_v46, %v6364_v11 }
 0x840   : > { %v6649_v45 = vsel %vm6641_vm5, %v6638_v44, 0.0 }
 0x841   : > { %v6650_v18 = vrot.slane %v6649_v45, 4  ;;  %v6656_v15 = vsel %vm6641_vm5, %v6639_v61, 0.0 }
 0x842   : > { %v6657_v30 = vrot.slane %v6656_v15, 4 }
 0x843   : > { %v6651_v22 = vadd.f32 %v6650_v18, %v6649_v45  ;;  %v6594_v35 = vpop.f32.mrf.mxu3 }
 0x844   : > { %v6658_v16 = vadd.f32 %v6657_v30, %v6656_v15  ;;  %v6637_v38 = vadd.f32 %v6594_v35, %v6362_v41  ;;  %v6633_v53 = vpop.f32.mrf.mxu2  ;;  %v5488_v30 = vpop.xlane.xlu2 %5487 }
 0x845   : > { %v6640_v54 = vadd.f32 %v6633_v53, %v6365_v39  ;;  %v6609_v33 = vpop.f32.mrf.mxu0  ;;  %v6652_v48 = vrot.slane %v6651_v22, 2  ;;  %v5489_v35 = vmul.f32 %v5488_v30, %v11624_v10 }
 0x846   : > { %v6659_v7 = vrot.slane %v6658_v16, 2  ;;  %v6642_v59 = vsel %vm6641_vm5, %v6637_v38, 0.0  ;;  %v6622_v27 = vpop.f32.mrf.mxu1 }
 0x847   : > { %v6643_v9 = vrot.slane %v6642_v59, 4  ;;  %v6663_v51 = vsel %vm6641_vm5, %v6640_v54, 0.0  ;;  %v6653_v62 = vadd.f32 %v6652_v48, %v6651_v22 }
 0x848   : > { %v6664_v60 = vrot.slane %v6663_v51, 4  ;;  %v6660_v25 = vadd.f32 %v6659_v7, %v6658_v16  ;;  %v5490_v16 = vadd.f32 1e-06, %v5489_v35 }
 0x849   : > { %v6644_v17 = vadd.f32 %v6643_v9, %v6642_v59  ;;  %v6654_v8 = vrot.slane %v6653_v62, 1 }
 0x84a   : > { %v6665_v50 = vadd.f32 %v6664_v60, %v6663_v51  ;;  %v6661_v2 = vrot.slane %v6660_v25, 1  ;;  %vm5497_vm10 = vweird.f32 %v5490_v16 }
 0x84b   : > { %v6645_v63 = vrot.slane %v6644_v17, 2  ;;  %v6596_v0 = vpop.f32.mrf.mxu3  ;;  %v6655_v42 = vadd.f32 %v6654_v8, %v6653_v62 }
 0x84c   : > { %v6666_v12 = vrot.slane %v6665_v50, 2  ;;  %v6635_v57 = vpop.f32.mrf.mxu2  ;;  %v6662_v31 = vadd.f32 %v6661_v2, %v6660_v25  ;;  %v3791_v2 = vld [vmem:[#allocation17] sm:$0x3] }
 0x84d   : > { %v6646_v26 = vadd.f32 %v6645_v63, %v6644_v17  ;;  %v3781_v63 = vld [vmem:[#allocation16] sm:$0x3] }
 0x84e   : > { %v6667_v5 = vadd.f32 %v6666_v12, %v6665_v50  ;;  %v3783_v8 = vperm.slane %v3781_v63, 0 }
 0x84f   : > { %v6647_v56 = vrot.slane %v6646_v26, 1 }
 0x850   : > { %v6668_v37 = vrot.slane %v6667_v5, 1 }
 0x851   : > { %v6648_v34 = vadd.f32 %v6647_v56, %v6646_v26 }
 0x852   : > { %v6669_v4 = vadd.f32 %v6668_v37, %v6667_v5  ;;  %v3784_v5 = vperm.slane %v3781_v63, 1  ;;  %v3793_v37 = vperm.slane %v3791_v2, 0 }
 0x853   : > { %v6670_v28 = vadd.f32 %v6662_v31, %v6648_v34  ;;  %v3794_v34 = vperm.slane %v3791_v2, 1 }
 0x854   : > { %v6671_v36 = vadd.f32 %v6669_v4, %v6655_v42 }
 0x855   : > { %v6672_v14 = vmul.f32 0.25, %v6670_v28 }
 0x856   : > { %v6673_v11 = vmul.f32 0.25, %v6671_v36 }
 0x857   : > { %v6674_v39 = vadd.f32 %v6672_v14, %v11491_v47 }
 0x858   : > { %v6675_v41 = vadd.f32 %v6673_v11, %v11493_v49 }
 0x859   : > { %v6676_v43 = vsel %vm3744_vm2, %v6674_v39, 0.0 }
 0x85a   : > { %v6677_v19 = vsel %vm3744_vm2, %v6675_v41, 0.0 }
 0x85b   : > { %v6678_v29 = vadd.f32 %v6677_v19, %v6676_v43 }
 0x85d   : > { %6679 = vadd.xlane.f32.xlu1 %v6678_v29 }
 0x865   : > { %3765 = vadd.xlane.f32.xlu1 %v3764_v3 }
 0x8d0   : > { %v6680_v47 = vpop.xlane.xlu1 %6679 }
 0x8d1   : > { %v6681_v55 = vmul.f32 %v6680_v47, %v11624_v10 }
 0x8d3   : > { %v11674_v58 = vsub.f32 %v6674_v39, %v6681_v55  ;;  %v11676_v49 = vsub.f32 %v6675_v41, %v6681_v55 }
 0x8d5   : > { %v6684_v52 = vmul.f32 %v11674_v58, %v11674_v58  ;;  %v6685_v44 = vmul.f32 %v11676_v49, %v11676_v49 }
 0x8d7   : > { %v6686_v46 = vsel %vm3744_vm2, %v6684_v52, 0.0  ;;  %v6687_v61 = vsel %vm3744_vm2, %v6685_v44, 0.0  ;;  %v6718_v44 = vlaneseq }
 0x8d8   : > { %v6688_v45 = vadd.f32 %v6687_v61, %v6686_v46  ;;  %v3766_v18 = vpop.xlane.xlu1 %3765 }
 0x8d9   : > { %v3767_v15 = vmul.f32 %v3766_v18, %v11624_v10  ;;  %vm6720_vm15 = vcmp.lt.s32.totalorder %v6718_v44, 256 }
 0x8da   : > { %6689 = vadd.xlane.f32.xlu2 %v6688_v45 }
 0x8db   : > { %v3768_v22 = vadd.f32 1e-06, %v3767_v15 }
 0x8dd   : > { %10614 = vrsqrt.f32 %v3768_v22  ;;  %vm3775_vm7 = vweird.f32 %v3768_v22 }
 0x8de   : > { %10616 = vrsqrt.f32 %v5490_v16 }
 0x8e3   : > { %v10615_v38 = vpop.eup %10614 }
 0x8e4   : > { %v3770_v53 = vmul.f32 %v10615_v38, %v3768_v22  ;;  %v10617_v54 = vpop.eup %10616  ;;  %vm3776_vm6 = vweird.f32 %v10615_v38 }
 0x8e5   : > { %v5492_v48 = vmul.f32 %v10617_v54, %v5490_v16  ;;  %vm3777_vm8 = vmor %vm3775_vm7, %vm3776_vm6  ;;  %vm5498_vm9 = vweird.f32 %v10617_v54 }
 0x8e6   : > { %v3771_v33 = vmul.f32 %v10615_v38, %v3770_v53  ;;  %vm5499_vm11 = vmor %vm5497_vm10, %vm5498_vm9 }
 0x8e7   : > { %v5493_v59 = vmul.f32 %v10617_v54, %v5492_v48 }
 0x8e8   : > { %v3772_v7 = vmul.f32 0.5, %v3771_v33 }
 0x8e9   : > { %v5494_v9 = vmul.f32 0.5, %v5493_v59 }
 0x8ea   : > { %v3773_v27 = vsub.f32 1.5, %v3772_v7 }
 0x8eb   : > { %v5495_v62 = vsub.f32 1.5, %v5494_v9 }
 0x8ec   : > { %v3774_v25 = vmul.f32 %v10615_v38, %v3773_v27 }
 0x8ed   : > { %v5496_v0 = vmul.f32 %v10617_v54, %v5495_v62 }
 0x8ee   : > { %v3778_v50 = vsel %vm3777_vm8, %v10615_v38, %v3774_v25 }
 0x8ef   : > { %v3779_v12 = vmul.f32 %v3778_v50, %v3758_v32  ;;  %v3780_v57 = vmul.f32 %v3778_v50, %v3759_v13 }
 0x8f1   : > { %v3787_v31 = vmul.f32 %v3783_v8, %v3779_v12  ;;  %v3788_v42 = vmul.f32 %v3784_v5, %v3780_v57 }
 0x8f3   : > { %v3797_v14 = vadd.f32 %v3793_v37, %v3787_v31  ;;  %v3798_v11 = vadd.f32 %v3794_v34, %v3788_v42 }
 0x94d   : > { %v6690_v51 = vpop.xlane.xlu2 %6689 }
 0x94e   : > { %v6691_v60 = vmul.f32 %v6690_v51, %v11624_v10  ;;  %v5500_v10 = vsel %vm5499_vm11, %v10617_v54, %v5496_v0 }
 0x94f   : > { %v5501_v28 = vmul.f32 %v5500_v10, %v11628_v20  ;;  %v5502_v23 = vmul.f32 %v5500_v10, %v11631_v21 }
 0x950   : > { %v6692_v17 = vadd.f32 1e-06, %v6691_v60 }
 0x951   : > { %v5503_v32 = vmul.f32 %v5501_v28, %v3783_v8  ;;  %v5504_v13 = vmul.f32 %v5502_v23, %v3784_v5 }
 0x952   : > { %10618 = vrsqrt.f32 %v6692_v17  ;;  %vm6699_vm13 = vweird.f32 %v6692_v17 }
 0x953   : > { %v5505_v43 = vadd.f32 %v5503_v32, %v3797_v14  ;;  %v5506_v19 = vadd.f32 %v5504_v13, %v3798_v11 }
 0x955   : > { %v5507_v21 = vadd.f32 %v5505_v43, %v3793_v37  ;;  %v5508_v6 = vadd.f32 %v5506_v19, %v3794_v34 }
 0x958   : > { %v10619_v26 = vpop.eup %10618 }
 0x959   : > { %v6694_v56 = vmul.f32 %v10619_v26, %v6692_v17  ;;  %vm6700_vm12 = vweird.f32 %v10619_v26 }
 0x95a   : > { %vm6701_vm14 = vmor %vm6699_vm13, %vm6700_vm12 }
 0x95b   : > { %v6695_v4 = vmul.f32 %v10619_v26, %v6694_v56 }
 0x95d   : > { %v6696_v36 = vmul.f32 0.5, %v6695_v4 }
 0x95f   : > { %v6697_v39 = vsub.f32 1.5, %v6696_v36 }
 0x961   : > { %v6698_v41 = vmul.f32 %v10619_v26, %v6697_v39 }
 0x963   : > { %v6702_v29 = vsel %vm6701_vm14, %v10619_v26, %v6698_v41 }
 0x964   : > { %v6703_v24 = vmul.f32 %v6702_v29, %v11674_v58  ;;  %v6704_v20 = vmul.f32 %v6702_v29, %v11676_v49 }
 0x966   : > { %v6705_v1 = vmul.f32 %v6703_v24, %v3783_v8  ;;  %v6706_v40 = vmul.f32 %v6704_v20, %v3784_v5 }
 0x968   : > { %v6707_v3 = vadd.f32 %v6705_v1, %v5507_v21  ;;  %v6708_v47 = vadd.f32 %v6706_v40, %v5508_v6 }
 0x96a   : > { %v6709_v55 = vadd.f32 %v6707_v3, %v3793_v37  ;;  %v6710_v52 = vadd.f32 %v6708_v47, %v3794_v34 }
 0x96c   : > { %v6712_v46 = vmul.f32 0.33333334, %v6710_v52  ;;  %v6711_v58 = vmul.f32 0.33333334, %v6709_v55 }
 0x96e   : > { %v6715_v49 = vrot.slane %v6712_v46, 7 }
 0x970   : > { %v6716_v61 = vsel %vm3744_vm2, %v6711_v58, %v6715_v49 }
 0x971   : > { %6722 = vst.msk [vmem:[%s576_s14] sm:$0x3] %vm6720_vm15, %v6716_v61 }
 0x972   : > { %10956 = shalt.err (!%p10953_p9)
}
 0x973   : > { %10502 = dma.vmem_to_hbm [thread:$0]  (%p11214_p0), %s6737_s5, 32, %s6739_s15, %s6724_s28  }
 0x974 PF: > { %s6750_s3 = sand.u32 1, %s11003_s21   ;;  %p11771_p10 = scmp.ge.s32.totalorder %s11015_s24, 2 }
 0x975   : > { %s6751_s16 = scalar_lea.sflag [#allocation4], %s6750_s3 }
 0x976   : > { %p10537_p11 = pnand %p11771_p10, %p11220_p6 }
 0x978   : > { %p10538_p12 = pneg %p10537_p11 }
 0x97a   : > { %10998 = dma.done.wait (%p10538_p12), %s6751_s16, 32  }
 0x97b   : > { %11000 = vsyncadd (%p10538_p12), %s6751_s16, 4294967264  ;;  %p30_p2 = scmp.ge.s32.totalorder %s11194_s13, 4   ;;  %s11772_s21 = smov %s11007_s22 }
 0x97c   : > { %s11773_s22 = smov %s11011_s23  ;;  %s11774_s23 = smov %s11206_s20 }
 0x97d   : > { %s11775_s24 = smov %s11194_s13  ;;  %32 = sbr.rel (!%p30_p2) target bundleno = 19 (0x13), region = 167 }
 0x982   :  { %6757 = vsyncpa [#allocation3], 1 }
 0x983   :  { %6759 = vsyncpa [#allocation3 + $0x1], 1 }
 0x984   :  { %6760 = vsyncpa [#allocation6], 1 }
 0x985   :  { %6761 = vsyncpa [#allocation9], 1 }
 0x986   :  { %6762 = vsyncpa [#allocation12], 1 }
 0x987   :  { %6763 = vsyncpa [#allocation15], 1 }
 0x988   :  { %6764 = vsyncpa [#allocation18], 1 }
 0x989   :  { %6765 = vsyncpa [#allocation4], 1 }
 0x98a   :  { %6767 = vsyncpa [#allocation4 + $0x1], 1 }

</bundles_post_ra>
